<compile_context>
chip_gen: v6e
topology: v6e:2x2x1
jax: 0.10.0
libtpu: 0.0.40
codegen_flags: <defaults>
</compile_context>

<pallas_src>
import jax
import jax.numpy as jnp
from jax.experimental import pallas as pl
from jax.experimental.pallas import tpu as pltpu


def _pick_batch_block(batch, max_bb=8):
    """Largest block size <= max_bb dividing batch that still leaves >=2 grid steps."""
    for bb in (max_bb, 4, 2, 1):
        if bb <= max_bb and batch % bb == 0 and batch // bb >= 2:
            return bb
    return 1


def face_keypoint_forward_pallas(x_nhwc, params):
    """x_nhwc: (B, H, W, 3) f32 -> (B, 18) f32.  Whole network in one pallas_call."""
    B, H, W, Cin = x_nhwc.shape
    f32, bf16 = jnp.float32, jnp.bfloat16

    # ---- static layer geometry -------------------------------------------------------
    KH1 = KW1 = 5
    KH2 = KW2 = 3
    KH3 = KW3 = 3
    C1 = params["w1"].shape[-1]
    C2 = params["w2"].shape[-1]
    C3 = params["w3"].shape[-1]
    NOUT = params["wfc"].shape[-1]

    HO1, WO1 = H - KH1 + 1, W - KW1 + 1          # conv1 out
    assert HO1 % 2 == 0 and WO1 % 2 == 0, "conv1 output must be even for the 2x2 pool"
    P1H, P1W = HO1 // 2, WO1 // 2                # pool1 out
    assert P1W % 2 == 0, "pool1 width must be even (pool2 parity trick)"
    assert P1H > KH2 and P1W > KW2

    HO2, WO2 = P1H - KH2 + 1, P1W - KW2 + 1      # conv2 out
    assert HO2 % 2 == 0, "conv2 output height must be even for the 2x2 pool"
    P2H, P2W = HO2 // 2, WO2 // 2                # pool2 out (valid)
    P2Wp = P1W // 2                              # pool2 stored width (incl. garbage col)
    assert P2H > KH3 and P2W >= KW3

    HO3, WO3 = P2H - KH3 + 1, P2W - KW3 + 1      # conv3 out
    P3H, P3W = HO3 // 2, WO3 // 2                # pool3 out
    assert P3H >= 1 and P3W >= 1

    K1 = KH1 * KW1 * Cin                          # conv1 im2col contraction depth (75)
    R1 = HO1 * WO1                                # conv1 rows per image
    NP1 = P1H * P1W                               # pool1 rows per image
    R2 = HO2 * P1W                                # conv2 full-width rows per image
    NP2 = P2H * P2Wp                              # pool2 rows per image (padded width)
    R3 = HO3 * P2Wp                               # conv3 full-width rows per image
    L3 = NP2 + KW3 - 1                            # p2 scratch rows per image (+ pad)

    BB = _pick_batch_block(B)
    nblk = B // BB

    # ---- glue: im2col for conv1 (bf16), rows ordered (hpar, wpar, ph, pw) per image ---
    # so the 2x2 max pool becomes a max over 4 contiguous "phase" planes in-kernel.
    cols = [x_nhwc[:, i:i + HO1, j:j + WO1, :] for i in range(KH1) for j in range(KW1)]
    xc = jnp.concatenate(cols, axis=-1)                       # (B, HO1, WO1, K1)
    xc = xc.reshape(B, P1H, 2, P1W, 2, K1)                    # [b, ph, hp, pw, wp, k]
    xc = jnp.transpose(xc, (0, 2, 4, 1, 3, 5))                # [b, hp, wp, ph, pw, k]
    x_cols = xc.reshape(B, R1, K1).astype(bf16)

    w1r = params["w1"].reshape(K1, C1).astype(bf16)            # (75, 32)
    w2f = params["w2"].reshape(KH2, KW2 * C1, C2).astype(bf16)  # (3, 96, 64)
    w3f = params["w3"].reshape(KH3, KW3 * C2, C3).astype(bf16)  # (3, 192, 128)
    wfc = params["wfc"].astype(bf16)                            # (128, 18)
    b1 = params["b1"].reshape(1, C1).astype(f32)
    b2 = params["b2"].reshape(1, C2).astype(f32)
    b3 = params["b3"].reshape(1, C3).astype(f32)
    bfc = params["bfc"].reshape(1, NOUT).astype(f32)

    # ---- fused kernel ----------------------------------------------------------------
    def kernel(x_ref, w1_ref, b1_ref, w2_ref, b2_ref, w3_ref, b3_ref,
               wfc_ref, bfc_ref, o_ref, p1_ref, c2h_ref, p2_ref, feats_ref):
        # conv1: one (BB*R1, K1) x (K1, C1) bf16 matmul with f32 accumulation.
        x2d = x_ref[...].reshape(BB * R1, K1)
        a1 = jnp.dot(x2d, w1_ref[...], preferred_element_type=f32)      # (BB*R1, C1)
        # pool1: max over the 4 phase planes (row order built in glue).  Bias + relu
        # commute with max, so apply them on the 4x smaller pooled result.
        p1v = jnp.max(a1.reshape(BB, 4, NP1, C1), axis=1).reshape(BB * NP1, C1)
        p1v = jnp.maximum(p1v + b1_ref[...], 0.0)
        p1_ref[pl.ds(0, BB * NP1), :] = p1v.astype(bf16)
        p1_ref[pl.ds(BB * NP1, KW2 - 1), :] = jnp.zeros((KW2 - 1, C1), bf16)

        # per-image conv2 / pool2 / conv3 / pool3 / GAP (unrolled over the block)
        for b in range(BB):
            base = b * NP1
            # conv2: KH2 tap matmuls with the kw window fattened into K (= KW2*C1)
            acc2 = None
            for i in range(KH2):
                fat = jnp.concatenate(
                    [p1_ref[pl.ds(base + i * P1W + j, R2), :] for j in range(KW2)],
                    axis=-1)                                             # (R2, KW2*C1)
                d = jnp.dot(fat, w2_ref[i], preferred_element_type=f32)
                acc2 = d if acc2 is None else acc2 + d                   # (R2, C2) f32

            # pool2: h-pair max (contiguous halves), then w-pair max (two stride-2
            # whole-slab reads through a small VMEM bounce), bias + relu after max.
            v = acc2.reshape(P2H, 2 * P1W, C2)
            c2h_ref[...] = jnp.maximum(v[:, :P1W, :], v[:, P1W:, :]).reshape(P2H * P1W, C2)
            wmax = jnp.maximum(c2h_ref[pl.ds(0, NP2, stride=2), :],
                               c2h_ref[pl.ds(1, NP2, stride=2), :])      # (NP2, C2)
            p2v = jnp.maximum(wmax + b2_ref[...], 0.0)
            p2_ref[b, pl.ds(0, NP2), :] = p2v.astype(bf16)
            p2_ref[b, pl.ds(NP2, KW3 - 1), :] = jnp.zeros((KW3 - 1, C2), bf16)

            # conv3: KH3 tap matmuls, K = KW3*C2
            acc3 = None
            for i in range(KH3):
                fat = jnp.concatenate(
                    [p2_ref[b, pl.ds(i * P2Wp + j, R3), :] for j in range(KW3)],
                    axis=-1)                                             # (R3, KW3*C2)
                d = jnp.dot(fat, w3_ref[i], preferred_element_type=f32)
                acc3 = d if acc3 is None else acc3 + d                   # (R3, C3) f32

            # pool3 (2x2 max) + bias + relu + global average pool (tiny epilogue)
            a3 = acc3.reshape(HO3, P2Wp, C3)
            feat = jnp.zeros((1, C3), f32)
            for ph in range(P3H):
                hm = jnp.maximum(a3[2 * ph], a3[2 * ph + 1])             # (P2Wp, C3)
                for pw in range(P3W):
                    m = jnp.maximum(hm[2 * pw:2 * pw + 1, :],
                                    hm[2 * pw + 1:2 * pw + 2, :])        # (1, C3)
                    feat = feat + jnp.maximum(m + b3_ref[...], 0.0)
            feats_ref[pl.ds(b, 1), :] = feat * (1.0 / (P3H * P3W))

        # fc over the whole batch block
        o_ref[0] = (jnp.dot(feats_ref[...].astype(bf16), wfc_ref[...],
                            preferred_element_type=f32) + bfc_ref[...])

    out = pl.pallas_call(
        kernel,
        out_shape=jax.ShapeDtypeStruct((nblk, BB, NOUT), f32),
        grid_spec=pltpu.PrefetchScalarGridSpec(
            num_scalar_prefetch=0,
            grid=(nblk,),
            in_specs=[
                pl.BlockSpec((BB, R1, K1), lambda g: (g, 0, 0)),
                pl.BlockSpec((K1, C1), lambda g: (0, 0)),
                pl.BlockSpec((1, C1), lambda g: (0, 0)),
                pl.BlockSpec((KH2, KW2 * C1, C2), lambda g: (0, 0, 0)),
                pl.BlockSpec((1, C2), lambda g: (0, 0)),
                pl.BlockSpec((KH3, KW3 * C2, C3), lambda g: (0, 0, 0)),
                pl.BlockSpec((1, C3), lambda g: (0, 0)),
                pl.BlockSpec((C3, NOUT), lambda g: (0, 0)),
                pl.BlockSpec((1, NOUT), lambda g: (0, 0)),
            ],
            out_specs=pl.BlockSpec((1, BB, NOUT), lambda g: (g, 0, 0)),
            scratch_shapes=[
                pltpu.VMEM((BB * NP1 + KW2 - 1, C1), bf16),   # p1: pooled conv1 (+pad)
                pltpu.VMEM((P2H * P1W, C2), f32),             # pool2 h-max bounce buffer
                pltpu.VMEM((BB, L3, C2), bf16),               # p2: pooled conv2 (+pad)
                pltpu.VMEM((BB, C3), f32),                    # per-image GAP features
            ],
        ),
        compiler_params=pltpu.CompilerParams(
            dimension_semantics=("parallel",),
            vmem_limit_bytes=32 * 1024 * 1024,
        ),
        # NOTE: if profiling shows the x-input DMA exposed, add
        # pipeline_mode=pl.Buffered(3) to the x BlockSpec.
    )(x_cols, w1r, b1, w2f, b2, w3f, b3, wfc, bfc)

    return out.reshape(B, NOUT)


face_keypoint_forward = jax.jit(face_keypoint_forward_pallas)


# ----------------------------- reference & params --------------------------------------


def reference_forward(x_nhwc, params):
    dn = ("NHWC", "HWIO", "NHWC")

    def conv(x, w, b):
        return jax.nn.relu(
            jax.lax.conv_general_dilated(x, w, (1, 1), "VALID",
                                         dimension_numbers=dn) + b)

    def pool(x):
        return jax.lax.reduce_window(x, -jnp.inf, jax.lax.max,
                                     (1, 2, 2, 1), (1, 2, 2, 1), "VALID")

    y = pool(conv(x_nhwc, params["w1"], params["b1"]))
    y = pool(conv(y, params["w2"], params["b2"]))
    y = pool(conv(y, params["w3"], params["b3"]))
    feat = jnp.mean(y, axis=(1, 2))
    return feat @ params["wfc"] + params["bfc"]


def init_params(key):
    ks = jax.random.split(key, 8)

    def winit(k, shape, fan_in):
        return (jax.random.normal(k, shape, jnp.float32) / jnp.sqrt(fan_in)).astype(jnp.float32)

    return {
        "w1": winit(ks[0], (5, 5, 3, 32), 5 * 5 * 3),
        "b1": 0.01 * jax.random.normal(ks[1], (32,), jnp.float32),
        "w2": winit(ks[2], (3, 3, 32, 64), 3 * 3 * 32),
        "b2": 0.01 * jax.random.normal(ks[3], (64,), jnp.float32),
        "w3": winit(ks[4], (3, 3, 64, 128), 3 * 3 * 64),
        "b3": 0.01 * jax.random.normal(ks[5], (128,), jnp.float32),
        "wfc": winit(ks[6], (128, 18), 128),
        "bfc": 0.01 * jax.random.normal(ks[7], (18,), jnp.float32),
    }


if __name__ == "__main__":
    key = jax.random.PRNGKey(0)
    kx, kp = jax.random.split(key)

    # PyTorch-style NCHW input; 36x36 spatial (36 -> 32 -> 16 -> 14 -> 7 -> 5 -> 2).
    # B=4 -> batch block BB=2, grid=(2,) (two even steps for v7x's 2 TensorCores).
    B, C, H, W = 4, 3, 36, 36
    x_nchw = jax.random.normal(kx, (B, C, H, W), jnp.float32)
    x_nhwc = jnp.transpose(x_nchw, (0, 2, 3, 1))  # NHWC layout for the kernel

    params = init_params(kp)

    out = face_keypoint_forward(x_nhwc, params)
    out = jax.block_until_ready(out)
    assert out.shape == (B, 18), out.shape

    ref = reference_forward(x_nhwc, params)
    err = float(jnp.max(jnp.abs(out - ref)))
    assert jnp.allclose(out, ref, rtol=2e-2, atol=2e-2), err  # bf16 operands, f32 accum

    print("KERNEL_OK")
</pallas_src>

<mosaic_0001>
module attributes {stable_mosaic.version = 11 : i64} {
  func.func @kernel(%arg0: i32, %arg1: memref<2x1024x75xbf16, #tpu.memory_space<vmem>>, %arg2: memref<75x32xbf16, #tpu.memory_space<vmem>>, %arg3: memref<1x32xf32, #tpu.memory_space<vmem>>, %arg4: memref<3x96x64xbf16, #tpu.memory_space<vmem>>, %arg5: memref<1x64xf32, #tpu.memory_space<vmem>>, %arg6: memref<3x192x128xbf16, #tpu.memory_space<vmem>>, %arg7: memref<1x128xf32, #tpu.memory_space<vmem>>, %arg8: memref<128x18xbf16, #tpu.memory_space<vmem>>, %arg9: memref<1x18xf32, #tpu.memory_space<vmem>>, %arg10: memref<1x2x18xf32, #tpu.memory_space<vmem>>, %arg11: memref<514x32xbf16, #tpu.memory_space<vmem>>, %arg12: memref<112x64xf32, #tpu.memory_space<vmem>>, %arg13: memref<2x58x64xbf16, #tpu.memory_space<vmem>>, %arg14: memref<2x128xf32, #tpu.memory_space<vmem>>) attributes {dimension_semantics = [#tpu.dimension_semantics<parallel>], iteration_bounds = array<i64: 2>, scalar_prefetch = 0 : i64, scratch_operands = 4 : i64, tpu.core_type = #tpu.core_type<tc>, window_params = [{transform_indices = @transform_0, window_bounds = array<i64: 2, 1024, 75>}, {pipeline_mode = #tpu.pipeline_mode<synchronous>, transform_indices = @transform_1, window_bounds = array<i64: 75, 32>}, {pipeline_mode = #tpu.pipeline_mode<synchronous>, transform_indices = @transform_2, window_bounds = array<i64: 1, 32>}, {pipeline_mode = #tpu.pipeline_mode<synchronous>, transform_indices = @transform_3, window_bounds = array<i64: 3, 96, 64>}, {pipeline_mode = #tpu.pipeline_mode<synchronous>, transform_indices = @transform_4, window_bounds = array<i64: 1, 64>}, {pipeline_mode = #tpu.pipeline_mode<synchronous>, transform_indices = @transform_5, window_bounds = array<i64: 3, 192, 128>}, {pipeline_mode = #tpu.pipeline_mode<synchronous>, transform_indices = @transform_6, window_bounds = array<i64: 1, 128>}, {pipeline_mode = #tpu.pipeline_mode<synchronous>, transform_indices = @transform_7, window_bounds = array<i64: 128, 18>}, {pipeline_mode = #tpu.pipeline_mode<synchronous>, transform_indices = @transform_8, window_bounds = array<i64: 1, 18>}, {transform_indices = @transform_9, window_bounds = array<i64: 1, 2, 18>}]} {
    %c0 = arith.constant 0 : index
    %c0_0 = arith.constant 0 : index
    %c0_1 = arith.constant 0 : index
    %0 = vector.load %arg1[%c0, %c0_0, %c0_1] : memref<2x1024x75xbf16, #tpu.memory_space<vmem>>, vector<2x1024x75xbf16>
    %1 = vector.shape_cast %0 : vector<2x1024x75xbf16> to vector<2048x75xbf16>
    %c0_2 = arith.constant 0 : index
    %c0_3 = arith.constant 0 : index
    %2 = vector.load %arg2[%c0_2, %c0_3] : memref<75x32xbf16, #tpu.memory_space<vmem>>, vector<75x32xbf16>
    %cst = arith.constant dense<0.000000e+00> : vector<2048x32xf32>
    %3 = tpu.matmul %1, %2, %cst {dimension_numbers = #tpu.dot_dimension_numbers<[1], [0], [0], [1], [0, 0, 1, 1], [], []>} : vector<2048x75xbf16>, vector<75x32xbf16>, vector<2048x32xf32> -> vector<2048x32xf32>
    %4 = vector.shape_cast %3 : vector<2048x32xf32> to vector<2x4x256x32xf32>
    %cst_4 = arith.constant dense<0xFF800000> : vector<2x256x32xf32>
    %5 = vector.multi_reduction <maximumf>, %4, %cst_4 [1] : vector<2x4x256x32xf32> to vector<2x256x32xf32>
    %6 = vector.shape_cast %5 : vector<2x256x32xf32> to vector<512x32xf32>
    %c0_5 = arith.constant 0 : index
    %c0_6 = arith.constant 0 : index
    %7 = vector.load %arg3[%c0_5, %c0_6] : memref<1x32xf32, #tpu.memory_space<vmem>>, vector<1x32xf32>
    %8 = vector.broadcast %7 : vector<1x32xf32> to vector<512x32xf32>
    %9 = arith.addf %6, %8 : vector<512x32xf32>
    %cst_7 = arith.constant 0.000000e+00 : f32
    %10 = vector.broadcast %cst_7 : f32 to vector<512x32xf32>
    %11 = arith.maximumf %9, %10 : vector<512x32xf32>
    %12 = arith.truncf %11 : vector<512x32xf32> to vector<512x32xbf16>
    %c0_8 = arith.constant 0 : index
    %c0_9 = arith.constant 0 : index
    %13 = vector.load %arg11[%c0_8, %c0_9] : memref<514x32xbf16, #tpu.memory_space<vmem>>, vector<512x32xbf16>
    tpu.vector_store %arg11[%c0_8, %c0_9], %12 {strides = array<i32>} : memref<514x32xbf16, #tpu.memory_space<vmem>>, vector<512x32xbf16>,
    %cst_10 = arith.constant 0.000000e+00 : bf16
    %14 = vector.broadcast %cst_10 : bf16 to vector<2x32xbf16>
    %c512 = arith.constant 512 : index
    %c0_11 = arith.constant 0 : index
    %15 = vector.load %arg11[%c512, %c0_11] : memref<514x32xbf16, #tpu.memory_space<vmem>>, vector<2x32xbf16>
    tpu.vector_store %arg11[%c512, %c0_11], %14 {strides = array<i32>} : memref<514x32xbf16, #tpu.memory_space<vmem>>, vector<2x32xbf16>,
    %c0_12 = arith.constant 0 : index
    %c0_13 = arith.constant 0 : index
    %16 = vector.load %arg11[%c0_12, %c0_13] : memref<514x32xbf16, #tpu.memory_space<vmem>>, vector<224x32xbf16>
    %c1 = arith.constant 1 : index
    %c0_14 = arith.constant 0 : index
    %17 = vector.load %arg11[%c1, %c0_14] : memref<514x32xbf16, #tpu.memory_space<vmem>>, vector<224x32xbf16>
    %c2 = arith.constant 2 : index
    %c0_15 = arith.constant 0 : index
    %18 = vector.load %arg11[%c2, %c0_15] : memref<514x32xbf16, #tpu.memory_space<vmem>>, vector<224x32xbf16>
    %19 = tpu.concatenate %16, %17, %18 in 1 : vector<224x32xbf16>, vector<224x32xbf16>, vector<224x32xbf16> -> vector<224x96xbf16>
    %c0_16 = arith.constant 0 : index
    %c0_17 = arith.constant 0 : index
    %c0_18 = arith.constant 0 : index
    %20 = vector.load %arg4[%c0_16, %c0_17, %c0_18] : memref<3x96x64xbf16, #tpu.memory_space<vmem>>, vector<1x96x64xbf16>
    %21 = vector.shape_cast %20 : vector<1x96x64xbf16> to vector<96x64xbf16>
    %cst_19 = arith.constant dense<0.000000e+00> : vector<224x64xf32>
    %22 = tpu.matmul %19, %21, %cst_19 {dimension_numbers = #tpu.dot_dimension_numbers<[1], [0], [0], [1], [0, 0, 1, 1], [], []>} : vector<224x96xbf16>, vector<96x64xbf16>, vector<224x64xf32> -> vector<224x64xf32>
    %c16 = arith.constant 16 : index
    %c0_20 = arith.constant 0 : index
    %23 = vector.load %arg11[%c16, %c0_20] : memref<514x32xbf16, #tpu.memory_space<vmem>>, vector<224x32xbf16>
    %c17 = arith.constant 17 : index
    %c0_21 = arith.constant 0 : index
    %24 = vector.load %arg11[%c17, %c0_21] : memref<514x32xbf16, #tpu.memory_space<vmem>>, vector<224x32xbf16>
    %c18 = arith.constant 18 : index
    %c0_22 = arith.constant 0 : index
    %25 = vector.load %arg11[%c18, %c0_22] : memref<514x32xbf16, #tpu.memory_space<vmem>>, vector<224x32xbf16>
    %26 = tpu.concatenate %23, %24, %25 in 1 : vector<224x32xbf16>, vector<224x32xbf16>, vector<224x32xbf16> -> vector<224x96xbf16>
    %c1_23 = arith.constant 1 : index
    %c0_24 = arith.constant 0 : index
    %c0_25 = arith.constant 0 : index
    %27 = vector.load %arg4[%c1_23, %c0_24, %c0_25] : memref<3x96x64xbf16, #tpu.memory_space<vmem>>, vector<1x96x64xbf16>
    %28 = vector.shape_cast %27 : vector<1x96x64xbf16> to vector<96x64xbf16>
    %cst_26 = arith.constant dense<0.000000e+00> : vector<224x64xf32>
    %29 = tpu.matmul %26, %28, %cst_26 {dimension_numbers = #tpu.dot_dimension_numbers<[1], [0], [0], [1], [0, 0, 1, 1], [], []>} : vector<224x96xbf16>, vector<96x64xbf16>, vector<224x64xf32> -> vector<224x64xf32>
    %30 = arith.addf %22, %29 : vector<224x64xf32>
    %c32 = arith.constant 32 : index
    %c0_27 = arith.constant 0 : index
    %31 = vector.load %arg11[%c32, %c0_27] : memref<514x32xbf16, #tpu.memory_space<vmem>>, vector<224x32xbf16>
    %c33 = arith.constant 33 : index
    %c0_28 = arith.constant 0 : index
    %32 = vector.load %arg11[%c33, %c0_28] : memref<514x32xbf16, #tpu.memory_space<vmem>>, vector<224x32xbf16>
    %c34 = arith.constant 34 : index
    %c0_29 = arith.constant 0 : index
    %33 = vector.load %arg11[%c34, %c0_29] : memref<514x32xbf16, #tpu.memory_space<vmem>>, vector<224x32xbf16>
    %34 = tpu.concatenate %31, %32, %33 in 1 : vector<224x32xbf16>, vector<224x32xbf16>, vector<224x32xbf16> -> vector<224x96xbf16>
    %c2_30 = arith.constant 2 : index
    %c0_31 = arith.constant 0 : index
    %c0_32 = arith.constant 0 : index
    %35 = vector.load %arg4[%c2_30, %c0_31, %c0_32] : memref<3x96x64xbf16, #tpu.memory_space<vmem>>, vector<1x96x64xbf16>
    %36 = vector.shape_cast %35 : vector<1x96x64xbf16> to vector<96x64xbf16>
    %cst_33 = arith.constant dense<0.000000e+00> : vector<224x64xf32>
    %37 = tpu.matmul %34, %36, %cst_33 {dimension_numbers = #tpu.dot_dimension_numbers<[1], [0], [0], [1], [0, 0, 1, 1], [], []>} : vector<224x96xbf16>, vector<96x64xbf16>, vector<224x64xf32> -> vector<224x64xf32>
    %38 = arith.addf %30, %37 : vector<224x64xf32>
    %39 = vector.shape_cast %38 : vector<224x64xf32> to vector<7x32x64xf32>
    %40 = vector.extract_strided_slice %39 {offsets = [0, 0, 0], sizes = [7, 16, 64], strides = [1, 1, 1]} : vector<7x32x64xf32> to vector<7x16x64xf32>
    %41 = vector.extract_strided_slice %39 {offsets = [0, 16, 0], sizes = [7, 16, 64], strides = [1, 1, 1]} : vector<7x32x64xf32> to vector<7x16x64xf32>
    %42 = arith.maximumf %40, %41 : vector<7x16x64xf32>
    %43 = vector.shape_cast %42 : vector<7x16x64xf32> to vector<112x64xf32>
    %c0_34 = arith.constant 0 : index
    %c0_35 = arith.constant 0 : index
    %44 = vector.load %arg12[%c0_34, %c0_35] : memref<112x64xf32, #tpu.memory_space<vmem>>, vector<112x64xf32>
    tpu.vector_store %arg12[%c0_34, %c0_35], %43 {strides = array<i32>} : memref<112x64xf32, #tpu.memory_space<vmem>>, vector<112x64xf32>,
    %c0_36 = arith.constant 0 : index
    %c0_37 = arith.constant 0 : index
    %45 = tpu.strided_load %arg12[%c0_36, %c0_37] {strides = array<i32: 2, 1>} : memref<112x64xf32, #tpu.memory_space<vmem>>, vector<56x64xf32>
    %c1_38 = arith.constant 1 : index
    %c0_39 = arith.constant 0 : index
    %46 = tpu.strided_load %arg12[%c1_38, %c0_39] {strides = array<i32: 2, 1>} : memref<112x64xf32, #tpu.memory_space<vmem>>, vector<56x64xf32>
    %47 = arith.maximumf %45, %46 : vector<56x64xf32>
    %c0_40 = arith.constant 0 : index
    %c0_41 = arith.constant 0 : index
    %48 = vector.load %arg5[%c0_40, %c0_41] : memref<1x64xf32, #tpu.memory_space<vmem>>, vector<1x64xf32>
    %49 = vector.broadcast %48 : vector<1x64xf32> to vector<56x64xf32>
    %50 = arith.addf %47, %49 : vector<56x64xf32>
    %cst_42 = arith.constant 0.000000e+00 : f32
    %51 = vector.broadcast %cst_42 : f32 to vector<56x64xf32>
    %52 = arith.maximumf %50, %51 : vector<56x64xf32>
    %53 = arith.truncf %52 : vector<56x64xf32> to vector<56x64xbf16>
    %c0_43 = arith.constant 0 : index
    %c0_44 = arith.constant 0 : index
    %c0_45 = arith.constant 0 : index
    %54 = vector.load %arg13[%c0_43, %c0_44, %c0_45] : memref<2x58x64xbf16, #tpu.memory_space<vmem>>, vector<1x56x64xbf16>
    %55 = vector.shape_cast %54 : vector<1x56x64xbf16> to vector<56x64xbf16>
    %56 = vector.shape_cast %53 : vector<56x64xbf16> to vector<1x56x64xbf16>
    tpu.vector_store %arg13[%c0_43, %c0_44, %c0_45], %56 {strides = array<i32>} : memref<2x58x64xbf16, #tpu.memory_space<vmem>>, vector<1x56x64xbf16>,
    %cst_46 = arith.constant 0.000000e+00 : bf16
    %57 = vector.broadcast %cst_46 : bf16 to vector<2x64xbf16>
    %c0_47 = arith.constant 0 : index
    %c56 = arith.constant 56 : index
    %c0_48 = arith.constant 0 : index
    %58 = vector.load %arg13[%c0_47, %c56, %c0_48] : memref<2x58x64xbf16, #tpu.memory_space<vmem>>, vector<1x2x64xbf16>
    %59 = vector.shape_cast %58 : vector<1x2x64xbf16> to vector<2x64xbf16>
    %60 = vector.shape_cast %57 : vector<2x64xbf16> to vector<1x2x64xbf16>
    tpu.vector_store %arg13[%c0_47, %c56, %c0_48], %60 {strides = array<i32>} : memref<2x58x64xbf16, #tpu.memory_space<vmem>>, vector<1x2x64xbf16>,
    %c0_49 = arith.constant 0 : index
    %c0_50 = arith.constant 0 : index
    %c0_51 = arith.constant 0 : index
    %61 = vector.load %arg13[%c0_49, %c0_50, %c0_51] : memref<2x58x64xbf16, #tpu.memory_space<vmem>>, vector<1x40x64xbf16>
    %62 = vector.shape_cast %61 : vector<1x40x64xbf16> to vector<40x64xbf16>
    %c0_52 = arith.constant 0 : index
    %c1_53 = arith.constant 1 : index
    %c0_54 = arith.constant 0 : index
    %63 = vector.load %arg13[%c0_52, %c1_53, %c0_54] : memref<2x58x64xbf16, #tpu.memory_space<vmem>>, vector<1x40x64xbf16>
    %64 = vector.shape_cast %63 : vector<1x40x64xbf16> to vector<40x64xbf16>
    %c0_55 = arith.constant 0 : index
    %c2_56 = arith.constant 2 : index
    %c0_57 = arith.constant 0 : index
    %65 = vector.load %arg13[%c0_55, %c2_56, %c0_57] : memref<2x58x64xbf16, #tpu.memory_space<vmem>>, vector<1x40x64xbf16>
    %66 = vector.shape_cast %65 : vector<1x40x64xbf16> to vector<40x64xbf16>
    %67 = tpu.concatenate %62, %64, %66 in 1 : vector<40x64xbf16>, vector<40x64xbf16>, vector<40x64xbf16> -> vector<40x192xbf16>
    %c0_58 = arith.constant 0 : index
    %c0_59 = arith.constant 0 : index
    %c0_60 = arith.constant 0 : index
    %68 = vector.load %arg6[%c0_58, %c0_59, %c0_60] : memref<3x192x128xbf16, #tpu.memory_space<vmem>>, vector<1x192x128xbf16>
    %69 = vector.shape_cast %68 : vector<1x192x128xbf16> to vector<192x128xbf16>
    %cst_61 = arith.constant dense<0.000000e+00> : vector<40x128xf32>
    %70 = tpu.matmul %67, %69, %cst_61 {dimension_numbers = #tpu.dot_dimension_numbers<[1], [0], [0], [1], [0, 0, 1, 1], [], []>} : vector<40x192xbf16>, vector<192x128xbf16>, vector<40x128xf32> -> vector<40x128xf32>
    %c0_62 = arith.constant 0 : index
    %c8 = arith.constant 8 : index
    %c0_63 = arith.constant 0 : index
    %71 = vector.load %arg13[%c0_62, %c8, %c0_63] : memref<2x58x64xbf16, #tpu.memory_space<vmem>>, vector<1x40x64xbf16>
    %72 = vector.shape_cast %71 : vector<1x40x64xbf16> to vector<40x64xbf16>
    %c0_64 = arith.constant 0 : index
    %c9 = arith.constant 9 : index
    %c0_65 = arith.constant 0 : index
    %73 = vector.load %arg13[%c0_64, %c9, %c0_65] : memref<2x58x64xbf16, #tpu.memory_space<vmem>>, vector<1x40x64xbf16>
    %74 = vector.shape_cast %73 : vector<1x40x64xbf16> to vector<40x64xbf16>
    %c0_66 = arith.constant 0 : index
    %c10 = arith.constant 10 : index
    %c0_67 = arith.constant 0 : index
    %75 = vector.load %arg13[%c0_66, %c10, %c0_67] : memref<2x58x64xbf16, #tpu.memory_space<vmem>>, vector<1x40x64xbf16>
    %76 = vector.shape_cast %75 : vector<1x40x64xbf16> to vector<40x64xbf16>
    %77 = tpu.concatenate %72, %74, %76 in 1 : vector<40x64xbf16>, vector<40x64xbf16>, vector<40x64xbf16> -> vector<40x192xbf16>
    %c1_68 = arith.constant 1 : index
    %c0_69 = arith.constant 0 : index
    %c0_70 = arith.constant 0 : index
    %78 = vector.load %arg6[%c1_68, %c0_69, %c0_70] : memref<3x192x128xbf16, #tpu.memory_space<vmem>>, vector<1x192x128xbf16>
    %79 = vector.shape_cast %78 : vector<1x192x128xbf16> to vector<192x128xbf16>
    %cst_71 = arith.constant dense<0.000000e+00> : vector<40x128xf32>
    %80 = tpu.matmul %77, %79, %cst_71 {dimension_numbers = #tpu.dot_dimension_numbers<[1], [0], [0], [1], [0, 0, 1, 1], [], []>} : vector<40x192xbf16>, vector<192x128xbf16>, vector<40x128xf32> -> vector<40x128xf32>
    %81 = arith.addf %70, %80 : vector<40x128xf32>
    %c0_72 = arith.constant 0 : index
    %c16_73 = arith.constant 16 : index
    %c0_74 = arith.constant 0 : index
    %82 = vector.load %arg13[%c0_72, %c16_73, %c0_74] : memref<2x58x64xbf16, #tpu.memory_space<vmem>>, vector<1x40x64xbf16>
    %83 = vector.shape_cast %82 : vector<1x40x64xbf16> to vector<40x64xbf16>
    %c0_75 = arith.constant 0 : index
    %c17_76 = arith.constant 17 : index
    %c0_77 = arith.constant 0 : index
    %84 = vector.load %arg13[%c0_75, %c17_76, %c0_77] : memref<2x58x64xbf16, #tpu.memory_space<vmem>>, vector<1x40x64xbf16>
    %85 = vector.shape_cast %84 : vector<1x40x64xbf16> to vector<40x64xbf16>
    %c0_78 = arith.constant 0 : index
    %c18_79 = arith.constant 18 : index
    %c0_80 = arith.constant 0 : index
    %86 = vector.load %arg13[%c0_78, %c18_79, %c0_80] : memref<2x58x64xbf16, #tpu.memory_space<vmem>>, vector<1x40x64xbf16>
    %87 = vector.shape_cast %86 : vector<1x40x64xbf16> to vector<40x64xbf16>
    %88 = tpu.concatenate %83, %85, %87 in 1 : vector<40x64xbf16>, vector<40x64xbf16>, vector<40x64xbf16> -> vector<40x192xbf16>
    %c2_81 = arith.constant 2 : index
    %c0_82 = arith.constant 0 : index
    %c0_83 = arith.constant 0 : index
    %89 = vector.load %arg6[%c2_81, %c0_82, %c0_83] : memref<3x192x128xbf16, #tpu.memory_space<vmem>>, vector<1x192x128xbf16>
    %90 = vector.shape_cast %89 : vector<1x192x128xbf16> to vector<192x128xbf16>
    %cst_84 = arith.constant dense<0.000000e+00> : vector<40x128xf32>
    %91 = tpu.matmul %88, %90, %cst_84 {dimension_numbers = #tpu.dot_dimension_numbers<[1], [0], [0], [1], [0, 0, 1, 1], [], []>} : vector<40x192xbf16>, vector<192x128xbf16>, vector<40x128xf32> -> vector<40x128xf32>
    %92 = arith.addf %81, %91 : vector<40x128xf32>
    %93 = vector.shape_cast %92 : vector<40x128xf32> to vector<5x8x128xf32>
    %cst_85 = arith.constant 0.000000e+00 : f32
    %94 = vector.broadcast %cst_85 : f32 to vector<1x128xf32>
    %95 = vector.extract_strided_slice %93 {offsets = [0, 0, 0], sizes = [1, 8, 128], strides = [1, 1, 1]} : vector<5x8x128xf32> to vector<1x8x128xf32>
    %96 = vector.shape_cast %95 : vector<1x8x128xf32> to vector<8x128xf32>
    %97 = vector.extract_strided_slice %93 {offsets = [1, 0, 0], sizes = [1, 8, 128], strides = [1, 1, 1]} : vector<5x8x128xf32> to vector<1x8x128xf32>
    %98 = vector.shape_cast %97 : vector<1x8x128xf32> to vector<8x128xf32>
    %99 = arith.maximumf %96, %98 : vector<8x128xf32>
    %100 = vector.extract_strided_slice %99 {offsets = [0, 0], sizes = [1, 128], strides = [1, 1]} : vector<8x128xf32> to vector<1x128xf32>
    %101 = vector.extract_strided_slice %99 {offsets = [1, 0], sizes = [1, 128], strides = [1, 1]} : vector<8x128xf32> to vector<1x128xf32>
    %102 = arith.maximumf %100, %101 : vector<1x128xf32>
    %c0_86 = arith.constant 0 : index
    %c0_87 = arith.constant 0 : index
    %103 = vector.load %arg7[%c0_86, %c0_87] : memref<1x128xf32, #tpu.memory_space<vmem>>, vector<1x128xf32>
    %104 = arith.addf %102, %103 : vector<1x128xf32>
    %cst_88 = arith.constant 0.000000e+00 : f32
    %105 = vector.broadcast %cst_88 : f32 to vector<1x128xf32>
    %106 = arith.maximumf %104, %105 : vector<1x128xf32>
    %107 = arith.addf %94, %106 : vector<1x128xf32>
    %108 = vector.extract_strided_slice %99 {offsets = [2, 0], sizes = [1, 128], strides = [1, 1]} : vector<8x128xf32> to vector<1x128xf32>
    %109 = vector.extract_strided_slice %99 {offsets = [3, 0], sizes = [1, 128], strides = [1, 1]} : vector<8x128xf32> to vector<1x128xf32>
    %110 = arith.maximumf %108, %109 : vector<1x128xf32>
    %c0_89 = arith.constant 0 : index
    %c0_90 = arith.constant 0 : index
    %111 = vector.load %arg7[%c0_89, %c0_90] : memref<1x128xf32, #tpu.memory_space<vmem>>, vector<1x128xf32>
    %112 = arith.addf %110, %111 : vector<1x128xf32>
    %cst_91 = arith.constant 0.000000e+00 : f32
    %113 = vector.broadcast %cst_91 : f32 to vector<1x128xf32>
    %114 = arith.maximumf %112, %113 : vector<1x128xf32>
    %115 = arith.addf %107, %114 : vector<1x128xf32>
    %116 = vector.extract_strided_slice %93 {offsets = [2, 0, 0], sizes = [1, 8, 128], strides = [1, 1, 1]} : vector<5x8x128xf32> to vector<1x8x128xf32>
    %117 = vector.shape_cast %116 : vector<1x8x128xf32> to vector<8x128xf32>
    %118 = vector.extract_strided_slice %93 {offsets = [3, 0, 0], sizes = [1, 8, 128], strides = [1, 1, 1]} : vector<5x8x128xf32> to vector<1x8x128xf32>
    %119 = vector.shape_cast %118 : vector<1x8x128xf32> to vector<8x128xf32>
    %120 = arith.maximumf %117, %119 : vector<8x128xf32>
    %121 = vector.extract_strided_slice %120 {offsets = [0, 0], sizes = [1, 128], strides = [1, 1]} : vector<8x128xf32> to vector<1x128xf32>
    %122 = vector.extract_strided_slice %120 {offsets = [1, 0], sizes = [1, 128], strides = [1, 1]} : vector<8x128xf32> to vector<1x128xf32>
    %123 = arith.maximumf %121, %122 : vector<1x128xf32>
    %c0_92 = arith.constant 0 : index
    %c0_93 = arith.constant 0 : index
    %124 = vector.load %arg7[%c0_92, %c0_93] : memref<1x128xf32, #tpu.memory_space<vmem>>, vector<1x128xf32>
    %125 = arith.addf %123, %124 : vector<1x128xf32>
    %cst_94 = arith.constant 0.000000e+00 : f32
    %126 = vector.broadcast %cst_94 : f32 to vector<1x128xf32>
    %127 = arith.maximumf %125, %126 : vector<1x128xf32>
    %128 = arith.addf %115, %127 : vector<1x128xf32>
    %129 = vector.extract_strided_slice %120 {offsets = [2, 0], sizes = [1, 128], strides = [1, 1]} : vector<8x128xf32> to vector<1x128xf32>
    %130 = vector.extract_strided_slice %120 {offsets = [3, 0], sizes = [1, 128], strides = [1, 1]} : vector<8x128xf32> to vector<1x128xf32>
    %131 = arith.maximumf %129, %130 : vector<1x128xf32>
    %c0_95 = arith.constant 0 : index
    %c0_96 = arith.constant 0 : index
    %132 = vector.load %arg7[%c0_95, %c0_96] : memref<1x128xf32, #tpu.memory_space<vmem>>, vector<1x128xf32>
    %133 = arith.addf %131, %132 : vector<1x128xf32>
    %cst_97 = arith.constant 0.000000e+00 : f32
    %134 = vector.broadcast %cst_97 : f32 to vector<1x128xf32>
    %135 = arith.maximumf %133, %134 : vector<1x128xf32>
    %136 = arith.addf %128, %135 : vector<1x128xf32>
    %cst_98 = arith.constant 2.500000e-01 : f32
    %137 = vector.broadcast %cst_98 : f32 to vector<1x128xf32>
    %138 = arith.mulf %136, %137 : vector<1x128xf32>
    %c0_99 = arith.constant 0 : index
    %c0_100 = arith.constant 0 : index
    %139 = vector.load %arg14[%c0_99, %c0_100] : memref<2x128xf32, #tpu.memory_space<vmem>>, vector<1x128xf32>
    tpu.vector_store %arg14[%c0_99, %c0_100], %138 {strides = array<i32>} : memref<2x128xf32, #tpu.memory_space<vmem>>, vector<1x128xf32>,
    %c256 = arith.constant 256 : index
    %c0_101 = arith.constant 0 : index
    %140 = vector.load %arg11[%c256, %c0_101] : memref<514x32xbf16, #tpu.memory_space<vmem>>, vector<224x32xbf16>
    %c257 = arith.constant 257 : index
    %c0_102 = arith.constant 0 : index
    %141 = vector.load %arg11[%c257, %c0_102] : memref<514x32xbf16, #tpu.memory_space<vmem>>, vector<224x32xbf16>
    %c258 = arith.constant 258 : index
    %c0_103 = arith.constant 0 : index
    %142 = vector.load %arg11[%c258, %c0_103] : memref<514x32xbf16, #tpu.memory_space<vmem>>, vector<224x32xbf16>
    %143 = tpu.concatenate %140, %141, %142 in 1 : vector<224x32xbf16>, vector<224x32xbf16>, vector<224x32xbf16> -> vector<224x96xbf16>
    %c0_104 = arith.constant 0 : index
    %c0_105 = arith.constant 0 : index
    %c0_106 = arith.constant 0 : index
    %144 = vector.load %arg4[%c0_104, %c0_105, %c0_106] : memref<3x96x64xbf16, #tpu.memory_space<vmem>>, vector<1x96x64xbf16>
    %145 = vector.shape_cast %144 : vector<1x96x64xbf16> to vector<96x64xbf16>
    %cst_107 = arith.constant dense<0.000000e+00> : vector<224x64xf32>
    %146 = tpu.matmul %143, %145, %cst_107 {dimension_numbers = #tpu.dot_dimension_numbers<[1], [0], [0], [1], [0, 0, 1, 1], [], []>} : vector<224x96xbf16>, vector<96x64xbf16>, vector<224x64xf32> -> vector<224x64xf32>
    %c272 = arith.constant 272 : index
    %c0_108 = arith.constant 0 : index
    %147 = vector.load %arg11[%c272, %c0_108] : memref<514x32xbf16, #tpu.memory_space<vmem>>, vector<224x32xbf16>
    %c273 = arith.constant 273 : index
    %c0_109 = arith.constant 0 : index
    %148 = vector.load %arg11[%c273, %c0_109] : memref<514x32xbf16, #tpu.memory_space<vmem>>, vector<224x32xbf16>
    %c274 = arith.constant 274 : index
    %c0_110 = arith.constant 0 : index
    %149 = vector.load %arg11[%c274, %c0_110] : memref<514x32xbf16, #tpu.memory_space<vmem>>, vector<224x32xbf16>
    %150 = tpu.concatenate %147, %148, %149 in 1 : vector<224x32xbf16>, vector<224x32xbf16>, vector<224x32xbf16> -> vector<224x96xbf16>
    %c1_111 = arith.constant 1 : index
    %c0_112 = arith.constant 0 : index
    %c0_113 = arith.constant 0 : index
    %151 = vector.load %arg4[%c1_111, %c0_112, %c0_113] : memref<3x96x64xbf16, #tpu.memory_space<vmem>>, vector<1x96x64xbf16>
    %152 = vector.shape_cast %151 : vector<1x96x64xbf16> to vector<96x64xbf16>
    %cst_114 = arith.constant dense<0.000000e+00> : vector<224x64xf32>
    %153 = tpu.matmul %150, %152, %cst_114 {dimension_numbers = #tpu.dot_dimension_numbers<[1], [0], [0], [1], [0, 0, 1, 1], [], []>} : vector<224x96xbf16>, vector<96x64xbf16>, vector<224x64xf32> -> vector<224x64xf32>
    %154 = arith.addf %146, %153 : vector<224x64xf32>
    %c288 = arith.constant 288 : index
    %c0_115 = arith.constant 0 : index
    %155 = vector.load %arg11[%c288, %c0_115] : memref<514x32xbf16, #tpu.memory_space<vmem>>, vector<224x32xbf16>
    %c289 = arith.constant 289 : index
    %c0_116 = arith.constant 0 : index
    %156 = vector.load %arg11[%c289, %c0_116] : memref<514x32xbf16, #tpu.memory_space<vmem>>, vector<224x32xbf16>
    %c290 = arith.constant 290 : index
    %c0_117 = arith.constant 0 : index
    %157 = vector.load %arg11[%c290, %c0_117] : memref<514x32xbf16, #tpu.memory_space<vmem>>, vector<224x32xbf16>
    %158 = tpu.concatenate %155, %156, %157 in 1 : vector<224x32xbf16>, vector<224x32xbf16>, vector<224x32xbf16> -> vector<224x96xbf16>
    %c2_118 = arith.constant 2 : index
    %c0_119 = arith.constant 0 : index
    %c0_120 = arith.constant 0 : index
    %159 = vector.load %arg4[%c2_118, %c0_119, %c0_120] : memref<3x96x64xbf16, #tpu.memory_space<vmem>>, vector<1x96x64xbf16>
    %160 = vector.shape_cast %159 : vector<1x96x64xbf16> to vector<96x64xbf16>
    %cst_121 = arith.constant dense<0.000000e+00> : vector<224x64xf32>
    %161 = tpu.matmul %158, %160, %cst_121 {dimension_numbers = #tpu.dot_dimension_numbers<[1], [0], [0], [1], [0, 0, 1, 1], [], []>} : vector<224x96xbf16>, vector<96x64xbf16>, vector<224x64xf32> -> vector<224x64xf32>
    %162 = arith.addf %154, %161 : vector<224x64xf32>
    %163 = vector.shape_cast %162 : vector<224x64xf32> to vector<7x32x64xf32>
    %164 = vector.extract_strided_slice %163 {offsets = [0, 0, 0], sizes = [7, 16, 64], strides = [1, 1, 1]} : vector<7x32x64xf32> to vector<7x16x64xf32>
    %165 = vector.extract_strided_slice %163 {offsets = [0, 16, 0], sizes = [7, 16, 64], strides = [1, 1, 1]} : vector<7x32x64xf32> to vector<7x16x64xf32>
    %166 = arith.maximumf %164, %165 : vector<7x16x64xf32>
    %167 = vector.shape_cast %166 : vector<7x16x64xf32> to vector<112x64xf32>
    %c0_122 = arith.constant 0 : index
    %c0_123 = arith.constant 0 : index
    %168 = vector.load %arg12[%c0_122, %c0_123] : memref<112x64xf32, #tpu.memory_space<vmem>>, vector<112x64xf32>
    tpu.vector_store %arg12[%c0_122, %c0_123], %167 {strides = array<i32>} : memref<112x64xf32, #tpu.memory_space<vmem>>, vector<112x64xf32>,
    %c0_124 = arith.constant 0 : index
    %c0_125 = arith.constant 0 : index
    %169 = tpu.strided_load %arg12[%c0_124, %c0_125] {strides = array<i32: 2, 1>} : memref<112x64xf32, #tpu.memory_space<vmem>>, vector<56x64xf32>
    %c1_126 = arith.constant 1 : index
    %c0_127 = arith.constant 0 : index
    %170 = tpu.strided_load %arg12[%c1_126, %c0_127] {strides = array<i32: 2, 1>} : memref<112x64xf32, #tpu.memory_space<vmem>>, vector<56x64xf32>
    %171 = arith.maximumf %169, %170 : vector<56x64xf32>
    %c0_128 = arith.constant 0 : index
    %c0_129 = arith.constant 0 : index
    %172 = vector.load %arg5[%c0_128, %c0_129] : memref<1x64xf32, #tpu.memory_space<vmem>>, vector<1x64xf32>
    %173 = vector.broadcast %172 : vector<1x64xf32> to vector<56x64xf32>
    %174 = arith.addf %171, %173 : vector<56x64xf32>
    %cst_130 = arith.constant 0.000000e+00 : f32
    %175 = vector.broadcast %cst_130 : f32 to vector<56x64xf32>
    %176 = arith.maximumf %174, %175 : vector<56x64xf32>
    %177 = arith.truncf %176 : vector<56x64xf32> to vector<56x64xbf16>
    %c1_131 = arith.constant 1 : index
    %c0_132 = arith.constant 0 : index
    %c0_133 = arith.constant 0 : index
    %178 = vector.load %arg13[%c1_131, %c0_132, %c0_133] : memref<2x58x64xbf16, #tpu.memory_space<vmem>>, vector<1x56x64xbf16>
    %179 = vector.shape_cast %178 : vector<1x56x64xbf16> to vector<56x64xbf16>
    %180 = vector.shape_cast %177 : vector<56x64xbf16> to vector<1x56x64xbf16>
    tpu.vector_store %arg13[%c1_131, %c0_132, %c0_133], %180 {strides = array<i32>} : memref<2x58x64xbf16, #tpu.memory_space<vmem>>, vector<1x56x64xbf16>,
    %cst_134 = arith.constant 0.000000e+00 : bf16
    %181 = vector.broadcast %cst_134 : bf16 to vector<2x64xbf16>
    %c1_135 = arith.constant 1 : index
    %c56_136 = arith.constant 56 : index
    %c0_137 = arith.constant 0 : index
    %182 = vector.load %arg13[%c1_135, %c56_136, %c0_137] : memref<2x58x64xbf16, #tpu.memory_space<vmem>>, vector<1x2x64xbf16>
    %183 = vector.shape_cast %182 : vector<1x2x64xbf16> to vector<2x64xbf16>
    %184 = vector.shape_cast %181 : vector<2x64xbf16> to vector<1x2x64xbf16>
    tpu.vector_store %arg13[%c1_135, %c56_136, %c0_137], %184 {strides = array<i32>} : memref<2x58x64xbf16, #tpu.memory_space<vmem>>, vector<1x2x64xbf16>,
    %c1_138 = arith.constant 1 : index
    %c0_139 = arith.constant 0 : index
    %c0_140 = arith.constant 0 : index
    %185 = vector.load %arg13[%c1_138, %c0_139, %c0_140] : memref<2x58x64xbf16, #tpu.memory_space<vmem>>, vector<1x40x64xbf16>
    %186 = vector.shape_cast %185 : vector<1x40x64xbf16> to vector<40x64xbf16>
    %c1_141 = arith.constant 1 : index
    %c1_142 = arith.constant 1 : index
    %c0_143 = arith.constant 0 : index
    %187 = vector.load %arg13[%c1_141, %c1_142, %c0_143] : memref<2x58x64xbf16, #tpu.memory_space<vmem>>, vector<1x40x64xbf16>
    %188 = vector.shape_cast %187 : vector<1x40x64xbf16> to vector<40x64xbf16>
    %c1_144 = arith.constant 1 : index
    %c2_145 = arith.constant 2 : index
    %c0_146 = arith.constant 0 : index
    %189 = vector.load %arg13[%c1_144, %c2_145, %c0_146] : memref<2x58x64xbf16, #tpu.memory_space<vmem>>, vector<1x40x64xbf16>
    %190 = vector.shape_cast %189 : vector<1x40x64xbf16> to vector<40x64xbf16>
    %191 = tpu.concatenate %186, %188, %190 in 1 : vector<40x64xbf16>, vector<40x64xbf16>, vector<40x64xbf16> -> vector<40x192xbf16>
    %c0_147 = arith.constant 0 : index
    %c0_148 = arith.constant 0 : index
    %c0_149 = arith.constant 0 : index
    %192 = vector.load %arg6[%c0_147, %c0_148, %c0_149] : memref<3x192x128xbf16, #tpu.memory_space<vmem>>, vector<1x192x128xbf16>
    %193 = vector.shape_cast %192 : vector<1x192x128xbf16> to vector<192x128xbf16>
    %cst_150 = arith.constant dense<0.000000e+00> : vector<40x128xf32>
    %194 = tpu.matmul %191, %193, %cst_150 {dimension_numbers = #tpu.dot_dimension_numbers<[1], [0], [0], [1], [0, 0, 1, 1], [], []>} : vector<40x192xbf16>, vector<192x128xbf16>, vector<40x128xf32> -> vector<40x128xf32>
    %c1_151 = arith.constant 1 : index
    %c8_152 = arith.constant 8 : index
    %c0_153 = arith.constant 0 : index
    %195 = vector.load %arg13[%c1_151, %c8_152, %c0_153] : memref<2x58x64xbf16, #tpu.memory_space<vmem>>, vector<1x40x64xbf16>
    %196 = vector.shape_cast %195 : vector<1x40x64xbf16> to vector<40x64xbf16>
    %c1_154 = arith.constant 1 : index
    %c9_155 = arith.constant 9 : index
    %c0_156 = arith.constant 0 : index
    %197 = vector.load %arg13[%c1_154, %c9_155, %c0_156] : memref<2x58x64xbf16, #tpu.memory_space<vmem>>, vector<1x40x64xbf16>
    %198 = vector.shape_cast %197 : vector<1x40x64xbf16> to vector<40x64xbf16>
    %c1_157 = arith.constant 1 : index
    %c10_158 = arith.constant 10 : index
    %c0_159 = arith.constant 0 : index
    %199 = vector.load %arg13[%c1_157, %c10_158, %c0_159] : memref<2x58x64xbf16, #tpu.memory_space<vmem>>, vector<1x40x64xbf16>
    %200 = vector.shape_cast %199 : vector<1x40x64xbf16> to vector<40x64xbf16>
    %201 = tpu.concatenate %196, %198, %200 in 1 : vector<40x64xbf16>, vector<40x64xbf16>, vector<40x64xbf16> -> vector<40x192xbf16>
    %c1_160 = arith.constant 1 : index
    %c0_161 = arith.constant 0 : index
    %c0_162 = arith.constant 0 : index
    %202 = vector.load %arg6[%c1_160, %c0_161, %c0_162] : memref<3x192x128xbf16, #tpu.memory_space<vmem>>, vector<1x192x128xbf16>
    %203 = vector.shape_cast %202 : vector<1x192x128xbf16> to vector<192x128xbf16>
    %cst_163 = arith.constant dense<0.000000e+00> : vector<40x128xf32>
    %204 = tpu.matmul %201, %203, %cst_163 {dimension_numbers = #tpu.dot_dimension_numbers<[1], [0], [0], [1], [0, 0, 1, 1], [], []>} : vector<40x192xbf16>, vector<192x128xbf16>, vector<40x128xf32> -> vector<40x128xf32>
    %205 = arith.addf %194, %204 : vector<40x128xf32>
    %c1_164 = arith.constant 1 : index
    %c16_165 = arith.constant 16 : index
    %c0_166 = arith.constant 0 : index
    %206 = vector.load %arg13[%c1_164, %c16_165, %c0_166] : memref<2x58x64xbf16, #tpu.memory_space<vmem>>, vector<1x40x64xbf16>
    %207 = vector.shape_cast %206 : vector<1x40x64xbf16> to vector<40x64xbf16>
    %c1_167 = arith.constant 1 : index
    %c17_168 = arith.constant 17 : index
    %c0_169 = arith.constant 0 : index
    %208 = vector.load %arg13[%c1_167, %c17_168, %c0_169] : memref<2x58x64xbf16, #tpu.memory_space<vmem>>, vector<1x40x64xbf16>
    %209 = vector.shape_cast %208 : vector<1x40x64xbf16> to vector<40x64xbf16>
    %c1_170 = arith.constant 1 : index
    %c18_171 = arith.constant 18 : index
    %c0_172 = arith.constant 0 : index
    %210 = vector.load %arg13[%c1_170, %c18_171, %c0_172] : memref<2x58x64xbf16, #tpu.memory_space<vmem>>, vector<1x40x64xbf16>
    %211 = vector.shape_cast %210 : vector<1x40x64xbf16> to vector<40x64xbf16>
    %212 = tpu.concatenate %207, %209, %211 in 1 : vector<40x64xbf16>, vector<40x64xbf16>, vector<40x64xbf16> -> vector<40x192xbf16>
    %c2_173 = arith.constant 2 : index
    %c0_174 = arith.constant 0 : index
    %c0_175 = arith.constant 0 : index
    %213 = vector.load %arg6[%c2_173, %c0_174, %c0_175] : memref<3x192x128xbf16, #tpu.memory_space<vmem>>, vector<1x192x128xbf16>
    %214 = vector.shape_cast %213 : vector<1x192x128xbf16> to vector<192x128xbf16>
    %cst_176 = arith.constant dense<0.000000e+00> : vector<40x128xf32>
    %215 = tpu.matmul %212, %214, %cst_176 {dimension_numbers = #tpu.dot_dimension_numbers<[1], [0], [0], [1], [0, 0, 1, 1], [], []>} : vector<40x192xbf16>, vector<192x128xbf16>, vector<40x128xf32> -> vector<40x128xf32>
    %216 = arith.addf %205, %215 : vector<40x128xf32>
    %217 = vector.shape_cast %216 : vector<40x128xf32> to vector<5x8x128xf32>
    %cst_177 = arith.constant 0.000000e+00 : f32
    %218 = vector.broadcast %cst_177 : f32 to vector<1x128xf32>
    %219 = vector.extract_strided_slice %217 {offsets = [0, 0, 0], sizes = [1, 8, 128], strides = [1, 1, 1]} : vector<5x8x128xf32> to vector<1x8x128xf32>
    %220 = vector.shape_cast %219 : vector<1x8x128xf32> to vector<8x128xf32>
    %221 = vector.extract_strided_slice %217 {offsets = [1, 0, 0], sizes = [1, 8, 128], strides = [1, 1, 1]} : vector<5x8x128xf32> to vector<1x8x128xf32>
    %222 = vector.shape_cast %221 : vector<1x8x128xf32> to vector<8x128xf32>
    %223 = arith.maximumf %220, %222 : vector<8x128xf32>
    %224 = vector.extract_strided_slice %223 {offsets = [0, 0], sizes = [1, 128], strides = [1, 1]} : vector<8x128xf32> to vector<1x128xf32>
    %225 = vector.extract_strided_slice %223 {offsets = [1, 0], sizes = [1, 128], strides = [1, 1]} : vector<8x128xf32> to vector<1x128xf32>
    %226 = arith.maximumf %224, %225 : vector<1x128xf32>
    %c0_178 = arith.constant 0 : index
    %c0_179 = arith.constant 0 : index
    %227 = vector.load %arg7[%c0_178, %c0_179] : memref<1x128xf32, #tpu.memory_space<vmem>>, vector<1x128xf32>
    %228 = arith.addf %226, %227 : vector<1x128xf32>
    %cst_180 = arith.constant 0.000000e+00 : f32
    %229 = vector.broadcast %cst_180 : f32 to vector<1x128xf32>
    %230 = arith.maximumf %228, %229 : vector<1x128xf32>
    %231 = arith.addf %218, %230 : vector<1x128xf32>
    %232 = vector.extract_strided_slice %223 {offsets = [2, 0], sizes = [1, 128], strides = [1, 1]} : vector<8x128xf32> to vector<1x128xf32>
    %233 = vector.extract_strided_slice %223 {offsets = [3, 0], sizes = [1, 128], strides = [1, 1]} : vector<8x128xf32> to vector<1x128xf32>
    %234 = arith.maximumf %232, %233 : vector<1x128xf32>
    %c0_181 = arith.constant 0 : index
    %c0_182 = arith.constant 0 : index
    %235 = vector.load %arg7[%c0_181, %c0_182] : memref<1x128xf32, #tpu.memory_space<vmem>>, vector<1x128xf32>
    %236 = arith.addf %234, %235 : vector<1x128xf32>
    %cst_183 = arith.constant 0.000000e+00 : f32
    %237 = vector.broadcast %cst_183 : f32 to vector<1x128xf32>
    %238 = arith.maximumf %236, %237 : vector<1x128xf32>
    %239 = arith.addf %231, %238 : vector<1x128xf32>
    %240 = vector.extract_strided_slice %217 {offsets = [2, 0, 0], sizes = [1, 8, 128], strides = [1, 1, 1]} : vector<5x8x128xf32> to vector<1x8x128xf32>
    %241 = vector.shape_cast %240 : vector<1x8x128xf32> to vector<8x128xf32>
    %242 = vector.extract_strided_slice %217 {offsets = [3, 0, 0], sizes = [1, 8, 128], strides = [1, 1, 1]} : vector<5x8x128xf32> to vector<1x8x128xf32>
    %243 = vector.shape_cast %242 : vector<1x8x128xf32> to vector<8x128xf32>
    %244 = arith.maximumf %241, %243 : vector<8x128xf32>
    %245 = vector.extract_strided_slice %244 {offsets = [0, 0], sizes = [1, 128], strides = [1, 1]} : vector<8x128xf32> to vector<1x128xf32>
    %246 = vector.extract_strided_slice %244 {offsets = [1, 0], sizes = [1, 128], strides = [1, 1]} : vector<8x128xf32> to vector<1x128xf32>
    %247 = arith.maximumf %245, %246 : vector<1x128xf32>
    %c0_184 = arith.constant 0 : index
    %c0_185 = arith.constant 0 : index
    %248 = vector.load %arg7[%c0_184, %c0_185] : memref<1x128xf32, #tpu.memory_space<vmem>>, vector<1x128xf32>
    %249 = arith.addf %247, %248 : vector<1x128xf32>
    %cst_186 = arith.constant 0.000000e+00 : f32
    %250 = vector.broadcast %cst_186 : f32 to vector<1x128xf32>
    %251 = arith.maximumf %249, %250 : vector<1x128xf32>
    %252 = arith.addf %239, %251 : vector<1x128xf32>
    %253 = vector.extract_strided_slice %244 {offsets = [2, 0], sizes = [1, 128], strides = [1, 1]} : vector<8x128xf32> to vector<1x128xf32>
    %254 = vector.extract_strided_slice %244 {offsets = [3, 0], sizes = [1, 128], strides = [1, 1]} : vector<8x128xf32> to vector<1x128xf32>
    %255 = arith.maximumf %253, %254 : vector<1x128xf32>
    %c0_187 = arith.constant 0 : index
    %c0_188 = arith.constant 0 : index
    %256 = vector.load %arg7[%c0_187, %c0_188] : memref<1x128xf32, #tpu.memory_space<vmem>>, vector<1x128xf32>
    %257 = arith.addf %255, %256 : vector<1x128xf32>
    %cst_189 = arith.constant 0.000000e+00 : f32
    %258 = vector.broadcast %cst_189 : f32 to vector<1x128xf32>
    %259 = arith.maximumf %257, %258 : vector<1x128xf32>
    %260 = arith.addf %252, %259 : vector<1x128xf32>
    %cst_190 = arith.constant 2.500000e-01 : f32
    %261 = vector.broadcast %cst_190 : f32 to vector<1x128xf32>
    %262 = arith.mulf %260, %261 : vector<1x128xf32>
    %c1_191 = arith.constant 1 : index
    %c0_192 = arith.constant 0 : index
    %263 = vector.load %arg14[%c1_191, %c0_192] : memref<2x128xf32, #tpu.memory_space<vmem>>, vector<1x128xf32>
    tpu.vector_store %arg14[%c1_191, %c0_192], %262 {strides = array<i32>} : memref<2x128xf32, #tpu.memory_space<vmem>>, vector<1x128xf32>,
    %c0_193 = arith.constant 0 : index
    %c0_194 = arith.constant 0 : index
    %264 = vector.load %arg14[%c0_193, %c0_194] : memref<2x128xf32, #tpu.memory_space<vmem>>, vector<2x128xf32>
    %265 = arith.truncf %264 : vector<2x128xf32> to vector<2x128xbf16>
    %c0_195 = arith.constant 0 : index
    %c0_196 = arith.constant 0 : index
    %266 = vector.load %arg8[%c0_195, %c0_196] : memref<128x18xbf16, #tpu.memory_space<vmem>>, vector<128x18xbf16>
    %cst_197 = arith.constant dense<0.000000e+00> : vector<2x18xf32>
    %267 = tpu.matmul %265, %266, %cst_197 {dimension_numbers = #tpu.dot_dimension_numbers<[1], [0], [0], [1], [0, 0, 1, 1], [], []>} : vector<2x128xbf16>, vector<128x18xbf16>, vector<2x18xf32> -> vector<2x18xf32>
    %c0_198 = arith.constant 0 : index
    %c0_199 = arith.constant 0 : index
    %268 = vector.load %arg9[%c0_198, %c0_199] : memref<1x18xf32, #tpu.memory_space<vmem>>, vector<1x18xf32>
    %269 = vector.broadcast %268 : vector<1x18xf32> to vector<2x18xf32>
    %270 = arith.addf %267, %269 : vector<2x18xf32>
    %c0_200 = arith.constant 0 : index
    %c0_201 = arith.constant 0 : index
    %c0_202 = arith.constant 0 : index
    %271 = vector.load %arg10[%c0_200, %c0_201, %c0_202] : memref<1x2x18xf32, #tpu.memory_space<vmem>>, vector<1x2x18xf32>
    %272 = vector.shape_cast %271 : vector<1x2x18xf32> to vector<2x18xf32>
    %273 = vector.shape_cast %270 : vector<2x18xf32> to vector<1x2x18xf32>
    tpu.vector_store %arg10[%c0_200, %c0_201, %c0_202], %273 {strides = array<i32>} : memref<1x2x18xf32, #tpu.memory_space<vmem>>, vector<1x2x18xf32>,
    return
  }
  func.func @transform_0(%arg0: i32) -> (i32, i32, i32) {
    %c0_i32 = arith.constant 0 : i32
    %c0_i32_0 = arith.constant 0 : i32
    %c0_i32_1 = arith.constant 0 : i32
    return %arg0, %c0_i32, %c0_i32_0 : i32, i32, i32
  }
  func.func @transform_1(%arg0: i32) -> (i32, i32) {
    %c0_i32 = arith.constant 0 : i32
    %c0_i32_0 = arith.constant 0 : i32
    %c0_i32_1 = arith.constant 0 : i32
    return %c0_i32, %c0_i32_0 : i32, i32
  }
  func.func @transform_2(%arg0: i32) -> (i32, i32) {
    %c0_i32 = arith.constant 0 : i32
    %c0_i32_0 = arith.constant 0 : i32
    %c0_i32_1 = arith.constant 0 : i32
    return %c0_i32, %c0_i32_0 : i32, i32
  }
  func.func @transform_3(%arg0: i32) -> (i32, i32, i32) {
    %c0_i32 = arith.constant 0 : i32
    %c0_i32_0 = arith.constant 0 : i32
    %c0_i32_1 = arith.constant 0 : i32
    %c0_i32_2 = arith.constant 0 : i32
    return %c0_i32, %c0_i32_0, %c0_i32_1 : i32, i32, i32
  }
  func.func @transform_4(%arg0: i32) -> (i32, i32) {
    %c0_i32 = arith.constant 0 : i32
    %c0_i32_0 = arith.constant 0 : i32
    %c0_i32_1 = arith.constant 0 : i32
    return %c0_i32, %c0_i32_0 : i32, i32
  }
  func.func @transform_5(%arg0: i32) -> (i32, i32, i32) {
    %c0_i32 = arith.constant 0 : i32
    %c0_i32_0 = arith.constant 0 : i32
    %c0_i32_1 = arith.constant 0 : i32
    %c0_i32_2 = arith.constant 0 : i32
    return %c0_i32, %c0_i32_0, %c0_i32_1 : i32, i32, i32
  }
  func.func @transform_6(%arg0: i32) -> (i32, i32) {
    %c0_i32 = arith.constant 0 : i32
    %c0_i32_0 = arith.constant 0 : i32
    %c0_i32_1 = arith.constant 0 : i32
    return %c0_i32, %c0_i32_0 : i32, i32
  }
  func.func @transform_7(%arg0: i32) -> (i32, i32) {
    %c0_i32 = arith.constant 0 : i32
    %c0_i32_0 = arith.constant 0 : i32
    %c0_i32_1 = arith.constant 0 : i32
    return %c0_i32, %c0_i32_0 : i32, i32
  }
  func.func @transform_8(%arg0: i32) -> (i32, i32) {
    %c0_i32 = arith.constant 0 : i32
    %c0_i32_0 = arith.constant 0 : i32
    %c0_i32_1 = arith.constant 0 : i32
    return %c0_i32, %c0_i32_0 : i32, i32
  }
  func.func @transform_9(%arg0: i32) -> (i32, i32, i32) {
    %c0_i32 = arith.constant 0 : i32
    %c0_i32_0 = arith.constant 0 : i32
    %c0_i32_1 = arith.constant 0 : i32
    return %arg0, %c0_i32, %c0_i32_0 : i32, i32, i32
  }
}

</mosaic_0001>

<bundles_post_ra>
// kernel: face_keypoint_forward_pallas.1
= control target key start
LH: loop header
LB: loop body
LE: loop exit
PB: predicated region body
PF: predicated region fallthrough
CT: control target
= control target key end

     0   :  { %14 = vsyncpa [#allocation7], 0  ;;  %s14440_s0 = inlined_call_operand.vmem [shape: bf16[4,1024,75], index: 0, kind: input, shape index: {}]   ;;  %s14441_s1 = inlined_call_operand.vmem [shape: bf16[75,32], index: 1, kind: input, shape index: {}]   ;;  %s14442_s2 = inlined_call_operand.vmem [shape: f32[1,32], index: 2, kind: input, shape index: {}]   ;;  %s14443_s3 = inlined_call_operand.vmem [shape: bf16[3,96,64], index: 3, kind: input, shape index: {}]   ;;  %s14444_s4 = inlined_call_operand.vmem [shape: f32[1,64], index: 4, kind: input, shape index: {}]   ;;  %s14445_s5 = inlined_call_operand.vmem [shape: bf16[3,192,128], index: 5, kind: input, shape index: {}]   ;;  %s14446_s6 = inlined_call_operand.vmem [shape: f32[1,128], index: 6, kind: input, shape index: {}]   ;;  %s14447_s7 = inlined_call_operand.vmem [shape: bf16[128,18], index: 7, kind: input, shape index: {}]   ;;  %s14448_s8 = inlined_call_operand.vmem [shape: f32[1,18], index: 8, kind: input, shape index: {}]   ;;  %s14449_s9 = inlined_call_operand.hbm [shape: f32[2,2,18], index: 9, kind: output, shape index: {}]  }
   0x1   :  { %16 = vsyncpa [#allocation7 + $0x1], 0  ;;  %s10607_s30 = smov 0   ;;  %s10609_s10 = smov 0  }
   0x2   :  { %s10611_s11 = smov 0   ;;  %s10613_s12 = smov 0  }
   0x3 LB: > { %s10628_s13 = sadd.s32 4294967295, %s10548_s12   ;;  %s8394_s14 = sadd.s32 4294967294, %s10548_s12   ;;  %s10548_s12 = sphi %s10613_s12, %s14811_s12   ;;  %s10544_s11 = sphi %s10611_s11, %s14810_s11   ;;  %s10540_s10 = sphi %s10609_s10, %s14809_s10   ;;  %s10536_s30 = sphi %s10607_s30, %s14808_s30  }
   0x4   : > { %s10632_s15 = sadd.s32 1, %s10548_s12   ;;  %s223_s16 = sadd.s32 1, %s10544_s11 }
   0x5   : > { %s220_s17 = ssub.s32 %s10548_s12, %s10632_s15  ;;  %p233_p0 = scmp.ne.s32.totalorder %s10544_s11, %s10540_s10 }
   0x6   : > { %p221_p1 = scmp.eq.s32.totalorder %s220_s17, 0  ;;  %p234_p2 = scmp.eq.s32.totalorder %s10628_s13, 1 }
   0x7   : > { %p239_p3 = scmp.ne.s32.totalorder %s10540_s10, %s10536_s30  ;;  %p240_p4 = scmp.eq.s32.totalorder %s8394_s14, 1 }
   0x8   : > { %s10643_s18 = scalar_select %p221_p1, %s10544_s11, %s223_s16  }
   0x9   : > { %p10645_p5 = por %p234_p2, %p233_p0  ;;  %p10649_p6 = por %p240_p4, %p239_p3 }
   0xa   : > { %p8397_p7 = scmp.ge.s32.totalorder %s10548_s12, 1  ;;  %p292_p8 = scmp.lt.s32.totalorder %s10548_s12, 3 }
   0xc   : > { %p293_p9 = pnand %p8397_p7, %p292_p8 }
   0xe   : > { %296 = sbr.rel (%p293_p9) target bundleno = 2259 (0x8d3), region = 56 }
  0x13   : > { %v10125_v0 = vld [vmem:[%s14441_s1 + $0x20] sm:$0x3f]   ;;  %vm1657_vm0 = vcmask 1044480   ;;  %vm1658_vm1 = vcmask 1045504   ;;  %v10550_v1 = vmov 65535   ;;  %v10126_v4 = vld [vmem:[%s14441_s1 + $0x18] sm:$0xff]  }
  0x14   : > { %v1659_v2 = vsel %vm1657_vm0, 4294967295, %v10550_v1  ;;  %s8399_s25 = sshll.u32 %s10628_s13, 1  ;;  %v10127_v6 = vld [vmem:[%s14441_s1 + $0x10] sm:$0xff]   ;;  %v10128_v7 = vld [vmem:[%s14441_s1 + $0x8] sm:$0xff]   ;;  %vm1272_vm2 = vcmask 613376   ;;  %v10129_v9 = vld [vmem:[%s14441_s1] sm:$0xff]  }
  0x15   : > { %v1660_v3 = vsel %vm1658_vm1, %v1659_v2, 0  ;;  %p330_p10 = scmp.lt.s32.totalorder %s8399_s25, 3  ;;  %vm2721_vm3 = vcmask 261120   ;;  %vm3561_vm4 = vcmask 257024   ;;  %vm3879_vm5 = vcmask 1046528   ;;  %s10551_s27 = smov 64  }
  0x16   : > { %v1662_v5 = vand.u32 %v10125_v0, %v1660_v3  ;;  %vm3731_vm6 = vsmask.f32 7424  ;;  %s10552_s28 = smov 32   ;;  %vm3965_vm7 = vcmask 523264   ;;  %vm4109_vm8 = vcmask 785408   ;;  %s9210_s23 = sshll.u32 %s10628_s13, 5 }
  0x17   : > { %s14813_s25 = smov (!%p330_p10, %s8399_s25), 3  ;;  %vm3626_vm9 = vcmask 253952   ;;  %vm5195_vm10 = vcmask 519168   ;;  %vm5203_vm11 = vcmask 516096   ;;  %vm10555_vm12 = vmmov 0  }
  0x18   : > { %9554 = vmatprep.subr.bf16.mxu0 %v1662_v5  ;;  %s9213_s14 = sshll.u32 %s14813_s25, 9  ;;  %vm8319_vm13 = vcmask 140288  }
  0x19   : > { %9555 = vmatpush3.bf16.msra.mxu0 %v1662_v5  ;;  %s10671_s21 = scalar_lea.vmem %s14440_s0, %s9213_s14  ;;  %s14399_s14 = scalar_lea.hbm %s14449_s9, %s9210_s23 }
  0x1a   : > { %9556 = vmatprep.subr.bf16.mxu0 %v10126_v4  ;;  %v10130_v8 = vld [vmem:[%s10671_s21] sm:$0xff]   ;;  %v10131_v10 = vld [vmem:[%s10671_s21 + $0x8] sm:$0xff]   ;;  %v10132_v11 = vld [vmem:[%s10671_s21 + $0x10] sm:$0xff]  }
  0x1b   : > { %9564 = vmatprep.mubr.msk.bf16.mxu0 %vm1272_vm2, %v10130_v8  ;;  %v10133_v12 = vld [vmem:[%s10671_s21 + $0x18] sm:$0xff]   ;;  %v10134_v13 = vld [vmem:[%s10671_s21 + $0x20] sm:$0xff]   ;;  %v10135_v14 = vld [vmem:[%s10671_s21 + $0x28] sm:$0xff]  }
  0x1c   : > { %v10136_v15 = vld [vmem:[%s10671_s21 + $0x30] sm:$0xff]   ;;  %v10137_v16 = vld [vmem:[%s10671_s21 + $0x38] sm:$0xff]   ;;  %v10138_v17 = vld [vmem:[%s10671_s21 + $0x40] sm:$0xff]  }
  0x1d   : > { %9557 = vmatpush3.bf16.msra.mxu0 %v10126_v4  ;;  %v10139_v18 = vld [vmem:[%s10671_s21 + $0x48] sm:$0xff]   ;;  %v10140_v19 = vld [vmem:[%s10671_s21 + $0x50] sm:$0xff]   ;;  %v10141_v20 = vld [vmem:[%s10671_s21 + $0x58] sm:$0xff]  }
  0x1e   : > { %9558 = vmatprep.subr.bf16.mxu0 %v10127_v6  ;;  %v10142_v21 = vld [vmem:[%s10671_s21 + $0x60] sm:$0xff]   ;;  %v10143_v22 = vld [vmem:[%s10671_s21 + $0x68] sm:$0xff]   ;;  %v10144_v23 = vld [vmem:[%s10671_s21 + $0x70] sm:$0xff]  }
  0x1f   : > { %v10145_v24 = vld [vmem:[%s10671_s21 + $0x78] sm:$0xff]   ;;  %v10146_v25 = vld [vmem:[%s10671_s21 + $0x80] sm:$0xff]   ;;  %v10147_v26 = vld [vmem:[%s10671_s21 + $0x88] sm:$0xff]  }
  0x20   : > { %v10148_v27 = vld [vmem:[%s10671_s21 + $0x90] sm:$0xff]   ;;  %v10149_v28 = vld [vmem:[%s10671_s21 + $0x98] sm:$0xff]   ;;  %v10150_v29 = vld [vmem:[%s10671_s21 + $0xa0] sm:$0xff]  }
  0x21   : > { %9559 = vmatpush3.bf16.msra.mxu0 %v10127_v6  ;;  %v10151_v30 = vld [vmem:[%s10671_s21 + $0xa8] sm:$0xff]   ;;  %v10152_v31 = vld [vmem:[%s10671_s21 + $0xb0] sm:$0xff]   ;;  %v10153_v32 = vld [vmem:[%s10671_s21 + $0xb8] sm:$0xff]  }
  0x22   : > { %9560 = vmatprep.subr.bf16.mxu0 %v10128_v7  ;;  %v10154_v33 = vld [vmem:[%s10671_s21 + $0xc0] sm:$0xff]   ;;  %v10155_v34 = vld [vmem:[%s10671_s21 + $0xc8] sm:$0xff]   ;;  %v10156_v35 = vld [vmem:[%s10671_s21 + $0xd0] sm:$0xff]  }
  0x23   : > { %v10157_v36 = vld [vmem:[%s10671_s21 + $0xd8] sm:$0xff]   ;;  %v10158_v37 = vld [vmem:[%s10671_s21 + $0xe0] sm:$0xff]   ;;  %v10159_v38 = vld [vmem:[%s10671_s21 + $0xe8] sm:$0xff]  }
  0x24   : > { %v10160_v39 = vld [vmem:[%s10671_s21 + $0xf0] sm:$0xff]   ;;  %v10161_v40 = vld [vmem:[%s10671_s21 + $0xf8] sm:$0xff]   ;;  %v10162_v41 = vld [vmem:[%s10671_s21 + $0x100] sm:$0xff]  }
  0x25   : > { %9561 = vmatpush3.bf16.msra.mxu0 %v10128_v7  ;;  %v10163_v42 = vld [vmem:[%s10671_s21 + $0x108] sm:$0xff]   ;;  %v10164_v43 = vld [vmem:[%s10671_s21 + $0x110] sm:$0xff]   ;;  %v10165_v44 = vld [vmem:[%s10671_s21 + $0x118] sm:$0xff]  }
  0x26   : > { %9562 = vmatprep.subr.bf16.mxu0 %v10129_v9  ;;  %v10166_v45 = vld [vmem:[%s10671_s21 + $0x120] sm:$0xff]   ;;  %v10167_v46 = vld [vmem:[%s10671_s21 + $0x128] sm:$0xff]   ;;  %v10168_v47 = vld [vmem:[%s10671_s21 + $0x130] sm:$0xff]  }
  0x27   : > { %v10169_v48 = vld [vmem:[%s10671_s21 + $0x138] sm:$0xff]   ;;  %v10170_v49 = vld [vmem:[%s10671_s21 + $0x140] sm:$0xff]   ;;  %v10171_v50 = vld [vmem:[%s10671_s21 + $0x148] sm:$0xff]  }
  0x28   : > { %v10172_v51 = vld [vmem:[%s10671_s21 + $0x150] sm:$0xff]   ;;  %v10173_v52 = vld [vmem:[%s10671_s21 + $0x158] sm:$0xff]   ;;  %v10174_v53 = vld [vmem:[%s10671_s21 + $0x160] sm:$0xff]  }
  0x29   : > { %9563 = vmatpush3.bf16.msra.mxu0 %v10129_v9  ;;  %v10175_v54 = vld [vmem:[%s10671_s21 + $0x168] sm:$0xff]   ;;  %v10176_v55 = vld [vmem:[%s10671_s21 + $0x170] sm:$0xff]   ;;  %v10177_v56 = vld [vmem:[%s10671_s21 + $0x178] sm:$0xff]  }
  0x2a   : > { %v10178_v57 = vld [vmem:[%s10671_s21 + $0x180] sm:$0xff]   ;;  %v10179_v58 = vld [vmem:[%s10671_s21 + $0x188] sm:$0xff]   ;;  %v10180_v59 = vld [vmem:[%s10671_s21 + $0x190] sm:$0xff]  }
  0x2b   : > { %v10181_v63 = vld [vmem:[%s10671_s21 + $0x198] sm:$0xff]   ;;  %v10182_v0 = vld [vmem:[%s10671_s21 + $0x1a0] sm:$0xff]   ;;  %v10183_v5 = vld [vmem:[%s10671_s21 + $0x1a8] sm:$0xff]  }
  0x2c   : > { %9565 = vmatmul.mubr.msk.bf16.vlgmr.msra.gmra.mxu0 %vm1272_vm2, %v10131_v10  ;;  %v10184_v6 = vld [vmem:[%s10671_s21 + $0x1b0] sm:$0xff]  }
  0x2d   : > { %9568 = vmatprep.mubr.msk.bf16.mxu0 %vm1272_vm2, %v10132_v11  ;;  %v10185_v11 = vld [vmem:[%s10671_s21 + $0x1b8] sm:$0xff]  }
  0x34   : > { %9569 = vmatmul.mubr.msk.bf16.gmra.mxu0 %vm1272_vm2, %v10133_v12  ;;  %v10186_v12 = vld [vmem:[%s10671_s21 + $0x1c0] sm:$0xff]  }
  0x35   : > { %9572 = vmatprep.mubr.msk.bf16.mxu0 %vm1272_vm2, %v10134_v13 }
  0x3c   : > { %9573 = vmatmul.mubr.msk.bf16.gmra.mxu0 %vm1272_vm2, %v10135_v14 }
  0x3d   : > { %9576 = vmatprep.mubr.msk.bf16.mxu0 %vm1272_vm2, %v10136_v15 }
  0x44   : > { %9577 = vmatmul.mubr.msk.bf16.gmra.mxu0 %vm1272_vm2, %v10137_v16 }
  0x45   : > { %9580 = vmatprep.mubr.msk.bf16.mxu0 %vm1272_vm2, %v10138_v17  ;;  %v10187_v17 = vld [vmem:[%s10671_s21 + $0x1c8] sm:$0xff]  }
  0x4c   : > { %9581 = vmatmul.mubr.msk.bf16.gmra.mxu0 %vm1272_vm2, %v10139_v18  ;;  %v10188_v18 = vld [vmem:[%s10671_s21 + $0x1d0] sm:$0xff]  }
  0x4d   : > { %9584 = vmatprep.mubr.msk.bf16.mxu0 %vm1272_vm2, %v10140_v19 }
  0x54   : > { %9585 = vmatmul.mubr.msk.bf16.gmra.mxu0 %vm1272_vm2, %v10141_v20 }
  0x55   : > { %9588 = vmatprep.mubr.msk.bf16.mxu0 %vm1272_vm2, %v10142_v21 }
  0x5c   : > { %9589 = vmatmul.mubr.msk.bf16.gmra.mxu0 %vm1272_vm2, %v10143_v22 }
  0x5d   : > { %9592 = vmatprep.mubr.msk.bf16.mxu0 %vm1272_vm2, %v10144_v23  ;;  %v10189_v23 = vld [vmem:[%s10671_s21 + $0x1d8] sm:$0xff]  }
  0x64   : > { %9593 = vmatmul.mubr.msk.bf16.gmra.mxu0 %vm1272_vm2, %v10145_v24  ;;  %v10190_v24 = vld [vmem:[%s10671_s21 + $0x1e0] sm:$0xff]  }
  0x65   : > { %9596 = vmatprep.mubr.msk.bf16.mxu0 %vm1272_vm2, %v10146_v25 }
  0x6c   : > { %9597 = vmatmul.mubr.msk.bf16.gmra.mxu0 %vm1272_vm2, %v10147_v26 }
  0x6d   : > { %9600 = vmatprep.mubr.msk.bf16.mxu0 %vm1272_vm2, %v10148_v27 }
  0x74   : > { %9601 = vmatmul.mubr.msk.bf16.gmra.mxu0 %vm1272_vm2, %v10149_v28 }
  0x75   : > { %9604 = vmatprep.mubr.msk.bf16.mxu0 %vm1272_vm2, %v10150_v29  ;;  %v10191_v29 = vld [vmem:[%s10671_s21 + $0x1e8] sm:$0xff]  }
  0x7c   : > { %9605 = vmatmul.mubr.msk.bf16.gmra.mxu0 %vm1272_vm2, %v10151_v30  ;;  %v10192_v30 = vld [vmem:[%s10671_s21 + $0x1f0] sm:$0xff]  }
  0x7d   : > { %9608 = vmatprep.mubr.msk.bf16.mxu0 %vm1272_vm2, %v10152_v31 }
  0x84   : > { %9609 = vmatmul.mubr.msk.bf16.gmra.mxu0 %vm1272_vm2, %v10153_v32 }
  0x85   : > { %9612 = vmatprep.mubr.msk.bf16.mxu0 %vm1272_vm2, %v10154_v33 }
  0x8c   : > { %9613 = vmatmul.mubr.msk.bf16.gmra.mxu0 %vm1272_vm2, %v10155_v34 }
  0x8d   : > { %9616 = vmatprep.mubr.msk.bf16.mxu0 %vm1272_vm2, %v10156_v35  ;;  %v10193_v35 = vld [vmem:[%s10671_s21 + $0x1f8] sm:$0xff]  }
  0x94   : > { %9617 = vmatmul.mubr.msk.bf16.gmra.mxu0 %vm1272_vm2, %v10157_v36  ;;  %v10194_v36 = vld [vmem:[%s10671_s21 + $0x200] sm:$0xff]  }
  0x95   : > { %9620 = vmatprep.mubr.msk.bf16.mxu0 %vm1272_vm2, %v10158_v37 }
  0x9c   : > { %9621 = vmatmul.mubr.msk.bf16.gmra.mxu0 %vm1272_vm2, %v10159_v38 }
  0x9d   : > { %9624 = vmatprep.mubr.msk.bf16.mxu0 %vm1272_vm2, %v10160_v39 }
  0xa4   : > { %9625 = vmatmul.mubr.msk.bf16.gmra.mxu0 %vm1272_vm2, %v10161_v40 }
  0xa5   : > { %9628 = vmatprep.mubr.msk.bf16.mxu0 %vm1272_vm2, %v10162_v41  ;;  %v10195_v41 = vld [vmem:[%s10671_s21 + $0x208] sm:$0xff]  }
  0xac   : > { %9629 = vmatmul.mubr.msk.bf16.gmra.mxu0 %vm1272_vm2, %v10163_v42  ;;  %v10196_v42 = vld [vmem:[%s10671_s21 + $0x210] sm:$0xff]  }
  0xad   : > { %9632 = vmatprep.mubr.msk.bf16.mxu0 %vm1272_vm2, %v10164_v43 }
  0xb4   : > { %9633 = vmatmul.mubr.msk.bf16.gmra.mxu0 %vm1272_vm2, %v10165_v44 }
  0xb5   : > { %9636 = vmatprep.mubr.msk.bf16.mxu0 %vm1272_vm2, %v10166_v45 }
  0xbc   : > { %9637 = vmatmul.mubr.msk.bf16.gmra.mxu0 %vm1272_vm2, %v10167_v46 }
  0xbd   : > { %9640 = vmatprep.mubr.msk.bf16.mxu0 %vm1272_vm2, %v10168_v47 }
  0xc4   : > { %9641 = vmatmul.mubr.msk.bf16.gmra.mxu0 %vm1272_vm2, %v10169_v48 }
  0xc5   : > { %9644 = vmatprep.mubr.msk.bf16.mxu0 %vm1272_vm2, %v10170_v49 }
  0xcc   : > { %9645 = vmatmul.mubr.msk.bf16.gmra.mxu0 %vm1272_vm2, %v10171_v50 }
  0xcd   : > { %9648 = vmatprep.mubr.msk.bf16.mxu0 %vm1272_vm2, %v10172_v51 }
  0xd4   : > { %9649 = vmatmul.mubr.msk.bf16.gmra.mxu0 %vm1272_vm2, %v10173_v52 }
  0xd5   : > { %9652 = vmatprep.mubr.msk.bf16.mxu0 %vm1272_vm2, %v10174_v53  ;;  %v10197_v53 = vld [vmem:[%s10671_s21 + $0x218] sm:$0xff]  }
  0xdc   : > { %9653 = vmatmul.mubr.msk.bf16.gmra.mxu0 %vm1272_vm2, %v10175_v54 }
  0xdd   : > { %9656 = vmatprep.mubr.msk.bf16.mxu0 %vm1272_vm2, %v10176_v55 }
  0xe4   : > { %9657 = vmatmul.mubr.msk.bf16.gmra.mxu0 %vm1272_vm2, %v10177_v56  ;;  %v10198_v56 = vld [vmem:[%s10671_s21 + $0x220] sm:$0xff]  }
  0xe5   : > { %9660 = vmatprep.mubr.msk.bf16.mxu0 %vm1272_vm2, %v10178_v57  ;;  %v10207_v57 = vld [vmem:[%s10671_s21 + $0x268] sm:$0xff]  }
  0xec   : > { %v10776_v60 = vpop.f32.mrf.mxu0  ;;  %9661 = vmatmul.mubr.msk.bf16.gmra.mxu0 %vm1272_vm2, %v10179_v58 }
  0xed   : > { %9664 = vmatprep.mubr.msk.bf16.mxu0 %vm1272_vm2, %v10180_v59  ;;  %v10875_v45 = vsel %vm2721_vm3, %v10776_v60, -inf }
  0xee   : > { %v10780_v61 = vpop.f32.mrf.mxu0 }
  0xef   : > { %v10885_v49 = vsel %vm2721_vm3, %v10780_v61, -inf }
  0xf0   : > { %v10782_v62 = vpop.f32.mrf.mxu0 }
  0xf1   : > { %v10895_v54 = vsel %vm2721_vm3, %v10782_v62, -inf }
  0xf2   : > { %v10786_v1 = vpop.f32.mrf.mxu0 }
  0xf3   : > { %v10905_v59 = vsel %vm2721_vm3, %v10786_v1, -inf }
  0xf4   : > { %v10788_v2 = vpop.f32.mrf.mxu0  ;;  %9665 = vmatmul.mubr.msk.bf16.gmra.mxu0 %vm1272_vm2, %v10181_v63 }
  0xf5   : > { %9668 = vmatprep.mubr.msk.bf16.mxu0 %vm1272_vm2, %v10182_v0  ;;  %v10915_v63 = vsel %vm2721_vm3, %v10788_v2, -inf }
  0xf6   : > { %v10792_v3 = vpop.f32.mrf.mxu0 }
  0xf8   : > { %v10794_v4 = vpop.f32.mrf.mxu0 }
  0xfa   : > { %v10798_v7 = vpop.f32.mrf.mxu0 }
  0xfc   : > { %v10800_v8 = vpop.f32.mrf.mxu0  ;;  %9669 = vmatmul.mubr.msk.bf16.gmra.mxu0 %vm1272_vm2, %v10183_v5 }
  0xfd   : > { %9672 = vmatprep.mubr.msk.bf16.mxu0 %vm1272_vm2, %v10184_v6  ;;  %v10925_v6 = vsel %vm2721_vm3, %v10792_v3, -inf  ;;  %v10205_v3 = vld [vmem:[%s10671_s21 + $0x258] sm:$0xff]  }
  0xfe   : > { %v10804_v9 = vpop.f32.mrf.mxu0 }
 0x100   : > { %v10806_v10 = vpop.f32.mrf.mxu0 }
 0x102   : > { %v10810_v13 = vpop.f32.mrf.mxu0 }
 0x104   : > { %v10812_v14 = vpop.f32.mrf.mxu0  ;;  %9673 = vmatmul.mubr.msk.bf16.gmra.mxu0 %vm1272_vm2, %v10185_v11 }
 0x105   : > { %9676 = vmatprep.mubr.msk.bf16.mxu0 %vm1272_vm2, %v10186_v12 }
 0x106   : > { %v10816_v15 = vpop.f32.mrf.mxu0 }
 0x108   : > { %v10818_v16 = vpop.f32.mrf.mxu0 }
 0x10a   : > { %v10822_v19 = vpop.f32.mrf.mxu0 }
 0x10c   : > { %v10824_v20 = vpop.f32.mrf.mxu0  ;;  %9677 = vmatmul.mubr.msk.bf16.gmra.mxu0 %vm1272_vm2, %v10187_v17  ;;  %v10199_v17 = vld [vmem:[%s10671_s21 + $0x228] sm:$0xff]  }
 0x10d   : > { %9680 = vmatprep.mubr.msk.bf16.mxu0 %vm1272_vm2, %v10188_v18  ;;  %v10935_v18 = vsel %vm2721_vm3, %v10794_v4, -inf }
 0x10e   : > { %v10828_v21 = vpop.f32.mrf.mxu0 }
 0x10f   : > { %v11045_v4 = vsel %vm2721_vm3, %v10828_v21, -inf }
 0x110   : > { %v10830_v22 = vpop.f32.mrf.mxu0  ;;  %14526 = vst [vmem:[#allocation9_spill] sm:$0xff] %v11045_v4 }
 0x112   : > { %v10834_v25 = vpop.f32.mrf.mxu0 }
 0x114   : > { %v10836_v26 = vpop.f32.mrf.mxu0  ;;  %9681 = vmatmul.mubr.msk.bf16.gmra.mxu0 %vm1272_vm2, %v10189_v23 }
 0x115   : > { %9684 = vmatprep.mubr.msk.bf16.mxu0 %vm1272_vm2, %v10190_v24  ;;  %v10200_v24 = vld [vmem:[%s10671_s21 + $0x230] sm:$0xff]  }
 0x116   : > { %v10840_v27 = vpop.f32.mrf.mxu0 }
 0x117   : > { %v11085_v61 = vsel %vm2721_vm3, %v10840_v27, -inf }
 0x118   : > { %v10842_v28 = vpop.f32.mrf.mxu0  ;;  %14534 = vst [vmem:[#allocation17_spill] sm:$0xff] %v11085_v61 }
 0x11a   : > { %v10846_v31 = vpop.f32.mrf.mxu0 }
 0x11c   : > { %v10848_v32 = vpop.f32.mrf.mxu0  ;;  %9685 = vmatmul.mubr.msk.bf16.gmra.mxu0 %vm1272_vm2, %v10191_v29 }
 0x11d   : > { %9688 = vmatprep.mubr.msk.bf16.mxu0 %vm1272_vm2, %v10192_v30  ;;  %v10945_v30 = vsel %vm2721_vm3, %v10798_v7, -inf }
 0x11e   : > { %v10852_v33 = vpop.f32.mrf.mxu0 }
 0x120   : > { %v10854_v34 = vpop.f32.mrf.mxu0 }
 0x122   : > { %v10858_v37 = vpop.f32.mrf.mxu0 }
 0x124   : > { %v10860_v38 = vpop.f32.mrf.mxu0  ;;  %9689 = vmatmul.mubr.msk.bf16.gmra.mxu0 %vm1272_vm2, %v10193_v35 }
 0x125   : > { %9692 = vmatprep.mubr.msk.bf16.mxu0 %vm1272_vm2, %v10194_v36 }
 0x126   : > { %v10864_v39 = vpop.f32.mrf.mxu0 }
 0x128   : > { %v10866_v40 = vpop.f32.mrf.mxu0 }
 0x12a   : > { %v10870_v43 = vpop.f32.mrf.mxu0 }
 0x12c   : > { %v9598_v44 = vpop.f32.mrf.mxu0  ;;  %9693 = vmatmul.mubr.msk.bf16.gmra.mxu0 %vm1272_vm2, %v10195_v41  ;;  %v10955_v41 = vsel %vm2721_vm3, %v10800_v8, -inf }
 0x12d   : > { %v10878_v46 = vsel %vm2721_vm3, %v9598_v44, -inf  ;;  %9696 = vmatprep.mubr.msk.bf16.mxu0 %vm1272_vm2, %v10196_v42 }
 0x12e   : > { %v1826_v48 = vpop.f32.mrf.mxu0 }
 0x12f   : > { %v10888_v50 = vsel %vm2721_vm3, %v1826_v48, -inf  ;;  %v10965_v48 = vsel %vm2721_vm3, %v10804_v9, -inf  ;;  %v10203_v9 = vld [vmem:[%s10671_s21 + $0x248] sm:$0xff]  }
 0x130   : > { %v9599_v52 = vpop.f32.mrf.mxu0 }
 0x131   : > { %v10898_v55 = vsel %vm2721_vm3, %v9599_v52, -inf }
 0x132   : > { %v1829_v58 = vpop.f32.mrf.mxu0 }
 0x133   : > { %v10908_v60 = vsel %vm2721_vm3, %v1829_v58, -inf  ;;  %v10975_v58 = vsel %vm2721_vm3, %v10806_v10, -inf }
 0x134   : > { %v9602_v62 = vpop.f32.mrf.mxu0  ;;  %9697 = vmatmul.mubr.msk.bf16.gmra.mxu0 %vm1272_vm2, %v10197_v53 }
 0x135   : > { %v10918_v0 = vsel %vm2721_vm3, %v9602_v62, -inf  ;;  %9700 = vmatprep.mubr.msk.bf16.mxu0 %vm1272_vm2, %v10198_v56  ;;  %v10201_v56 = vld [vmem:[%s10671_s21 + $0x238] sm:$0xff]  }
 0x136   : > { %v1842_v5 = vpop.f32.mrf.mxu0 }
 0x137   : > { %v10928_v11 = vsel %vm2721_vm3, %v1842_v5, -inf  ;;  %v10202_v5 = vld [vmem:[%s10671_s21 + $0x240] sm:$0xff]  }
 0x138   : > { %v9603_v12 = vpop.f32.mrf.mxu0 }
 0x139   : > { %v10938_v23 = vsel %vm2721_vm3, %v9603_v12, -inf }
 0x13a   : > { %v1845_v29 = vpop.f32.mrf.mxu0 }
 0x13b   : > { %v10948_v35 = vsel %vm2721_vm3, %v1845_v29, -inf }
 0x13c   : > { %v9606_v36 = vpop.f32.mrf.mxu0  ;;  %9701 = vmatmul.mubr.msk.bf16.gmra.mxu0 %vm1272_vm2, %v10199_v17  ;;  %v10985_v17 = vsel %vm2721_vm3, %v10810_v13, -inf  ;;  %v10204_v13 = vld [vmem:[%s10671_s21 + $0x250] sm:$0xff]  }
 0x13d   : > { %v10958_v42 = vsel %vm2721_vm3, %v9606_v36, -inf  ;;  %9704 = vmatprep.mubr.msk.bf16.mxu0 %vm1272_vm2, %v10200_v24  ;;  %v10995_v36 = vsel %vm2721_vm3, %v10812_v14, -inf }
 0x13e   : > { %v1858_v44 = vpop.f32.mrf.mxu0 }
 0x13f   : > { %v10968_v52 = vsel %vm2721_vm3, %v1858_v44, -inf }
 0x140   : > { %v9607_v53 = vpop.f32.mrf.mxu0 }
 0x141   : > { %v10978_v62 = vsel %vm2721_vm3, %v9607_v53, -inf }
 0x142   : > { %v1861_v12 = vpop.f32.mrf.mxu0 }
 0x143   : > { %v10988_v24 = vsel %vm2721_vm3, %v1861_v12, -inf  ;;  %v11005_v12 = vsel %vm2721_vm3, %v10816_v15, -inf }
 0x144   : > { %v9610_v29 = vpop.f32.mrf.mxu0  ;;  %9705 = vmatmul.mubr.msk.bf16.gmra.mxu0 %vm1272_vm2, %v10201_v56 }
 0x145   : > { %v10998_v44 = vsel %vm2721_vm3, %v9610_v29, -inf  ;;  %9708 = vmatprep.mubr.msk.bf16.mxu0 %vm1272_vm2, %v10202_v5  ;;  %v11015_v29 = vsel %vm2721_vm3, %v10818_v16, -inf }
 0x146   : > { %v1874_v53 = vpop.f32.mrf.mxu0 }
 0x147   : > { %v11008_v10 = vsel %vm2721_vm3, %v1874_v53, -inf  ;;  %v11025_v53 = vsel %vm2721_vm3, %v10822_v19, -inf  ;;  %v10206_v19 = vld [vmem:[%s10671_s21 + $0x260] sm:$0xff]  }
 0x148   : > { %v9611_v56 = vpop.f32.mrf.mxu0 }
 0x149   : > { %v11018_v5 = vsel %vm2721_vm3, %v9611_v56, -inf  ;;  %v11035_v56 = vsel %vm2721_vm3, %v10824_v20, -inf }
 0x14a   : > { %v1877_v8 = vpop.f32.mrf.mxu0 }
 0x14b   : > { %v11028_v14 = vsel %vm2721_vm3, %v1877_v8, -inf }
 0x14c   : > { %v9614_v7 = vpop.f32.mrf.mxu0  ;;  %9709 = vmatmul.mubr.msk.bf16.gmra.mxu0 %vm1272_vm2, %v10203_v9 }
 0x14d   : > { %v11038_v15 = vsel %vm2721_vm3, %v9614_v7, -inf  ;;  %9712 = vmatprep.mubr.msk.bf16.mxu0 %vm1272_vm2, %v10204_v13  ;;  %v11055_v7 = vsel %vm2721_vm3, %v10830_v22, -inf }
 0x14e   : > { %v1890_v8 = vpop.f32.mrf.mxu0  ;;  %14528 = vst [vmem:[#allocation11_spill] sm:$0xff] %v11055_v7 }
 0x14f   : > { %v11048_v16 = vsel %vm2721_vm3, %v1890_v8, -inf  ;;  %v11065_v8 = vsel %vm2721_vm3, %v10834_v25, -inf  ;;  %v10208_v25 = vld [vmem:[%s10671_s21 + $0x270] sm:$0xff]  }
 0x150   : > { %14527 = vst [vmem:[#allocation10_spill] sm:$0xff] %v11048_v16  ;;  %v9615_v9 = vpop.f32.mrf.mxu0  ;;  %14530 = vst [vmem:[#allocation13_spill] sm:$0xff] %v11065_v8 }
 0x151   : > { %v11058_v13 = vsel %vm2721_vm3, %v9615_v9, -inf  ;;  %v11075_v9 = vsel %vm2721_vm3, %v10836_v26, -inf }
 0x152   : > { %14529 = vst [vmem:[#allocation12_spill] sm:$0xff] %v11058_v13  ;;  %v1893_v2 = vpop.f32.mrf.mxu0  ;;  %14532 = vst [vmem:[#allocation15_spill] sm:$0xff] %v11075_v9  ;;  %v10224_v13 = vld [vmem:[%s10671_s21 + $0x2f0] sm:$0xff]  }
 0x153   : > { %v11068_v20 = vsel %vm2721_vm3, %v1893_v2, -inf }
 0x154   : > { %14531 = vst [vmem:[#allocation14_spill] sm:$0xff] %v11068_v20  ;;  %v9618_v1 = vpop.f32.mrf.mxu0  ;;  %9713 = vmatmul.mubr.msk.bf16.gmra.mxu0 %vm1272_vm2, %v10205_v3 }
 0x155   : > { %v11078_v21 = vsel %vm2721_vm3, %v9618_v1, -inf  ;;  %9716 = vmatprep.mubr.msk.bf16.mxu0 %vm1272_vm2, %v10206_v19  ;;  %v11095_v1 = vsel %vm2721_vm3, %v10842_v28, -inf }
 0x156   : > { %14533 = vst [vmem:[#allocation16_spill] sm:$0xff] %v11078_v21  ;;  %v1906_v2 = vpop.f32.mrf.mxu0  ;;  %14536 = vst [vmem:[#allocation19_spill] sm:$0xff] %v11095_v1  ;;  %v10222_v21 = vld [vmem:[%s10671_s21 + $0x2e0] sm:$0xff]  }
 0x157   : > { %v11088_v22 = vsel %vm2721_vm3, %v1906_v2, -inf  ;;  %v11105_v2 = vsel %vm2721_vm3, %v10846_v31, -inf  ;;  %v10210_v31 = vld [vmem:[%s10671_s21 + $0x280] sm:$0xff]  }
 0x158   : > { %14535 = vst [vmem:[#allocation18_spill] sm:$0xff] %v11088_v22  ;;  %v9619_v3 = vpop.f32.mrf.mxu0  ;;  %14538 = vst [vmem:[#allocation21_spill] sm:$0xff] %v11105_v2  ;;  %v10220_v2 = vld [vmem:[%s10671_s21 + $0x2d0] sm:$0xff]  }
 0x159   : > { %v11098_v19 = vsel %vm2721_vm3, %v9619_v3, -inf  ;;  %v11115_v3 = vsel %vm2721_vm3, %v10848_v32, -inf }
 0x15a   : > { %14537 = vst [vmem:[#allocation20_spill] sm:$0xff] %v11098_v19  ;;  %v1909_v51 = vpop.f32.mrf.mxu0  ;;  %14540 = vst [vmem:[#allocation23_spill] sm:$0xff] %v11115_v3  ;;  %v11125_v19 = vsel %vm2721_vm3, %v10852_v33, -inf }
 0x15b   : > { %v11108_v26 = vsel %vm2721_vm3, %v1909_v51, -inf  ;;  %14542 = vst [vmem:[#allocation25_spill] sm:$0xff] %v11125_v19 }
 0x15c   : > { %14539 = vst [vmem:[#allocation22_spill] sm:$0xff] %v11108_v26  ;;  %v9622_v47 = vpop.f32.mrf.mxu0  ;;  %9717 = vmatmul.mubr.msk.bf16.gmra.mxu0 %vm1272_vm2, %v10207_v57  ;;  %v10209_v26 = vld [vmem:[%s10671_s21 + $0x278] sm:$0xff]  }
 0x15d   : > { %v11118_v27 = vsel %vm2721_vm3, %v9622_v47, -inf  ;;  %9720 = vmatprep.mubr.msk.bf16.mxu0 %vm1272_vm2, %v10208_v25  ;;  %v11135_v47 = vsel %vm2721_vm3, %v10854_v34, -inf }
 0x15e   : > { %14541 = vst [vmem:[#allocation24_spill] sm:$0xff] %v11118_v27  ;;  %v1922_v51 = vpop.f32.mrf.mxu0  ;;  %14544 = vst [vmem:[#allocation27_spill] sm:$0xff] %v11135_v47  ;;  %v10217_v47 = vld [vmem:[%s10671_s21 + $0x2b8] sm:$0xff]  }
 0x15f   : > { %v11128_v28 = vsel %vm2721_vm3, %v1922_v51, -inf  ;;  %v11145_v51 = vsel %vm2721_vm3, %v10858_v37, -inf }
 0x160   : > { %14543 = vst [vmem:[#allocation26_spill] sm:$0xff] %v11128_v28  ;;  %v9623_v57 = vpop.f32.mrf.mxu0  ;;  %14546 = vst [vmem:[#allocation29_spill] sm:$0xff] %v11145_v51 }
 0x161   : > { %v11138_v25 = vsel %vm2721_vm3, %v9623_v57, -inf  ;;  %v11155_v57 = vsel %vm2721_vm3, %v10860_v38, -inf }
 0x162   : > { %14545 = vst [vmem:[#allocation28_spill] sm:$0xff] %v11138_v25  ;;  %v1925_v27 = vpop.f32.mrf.mxu0  ;;  %14548 = vst [vmem:[#allocation31_spill] sm:$0xff] %v11155_v57  ;;  %v11165_v25 = vsel %vm2721_vm3, %v10864_v39, -inf  ;;  %v11185_v57 = vsel %vm2721_vm3, %v10870_v43, -inf }
 0x163   : > { %v11148_v32 = vsel %vm2721_vm3, %v1925_v27, -inf  ;;  %14550 = vst [vmem:[#allocation33_spill] sm:$0xff] %v11165_v25  ;;  %14554 = vst [vmem:[#allocation37_spill] sm:$0xff] %v11185_v57 }
 0x164   : > { %14547 = vst [vmem:[#allocation30_spill] sm:$0xff] %v11148_v32  ;;  %v9626_v28 = vpop.f32.mrf.mxu0  ;;  %9721 = vmatmul.mubr.msk.bf16.gmra.mxu0 %vm1272_vm2, %v10209_v26 }
 0x165   : > { %v11158_v33 = vsel %vm2721_vm3, %v9626_v28, -inf  ;;  %9724 = vmatprep.mubr.msk.bf16.mxu0 %vm1272_vm2, %v10210_v31  ;;  %v10211_v28 = vld [vmem:[%s10671_s21 + $0x288] sm:$0xff]   ;;  %v11175_v31 = vsel %vm2721_vm3, %v10866_v40, -inf }
 0x166   : > { %14549 = vst [vmem:[#allocation32_spill] sm:$0xff] %v11158_v33  ;;  %v1938_v27 = vpop.f32.mrf.mxu0  ;;  %14552 = vst [vmem:[#allocation35_spill] sm:$0xff] %v11175_v31  ;;  %v10212_v33 = vld [vmem:[%s10671_s21 + $0x290] sm:$0xff]   ;;  %v10214_v31 = vld [vmem:[%s10671_s21 + $0x2a0] sm:$0xff]  }
 0x167   : > { %v11168_v34 = vsel %vm2721_vm3, %v1938_v27, -inf  ;;  %v10215_v40 = vld [vmem:[%s10671_s21 + $0x2a8] sm:$0xff]  }
 0x168   : > { %14551 = vst [vmem:[#allocation34_spill] sm:$0xff] %v11168_v34  ;;  %v9627_v26 = vpop.f32.mrf.mxu0 }
 0x169   : > { %v11178_v37 = vsel %vm2721_vm3, %v9627_v26, -inf }
 0x16a   : > { %14553 = vst [vmem:[#allocation36_spill] sm:$0xff] %v11178_v37  ;;  %v1941_v27 = vpop.f32.mrf.mxu0  ;;  %v10213_v37 = vld [vmem:[%s10671_s21 + $0x298] sm:$0xff]  }
 0x16b   : > { %v11188_v38 = vsel %vm2721_vm3, %v1941_v27, -inf }
 0x16c   : > { %14555 = vst [vmem:[#allocation38_spill] sm:$0xff] %v11188_v38  ;;  %v9630_v34 = vpop.f32.mrf.mxu0  ;;  %9725 = vmatmul.mubr.msk.bf16.gmra.mxu0 %vm1272_vm2, %v10211_v28  ;;  %v10216_v38 = vld [vmem:[%s10671_s21 + $0x2b0] sm:$0xff]  }
 0x16d   : > { %9728 = vmatprep.mubr.msk.bf16.mxu0 %vm1272_vm2, %v10212_v33 }
 0x16e   : > { %v1954_v26 = vpop.f32.mrf.mxu0 }
 0x170   : > { %v9631_v39 = vpop.f32.mrf.mxu0 }
 0x172   : > { %v1957_v43 = vpop.f32.mrf.mxu0 }
 0x174   : > { %v9634_v25 = vpop.f32.mrf.mxu0  ;;  %9729 = vmatmul.mubr.msk.bf16.gmra.mxu0 %vm1272_vm2, %v10213_v37  ;;  %v10218_v37 = vld [vmem:[%s10671_s21 + $0x2c0] sm:$0xff]  }
 0x175   : > { %9732 = vmatprep.mubr.msk.bf16.mxu0 %vm1272_vm2, %v10214_v31 }
 0x176   : > { %v1970_v27 = vpop.f32.mrf.mxu0 }
 0x178   : > { %v9635_v32 = vpop.f32.mrf.mxu0 }
 0x17a   : > { %v1973_v28 = vpop.f32.mrf.mxu0 }
 0x17c   : > { %v9638_v33 = vpop.f32.mrf.mxu0  ;;  %9733 = vmatmul.mubr.msk.bf16.gmra.mxu0 %vm1272_vm2, %v10215_v40 }
 0x17d   : > { %9736 = vmatprep.mubr.msk.bf16.mxu0 %vm1272_vm2, %v10216_v38  ;;  %v10219_v38 = vld [vmem:[%s10671_s21 + $0x2c8] sm:$0xff]  }
 0x17e   : > { %v11202_v57 = vpop.f32.mrf.mxu0 }
 0x180   : > { %v11204_v51 = vpop.f32.mrf.mxu0 }
 0x182   : > { %v11208_v31 = vpop.f32.mrf.mxu0 }
 0x184   : > { %v11210_v19 = vpop.f32.mrf.mxu0  ;;  %9737 = vmatmul.mubr.msk.bf16.gmra.mxu0 %vm1272_vm2, %v10217_v47 }
 0x185   : > { %9740 = vmatprep.mubr.msk.bf16.mxu0 %vm1272_vm2, %v10218_v37  ;;  %v10221_v37 = vld [vmem:[%s10671_s21 + $0x2d8] sm:$0xff]  }
 0x186   : > { %v11214_v3 = vpop.f32.mrf.mxu0 }
 0x188   : > { %v11216_v40 = vpop.f32.mrf.mxu0 }
 0x18a   : > { %v11220_v1 = vpop.f32.mrf.mxu0 }
 0x18c   : > { %v11222_v22 = vpop.f32.mrf.mxu0  ;;  %9741 = vmatmul.mubr.msk.bf16.gmra.mxu0 %vm1272_vm2, %v10219_v38 }
 0x18d   : > { %9744 = vmatprep.mubr.msk.bf16.mxu0 %vm1272_vm2, %v10220_v2  ;;  %v10223_v2 = vld [vmem:[%s10671_s21 + $0x2e8] sm:$0xff]  }
 0x18e   : > { %v11226_v61 = vpop.f32.mrf.mxu0 }
 0x190   : > { %v11228_v47 = vpop.f32.mrf.mxu0 }
 0x191   : > { %14556 = vst [vmem:[#allocation39_spill] sm:$0xff] %v11228_v47 }
 0x192   : > { %v11232_v9 = vpop.f32.mrf.mxu0 }
 0x193   : > { %14557 = vst [vmem:[#allocation40_spill] sm:$0xff] %v11232_v9 }
 0x194   : > { %v11234_v20 = vpop.f32.mrf.mxu0  ;;  %9745 = vmatmul.mubr.msk.bf16.gmra.mxu0 %vm1272_vm2, %v10221_v37 }
 0x195   : > { %14558 = vst [vmem:[#allocation41_spill] sm:$0xff] %v11234_v20  ;;  %9748 = vmatprep.mubr.msk.bf16.mxu0 %vm1272_vm2, %v10222_v21  ;;  %v10225_v21 = vld [vmem:[%s10671_s21 + $0x2f8] sm:$0xff]   ;;  %v10226_v20 = vld [vmem:[%s10671_s21 + $0x300] sm:$0xff]  }
 0x196   : > { %v11238_v8 = vpop.f32.mrf.mxu0 }
 0x197   : > { %14559 = vst [vmem:[#allocation42_spill] sm:$0xff] %v11238_v8 }
 0x198   : > { %v11240_v38 = vpop.f32.mrf.mxu0 }
 0x199   : > { %14560 = vst [vmem:[#allocation43_spill] sm:$0xff] %v11240_v38 }
 0x19a   : > { %v11244_v7 = vpop.f32.mrf.mxu0 }
 0x19b   : > { %14561 = vst [vmem:[#allocation44_spill] sm:$0xff] %v11244_v7  ;;  %v2767_v7 = vsel %vm2721_vm3, %v9634_v25, -inf  ;;  %v2795_v25 = vsel %vm2721_vm3, %v9638_v33, -inf  ;;  %v14575_v33 = vmax.f32 %v10935_v18, %v10938_v23  ;;  %v2788_v18 = vsel %vm2721_vm3, %v11208_v31, -inf }
 0x19c   : > { %v11246_v16 = vpop.f32.mrf.mxu0  ;;  %9749 = vmatmul.mubr.msk.bf16.gmra.mxu0 %vm1272_vm2, %v10223_v2  ;;  %v2725_v2 = vsel %vm2721_vm3, %v1954_v26, -inf  ;;  %v2823_v23 = vsel %vm2721_vm3, %v11210_v19, -inf  ;;  %v14578_v19 = vmax.f32 %v10965_v48, %v10968_v52  ;;  %v14581_v48 = vmax.f32 %v10995_v36, %v10998_v44 }
 0x19d   : > { %14562 = vst [vmem:[#allocation45_spill] sm:$0xff] %v11246_v16  ;;  %9752 = vmatprep.mubr.msk.bf16.mxu0 %vm1272_vm2, %v10224_v13  ;;  %v2739_v13 = vsel %vm2721_vm3, %v9630_v34, -inf  ;;  %v14569_v34 = vmax.f32 %v10875_v45, %v10878_v46  ;;  %v14573_v45 = vmax.f32 %v10915_v63, %v10918_v0  ;;  %v2802_v63 = vsel %vm2721_vm3, %v11204_v51, -inf }
 0x19e   : > { %v11250_v4 = vpop.f32.mrf.mxu0  ;;  %v11359_v52 = vmax.f32 %v14581_v48, %v2823_v23  ;;  %v14584_v36 = vmax.f32 %v11025_v53, %v11028_v14  ;;  %v14587_v53 = vld [vmem:[#allocation40_spill] sm:$0xff] }
 0x19f   : > { %14563 = vst [vmem:[#allocation46_spill] sm:$0xff] %v11250_v4  ;;  %v2746_v4 = vsel %vm2721_vm3, %v9631_v39, -inf  ;;  %v2740_v26 = vmax.f32 %v14569_v34, %v2739_v13  ;;  %v14570_v39 = vmax.f32 %v10885_v49, %v10888_v50  ;;  %v11294_v46 = vmax.f32 %v14573_v45, %v2767_v7 }
 0x1a0   : > { %v11252_v37 = vpop.f32.mrf.mxu0  ;;  %v14574_v49 = vmax.f32 %v10925_v6, %v10928_v11  ;;  %v14577_v6 = vmax.f32 %v10955_v41, %v10958_v42  ;;  %v2830_v41 = vsel %vm2721_vm3, %v11216_v40, -inf  ;;  %v2816_v42 = vsel %vm2721_vm3, %v11220_v1, -inf }
 0x1a1   : > { %14564 = vst [vmem:[#allocation47_spill] sm:$0xff] %v11252_v37  ;;  %v2732_v37 = vsel %vm2721_vm3, %v1957_v43, -inf  ;;  %v2726_v43 = vmax.f32 %v14570_v39, %v2725_v2  ;;  %v14580_v1 = vmax.f32 %v10985_v17, %v10988_v24  ;;  %v14583_v17 = vmax.f32 %v11015_v29, %v11018_v5  ;;  %v14586_v39 = vld [vmem:[#allocation39_spill] sm:$0xff] }
 0x1a2   : > { %v11256_v8 = vpop.f32.mrf.mxu0  ;;  %v11319_v11 = vmax.f32 %v14577_v6, %v2795_v25  ;;  %v11376_v44 = vmax.f32 %v14584_v36, %v2816_v42  ;;  %v2837_v5 = vsel %vm2721_vm3, %v11226_v61, -inf  ;;  %v2858_v14 = vsel %vm2721_vm3, %v14586_v39, -inf  ;;  %v14589_v61 = vld [vmem:[#allocation42_spill] sm:$0xff]  ;;  %v14606_v39 = vld [vmem:[#allocation19_spill] sm:$0xff] }
 0x1a3   : > { %14565 = vst [vmem:[#allocation48_spill] sm:$0xff] %v11256_v8  ;;  %v2753_v8 = vsel %vm2721_vm3, %v1970_v27, -inf  ;;  %v14571_v27 = vmax.f32 %v10895_v54, %v10898_v55  ;;  %v14576_v55 = vmax.f32 %v10945_v30, %v10948_v35  ;;  %v11329_v35 = vld [vmem:[%s14442_s2] ss:$0 sm:$0xff]  ;;  %v11354_v40 = vmax.f32 %v14580_v1, %v2788_v18  ;;  %v14598_v1 = vld [vmem:[#allocation14_spill] sm:$0xff] }
 0x1a4   : > { %v11258_v38 = vpop.f32.mrf.mxu0  ;;  %9753 = vmatmul.mubr.msk.bf16.gmra.mxu0 %vm1272_vm2, %v10225_v21  ;;  %v2774_v21 = vsel %vm2721_vm3, %v9635_v32, -inf  ;;  %v14572_v32 = vmax.f32 %v10905_v59, %v10908_v60  ;;  %v11299_v50 = vmax.f32 %v14574_v49, %v2753_v8  ;;  %v2781_v60 = vsel %vm2721_vm3, %v11202_v57, -inf  ;;  %v10231_v36 = vld [vmem:[%s10671_s21 + $0x328] sm:$0xff]  }
 0x1a5   : > { %14566 = vst [vmem:[#allocation49_spill] sm:$0xff] %v11258_v38  ;;  %9756 = vmatprep.mubr.msk.bf16.mxu0 %vm1272_vm2, %v10226_v20  ;;  %v10227_v38 = vld [vmem:[%s10671_s21 + $0x308] sm:$0xff]   ;;  %v2760_v20 = vsel %vm2721_vm3, %v1973_v28, -inf  ;;  %v11304_v54 = vmax.f32 %v14575_v33, %v2774_v21  ;;  %v11341_v51 = vmax.f32 %v14578_v19, %v2781_v60  ;;  %v11371_v24 = vmax.f32 %v14583_v17, %v2830_v41  ;;  %v10230_v21 = vld [vmem:[%s10671_s21 + $0x320] sm:$0xff]   ;;  %v14595_v19 = vld [vmem:[#allocation12_spill] sm:$0xff] }
 0x1a6   : > { %v11262_v16 = vpop.f32.mrf.mxu0  ;;  %v2733_v28 = vmax.f32 %v14572_v32, %v2732_v37  ;;  %v11309_v59 = vmax.f32 %v14576_v55, %v2760_v20  ;;  %v10229_v37 = vld [vmem:[%s10671_s21 + $0x318] sm:$0xff]   ;;  %v14585_v20 = vmax.f32 %v11035_v56, %v11038_v15  ;;  %v2865_v33 = vsel %vm2721_vm3, %v14589_v61, -inf  ;;  %v14590_v55 = vld [vmem:[#allocation43_spill] sm:$0xff]  ;;  %v14592_v41 = vld [vmem:[#allocation10_spill] sm:$0xff] }
 0x1a7   : > { %14567 = vst [vmem:[#allocation50_spill] sm:$0xff] %v11262_v16  ;;  %v10228_v16 = vld [vmem:[%s10671_s21 + $0x310] sm:$0xff]   ;;  %v2886_v60 = vsel %vm2721_vm3, %v14590_v55, -inf }
 0x1a8   : > { %v11270_v9 = vpop.f32.mrf.mxu0 }
 0x1a9   : > { %14568 = vst [vmem:[#allocation51_spill] sm:$0xff] %v11270_v9  ;;  %v2747_v9 = vmax.f32 %v14571_v27, %v2746_v4  ;;  %v2809_v4 = vsel %vm2721_vm3, %v11214_v3, -inf  ;;  %v2851_v3 = vsel %vm2721_vm3, %v11222_v22, -inf  ;;  %v14582_v22 = vmax.f32 %v11005_v12, %v11008_v10 }
 0x1aa   : > { %v11283_v47 = vpop.f32.mrf.mxu0  ;;  %v11383_v34 = vmax.f32 %v14585_v20, %v2851_v3 }
 0x1ab   : > { %v11366_v13 = vmax.f32 %v14582_v22, %v2809_v4  ;;  %v14591_v4 = vld [vmem:[#allocation9_spill] sm:$0xff] }
 0x1ac   : > { %v9662_v0 = vpop.f32.mrf.mxu0  ;;  %9757 = vmatmul.mubr.msk.bf16.gmra.mxu0 %vm1272_vm2, %v10227_v38  ;;  %v14593_v42 = vmax.f32 %v14591_v4, %v14592_v41  ;;  %v14613_v41 = vld [vmem:[#allocation48_spill] sm:$0xff] }
 0x1ad   : > { %v2741_v30 = vsel %vm2721_vm3, %v9662_v0, -inf  ;;  %9760 = vmatprep.mubr.msk.bf16.mxu0 %vm1272_vm2, %v10228_v16  ;;  %v14579_v16 = vmax.f32 %v10975_v58, %v10978_v62 }
 0x1ae   : > { %v2742_v7 = vmax.f32 %v2740_v26, %v2741_v30  ;;  %v2082_v8 = vpop.f32.mrf.mxu0  ;;  %v10287_v30 = vld [vmem:[%s14443_s3 + $0x58] sm:$0xff]  }
 0x1af   : > { %v11346_v57 = vmax.f32 %v14579_v16, %v2802_v63  ;;  %v2727_v31 = vsel %vm2721_vm3, %v2082_v8, -inf  ;;  %v14594_v8 = vld [vmem:[#allocation11_spill] sm:$0xff]  ;;  %9820 = vmatprep.subr.bf16.mxu1 %v10287_v30 }
 0x1b0   : > { %v3179_v38 = vadd.f32 %v11329_v35, %v2742_v7  ;;  %v2728_v58 = vmax.f32 %v2726_v43, %v2727_v31  ;;  %v9663_v62 = vpop.f32.mrf.mxu0  ;;  %v2844_v43 = vsel %vm2721_vm3, %v14587_v53, -inf  ;;  %v11412_v7 = vmax.f32 %v14593_v42, %v2837_v5  ;;  %v14597_v31 = vld [vmem:[#allocation13_spill] sm:$0xff]  ;;  %9821 = vmatpush3.bf16.msra.mxu1 %v10287_v30  ;;  %v14612_v30 = vld [vmem:[#allocation47_spill] sm:$0xff] }
 0x1b1   : > { %v2748_v2 = vsel %vm2721_vm3, %v9663_v62, -inf  ;;  %v14596_v16 = vmax.f32 %v14594_v8, %v14595_v19  ;;  %v14599_v48 = vmax.f32 %v14597_v31, %v14598_v1  ;;  %v2914_v4 = vsel %vm2721_vm3, %v14612_v30, -inf  ;;  %v14614_v8 = vld [vmem:[#allocation49_spill] sm:$0xff] }
 0x1b2   : > { %v3243_v10 = vmax.f32 %v3179_v38, 0.0  ;;  %v3177_v12 = vadd.f32 %v11329_v35, %v2728_v58  ;;  %v2749_v26 = vmax.f32 %v2747_v9, %v2748_v2  ;;  %v2085_v29 = vpop.f32.mrf.mxu0  ;;  %v14588_v9 = vld [vmem:[#allocation41_spill] sm:$0xff]  ;;  %v14600_v2 = vld [vmem:[#allocation15_spill] sm:$0xff]  ;;  %v2900_v42 = vsel %vm2721_vm3, %v14613_v41, -inf }
 0x1b3   : > { %v2734_v25 = vsel %vm2721_vm3, %v2085_v29, -inf  ;;  %v2879_v49 = vsel %vm2721_vm3, %v14588_v9, -inf  ;;  %v11417_v3 = vmax.f32 %v14596_v16, %v2858_v14  ;;  %v14607_v14 = vld [vmem:[#allocation20_spill] sm:$0xff]  ;;  %v2935_v19 = vsel %vm2721_vm3, %v14614_v8, -inf  ;;  %v10294_v8 = vld [vmem:[%s14443_s3 + $0x40] sm:$0xff]  }
 0x1b4   : > { %v9216_v27 = vpack.c.bf16 %v3243_v10, %v3243_v10  ;;  %v3241_v15 = vmax.f32 %v3177_v12, 0.0  ;;  %v3180_v56 = vadd.f32 %v11329_v35, %v2749_v26  ;;  %v2735_v32 = vmax.f32 %v2733_v28, %v2734_v25  ;;  %v9666_v45 = vpop.f32.mrf.mxu0  ;;  %9761 = vmatmul.mubr.msk.bf16.gmra.mxu0 %vm1272_vm2, %v10229_v37  ;;  %v14603_v12 = vld [vmem:[#allocation17_spill] sm:$0xff]  ;;  %v14604_v26 = vld [vmem:[#allocation18_spill] sm:$0xff]  ;;  %v10232_v25 = vld [vmem:[%s10671_s21 + $0x330] sm:$0xff]  }
 0x1b5   : > { %v2769_v63 = vsel %vm2721_vm3, %v9666_v45, -inf  ;;  %9764 = vmatprep.mubr.msk.bf16.mxu0 %vm1272_vm2, %v10230_v21  ;;  %v14601_v21 = vld [vmem:[#allocation16_spill] sm:$0xff]  ;;  %v14605_v29 = vmax.f32 %v14603_v12, %v14604_v26  ;;  %v14608_v53 = vmax.f32 %v14606_v39, %v14607_v14  ;;  %v14621_v12 = vld [vmem:[#allocation25_spill] sm:$0xff]  ;;  %v14622_v26 = vld [vmem:[#allocation26_spill] sm:$0xff] }
 0x1b6   : > { %3564 = vst.msk [vmem:[#allocation2 + $0x8] sm:$0xf] %vm3561_vm4, %v9216_v27  ;;  %v9214_v0 = vpack.c.bf16 %v3241_v15, %v3241_v15  ;;  %v3244_v28 = vmax.f32 %v3180_v56, 0.0  ;;  %v3178_v6 = vadd.f32 %v11329_v35, %v2735_v32  ;;  %v2770_v18 = vmax.f32 %v11294_v46, %v2769_v63  ;;  %v2098_v23 = vpop.f32.mrf.mxu0  ;;  %v10290_v9 = vld [vmem:[%s14443_s3 + $0x50] sm:$0xff]  }
 0x1b7   : > { %v11422_v46 = vmax.f32 %v14599_v48, %v2844_v43  ;;  %v2755_v38 = vsel %vm2721_vm3, %v2098_v23, -inf  ;;  %v14602_v20 = vmax.f32 %v14600_v2, %v14601_v21  ;;  %v11437_v5 = vmax.f32 %v14605_v29, %v2865_v33  ;;  %v14610_v33 = vld [vmem:[#allocation45_spill] sm:$0xff]  ;;  %9822 = vmatprep.subr.bf16.mxu1 %v10290_v9  ;;  %v14619_v2 = vld [vmem:[#allocation24_spill] sm:$0xff] }
 0x1b8   : > { %3562 = vst.msk [vmem:[#allocation2] sm:$0xf] %vm3561_vm4, %v9214_v0  ;;  %v9217_v58 = vpack.c.bf16 %v3244_v28, %v3244_v28  ;;  %v3242_v62 = vmax.f32 %v3178_v6, 0.0  ;;  %v3183_v37 = vadd.f32 %v11329_v35, %v2770_v18  ;;  %v2756_v22 = vmax.f32 %v11299_v50, %v2755_v38  ;;  %v9667_v17 = vpop.f32.mrf.mxu0  ;;  %9823 = vmatpush3.bf16.msra.mxu1 %v10290_v9 }
 0x1b9   : > { %v11432_v10 = vmax.f32 %v14602_v20, %v2879_v49  ;;  %v11442_v43 = vmax.f32 %v14608_v53, %v2886_v60  ;;  %v2776_v50 = vsel %vm2721_vm3, %v9667_v17, -inf  ;;  %v14609_v49 = vld [vmem:[#allocation44_spill] sm:$0xff]  ;;  %v2907_v55 = vsel %vm2721_vm3, %v14610_v33, -inf  ;;  %v14611_v60 = vld [vmem:[#allocation46_spill] sm:$0xff] }
 0x1ba   : > { %3565 = vst.msk [vmem:[#allocation2 + $0xc] sm:$0xf] %vm3561_vm4, %v9217_v58  ;;  %v9215_v27 = vpack.c.bf16 %v3242_v62, %v3242_v62  ;;  %v3247_v15 = vmax.f32 %v3183_v37, 0.0  ;;  %v3181_v56 = vadd.f32 %v11329_v35, %v2756_v22  ;;  %v2777_v32 = vmax.f32 %v11304_v54, %v2776_v50  ;;  %v2101_v45 = vpop.f32.mrf.mxu0  ;;  %v10291_v58 = vld [vmem:[%s14443_s3 + $0x48] sm:$0xff]   ;;  %v14615_v62 = vld [vmem:[#allocation21_spill] sm:$0xff] }
 0x1bb   : > { %v2872_v61 = vsel %vm2721_vm3, %v14609_v49, -inf  ;;  %v2893_v63 = vsel %vm2721_vm3, %v14611_v60, -inf  ;;  %v2762_v0 = vsel %vm2721_vm3, %v2101_v45, -inf  ;;  %v14616_v37 = vld [vmem:[#allocation22_spill] sm:$0xff]  ;;  %v14623_v29 = vmax.f32 %v14621_v12, %v14622_v26  ;;  %9824 = vmatprep.subr.bf16.mxu1 %v10291_v58  ;;  %v14627_v49 = vld [vmem:[#allocation29_spill] sm:$0xff]  ;;  %v14630_v60 = vld [vmem:[#allocation31_spill] sm:$0xff] }
 0x1bc   : > { %3563 = vst.msk [vmem:[#allocation2 + $0x4] sm:$0xf] %vm3561_vm4, %v9215_v27  ;;  %v9220_v28 = vpack.c.bf16 %v3247_v15, %v3247_v15  ;;  %v3245_v54 = vmax.f32 %v3181_v56, 0.0  ;;  %v3184_v6 = vadd.f32 %v11329_v35, %v2777_v32  ;;  %v2763_v18 = vmax.f32 %v11309_v59, %v2762_v0  ;;  %v9670_v23 = vpop.f32.mrf.mxu0  ;;  %9765 = vmatmul.mubr.msk.bf16.gmra.mxu0 %vm1272_vm2, %v10231_v36  ;;  %v14618_v36 = vld [vmem:[#allocation23_spill] sm:$0xff]  ;;  %v10233_v15 = vld [vmem:[%s10671_s21 + $0x338] sm:$0xff]  }
 0x1bd   : > { %v2797_v16 = vsel %vm2721_vm3, %v9670_v23, -inf  ;;  %9768 = vmatprep.mubr.msk.bf16.mxu0 %vm1272_vm2, %v10232_v25  ;;  %v14617_v22 = vmax.f32 %v14615_v62, %v14616_v37  ;;  %v14620_v21 = vmax.f32 %v14618_v36, %v14619_v2  ;;  %v14624_v56 = vld [vmem:[#allocation27_spill] sm:$0xff]  ;;  %v14625_v32 = vld [vmem:[#allocation28_spill] sm:$0xff]  ;;  %9825 = vmatpush3.bf16.msra.mxu1 %v10291_v58  ;;  %v2928_v36 = vsel %vm2721_vm3, %v11283_v47, -inf }
 0x1be   : > { %3568 = vst.msk [vmem:[#allocation2 + $0x18] sm:$0xf] %vm3561_vm4, %v9220_v28  ;;  %v9218_v59 = vpack.c.bf16 %v3245_v54, %v3245_v54  ;;  %v3248_v31 = vmax.f32 %v3184_v6, 0.0  ;;  %v3182_v1 = vadd.f32 %v11329_v35, %v2763_v18  ;;  %v2798_v48 = vmax.f32 %v11319_v11, %v2797_v16  ;;  %v2114_v38 = vpop.f32.mrf.mxu0  ;;  %v10234_v54 = vld [vmem:[%s10671_s21 + $0x340] sm:$0xff]   ;;  %9826 = vmatprep.subr.bf16.mxu1 %v10294_v8  ;;  %v10295_v47 = vld [vmem:[%s14443_s3 + $0x38] sm:$0xff]  }
 0x1bf   : > { %v11480_v17 = vmax.f32 %v14617_v22, %v2872_v61  ;;  %v11485_v20 = vmax.f32 %v14620_v21, %v2907_v55  ;;  %v11490_v11 = vmax.f32 %v14623_v29, %v2893_v63  ;;  %v2783_v39 = vsel %vm2721_vm3, %v2114_v38, -inf  ;;  %v14628_v61 = vld [vmem:[#allocation30_spill] sm:$0xff]  ;;  %v14631_v63 = vld [vmem:[#allocation32_spill] sm:$0xff] }
 0x1c0   : > { %3566 = vst.msk [vmem:[#allocation2 + $0x10] sm:$0xf] %vm3561_vm4, %v9218_v59  ;;  %v9221_v14 = vpack.c.bf16 %v3248_v31, %v3248_v31  ;;  %v3246_v53 = vmax.f32 %v3182_v1, 0.0  ;;  %v3187_v50 = vadd.f32 %v11329_v35, %v2798_v48  ;;  %v2784_v25 = vmax.f32 %v11341_v51, %v2783_v39  ;;  %v9671_v27 = vpop.f32.mrf.mxu0  ;;  %v14634_v59 = vld [vmem:[#allocation51_spill] sm:$0xff] }
 0x1c1   : > { %v14626_v45 = vmax.f32 %v14624_v56, %v14625_v32  ;;  %v14629_v33 = vmax.f32 %v14627_v49, %v14628_v61  ;;  %v14632_v0 = vmax.f32 %v14630_v60, %v14631_v63  ;;  %v2804_v51 = vsel %vm2721_vm3, %v9671_v27, -inf  ;;  %v3631_v6 = vld [vmem:[#allocation2 + $0xc] sm:$0xf]  ;;  %v4009_v22 = vld [vmem:[#allocation2 + $0x8] sm:$0xe]  ;;  %9827 = vmatpush3.bf16.msra.mxu1 %v10294_v8  ;;  %v14639_v56 = vld [vmem:[#allocation36_spill] sm:$0xff] }
 0x1c2   : > { %3569 = vst.msk [vmem:[#allocation2 + $0x1c] sm:$0xf] %vm3561_vm4, %v9221_v14  ;;  %v9219_v18 = vpack.c.bf16 %v3246_v53, %v3246_v53  ;;  %v3251_v23 = vmax.f32 %v3187_v50, 0.0  ;;  %v3185_v30 = vadd.f32 %v11329_v35, %v2784_v25  ;;  %v2117_v41 = vpop.f32.mrf.mxu0  ;;  %v2942_v31 = vsel %vm2721_vm3, %v14634_v59, -inf  ;;  %v14635_v53 = vld [vmem:[#allocation33_spill] sm:$0xff]  ;;  %v14636_v50 = vld [vmem:[#allocation34_spill] sm:$0xff]  ;;  %9828 = vmatprep.subr.bf16.mxu1 %v10295_v47 }
 0x1c3   : > { %v11500_v9 = vmax.f32 %v14626_v45, %v2914_v4  ;;  %v11505_v55 = vmax.f32 %v14629_v33, %v2900_v42  ;;  %v11510_v28 = vmax.f32 %v14632_v0, %v2935_v19  ;;  %v2805_v4 = vmax.f32 %v11346_v57, %v2804_v51  ;;  %v3630_v42 = vld [vmem:[#allocation2 + $0x8] sm:$0xf] }
 0x1c4   : > { %v14633_v19 = vld [vmem:[#allocation50_spill] sm:$0xff]  ;;  %v2790_v1 = vsel %vm2721_vm3, %v2117_v41, -inf  ;;  %v11525_v48 = vcombine.low %v3630_v42, %v3631_v6  ;;  %3567 = vst.msk [vmem:[#allocation2 + $0x14] sm:$0xf] %vm3561_vm4, %v9219_v18  ;;  %v9224_v38 = vpack.c.bf16 %v3251_v23, %v3251_v23  ;;  %v3249_v57 = vmax.f32 %v3185_v30, 0.0  ;;  %v9674_v37 = vpop.f32.mrf.mxu0  ;;  %9769 = vmatmul.mubr.msk.bf16.gmra.mxu0 %vm1272_vm2, %v10233_v15  ;;  %v14638_v15 = vld [vmem:[#allocation35_spill] sm:$0xff] }
 0x1c5   : > { %v2921_v16 = vsel %vm2721_vm3, %v14633_v19, -inf  ;;  %v3188_v58 = vadd.f32 %v11329_v35, %v2805_v4  ;;  %v2791_v62 = vmax.f32 %v11354_v40, %v2790_v1  ;;  %v2825_v2 = vsel %vm2721_vm3, %v9674_v37, -inf  ;;  %9772 = vmatprep.mubr.msk.bf16.mxu0 %vm1272_vm2, %v10234_v54  ;;  %v10235_v51 = vld [vmem:[%s10671_s21 + $0x348] sm:$0xff]   ;;  %v10239_v54 = vld [vmem:[%s10671_s21 + $0x350] sm:$0xff]   ;;  %9829 = vmatpush3.bf16.msra.mxu1 %v10295_v47 }
 0x1c6   : > { %v8746_v21 = vcombine.low %v4009_v22, %v3631_v6  ;;  %v3740_v12 = vshll.u32 %v11525_v48, 16  ;;  %3572 = vst.msk [vmem:[#allocation2 + $0x28] sm:$0xf] %vm3561_vm4, %v9224_v38  ;;  %v9222_v26 = vpack.c.bf16 %v3249_v57, %v3249_v57  ;;  %v2826_v39 = vmax.f32 %v11359_v52, %v2825_v2  ;;  %v2130_v14 = vpop.f32.mrf.mxu0  ;;  %v14641_v6 = vld [vmem:[#allocation37_spill] sm:$0xff]  ;;  %v14642_v18 = vld [vmem:[#allocation38_spill] sm:$0xff]  ;;  %v10297_v1 = vld [vmem:[%s14443_s3 + $0x30] sm:$0xff]  }
 0x1c7   : > { %v3252_v40 = vmax.f32 %v3188_v58, 0.0  ;;  %v3186_v29 = vadd.f32 %v11329_v35, %v2791_v62  ;;  %v14637_v25 = vmax.f32 %v14635_v53, %v14636_v50  ;;  %v14640_v32 = vmax.f32 %v14638_v15, %v14639_v56  ;;  %9830 = vmatprep.subr.bf16.mxu1 %v10297_v1 }
 0x1c8   : > { %v2811_v49 = vsel %vm2721_vm3, %v2130_v14, -inf  ;;  %v11553_v61 = vrot.slane %v3740_v12, 1  ;;  %3570 = vst.msk [vmem:[#allocation2 + $0x20] sm:$0xf] %vm3561_vm4, %v9222_v26  ;;  %v3191_v60 = vadd.f32 %v11329_v35, %v2826_v39  ;;  %v9675_v0 = vpop.f32.mrf.mxu0  ;;  %v14643_v23 = vmax.f32 %v14641_v6, %v14642_v18  ;;  %v10242_v6 = vld [vmem:[%s10671_s21 + $0x360] sm:$0xff]  }
 0x1c9   : > { %v11545_v27 = vmax.f32 %v14637_v25, %v2921_v16  ;;  %v11550_v45 = vmax.f32 %v14640_v32, %v2942_v31  ;;  %v9225_v52 = vpack.c.bf16 %v3252_v40, %v3252_v40  ;;  %v3250_v33 = vmax.f32 %v3186_v29, 0.0  ;;  %v11567_v8 = vld [vmem:[#allocation2 + $0x18] sm:$0xff]   ;;  %9831 = vmatpush3.bf16.msra.mxu1 %v10297_v1 }
 0x1ca   : > { %v2812_v63 = vmax.f32 %v11366_v13, %v2811_v49  ;;  %v11563_v30 = vmax.f32 %v14643_v23, %v2928_v36  ;;  %v2832_v4 = vsel %vm2721_vm3, %v9675_v0, -inf  ;;  %v4038_v41 = vrot.slane %v8746_v21, 1  ;;  %v2133_v31 = vpop.f32.mrf.mxu0 }
 0x1cb   : > { %v3744_v42 = vshrl.u32 %v11525_v48, 16  ;;  %3573 = vst.msk [vmem:[#allocation2 + $0x2c] sm:$0xf] %vm3561_vm4, %v9225_v52  ;;  %v9223_v13 = vpack.c.bf16 %v3250_v33, %v3250_v33  ;;  %v3255_v19 = vmax.f32 %v3191_v60, 0.0  ;;  %v2833_v59 = vmax.f32 %v11371_v24, %v2832_v4  ;;  %v10237_v57 = vld [vmem:[#allocation2 + $0x10] sm:$0xff]   ;;  %v10240_v60 = vld [vmem:[%s10671_s21 + $0x358] sm:$0xff]  }
 0x1cc   : > { %v3189_v16 = vadd.f32 %v11329_v35, %v2812_v63  ;;  %v2818_v38 = vsel %vm2721_vm3, %v2133_v31, -inf  ;;  %v3885_v62 = vrot.slane %v11567_v8, 1  ;;  %v3756_v37 = vshll.u32 %v11567_v8, 16  ;;  %v9678_v21 = vpop.f32.mrf.mxu0  ;;  %9773 = vmatmul.mubr.msk.bf16.gmra.mxu0 %vm1272_vm2, %v10235_v51 }
 0x1cd   : > { %v3746_v58 = vor.u32 %v3744_v42, %v11553_v61  ;;  %3571 = vst.msk [vmem:[#allocation2 + $0x24] sm:$0xf] %vm3561_vm4, %v9223_v13  ;;  %v9228_v22 = vpack.c.bf16 %v3255_v19, %v3255_v19  ;;  %v3192_v24 = vadd.f32 %v11329_v35, %v2833_v59  ;;  %v2819_v2 = vmax.f32 %v11376_v44, %v2818_v38 }
 0x1ce   : > { %v3253_v36 = vmax.f32 %v3189_v16, 0.0  ;;  %v2853_v12 = vsel %vm2721_vm3, %v9678_v21, -inf  ;;  %v11584_v26 = vrot.slane %v10237_v57, 1  ;;  %9776 = vmatprep.mubr.msk.bf16.mxu0 %vm1272_vm2, %v10239_v54  ;;  %v3748_v40 = vshll.u32 %v10237_v57, 16  ;;  %v2146_v53 = vpop.f32.mrf.mxu0 }
 0x1cf   : > { %v3752_v29 = vshrl.u32 %v10237_v57, 16  ;;  %3576 = vst.msk [vmem:[#allocation2 + $0x38] sm:$0xf] %vm3561_vm4, %v9228_v22  ;;  %v3256_v14 = vmax.f32 %v3192_v24, 0.0  ;;  %v3190_v44 = vadd.f32 %v11329_v35, %v2819_v2  ;;  %v2854_v47 = vmax.f32 %v11383_v34, %v2853_v12 }
 0x1d0   : > { %v9226_v39 = vpack.c.bf16 %v3253_v36, %v3253_v36  ;;  %v2839_v50 = vsel %vm2721_vm3, %v2146_v53, -inf  ;;  %v4039_v25 = vsel %vm3879_vm5, %v4038_v41, %v11584_v26  ;;  %v3750_v15 = vrot.slane %v3748_v40, 1  ;;  %v9679_v33 = vpop.f32.mrf.mxu0 }
 0x1d1   : > { %v3886_v56 = vsel %vm3879_vm5, %v11584_v26, %v3885_v62  ;;  %v9229_v32 = vpack.c.bf16 %v3256_v14, %v3256_v14  ;;  %v3254_v49 = vmax.f32 %v3190_v44, 0.0  ;;  %v3195_v52 = vadd.f32 %v11329_v35, %v2854_v47  ;;  %4044 = vrot.lane.b32.xlu1 %v4039_v25, %s10551_s27 }
 0x1d2   : > { %3574 = vst.msk [vmem:[#allocation2 + $0x30] sm:$0xf] %vm3561_vm4, %v9226_v39  ;;  %v2840_v34 = vmax.f32 %v11412_v7, %v2839_v50  ;;  %v2860_v63 = vsel %vm2721_vm3, %v9679_v33, -inf  ;;  %v3751_v0 = vsel %vm3731_vm6, %v3746_v58, %v3750_v15  ;;  %v3754_v51 = vor.u32 %v3752_v29, %v3750_v15  ;;  %v11605_v18 = vld [vmem:[#allocation2 + $0x28] sm:$0xff]   ;;  %v2149_v42 = vpop.f32.mrf.mxu0 }
 0x1d3   : > { %v3758_v54 = vrot.slane %v3756_v37, 1  ;;  %3577 = vst.msk [vmem:[#allocation2 + $0x3c] sm:$0xf] %vm3561_vm4, %v9229_v32  ;;  %v9227_v23 = vpack.c.bf16 %v3254_v49, %v3254_v49  ;;  %v3259_v4 = vmax.f32 %v3195_v52, 0.0  ;;  %v2861_v41 = vmax.f32 %v11417_v3, %v2860_v63  ;;  %3850 = vrot.lane.b32.xlu0 %v3751_v0, %s10552_s28 }
 0x1d4   : > { %v3193_v7 = vadd.f32 %v11329_v35, %v2840_v34  ;;  %v2846_v13 = vsel %vm2721_vm3, %v2149_v42, -inf  ;;  %v11613_v16 = vld [vmem:[#allocation2 + $0x20] sm:$0xff]   ;;  %v3760_v59 = vshrl.u32 %v11567_v8, 16  ;;  %v3772_v31 = vshll.u32 %v11605_v18, 16  ;;  %v9682_v58 = vpop.f32.mrf.mxu0  ;;  %9777 = vmatmul.mubr.msk.bf16.gmra.mxu0 %vm1272_vm2, %v10240_v60  ;;  %v10246_v34 = vld [vmem:[%s10671_s21 + $0x370] sm:$0xff]  }
 0x1d5   : > { %v3759_v19 = vsel %vm3731_vm6, %v3754_v51, %v3758_v54  ;;  %3575 = vst.msk [vmem:[#allocation2 + $0x34] sm:$0xf] %vm3561_vm4, %v9227_v23  ;;  %v9232_v1 = vpack.c.bf16 %v3259_v4, %v3259_v4  ;;  %v3196_v3 = vadd.f32 %v11329_v35, %v2861_v41  ;;  %v2847_v57 = vmax.f32 %v11422_v46, %v2846_v13 }
 0x1d6   : > { %v3257_v38 = vmax.f32 %v3193_v7, 0.0  ;;  %3913 = vrot.lane.b32.xlu1 %v3886_v56, %s10551_s27  ;;  %v2881_v37 = vsel %vm2721_vm3, %v9682_v58, -inf  ;;  %9780 = vmatprep.mubr.msk.bf16.mxu0 %vm1272_vm2, %v10242_v6  ;;  %v3762_v22 = vor.u32 %v3760_v59, %v3758_v54  ;;  %v3764_v36 = vshll.u32 %v11613_v16, 16  ;;  %v2162_v40 = vpop.f32.mrf.mxu0 }
 0x1d7   : > { %v3768_v24 = vshrl.u32 %v11613_v16, 16  ;;  %3580 = vst.msk [vmem:[#allocation2 + $0x48] sm:$0xf] %vm3561_vm4, %v9232_v1  ;;  %v3260_v21 = vmax.f32 %v3196_v3, 0.0  ;;  %v3194_v46 = vadd.f32 %v11329_v35, %v2847_v57  ;;  %v2882_v12 = vmax.f32 %v11432_v10, %v2881_v37  ;;  %3852 = vrot.lane.b32.xlu0 %v3759_v19, %s10552_s28  ;;  %v10244_v10 = vld [vmem:[%s10671_s21 + $0x368] sm:$0xff]  }
 0x1d8   : > { %v9230_v2 = vpack.c.bf16 %v3257_v38, %v3257_v38  ;;  %v2867_v29 = vsel %vm2721_vm3, %v2162_v40, -inf  ;;  %v3766_v39 = vrot.slane %v3764_v36, 1  ;;  %v3774_v14 = vrot.slane %v3772_v31, 1  ;;  %v9683_v15 = vpop.f32.mrf.mxu0 }
 0x1d9   : > { %v3887_v44 = vrot.slane %v11613_v16, 1  ;;  %v9233_v47 = vpack.c.bf16 %v3260_v21, %v3260_v21  ;;  %v3258_v53 = vmax.f32 %v3194_v46, 0.0  ;;  %v3199_v50 = vadd.f32 %v11329_v35, %v2882_v12  ;;  %v10248_v46 = vld [vmem:[%s10671_s21 + $0x378] sm:$0xff]  }
 0x1da   : > { %3578 = vst.msk [vmem:[#allocation2 + $0x40] sm:$0xf] %vm3561_vm4, %v9230_v2  ;;  %v2868_v25 = vmax.f32 %v11437_v5, %v2867_v29  ;;  %v2888_v56 = vsel %vm2721_vm3, %v9683_v15, -inf  ;;  %v3767_v32 = vsel %vm3731_vm6, %v3762_v22, %v3766_v39  ;;  %v3770_v49 = vor.u32 %v3768_v24, %v3766_v39  ;;  %v2165_v0 = vpop.f32.mrf.mxu0  ;;  %v11646_v51 = vld [vmem:[#allocation2 + $0x38] sm:$0xff]  }
 0x1db   : > { %v3888_v52 = vsel %vm3879_vm5, %v3885_v62, %v3887_v44  ;;  %3581 = vst.msk [vmem:[#allocation2 + $0x4c] sm:$0xf] %vm3561_vm4, %v9233_v47  ;;  %v9231_v33 = vpack.c.bf16 %v3258_v53, %v3258_v53  ;;  %v3263_v60 = vmax.f32 %v3199_v50, 0.0  ;;  %v2889_v5 = vmax.f32 %v11442_v43, %v2888_v56  ;;  %3854 = vrot.lane.b32.xlu0 %v3767_v32, %s10552_s28 }
 0x1dc   : > { %v3197_v63 = vadd.f32 %v11329_v35, %v2868_v25  ;;  %v2874_v54 = vsel %vm2721_vm3, %v2165_v0, -inf  ;;  %v3775_v8 = vsel %vm3731_vm6, %v3770_v49, %v3774_v14  ;;  %v3889_v62 = vrot.slane %v11605_v18, 1  ;;  %v11651_v6 = vld [vmem:[#allocation2 + $0x30] sm:$0xff]   ;;  %v9686_v42 = vpop.f32.mrf.mxu0  ;;  %9781 = vmatmul.mubr.msk.bf16.gmra.mxu0 %vm1272_vm2, %v10244_v10 }
 0x1dd   : > { %v3776_v23 = vshrl.u32 %v11605_v18, 16  ;;  %3579 = vst.msk [vmem:[#allocation2 + $0x44] sm:$0xf] %vm3561_vm4, %v9231_v33  ;;  %v9236_v4 = vpack.c.bf16 %v3263_v60, %v3263_v60  ;;  %v3200_v43 = vadd.f32 %v11329_v35, %v2889_v5  ;;  %v2875_v41 = vmax.f32 %v11480_v17, %v2874_v54  ;;  %3856 = vrot.lane.b32.xlu1 %v3775_v8, %s10552_s28 }
 0x1de   : > { %v3261_v7 = vmax.f32 %v3197_v63, 0.0  ;;  %v2909_v13 = vsel %vm2721_vm3, %v9686_v42, -inf  ;;  %v3890_v19 = vsel %vm3879_vm5, %v3887_v44, %v3889_v62  ;;  %9784 = vmatprep.mubr.msk.bf16.mxu0 %vm1272_vm2, %v10246_v34  ;;  %v3780_v59 = vshll.u32 %v11651_v6, 16  ;;  %v2178_v3 = vpop.f32.mrf.mxu0 }
 0x1df   : > { %v3778_v16 = vor.u32 %v3776_v23, %v3774_v14  ;;  %3584 = vst.msk [vmem:[#allocation2 + $0x58] sm:$0xf] %vm3561_vm4, %v9236_v4  ;;  %v3264_v17 = vmax.f32 %v3200_v43, 0.0  ;;  %v3198_v1 = vadd.f32 %v11329_v35, %v2875_v41  ;;  %v2910_v38 = vmax.f32 %v11485_v20, %v2909_v13  ;;  %3915 = vrot.lane.b32.xlu0 %v3888_v52, %s10551_s27  ;;  %v10250_v14 = vld [vmem:[%s10671_s21 + $0x380] sm:$0xff]  }
 0x1e0   : > { %v9234_v31 = vpack.c.bf16 %v3261_v7, %v3261_v7  ;;  %v2895_v57 = vsel %vm2721_vm3, %v2178_v3, -inf  ;;  %v3782_v58 = vrot.slane %v3780_v59, 1  ;;  %v3784_v37 = vshrl.u32 %v11651_v6, 16  ;;  %v9687_v20 = vpop.f32.mrf.mxu0  ;;  %v10254_v59 = vld [vmem:[%s10671_s21 + $0x390] sm:$0xff]  }
 0x1e1   : > { %v3788_v22 = vshll.u32 %v11646_v51, 16  ;;  %v9237_v36 = vpack.c.bf16 %v3264_v17, %v3264_v17  ;;  %v3262_v24 = vmax.f32 %v3198_v1, 0.0  ;;  %v3203_v2 = vadd.f32 %v11329_v35, %v2910_v38  ;;  %3917 = vrot.lane.b32.xlu1 %v3890_v19, %s10551_s27 }
 0x1e2   : > { %3582 = vst.msk [vmem:[#allocation2 + $0x50] sm:$0xf] %vm3561_vm4, %v9234_v31  ;;  %v2896_v21 = vmax.f32 %v11490_v11, %v2895_v57  ;;  %v2916_v12 = vsel %vm2721_vm3, %v9687_v20, -inf  ;;  %v3783_v40 = vsel %vm3731_vm6, %v3778_v16, %v3782_v58  ;;  %v3786_v29 = vor.u32 %v3784_v37, %v3782_v58  ;;  %v2181_v11 = vpop.f32.mrf.mxu0  ;;  %v11695_v60 = vld [vmem:[#allocation2 + $0x48] sm:$0xff]  }
 0x1e3   : > { %v3790_v39 = vrot.slane %v3788_v22, 1  ;;  %3585 = vst.msk [vmem:[#allocation2 + $0x5c] sm:$0xf] %vm3561_vm4, %v9237_v36  ;;  %v9235_v44 = vpack.c.bf16 %v3262_v24, %v3262_v24  ;;  %v3267_v47 = vmax.f32 %v3203_v2, 0.0  ;;  %v2917_v50 = vmax.f32 %v11500_v9, %v2916_v12  ;;  %3858 = vrot.lane.b32.xlu0 %v3783_v40, %s10552_s28 }
 0x1e4   : > { %v3201_v53 = vadd.f32 %v11329_v35, %v2896_v21  ;;  %v2902_v25 = vsel %vm2721_vm3, %v2181_v11, -inf  ;;  %v3891_v10 = vrot.slane %v11651_v6, 1  ;;  %v3893_v56 = vrot.slane %v11646_v51, 1  ;;  %v11688_v32 = vld [vmem:[#allocation2 + $0x40] sm:$0xff]   ;;  %v9690_v33 = vpop.f32.mrf.mxu0  ;;  %9785 = vmatmul.mubr.msk.bf16.gmra.mxu0 %vm1272_vm2, %v10248_v46 }
 0x1e5   : > { %v3791_v15 = vsel %vm3731_vm6, %v3786_v29, %v3790_v39  ;;  %3583 = vst.msk [vmem:[#allocation2 + $0x54] sm:$0xf] %vm3561_vm4, %v9235_v44  ;;  %v9240_v49 = vpack.c.bf16 %v3267_v47, %v3267_v47  ;;  %v3204_v34 = vadd.f32 %v11329_v35, %v2917_v50  ;;  %v2903_v9 = vmax.f32 %v11505_v55, %v2902_v25 }
 0x1e6   : > { %v3265_v52 = vmax.f32 %v3201_v53, 0.0  ;;  %3860 = vrot.lane.b32.xlu1 %v3791_v15, %s10552_s28  ;;  %v2937_v63 = vsel %vm2721_vm3, %v9690_v33, -inf  ;;  %v3892_v5 = vsel %vm3879_vm5, %v3889_v62, %v3891_v10  ;;  %v3894_v0 = vsel %vm3879_vm5, %v3891_v10, %v3893_v56  ;;  %9788 = vmatprep.mubr.msk.bf16.mxu0 %vm1272_vm2, %v10250_v14  ;;  %v2194_v23 = vpop.f32.mrf.mxu0  ;;  %v11748_v53 = vld [vmem:[%s14443_s3 + $0x28] sm:$0xff]   ;;  %v10258_v33 = vld [vmem:[%s10671_s21 + $0x3a0] sm:$0xff]  }
 0x1e7   : > { %v3792_v55 = vshrl.u32 %v11646_v51, 16  ;;  %3588 = vst.msk [vmem:[#allocation2 + $0x68] sm:$0xf] %vm3561_vm4, %v9240_v49  ;;  %v3268_v8 = vmax.f32 %v3204_v34, 0.0  ;;  %v3202_v6 = vadd.f32 %v11329_v35, %v2903_v9  ;;  %v2938_v18 = vmax.f32 %v11510_v28, %v2937_v63  ;;  %3919 = vrot.lane.b32.xlu0 %v3892_v5, %s10551_s27  ;;  %v10252_v28 = vld [vmem:[%s10671_s21 + $0x388] sm:$0xff]   ;;  %v10256_v49 = vld [vmem:[%s10671_s21 + $0x398] sm:$0xff]   ;;  %9860 = vmatprep.subr.bf16.mxu1 %v11748_v53 }
 0x1e8   : > { %v9238_v54 = vpack.c.bf16 %v3265_v52, %v3265_v52  ;;  %v2923_v62 = vsel %vm2721_vm3, %v2194_v23, -inf  ;;  %v3796_v7 = vshll.u32 %v11688_v32, 16  ;;  %v3800_v43 = vshrl.u32 %v11688_v32, 16  ;;  %v9691_v16 = vpop.f32.mrf.mxu0 }
 0x1e9   : > { %v3794_v4 = vor.u32 %v3792_v55, %v3790_v39  ;;  %v9241_v41 = vpack.c.bf16 %v3268_v8, %v3268_v8  ;;  %v3266_v42 = vmax.f32 %v3202_v6, 0.0  ;;  %v3207_v13 = vadd.f32 %v11329_v35, %v2938_v18 }
 0x1ea   : > { %3586 = vst.msk [vmem:[#allocation2 + $0x60] sm:$0xf] %vm3561_vm4, %v9238_v54  ;;  %v2924_v19 = vmax.f32 %v11545_v27, %v2923_v62  ;;  %3921 = vrot.lane.b32.xlu1 %v3894_v0, %s10551_s27  ;;  %v2944_v31 = vsel %vm2721_vm3, %v9691_v16, -inf  ;;  %v3798_v17 = vrot.slane %v3796_v7, 1  ;;  %v3804_v1 = vshll.u32 %v11695_v60, 16  ;;  %v2197_v37 = vpop.f32.mrf.mxu0  ;;  %v11736_v29 = vld [vmem:[#allocation2 + $0x58] sm:$0xff]  }
 0x1eb   : > { %v3895_v38 = vrot.slane %v11688_v32, 1  ;;  %3589 = vst.msk [vmem:[#allocation2 + $0x6c] sm:$0xf] %vm3561_vm4, %v9241_v41  ;;  %v9239_v3 = vpack.c.bf16 %v3266_v42, %v3266_v42  ;;  %v3271_v57 = vmax.f32 %v3207_v13, 0.0  ;;  %v2945_v27 = vmax.f32 %v11550_v45, %v2944_v31 }
 0x1ec   : > { %v3205_v58 = vadd.f32 %v11329_v35, %v2924_v19  ;;  %v2930_v22 = vsel %vm2721_vm3, %v2197_v37, -inf  ;;  %v3799_v36 = vsel %vm3731_vm6, %v3794_v4, %v3798_v17  ;;  %v3802_v24 = vor.u32 %v3800_v43, %v3798_v17  ;;  %v11727_v21 = vld [vmem:[#allocation2 + $0x50] sm:$0xff]   ;;  %v11733_v45 = vpop.f32.mrf.mxu0  ;;  %9789 = vmatmul.mubr.msk.bf16.gmra.mxu0 %vm1272_vm2, %v10252_v28  ;;  %v3628_v28 = vld [vmem:[#allocation2] sm:$0xf]  ;;  %v10260_v17 = vld [vmem:[%s10671_s21 + $0x3a8] sm:$0xff]  }
 0x1ed   : > { %v3806_v2 = vrot.slane %v3804_v1, 1  ;;  %3587 = vst.msk [vmem:[#allocation2 + $0x64] sm:$0xf] %vm3561_vm4, %v9239_v3  ;;  %v9244_v20 = vpack.c.bf16 %v3271_v57, %v3271_v57  ;;  %v3208_v12 = vadd.f32 %v11329_v35, %v2945_v27  ;;  %v2931_v40 = vmax.f32 %v11563_v30, %v2930_v22  ;;  %3862 = vrot.lane.b32.xlu0 %v3799_v36, %s10552_s28  ;;  %v10262_v27 = vld [vmem:[%s10671_s21 + $0x3b0] sm:$0xff]  }
 0x1ee   : > { %v3269_v46 = vmax.f32 %v3205_v58, 0.0  ;;  %9792 = vmatprep.mubr.msk.bf16.mxu0 %vm1272_vm2, %v10254_v59  ;;  %v11743_v30 = vpop.f32.mrf.mxu0  ;;  %v3896_v50 = vsel %vm3879_vm5, %v3893_v56, %v3895_v38  ;;  %v3897_v11 = vrot.slane %v11695_v60, 1  ;;  %v3808_v25 = vshrl.u32 %v11695_v60, 16  ;;  %v11792_v59 = vld [vmem:[#allocation2 + $0x4] sm:$0xf] }
 0x1ef   : > { %v3807_v39 = vsel %vm3731_vm6, %v3802_v24, %v3806_v2  ;;  %3592 = vst.msk [vmem:[#allocation2 + $0x78] sm:$0xf] %vm3561_vm4, %v9244_v20  ;;  %v3272_v44 = vmax.f32 %v3208_v12, 0.0  ;;  %v3206_v47 = vadd.f32 %v11329_v35, %v2931_v40  ;;  %v3812_v35 = vshll.u32 %v11727_v21, 16 }
 0x1f0   : > { %v9242_v14 = vpack.c.bf16 %v3269_v46, %v3269_v46  ;;  %3864 = vrot.lane.b32.xlu1 %v3807_v39, %s10552_s28  ;;  %v11758_v32 = vpop.f32.mrf.mxu0  ;;  %v3820_v51 = vshll.u32 %v11736_v29, 16  ;;  %v3898_v56 = vsel %vm3879_vm5, %v3895_v38, %v3897_v11  ;;  %v3810_v52 = vor.u32 %v3808_v25, %v3806_v2 }
 0x1f1   : > { %v9245_v15 = vpack.c.bf16 %v3272_v44, %v3272_v44  ;;  %v3270_v10 = vmax.f32 %v3206_v47, 0.0  ;;  %3923 = vrot.lane.b32.xlu0 %v3896_v50, %s10551_s27  ;;  %v3814_v34 = vrot.slane %v3812_v35, 1  ;;  %v3816_v9 = vshrl.u32 %v11727_v21, 16 }
 0x1f2   : > { %3590 = vst.msk [vmem:[#allocation2 + $0x70] sm:$0xf] %vm3561_vm4, %v9242_v14  ;;  %v11768_v63 = vpop.f32.mrf.mxu0  ;;  %v3899_v5 = vrot.slane %v11727_v21, 1  ;;  %v11771_v0 = vld [vmem:[#allocation2 + $0x68] sm:$0xff]   ;;  %v3822_v8 = vrot.slane %v3820_v51, 1  ;;  %v3824_v62 = vshrl.u32 %v11736_v29, 16  ;;  %v11805_v22 = vcombine.low %v3628_v28, %v11792_v59 }
 0x1f3   : > { %3593 = vst.msk [vmem:[#allocation2 + $0x7c] sm:$0xf] %vm3561_vm4, %v9245_v15  ;;  %v9243_v60 = vpack.c.bf16 %v3270_v10, %v3270_v10  ;;  %v3815_v55 = vsel %vm3731_vm6, %v3810_v52, %v3814_v34  ;;  %v3818_v54 = vor.u32 %v3816_v9, %v3814_v34  ;;  %v3836_v7 = vshll.u32 %v11771_v0, 16  ;;  %v10264_v15 = vld [vmem:[%s10671_s21 + $0x3b8] sm:$0xff]   ;;  %v10267_v52 = vld [vmem:[%s10671_s21 + $0x3c0] sm:$0xff]   ;;  %v10268_v28 = vld [vmem:[%s10671_s21 + $0x3c8] sm:$0xff]  }
 0x1f4   : > { %3925 = vrot.lane.b32.xlu1 %v3898_v56, %s10551_s27  ;;  %v11774_v6 = vld [vmem:[#allocation2 + $0x60] sm:$0xff]   ;;  %v11778_v18 = vpop.f32.mrf.mxu0  ;;  %9793 = vmatmul.mubr.msk.bf16.gmra.mxu0 %vm1272_vm2, %v10256_v49  ;;  %v3901_v41 = vrot.slane %v11736_v29, 1  ;;  %v3900_v42 = vsel %vm3879_vm5, %v3897_v11, %v3899_v5  ;;  %v3826_v13 = vor.u32 %v3824_v62, %v3822_v8  ;;  %v3840_v46 = vshrl.u32 %v11771_v0, 16  ;;  %v11841_v9 = vld [vmem:[#allocation2 + $0x14] sm:$0xf] }
 0x1f5   : > { %3591 = vst.msk [vmem:[#allocation2 + $0x74] sm:$0xf] %vm3561_vm4, %v9243_v60  ;;  %3866 = vrot.lane.b32.xlu0 %v3815_v55, %s10552_s28  ;;  %v3823_v23 = vsel %vm3731_vm6, %v3818_v54, %v3822_v8  ;;  %9796 = vmatprep.mubr.msk.bf16.mxu0 %vm1272_vm2, %v10258_v33  ;;  %v3828_v4 = vshll.u32 %v11774_v6, 16  ;;  %v3832_v16 = vshrl.u32 %v11774_v6, 16  ;;  %v3838_v58 = vrot.slane %v3836_v7, 1 }
 0x1f6   : > { %v11787_v43 = vpop.f32.mrf.mxu0  ;;  %v10265_v1 = vld [vmem:[#allocation2 + $0x78] ss:$0 sps:$4 sm:$0x11]   ;;  %v3902_v38 = vsel %vm3879_vm5, %v3899_v5, %v3901_v41  ;;  %v3903_v24 = vrot.slane %v11774_v6, 1  ;;  %v11822_v14 = vrot.slane %v11771_v0, 1  ;;  %v3735_v44 = vshll.u32 %v11805_v22, 16 }
 0x1f7   : > { %v3830_v19 = vrot.slane %v3828_v4, 1  ;;  %v4027_v40 = vshll.u32 %v10265_v1, 16  ;;  %v11826_v50 = vor.u32 %v3840_v46, %v3838_v58  ;;  %v3657_v54 = vld [vmem:[#allocation2] sm:$0xe]  ;;  %v4470_v8 = vld [vmem:[#allocation2 + $0x10] sm:$0xf] }
 0x1f8   : > { %3868 = vrot.lane.b32.xlu1 %v3823_v23, %s10552_s28  ;;  %v11795_v31 = vpop.f32.mrf.mxu0  ;;  %v3904_v47 = vsel %vm3879_vm5, %v3901_v41, %v3903_v24  ;;  %v3906_v10 = vsel %vm3879_vm5, %v3903_v24, %v11822_v14  ;;  %v3737_v5 = vrot.slane %v3735_v44, 1  ;;  %v3733_v23 = vshrl.u32 %v11805_v22, 16  ;;  %v11875_v24 = vld [vmem:[#allocation2 + $0x20] sm:$0xff]  }
 0x1f9   : > { %3927 = vrot.lane.b32.xlu0 %v3900_v42, %s10551_s27  ;;  %v3831_v3 = vsel %vm3731_vm6, %v3826_v13, %v3830_v19  ;;  %v3834_v57 = vor.u32 %v3832_v16, %v3830_v19  ;;  %v4029_v56 = vrot.slane %v4027_v40, 1  ;;  %v8743_v62 = vcombine.low %v3657_v54, %v11792_v59  ;;  %v10270_v4 = vld [vmem:[#allocation2 + $0x70] ss:$0 sps:$4 sm:$0x11]   ;;  %v10277_v54 = vld [vmem:[%s10671_s21 + $0x3e0] sm:$0xff]  }
 0x1fa   : > { %v11802_v37 = vpop.f32.mrf.mxu0  ;;  %v11853_v7 = vcombine.low %v4470_v8, %v11841_v9  ;;  %v4042_v13 = vrot.slane %v10265_v1, 1  ;;  %v3738_v19 = vor.u32 %v3737_v5, %v3733_v23 }
 0x1fb   : > { %v3839_v36 = vsel %vm3731_vm6, %v3834_v57, %v3838_v58  ;;  %v11866_v57 = vld [vmem:[#allocation2 + $0x18] sm:$0xff]  }
 0x1fc   : > { %3929 = vrot.lane.b32.xlu1 %v3902_v38, %s10551_s27  ;;  %v11809_v2 = vld [vmem:[#allocation2 + $0x70] sm:$0xff]   ;;  %v11812_v20 = vpop.f32.mrf.mxu0  ;;  %9797 = vmatmul.mubr.msk.bf16.gmra.mxu0 %vm1272_vm2, %v10260_v17  ;;  %14644 = vst [vmem:[#allocation39_spill] sm:$0xff] %v11853_v7  ;;  %v3880_v17 = vrot.slane %v8743_v62, 1  ;;  %v3844_v38 = vshll.u32 %v10270_v4, 16  ;;  %v4576_v58 = vshll.u32 %v11853_v7, 16  ;;  %v3743_v1 = vsel %vm3731_vm6, %v3738_v19, %v11553_v61 }
 0x1fd   : > { %3870 = vrot.lane.b32.xlu0 %v3831_v3, %s10552_s28  ;;  %9800 = vmatprep.mubr.msk.bf16.mxu0 %vm1272_vm2, %v10262_v27  ;;  %v4019_v12 = vshll.u32 %v11809_v2, 16  ;;  %v4023_v25 = vshrl.u32 %v11809_v2, 16  ;;  %v4040_v60 = vrot.slane %v11809_v2, 1  ;;  %v10271_v3 = vld [vmem:[%s10671_s21 + $0x3d0] sm:$0xff]   ;;  %v4581_v61 = vshll.u32 %v11866_v57, 16 }
 0x1fe   : > { %v11819_v39 = vpop.f32.mrf.mxu0  ;;  %v3846_v40 = vrot.slane %v3844_v38, 1  ;;  %v4578_v44 = vrot.slane %v4576_v58, 1  ;;  %v4585_v62 = vshrl.u32 %v11866_v57, 16  ;;  %v4723_v38 = vrot.slane %v11875_v24, 1 }
 0x1ff   : > { %v4021_v11 = vrot.slane %v4019_v12, 1  ;;  %v4041_v42 = vsel %vm3879_vm5, %v11822_v14, %v4040_v60  ;;  %v4043_v59 = vsel %vm3879_vm5, %v4040_v60, %v4042_v13  ;;  %v4583_v60 = vrot.slane %v4581_v61, 1  ;;  %v10281_v61 = vld [vmem:[%s10671_s21 + $0x3f0] sm:$0xff]  }
 0x200   : > { %3872 = vrot.lane.b32.xlu1 %v3839_v36, %s10552_s28  ;;  %v11830_v35 = vpop.f32.mrf.mxu0  ;;  %v3881_v36 = vrot.slane %v11525_v48, 1 }
 0x201   : > { %3931 = vrot.lane.b32.xlu0 %v3904_v47, %s10551_s27  ;;  %v4022_v49 = vsel %vm3731_vm6, %v11826_v50, %v4021_v11  ;;  %v4025_v51 = vor.u32 %v4023_v25, %v4021_v11  ;;  %v3907_v25 = vrot.slane %v10270_v4, 1  ;;  %v4587_v13 = vor.u32 %v4585_v62, %v4583_v60 }
 0x202   : > { %v11839_v34 = vpop.f32.mrf.mxu0  ;;  %v3882_v12 = vsel %vm3879_vm5, %v3880_v17, %v3881_v36  ;;  %v3884_v11 = vsel %vm3879_vm5, %v3881_v36, %v11584_v26  ;;  %v10279_v26 = vld [vmem:[#allocation2 + $0x28] sm:$0xff]  }
 0x203   : > { %v4030_v33 = vsel %vm3731_vm6, %v4025_v51, %v4029_v56  ;;  %v10272_v51 = vld [vmem:[%s10671_s21 + $0x3d8] sm:$0xff]   ;;  %v4499_v56 = vld [vmem:[#allocation2 + $0x10] sm:$0xe]  ;;  %v3908_v23 = vsel %vm3879_vm5, %v11822_v14, %v3907_v25  ;;  %v4597_v14 = vshll.u32 %v10279_v26, 16  ;;  %v10278_v36 = vld [vmem:[%s10671_s21 + $0x3e8] sm:$0xff]  }
 0x204   : > { %3933 = vrot.lane.b32.xlu1 %v3906_v10, %s10551_s27  ;;  %v11846_v55 = vpop.f32.mrf.mxu0  ;;  %9801 = vmatmul.mubr.msk.bf16.gmra.mxu0 %vm1272_vm2, %v10264_v15  ;;  %v4574_v15 = vshrl.u32 %v11853_v7, 16  ;;  %v4589_v10 = vshll.u32 %v11875_v24, 16  ;;  %v8814_v5 = vcombine.low %v4499_v56, %v11841_v9 }
 0x205   : > { %4031 = vrot.lane.b32.xlu0 %v4022_v49, %s10552_s28  ;;  %9804 = vmatprep.mubr.msk.bf16.mxu0 %vm1272_vm2, %v10267_v52  ;;  %v3847_v52 = vsel %vm3731_vm6, %v11826_v50, %v3846_v40 }
 0x206   : > { %v11856_v41 = vpop.f32.mrf.mxu0  ;;  %v4591_v4 = vrot.slane %v4589_v10, 1  ;;  %v4720_v19 = vrot.slane %v8814_v5, 1  ;;  %v11931_v10 = vld [vmem:[#allocation2 + $0x40] sm:$0xff]   ;;  %v4725_v5 = vrot.slane %v10279_v26, 1 }
 0x208   : > { %4033 = vrot.lane.b32.xlu1 %v4030_v33, %s10552_s28  ;;  %v11861_v16 = vpop.f32.mrf.mxu0  ;;  %v4579_v33 = vor.u32 %v4578_v44, %v4574_v15  ;;  %v4592_v17 = vsel %vm3731_vm6, %v4587_v13, %v4591_v4  ;;  %v4599_v44 = vrot.slane %v4597_v14, 1  ;;  %v10282_v13 = vld [vmem:[%s10671_s21 + $0x3f8] sm:$0xff]   ;;  %s326_s21 = sand.u32 1, %s10540_s10  }
 0x209   : > { %4046 = vrot.lane.b32.xlu0 %v4041_v42, %s10551_s27  ;;  %v11905_v42 = vld [vmem:[#allocation2 + $0x30] sm:$0xff]   ;;  %s8398_s16 = sshll.u32 %s326_s21, 1 }
 0x20a   : > { %v11870_v27 = vpop.f32.mrf.mxu0  ;;  %v4584_v9 = vsel %vm3731_vm6, %v4579_v33, %v4583_v60  ;;  %v4605_v58 = vshll.u32 %v11905_v42, 16  ;;  %v4609_v62 = vshrl.u32 %v11905_v42, 16  ;;  %s328_s24 = scalar_lea.vmem [#allocation6], %s8398_s16 }
 0x20b   : > { %s8335_s25 = sshll.u32 %s328_s24, 4  ;;  %s14401_s25 = int_to_ptr.vmem [resolvable:$true] %s8335_s25 }
 0x20c   : > { %4048 = vrot.lane.b32.xlu1 %v4043_v59, %s10551_s27  ;;  %v11878_v46 = vpop.f32.mrf.mxu0  ;;  %9805 = vmatmul.mubr.msk.bf16.gmra.mxu0 %vm1272_vm2, %v10268_v28  ;;  %v4721_v59 = vrot.slane %v11866_v57, 1  ;;  %v4607_v15 = vrot.slane %v4605_v58, 1  ;;  %s10488_s13 = scalar_lea.vmem %s14401_s25, 32 }
 0x20d   : > { %3848 = vrot.lane.b32.xlu0 %v3743_v1, %s10552_s28  ;;  %9808 = vmatprep.mubr.msk.bf16.mxu0 %vm1272_vm2, %v10271_v3  ;;  %v4593_v3 = vshrl.u32 %v11875_v24, 16  ;;  %v4601_v24 = vshrl.u32 %v10279_v26, 16  ;;  %p10489_p11 = scmp.ne.s32.totalorder %s14401_s25, %s10488_s13 }
 0x20e   : > { %v11885_v47 = vpop.f32.mrf.mxu0  ;;  %v4724_v25 = vsel %vm3879_vm5, %v4721_v59, %v4723_v38  ;;  %v4611_v14 = vor.u32 %v4609_v62, %v4607_v15 }
 0x20f   : > { %v4595_v40 = vor.u32 %v4593_v3, %v4591_v4  ;;  %v4621_v4 = vshll.u32 %v11931_v10, 16  ;;  %p10490_p12 = pnand %p10489_p11, %p10645_p5 }
 0x210   : > { %3909 = vrot.lane.b32.xlu1 %v3882_v12, %s10551_s27  ;;  %v11892_v49 = vpop.f32.mrf.mxu0  ;;  %v4722_v12 = vsel %vm3879_vm5, %v4720_v19, %v4721_v59  ;;  %v4726_v19 = vsel %vm3879_vm5, %v4723_v38, %v4725_v5 }
 0x211   : > { %3911 = vrot.lane.b32.xlu0 %v3884_v11, %s10551_s27  ;;  %v10283_v11 = vld [vmem:[#allocation2 + $0x38] sm:$0xff]   ;;  %v4600_v56 = vsel %vm3731_vm6, %v4595_v40, %v4599_v44  ;;  %v4623_v58 = vrot.slane %v4621_v4, 1  ;;  %p10491_p13 = pneg %p10490_p12 }
 0x212   : > { %v11900_v8 = vpop.f32.mrf.mxu0  ;;  %v4613_v33 = vshll.u32 %v10283_v11, 16  ;;  %v11976_v4 = vld [vmem:[#allocation2 + $0x58] sm:$0xff]  }
 0x214   : > { %3874 = vrot.lane.b32.xlu1 %v3847_v52, %s10552_s28  ;;  %v11908_v50 = vpop.f32.mrf.mxu0  ;;  %9809 = vmatmul.mubr.msk.bf16.gmra.mxu0 %vm1272_vm2, %v10272_v51  ;;  %v4603_v52 = vor.u32 %v4601_v24, %v4599_v44  ;;  %v4615_v59 = vrot.slane %v4613_v33, 1 }
 0x215   : > { %3935 = vrot.lane.b32.xlu0 %v3908_v23, %s10551_s27  ;;  %9812 = vmatprep.mubr.msk.bf16.mxu0 %vm1272_vm2, %v10277_v54  ;;  %v4727_v23 = vrot.slane %v11905_v42, 1  ;;  %v4617_v42 = vshrl.u32 %v10283_v11, 16 }
 0x216   : > { %v11914_v28 = vpop.f32.mrf.mxu0  ;;  %v4608_v54 = vsel %vm3731_vm6, %v4603_v52, %v4607_v15  ;;  %v4616_v38 = vsel %vm3731_vm6, %v4611_v14, %v4615_v59  ;;  %v4731_v15 = vrot.slane %v11931_v10, 1  ;;  %v11983_v14 = vld [vmem:[#allocation2 + $0x60] sm:$0xff]  }
 0x217   : > { %v4728_v3 = vsel %vm3879_vm5, %v4725_v5, %v4727_v23  ;;  %v4619_v40 = vor.u32 %v4617_v42, %v4615_v59  ;;  %v11987_v59 = vsel %vm2721_vm3, %v11733_v45, -inf }
 0x218   : > { %4689 = vrot.lane.b32.xlu1 %v4584_v9, %s10552_s28  ;;  %v11922_v1 = vpop.f32.mrf.mxu0 }
 0x219   : > { %4691 = vrot.lane.b32.xlu0 %v4592_v17, %s10552_s28  ;;  %v11951_v17 = vld [vmem:[#allocation2 + $0x48] sm:$0xff]   ;;  %v4624_v24 = vsel %vm3731_vm6, %v4619_v40, %v4623_v58  ;;  %v11997_v40 = vsel %vm2721_vm3, %v11743_v30, -inf  ;;  %v4653_v30 = vshll.u32 %v11983_v14, 16 }
 0x21a   : > { %v11928_v57 = vpop.f32.mrf.mxu0  ;;  %v4629_v44 = vshll.u32 %v11951_v17, 16 }
 0x21c   : > { %4749 = vrot.lane.b32.xlu1 %v4722_v12, %s10551_s27  ;;  %v11934_v51 = vpop.f32.mrf.mxu0  ;;  %9813 = vmatmul.mubr.msk.bf16.gmra.mxu0 %vm1272_vm2, %v10278_v36  ;;  %v11957_v36 = vld [vmem:[#allocation2 + $0x50] sm:$0xff]   ;;  %v4631_v62 = vrot.slane %v4629_v44, 1 }
 0x21d   : > { %4751 = vrot.lane.b32.xlu0 %v4724_v25, %s10551_s27  ;;  %9816 = vmatprep.mubr.msk.bf16.mxu0 %vm1272_vm2, %v10281_v61  ;;  %v4729_v25 = vrot.slane %v10283_v11, 1  ;;  %v4637_v52 = vshll.u32 %v11957_v36, 16 }
 0x21e   : > { %v11940_v60 = vpop.f32.mrf.mxu0 }
 0x21f   : > { %v4730_v5 = vsel %vm3879_vm5, %v4727_v23, %v4729_v25 }
 0x220   : > { %4693 = vrot.lane.b32.xlu1 %v4600_v56, %s10552_s28  ;;  %v11947_v9 = vpop.f32.mrf.mxu0  ;;  %v4625_v56 = vshrl.u32 %v11931_v10, 16  ;;  %v4633_v10 = vshrl.u32 %v11951_v17, 16 }
 0x221   : > { %4695 = vrot.lane.b32.xlu0 %v4608_v54, %s10552_s28 }
 0x222   : > { %v11954_v26 = vpop.f32.mrf.mxu0  ;;  %v4627_v54 = vor.u32 %v4625_v56, %v4623_v58  ;;  %v4635_v58 = vor.u32 %v4633_v10, %v4631_v62 }
 0x224   : > { %4753 = vrot.lane.b32.xlu1 %v4726_v19, %s10551_s27  ;;  %v11960_v12 = vpop.f32.mrf.mxu0  ;;  %9817 = vmatmul.mubr.msk.bf16.gmra.mxu0 %vm1272_vm2, %v10282_v13  ;;  %v4732_v13 = vsel %vm3879_vm5, %v4729_v25, %v4731_v15  ;;  %v4639_v19 = vrot.slane %v4637_v52, 1  ;;  %v4632_v42 = vsel %vm3731_vm6, %v4627_v54, %v4631_v62  ;;  %v4733_v25 = vrot.slane %v11951_v17, 1 }
 0x225   : > { %4755 = vrot.lane.b32.xlu0 %v4728_v3, %s10551_s27  ;;  %v12012_v54 = vsel %vm2721_vm3, %v11758_v32, -inf  ;;  %v12051_v62 = vsel %vm2721_vm3, %v11787_v43, -inf }
 0x226   : > { %v11966_v61 = vpop.f32.mrf.mxu0  ;;  %v4640_v52 = vsel %vm3731_vm6, %v4635_v58, %v4639_v19  ;;  %v4734_v10 = vsel %vm3879_vm5, %v4731_v15, %v4733_v25  ;;  %v12025_v58 = vsel %vm2721_vm3, %v11768_v63, -inf  ;;  %v4649_v15 = vshrl.u32 %v11976_v4, 16 }
 0x227   : > { %v12039_v63 = vsel %vm2721_vm3, %v11778_v18, -inf }
 0x228   : > { %4697 = vrot.lane.b32.xlu1 %v4616_v38, %s10552_s28  ;;  %v11973_v33 = vpop.f32.mrf.mxu0  ;;  %v4645_v38 = vshll.u32 %v11976_v4, 16 }
 0x229   : > { %4699 = vrot.lane.b32.xlu0 %v4624_v24, %s10552_s28  ;;  %v4735_v24 = vrot.slane %v11957_v36, 1 }
 0x22a   : > { %v11979_v11 = vpop.f32.mrf.mxu0 }
 0x22c   : > { %4757 = vrot.lane.b32.xlu1 %v4730_v5, %s10551_s27  ;;  %v9726_v23 = vpop.f32.mrf.mxu0  ;;  %v4641_v5 = vshrl.u32 %v11957_v36, 16  ;;  %v12021_v36 = vld [vmem:[#allocation2 + $0x68] sm:$0xff]  }
 0x22d   : > { %4759 = vrot.lane.b32.xlu0 %v4732_v13, %s10551_s27  ;;  %v11991_v3 = vsel %vm2721_vm3, %v9726_v23, -inf }
 0x22e   : > { %v2338_v45 = vpop.f32.mrf.mxu0  ;;  %v4643_v23 = vor.u32 %v4641_v5, %v4639_v19  ;;  %v4655_v19 = vrot.slane %v4653_v30, 1  ;;  %v4661_v30 = vshll.u32 %v12021_v36, 16 }
 0x22f   : > { %v12005_v56 = vsel %vm2721_vm3, %v2338_v45, -inf }
 0x230   : > { %4701 = vrot.lane.b32.xlu1 %v4632_v42, %s10552_s28  ;;  %v9727_v17 = vpop.f32.mrf.mxu0  ;;  %v4647_v42 = vrot.slane %v4645_v38, 1  ;;  %v12035_v38 = vld [vmem:[#allocation2 + $0x70] sm:$0xff]   ;;  %v4663_v7 = vrot.slane %v4661_v30, 1 }
 0x231   : > { %4703 = vrot.lane.b32.xlu0 %v4640_v52, %s10552_s28  ;;  %v12018_v13 = vsel %vm2721_vm3, %v9727_v17, -inf  ;;  %v4736_v17 = vsel %vm3879_vm5, %v4733_v25, %v4735_v24  ;;  %v4669_v43 = vshll.u32 %v12035_v38, 16 }
 0x232   : > { %v2341_v45 = vpop.f32.mrf.mxu0  ;;  %v4648_v25 = vsel %vm3731_vm6, %v4643_v23, %v4647_v42  ;;  %v4651_v32 = vor.u32 %v4649_v15, %v4647_v42  ;;  %v4657_v42 = vshrl.u32 %v11983_v14, 16  ;;  %v12066_v15 = vsel %vm2721_vm3, %v11795_v31, -inf }
 0x233   : > { %v12031_v52 = vsel %vm2721_vm3, %v2341_v45, -inf  ;;  %v4741_v31 = vrot.slane %v12021_v36, 1 }
 0x234   : > { %4761 = vrot.lane.b32.xlu1 %v4734_v10, %s10551_s27  ;;  %v9730_v10 = vpop.f32.mrf.mxu0  ;;  %v4656_v23 = vsel %vm3731_vm6, %v4651_v32, %v4655_v19  ;;  %v4659_v32 = vor.u32 %v4657_v42, %v4655_v19  ;;  %v12087_v19 = vld [vmem:[#allocation2 + $0x78] sm:$0xff]   ;;  %v12094_v42 = vsel %vm2721_vm3, %v11812_v20, -inf  ;;  %v4743_v20 = vrot.slane %v12035_v38, 1 }
 0x235   : > { %4763 = vrot.lane.b32.xlu0 %v4736_v17, %s10551_s27  ;;  %v12045_v45 = vsel %vm2721_vm3, %v9730_v10, -inf  ;;  %v4737_v17 = vrot.slane %v11976_v4, 1  ;;  %v4739_v10 = vrot.slane %v11983_v14, 1  ;;  %v12077_v14 = vsel %vm2721_vm3, %v11802_v37, -inf  ;;  %14646 = vst [vmem:[#allocation41_spill] sm:$0xff] %v12087_v19 }
 0x236   : > { %v2354_v5 = vpop.f32.mrf.mxu0 }
 0x237   : > { %v12059_v44 = vsel %vm2721_vm3, %v2354_v5, -inf  ;;  %v4738_v5 = vsel %vm3879_vm5, %v4735_v24, %v4737_v17  ;;  %v4671_v24 = vrot.slane %v4669_v43, 1  ;;  %v12102_v43 = vsel %vm2721_vm3, %v11819_v39, -inf }
 0x238   : > { %4705 = vrot.lane.b32.xlu1 %v4648_v25, %s10552_s28  ;;  %14645 = vst [vmem:[#allocation40_spill] sm:$0xff] %v12059_v44  ;;  %v9731_v4 = vpop.f32.mrf.mxu0  ;;  %v4665_v44 = vshrl.u32 %v12021_v36, 16  ;;  %14647 = vst [vmem:[#allocation42_spill] sm:$0xff] %v12102_v43  ;;  %v4677_v39 = vshll.u32 %v12087_v19, 16  ;;  %v12120_v36 = vsel %vm2721_vm3, %v11830_v35, -inf }
 0x239   : > { %4707 = vrot.lane.b32.xlu0 %v4656_v23, %s10552_s28  ;;  %v12072_v18 = vsel %vm2721_vm3, %v9731_v4, -inf  ;;  %v4740_v4 = vsel %vm3879_vm5, %v4737_v17, %v4739_v10  ;;  %v4664_v17 = vsel %vm3731_vm6, %v4659_v32, %v4663_v7 }
 0x23a   : > { %v2357_v25 = vpop.f32.mrf.mxu0  ;;  %v12137_v43 = vrot.slane %v4677_v39, 1 }
 0x23b   : > { %v12083_v23 = vsel %vm2721_vm3, %v2357_v25, -inf }
 0x23c   : > { %4765 = vrot.lane.b32.xlu1 %v4738_v5, %s10551_s27  ;;  %v9734_v30 = vpop.f32.mrf.mxu0  ;;  %v4667_v5 = vor.u32 %v4665_v44, %v4663_v7  ;;  %v4673_v7 = vshrl.u32 %v12035_v38, 16  ;;  %v12128_v38 = vsel %vm2721_vm3, %v11839_v34, -inf  ;;  %v10462_v44 = vld [vmem:[#allocation2 + $0x10] sm:$0xff]  }
 0x23d   : > { %4767 = vrot.lane.b32.xlu0 %v4740_v4, %s10551_s27  ;;  %v12097_v25 = vsel %vm2721_vm3, %v9734_v30, -inf }
 0x23e   : > { %v2370_v4 = vpop.f32.mrf.mxu0  ;;  %v4672_v32 = vsel %vm3731_vm6, %v4667_v5, %v4671_v24  ;;  %v4675_v5 = vor.u32 %v4673_v7, %v4671_v24  ;;  %v12144_v7 = vsel %vm2721_vm3, %v11846_v55, -inf }
 0x23f   : > { %v12110_v30 = vsel %vm2721_vm3, %v2370_v4, -inf  ;;  %v4742_v4 = vsel %vm3879_vm5, %v4739_v10, %v4741_v31  ;;  %14649 = vst [vmem:[#allocation9_spill] sm:$0xff] %v12144_v7 }
 0x240   : > { %4709 = vrot.lane.b32.xlu1 %v4664_v17, %s10552_s28  ;;  %14648 = vst [vmem:[#allocation43_spill] sm:$0xff] %v12110_v30  ;;  %v9735_v17 = vpop.f32.mrf.mxu0  ;;  %v4680_v39 = vsel %vm3731_vm6, %v4675_v5, %v12137_v43  ;;  %v10299_v5 = vld [vmem:[%s14443_s3 + $0x20] sm:$0xff]  }
 0x241   : > { %4711 = vrot.lane.b32.xlu0 %v4672_v32, %s10552_s28  ;;  %v12123_v37 = vsel %vm2721_vm3, %v9735_v17, -inf  ;;  %v4744_v17 = vsel %vm3879_vm5, %v4741_v31, %v4743_v20 }
 0x242   : > { %v2373_v32 = vpop.f32.mrf.mxu0 }
 0x243   : > { %v12134_v30 = vsel %vm2721_vm3, %v2373_v32, -inf  ;;  %v4045_v35 = vpop.permute.xlu1 %4044  ;;  %v12173_v32 = vsel %vm2721_vm3, %v11861_v16, -inf }
 0x244   : > { %4769 = vrot.lane.b32.xlu1 %v4742_v4, %s10551_s27  ;;  %v9738_v34 = vpop.f32.mrf.mxu0  ;;  %14653 = vst [vmem:[#allocation13_spill] sm:$0xff] %v12173_v32 }
 0x245   : > { %4771 = vrot.lane.b32.xlu0 %v4744_v17, %s10551_s27  ;;  %v3851_v24 = vpop.permute.xlu0 %3850  ;;  %v12147_v4 = vsel %vm2721_vm3, %v9738_v34, -inf  ;;  %v12162_v34 = vsel %vm2721_vm3, %v11856_v41, -inf }
 0x246   : > { %14650 = vst [vmem:[#allocation10_spill] sm:$0xff] %v12147_v4  ;;  %v12151_v31 = vsel %vm2721_vm3, %v11525_v48, %v3851_v24  ;;  %v2386_v17 = vpop.f32.mrf.mxu0  ;;  %14651 = vst [vmem:[#allocation11_spill] sm:$0xff] %v12162_v34  ;;  %v14485_v48 = vrot.slane %v12087_v19, 1 }
 0x247   : > { %v4055_v55 = vsel %vm3965_vm7, %v12151_v31, %v4045_v35  ;;  %v12165_v10 = vsel %vm2721_vm3, %v2386_v17, -inf }
 0x248   : > { %4713 = vrot.lane.b32.xlu1 %v4680_v39, %s10552_s28  ;;  %14652 = vst [vmem:[#allocation12_spill] sm:$0xff] %v12165_v10  ;;  %9832 = vmatprep.mubr.msk.bf16.mxu1 %vm4109_vm8, %v4055_v55  ;;  %v9739_v24 = vpop.f32.mrf.mxu0  ;;  %v3914_v35 = vpop.permute.xlu1 %3913  ;;  %v4746_v55 = vsel %vm3879_vm5, %v4743_v20, %v14485_v48 }
 0x249   : > { %v3853_v39 = vpop.permute.xlu0 %3852  ;;  %v12176_v41 = vsel %vm2721_vm3, %v9739_v24, -inf }
 0x24a   : > { %14654 = vst [vmem:[#allocation14_spill] sm:$0xff] %v12176_v41  ;;  %v3942_v17 = vsel %vm2721_vm3, %v10462_v44, %v3853_v39  ;;  %v2389_v16 = vpop.f32.mrf.mxu0  ;;  %v12193_v44 = vsel %vm2721_vm3, %v11870_v27, -inf }
 0x24b   : > { %v12189_v24 = vsel %vm3965_vm7, %v3942_v17, %v3914_v35  ;;  %14655 = vst [vmem:[#allocation15_spill] sm:$0xff] %v12193_v44  ;;  %v12196_v39 = vsel %vm2721_vm3, %v2389_v16, -inf  ;;  %v12205_v35 = vsel %vm2721_vm3, %v11878_v46, -inf  ;;  %v10300_v17 = vld [vmem:[%s14443_s3 + $0x18] sm:$0xff]  }
 0x24c   : > { %4773 = vrot.lane.b32.xlu1 %v4746_v55, %s10551_s27  ;;  %14656 = vst [vmem:[#allocation16_spill] sm:$0xff] %v12196_v39  ;;  %9833 = vmatmul.mubr.msk.bf16.vlgmr.msra.gmra.mxu1 %vm4109_vm8, %v12189_v24  ;;  %v9742_v48 = vpop.f32.mrf.mxu0  ;;  %14657 = vst [vmem:[#allocation17_spill] sm:$0xff] %v12205_v35  ;;  %v10463_v39 = vld [vmem:[#allocation2 + $0x18] sm:$0xff]   ;;  %v12227_v55 = vsel %vm2721_vm3, %v11892_v49, -inf  ;;  %v10301_v49 = vld [vmem:[%s14443_s3 + $0x10] sm:$0xff]  }
 0x24d   : > { %v3855_v10 = vpop.permute.xlu0 %3854  ;;  %9861 = vmatpush3.bf16.msra.mxu1 %v11748_v53  ;;  %v12208_v27 = vsel %vm2721_vm3, %v9742_v48, -inf  ;;  %v12217_v53 = vsel %vm2721_vm3, %v11885_v47, -inf  ;;  %14661 = vst [vmem:[#allocation44_spill] sm:$0xff] %v12227_v55 }
 0x24e   : > { %14658 = vst [vmem:[#allocation18_spill] sm:$0xff] %v12208_v27  ;;  %9862 = vmatprep.subr.bf16.mxu1 %v10299_v5  ;;  %v2402_v16 = vpop.f32.mrf.mxu0  ;;  %14659 = vst [vmem:[#allocation19_spill] sm:$0xff] %v12217_v53  ;;  %v3944_v48 = vsel %vm2721_vm3, %v10463_v39, %v3855_v10 }
 0x24f   : > { %v3857_v20 = vpop.permute.xlu1 %3856  ;;  %v12220_v46 = vsel %vm2721_vm3, %v2402_v16, -inf  ;;  %v10464_v16 = vld [vmem:[#allocation2 + $0x20] sm:$0xff]  }
 0x250   : > { %14660 = vst [vmem:[#allocation20_spill] sm:$0xff] %v12220_v46  ;;  %v9743_v41 = vpop.f32.mrf.mxu0  ;;  %v3946_v10 = vsel %vm2721_vm3, %v10464_v16, %v3857_v20  ;;  %v12274_v46 = vsel %vm2721_vm3, %v11922_v1, -inf  ;;  %v10303_v1 = vld [vmem:[%s14443_s3] sm:$0xff]  }
 0x251   : > { %v3916_v32 = vpop.permute.xlu0 %3915  ;;  %9863 = vmatpush3.bf16.msra.mxu1 %v10299_v5  ;;  %v12230_v27 = vsel %vm2721_vm3, %v9743_v41, -inf  ;;  %14667 = vst [vmem:[#allocation21_spill] sm:$0xff] %v12274_v46 }
 0x252   : > { %14662 = vst [vmem:[#allocation45_spill] sm:$0xff] %v12230_v27  ;;  %v12233_v47 = vsel %vm3965_vm7, %v3944_v48, %v3916_v32  ;;  %9864 = vmatprep.subr.bf16.mxu1 %v10300_v17  ;;  %v12238_v44 = vpop.f32.mrf.mxu0  ;;  %v12252_v48 = vsel %vm2721_vm3, %v11908_v50, -inf }
 0x253   : > { %v3918_v5 = vpop.permute.xlu1 %3917  ;;  %9836 = vmatprep.mubr.msk.bf16.mxu1 %vm4109_vm8, %v12233_v47  ;;  %14663 = vst [vmem:[#allocation46_spill] sm:$0xff] %v12252_v48 }
 0x254   : > { %v12246_v32 = vsel %vm3965_vm7, %v3946_v10, %v3918_v5  ;;  %v9746_v41 = vpop.f32.mrf.mxu0  ;;  %v10302_v10 = vld [vmem:[%s14443_s3 + $0x8] sm:$0xff]   ;;  %v12264_v5 = vsel %vm2721_vm3, %v11914_v28, -inf }
 0x255   : > { %9837 = vmatmul.mubr.msk.bf16.gmra.mxu1 %vm4109_vm8, %v12246_v32  ;;  %v3859_v20 = vpop.permute.xlu0 %3858  ;;  %v12255_v16 = vsel %vm2721_vm3, %v9746_v41, -inf  ;;  %14665 = vst [vmem:[#allocation48_spill] sm:$0xff] %v12264_v5  ;;  %v10465_v41 = vld [vmem:[#allocation2 + $0x28] sm:$0xff]  }
 0x256   : > { %14664 = vst [vmem:[#allocation47_spill] sm:$0xff] %v12255_v16  ;;  %9865 = vmatpush3.bf16.msra.mxu1 %v10300_v17  ;;  %v2418_v27 = vpop.f32.mrf.mxu0  ;;  %v3948_v17 = vsel %vm2721_vm3, %v10465_v41, %v3859_v20 }
 0x257   : > { %9866 = vmatprep.subr.bf16.mxu1 %v10301_v49  ;;  %v12267_v50 = vsel %vm2721_vm3, %v2418_v27, -inf  ;;  %v10466_v27 = vld [vmem:[#allocation2 + $0x30] sm:$0xff]  }
 0x258   : > { %v3861_v55 = vpop.permute.xlu1 %3860  ;;  %14666 = vst [vmem:[#allocation49_spill] sm:$0xff] %v12267_v50  ;;  %v9747_v16 = vpop.f32.mrf.mxu0 }
 0x259   : > { %v3920_v48 = vpop.permute.xlu0 %3919  ;;  %v12277_v53 = vsel %vm2721_vm3, %v9747_v16, -inf  ;;  %v3950_v35 = vsel %vm2721_vm3, %v10466_v27, %v3861_v55  ;;  %v12299_v55 = vsel %vm2721_vm3, %v11934_v51, -inf }
 0x25a   : > { %14668 = vst [vmem:[#allocation22_spill] sm:$0xff] %v12277_v53  ;;  %v12280_v28 = vsel %vm3965_vm7, %v3948_v17, %v3920_v48  ;;  %9867 = vmatpush3.bf16.msra.mxu1 %v10301_v49  ;;  %v12285_v41 = vpop.f32.mrf.mxu0  ;;  %14669 = vst [vmem:[#allocation23_spill] sm:$0xff] %v12299_v55  ;;  %v10467_v53 = vld [vmem:[#allocation2 + $0x38] sm:$0xff]  }
 0x25b   : > { %9840 = vmatprep.mubr.msk.bf16.mxu1 %vm4109_vm8, %v12280_v28  ;;  %9868 = vmatprep.subr.bf16.mxu1 %v10302_v10 }
 0x25c   : > { %v3922_v39 = vpop.permute.xlu1 %3921  ;;  %v9750_v49 = vpop.f32.mrf.mxu0 }
 0x25d   : > { %v12293_v48 = vsel %vm3965_vm7, %v3950_v35, %v3922_v39  ;;  %v12302_v16 = vsel %vm2721_vm3, %v9750_v49, -inf  ;;  %v12309_v35 = vld [vmem:[%s14443_s3 + $0x88] sm:$0xff]   ;;  %v12313_v39 = vsel %vm2721_vm3, %v11940_v60, -inf }
 0x25e   : > { %9841 = vmatmul.mubr.msk.bf16.gmra.mxu1 %vm4109_vm8, %v12293_v48  ;;  %14670 = vst [vmem:[#allocation24_spill] sm:$0xff] %v12302_v16  ;;  %v2434_v20 = vpop.f32.mrf.mxu0  ;;  %14671 = vst [vmem:[#allocation25_spill] sm:$0xff] %v12313_v39  ;;  %v12322_v16 = vsel %vm2721_vm3, %v11947_v9, -inf  ;;  %v10468_v9 = vld [vmem:[#allocation2 + $0x40] sm:$0xff]  }
 0x25f   : > { %9869 = vmatpush3.bf16.msra.mxu1 %v10302_v10  ;;  %v3863_v27 = vpop.permute.xlu0 %3862  ;;  %v12316_v51 = vsel %vm2721_vm3, %v2434_v20, -inf  ;;  %14673 = vst [vmem:[#allocation27_spill] sm:$0xff] %v12322_v16 }
 0x260   : > { %9870 = vmatprep.subr.bf16.mxu1 %v10303_v1  ;;  %14672 = vst [vmem:[#allocation26_spill] sm:$0xff] %v12316_v51  ;;  %v9751_v17 = vpop.f32.mrf.mxu0  ;;  %v3952_v60 = vsel %vm2721_vm3, %v10467_v53, %v3863_v27  ;;  %v12341_v53 = vsel %vm2721_vm3, %v11960_v12, -inf }
 0x261   : > { %v12325_v55 = vsel %vm2721_vm3, %v9751_v17, -inf  ;;  %14675 = vst [vmem:[#allocation29_spill] sm:$0xff] %v12341_v53  ;;  %v10469_v53 = vld [vmem:[#allocation2 + $0x48] sm:$0xff]  }
 0x262   : > { %v3865_v49 = vpop.permute.xlu1 %3864  ;;  %14674 = vst [vmem:[#allocation28_spill] sm:$0xff] %v12325_v55  ;;  %v12330_v50 = vpop.f32.mrf.mxu0 }
 0x263   : > { %9871 = vmatpush3.bf16.msra.mxu1 %v10303_v1  ;;  %v3924_v46 = vpop.permute.xlu0 %3923  ;;  %v3954_v51 = vsel %vm2721_vm3, %v10468_v9, %v3865_v49  ;;  %v12355_v9 = vsel %vm2721_vm3, %v11966_v61, -inf }
 0x264   : > { %9900 = vmatprep.subr.bf16.mxu1 %v12309_v35  ;;  %v12334_v10 = vsel %vm3965_vm7, %v3952_v60, %v3924_v46  ;;  %v9754_v1 = vpop.f32.mrf.mxu0  ;;  %14677 = vst [vmem:[#allocation31_spill] sm:$0xff] %v12355_v9  ;;  %v12364_v46 = vsel %vm2721_vm3, %v11973_v33, -inf }
 0x265   : > { %9844 = vmatprep.mubr.msk.bf16.mxu1 %vm4109_vm8, %v12334_v10  ;;  %v12347_v20 = vsel %vm2721_vm3, %v9754_v1, -inf  ;;  %14679 = vst [vmem:[#allocation50_spill] sm:$0xff] %v12364_v46 }
 0x266   : > { %v3926_v17 = vpop.permute.xlu1 %3925  ;;  %14676 = vst [vmem:[#allocation30_spill] sm:$0xff] %v12347_v20  ;;  %v2450_v60 = vpop.f32.mrf.mxu0 }
 0x267   : > { %v12344_v27 = vsel %vm3965_vm7, %v3954_v51, %v3926_v17  ;;  %v3867_v49 = vpop.permute.xlu0 %3866  ;;  %v12358_v12 = vsel %vm2721_vm3, %v2450_v60, -inf  ;;  %v12374_v51 = vsel %vm2721_vm3, %v11979_v11, -inf }
 0x268   : > { %9845 = vmatmul.mubr.msk.bf16.gmra.mxu1 %vm4109_vm8, %v12344_v27  ;;  %14678 = vst [vmem:[#allocation32_spill] sm:$0xff] %v12358_v12  ;;  %v9755_v1 = vpop.f32.mrf.mxu0  ;;  %v3956_v55 = vsel %vm2721_vm3, %v10469_v53, %v3867_v49  ;;  %14681 = vst [vmem:[#allocation33_spill] sm:$0xff] %v12374_v51 }
 0x269   : > { %v12367_v20 = vsel %vm2721_vm3, %v9755_v1, -inf }
 0x26a   : > { %v3869_v17 = vpop.permute.xlu1 %3868  ;;  %14680 = vst [vmem:[#allocation51_spill] sm:$0xff] %v12367_v20  ;;  %v2453_v16 = vpop.f32.mrf.mxu0 }
 0x26b   : > { %v3928_v60 = vpop.permute.xlu0 %3927  ;;  %v12380_v33 = vsel %vm2721_vm3, %v2453_v16, -inf  ;;  %v3958_v1 = vsel %vm2721_vm3, %v11727_v21, %v3869_v17 }
 0x26c   : > { %v12377_v12 = vsel %vm3965_vm7, %v3956_v55, %v3928_v60  ;;  %14682 = vst [vmem:[#allocation34_spill] sm:$0xff] %v12380_v33  ;;  %v12388_v61 = vpop.f32.mrf.mxu0 }
 0x26d   : > { %9848 = vmatprep.mubr.msk.bf16.mxu1 %vm4109_vm8, %v12377_v12 }
 0x26e   : > { %v3930_v49 = vpop.permute.xlu1 %3929  ;;  %v12395_v16 = vpop.f32.mrf.mxu0 }
 0x26f   : > { %v12391_v11 = vsel %vm3965_vm7, %v3958_v1, %v3930_v49  ;;  %v3871_v55 = vpop.permute.xlu0 %3870 }
 0x270   : > { %9849 = vmatmul.mubr.msk.bf16.gmra.mxu1 %vm4109_vm8, %v12391_v11  ;;  %v12397_v21 = vpop.f32.mrf.mxu0  ;;  %v3960_v17 = vsel %vm2721_vm3, %v11736_v29, %v3871_v55 }
 0x272   : > { %v3873_v60 = vpop.permute.xlu1 %3872  ;;  %v12401_v33 = vpop.f32.mrf.mxu0 }
 0x273   : > { %v3932_v53 = vpop.permute.xlu0 %3931  ;;  %v3962_v1 = vsel %vm2721_vm3, %v11774_v6, %v3873_v60 }
 0x274   : > { %v12404_v51 = vsel %vm3965_vm7, %v3960_v17, %v3932_v53  ;;  %v12410_v20 = vpop.f32.mrf.mxu0 }
 0x275   : > { %9852 = vmatprep.mubr.msk.bf16.mxu1 %vm4109_vm8, %v12404_v51 }
 0x276   : > { %v3934_v49 = vpop.permute.xlu1 %3933  ;;  %v12417_v55 = vpop.f32.mrf.mxu0 }
 0x277   : > { %v12413_v46 = vsel %vm3965_vm7, %v3962_v1, %v3934_v49  ;;  %v4032_v29 = vpop.permute.xlu0 %4031 }
 0x278   : > { %9853 = vmatmul.mubr.msk.bf16.gmra.mxu1 %vm4109_vm8, %v12413_v46  ;;  %v12419_v17 = vpop.f32.mrf.mxu0  ;;  %v4051_v6 = vsel %vm2721_vm3, %v11771_v0, %v4032_v29 }
 0x27a   : > { %v4034_v53 = vpop.permute.xlu1 %4033  ;;  %v12423_v9 = vpop.f32.mrf.mxu0 }
 0x27b   : > { %v4047_v60 = vpop.permute.xlu0 %4046  ;;  %v4053_v1 = vsel %vm2721_vm3, %v11809_v2, %v4034_v53 }
 0x27c   : > { %v4057_v39 = vsel %vm3965_vm7, %v4051_v6, %v4047_v60  ;;  %v12429_v5 = vpop.f32.mrf.mxu0 }
 0x27d   : > { %9856 = vmatprep.mubr.msk.bf16.mxu1 %vm4109_vm8, %v4057_v39 }
 0x27e   : > { %v4049_v49 = vpop.permute.xlu1 %4048  ;;  %v12433_v7 = vpop.f32.mrf.mxu0 }
 0x27f   : > { %v4059_v34 = vsel %vm3965_vm7, %v4053_v1, %v4049_v49  ;;  %v3849_v4 = vpop.permute.xlu0 %3848  ;;  %v10306_v49 = vld [vmem:[%s14443_s3 + $0x78] sm:$0xff]  }
 0x280   : > { %9857 = vmatmul.mubr.msk.bf16.gmra.mxu1 %vm4109_vm8, %v4059_v34  ;;  %v3938_v0 = vsel %vm2721_vm3, %v11805_v22, %v3849_v4  ;;  %v12437_v6 = vpop.f32.mrf.mxu0  ;;  %v10305_v34 = vld [vmem:[%s14443_s3 + $0x80] sm:$0xff]  }
 0x282   : > { %v3910_v29 = vpop.permute.xlu1 %3909  ;;  %v12441_v53 = vpop.f32.mrf.mxu0 }
 0x283   : > { %v3967_v2 = vsel %vm3965_vm7, %v3938_v0, %v3910_v29  ;;  %v3912_v39 = vpop.permute.xlu0 %3911  ;;  %v10307_v29 = vld [vmem:[%s14443_s3 + $0x70] sm:$0xff]  }
 0x284   : > { %9872 = vmatprep.mubr.msk.bf16.mxu1 %vm4109_vm8, %v3967_v2  ;;  %v12443_v60 = vpop.f32.mrf.mxu0  ;;  %v3969_v1 = vsel %vm3965_vm7, %v12151_v31, %v3912_v39  ;;  %v10308_v39 = vld [vmem:[%s14443_s3 + $0x68] sm:$0xff]  }
 0x286   : > { %v12451_v22 = vpop.f32.mrf.mxu0 }
 0x288   : > { %9873 = vmatmul.mubr.msk.bf16.vlgmr.msra.gmra.mxu1 %vm4109_vm8, %v3969_v1  ;;  %v12456_v4 = vpop.f32.mrf.mxu0 }
 0x289   : > { %9876 = vmatprep.mubr.msk.bf16.mxu1 %vm4109_vm8, %v12189_v24  ;;  %9901 = vmatpush3.bf16.msra.mxu1 %v12309_v35  ;;  %v12468_v24 = vpop.permute.xlu1 %3874 }
 0x28a   : > { %9902 = vmatprep.subr.bf16.mxu1 %v10305_v34  ;;  %v12461_v0 = vpop.f32.mrf.mxu0 }
 0x28c   : > { %v12463_v31 = vpop.f32.mrf.mxu0 }
 0x28d   : > { %9903 = vmatpush3.bf16.msra.mxu1 %v10305_v34  ;;  %14683 = vst [vmem:[#allocation35_spill] sm:$0xff] %v12463_v31  ;;  %v12483_v1 = vpop.permute.xlu1 %4689 }
 0x28e   : > { %9904 = vmatprep.subr.bf16.mxu1 %v10306_v49  ;;  %v12472_v35 = vpop.f32.mrf.mxu0 }
 0x290   : > { %9877 = vmatmul.mubr.msk.bf16.gmra.mxu1 %vm4109_vm8, %v12233_v47  ;;  %v12476_v2 = vpop.f32.mrf.mxu0  ;;  %v10309_v47 = vld [vmem:[%s14443_s3 + $0x60] sm:$0xff]  }
 0x291   : > { %9880 = vmatprep.mubr.msk.bf16.mxu1 %vm4109_vm8, %v12246_v32  ;;  %9905 = vmatpush3.bf16.msra.mxu1 %v10306_v49  ;;  %14684 = vst [vmem:[#allocation36_spill] sm:$0xff] %v12476_v2 }
 0x292   : > { %9906 = vmatprep.subr.bf16.mxu1 %v10307_v29  ;;  %v12481_v34 = vpop.f32.mrf.mxu0 }
 0x293   : > { %14685 = vst [vmem:[#allocation37_spill] sm:$0xff] %v12481_v34 }
 0x294   : > { %v12485_v31 = vpop.f32.mrf.mxu0 }
 0x295   : > { %9907 = vmatpush3.bf16.msra.mxu1 %v10307_v29  ;;  %14686 = vst [vmem:[#allocation38_spill] sm:$0xff] %v12485_v31  ;;  %v12498_v29 = vpop.permute.xlu0 %3935  ;;  %v12500_v31 = vpop.permute.xlu1 %4749 }
 0x296   : > { %9908 = vmatprep.subr.bf16.mxu1 %v10308_v39  ;;  %v12492_v32 = vpop.f32.mrf.mxu0 }
 0x297   : > { %14687 = vst [vmem:[#allocation52_spill] sm:$0xff] %v12492_v32 }
 0x298   : > { %9881 = vmatmul.mubr.msk.bf16.gmra.mxu1 %vm4109_vm8, %v12280_v28  ;;  %v12496_v49 = vpop.f32.mrf.mxu0 }
 0x299   : > { %9884 = vmatprep.mubr.msk.bf16.mxu1 %vm4109_vm8, %v12293_v48  ;;  %9909 = vmatpush3.bf16.msra.mxu1 %v10308_v39  ;;  %14688 = vst [vmem:[#allocation53_spill] sm:$0xff] %v12496_v49  ;;  %v12510_v32 = vpop.permute.xlu0 %4691  ;;  %v12514_v48 = vpop.permute.xlu1 %4693 }
 0x29a   : > { %9910 = vmatprep.subr.bf16.mxu1 %v10309_v47  ;;  %v12502_v34 = vpop.f32.mrf.mxu0 }
 0x29b   : > { %14689 = vst [vmem:[#allocation54_spill] sm:$0xff] %v12502_v34 }
 0x29c   : > { %v12504_v2 = vpop.f32.mrf.mxu0 }
 0x29d   : > { %9911 = vmatpush3.bf16.msra.mxu1 %v10309_v47  ;;  %14690 = vst [vmem:[#allocation55_spill] sm:$0xff] %v12504_v2  ;;  %v12522_v47 = vpop.permute.xlu0 %4751  ;;  %v12524_v2 = vpop.permute.xlu1 %4753 }
 0x29e   : > { %v12508_v28 = vpop.f32.mrf.mxu0 }
 0x29f   : > { %14691 = vst [vmem:[#allocation56_spill] sm:$0xff] %v12508_v28  ;;  %v14519_v28 = vmov 0  }
 0x2a0   : > { %9885 = vmatmul.mubr.msk.bf16.gmra.mxu1 %vm4109_vm8, %v12334_v10  ;;  %v12516_v39 = vpop.f32.mrf.mxu0  ;;  %5463 = vmatprep.subr.bf16.mxu1 %v14519_v28  ;;  %3627 = vst.msk [vmem:[#allocation2 + $0x100] sm:$0x1] %vm3626_vm9, %v14519_v28 }
 0x2a1   : > { %9888 = vmatprep.mubr.msk.bf16.mxu1 %vm4109_vm8, %v12344_v27  ;;  %14692 = vst [vmem:[#allocation57_spill] sm:$0xff] %v12516_v39  ;;  %v12534_v27 = vsel %vm2721_vm3, %v12238_v44, -inf  ;;  %8110 = vmatprep.subr.bf16.mxu0 %v14519_v28  ;;  %v12550_v44 = vsel %vm2721_vm3, %v11928_v57, -inf  ;;  %v2991_v28 = vsel %vm2721_vm3, %v12410_v20, -inf  ;;  %v14700_v20 = vmax.f32 %v11997_v40, %v12005_v56 }
 0x2a2   : > { %v12518_v49 = vpop.f32.mrf.mxu0  ;;  %v14703_v40 = vmax.f32 %v12039_v63, %v12045_v45 }
 0x2a3   : > { %14693 = vst [vmem:[#allocation58_spill] sm:$0xff] %v12518_v49  ;;  %v4681_v49 = vshrl.u32 %v12087_v19, 16 }
 0x2a4   : > { %v12520_v34 = vpop.f32.mrf.mxu0  ;;  %v2992_v56 = vmax.f32 %v14703_v40, %v2991_v28 }
 0x2a5   : > { %14694 = vst [vmem:[#allocation59_spill] sm:$0xff] %v12520_v34  ;;  %v2963_v34 = vsel %vm2721_vm3, %v12388_v61, -inf  ;;  %v12554_v61 = vsel %vm2721_vm3, %v12285_v41, -inf  ;;  %v12569_v57 = vor.u32 %v4681_v49, %v12137_v43  ;;  %v14699_v41 = vmax.f32 %v11987_v59, %v11991_v3 }
 0x2a6   : > { %v12528_v10 = vpop.f32.mrf.mxu0  ;;  %v2977_v49 = vsel %vm2721_vm3, %v12417_v55, -inf  ;;  %v2998_v59 = vsel %vm2721_vm3, %v12419_v17, -inf  ;;  %v14701_v17 = vmax.f32 %v12012_v54, %v12018_v13  ;;  %v14706_v54 = vmax.f32 %v12066_v15, %v12072_v18 }
 0x2a7   : > { %14695 = vst [vmem:[#allocation60_spill] sm:$0xff] %v12528_v10  ;;  %v12566_v10 = vpop.permute.xlu0 %4695  ;;  %v2964_v19 = vmax.f32 %v14699_v41, %v2963_v34  ;;  %v2984_v34 = vsel %vm2721_vm3, %v12423_v9, -inf  ;;  %v3005_v18 = vsel %vm2721_vm3, %v12433_v7, -inf  ;;  %v3012_v7 = vsel %vm2721_vm3, %v12441_v53, -inf }
 0x2a8   : > { %9889 = vmatmul.mubr.msk.bf16.gmra.mxu1 %vm4109_vm8, %v12377_v12  ;;  %v12536_v39 = vpop.f32.mrf.mxu0  ;;  %v12546_v12 = vsel %vm2721_vm3, %v11900_v8, -inf  ;;  %v2949_v8 = vsel %vm2721_vm3, %v12395_v16, -inf  ;;  %v12618_v13 = vmax.f32 %v14706_v54, %v2998_v59 }
 0x2a9   : > { %9892 = vmatprep.mubr.msk.bf16.mxu1 %vm4109_vm8, %v12391_v11  ;;  %14696 = vst [vmem:[#allocation61_spill] sm:$0xff] %v12536_v39  ;;  %v12560_v39 = vsel %vm2721_vm3, %v11954_v26, -inf  ;;  %v2956_v26 = vsel %vm2721_vm3, %v12401_v33, -inf  ;;  %v12591_v33 = vsel %vm2721_vm3, %v12330_v50, -inf  ;;  %v14702_v50 = vmax.f32 %v12025_v58, %v12031_v52  ;;  %v12623_v58 = vld [vmem:[%s14442_s2] ss:$0 sm:$0xff] }
 0x2aa   : > { %v12556_v11 = vpop.f32.mrf.mxu0  ;;  %14698 = vst [vmem:[#allocation63_spill] sm:$0xff] %v12560_v39  ;;  %v12580_v39 = vpop.permute.xlu1 %4697 }
 0x2ab   : > { %14697 = vst [vmem:[#allocation62_spill] sm:$0xff] %v12556_v11  ;;  %v2970_v11 = vsel %vm2721_vm3, %v12397_v21, -inf  ;;  %v2950_v21 = vmax.f32 %v14700_v20, %v2949_v8  ;;  %v2957_v43 = vmax.f32 %v14702_v50, %v2956_v26  ;;  %v12635_v15 = vpop.permute.xlu0 %4755  ;;  %v10471_v26 = vld [vmem:[#allocation2 + $0x68] sm:$0xff]  }
 0x2ac   : > { %v9790_v16 = vpop.f32.mrf.mxu0 }
 0x2ad   : > { %v2965_v3 = vsel %vm2721_vm3, %v9790_v16, -inf  ;;  %v2971_v16 = vmax.f32 %v14701_v17, %v2970_v11 }
 0x2ae   : > { %v2966_v41 = vmax.f32 %v2964_v19, %v2965_v3  ;;  %v2594_v55 = vpop.f32.mrf.mxu0  ;;  %v14704_v19 = vld [vmem:[#allocation40_spill] sm:$0xff]  ;;  %v12640_v59 = vpop.permute.xlu1 %4757 }
 0x2af   : > { %v2951_v8 = vsel %vm2721_vm3, %v2594_v55, -inf  ;;  %v14705_v9 = vmax.f32 %v12051_v62, %v14704_v19  ;;  %v3019_v62 = vsel %vm2721_vm3, %v12429_v5, -inf  ;;  %v3026_v5 = vsel %vm2721_vm3, %v12437_v6, -inf }
 0x2b0   : > { %9893 = vmatmul.mubr.msk.bf16.gmra.mxu1 %vm4109_vm8, %v12404_v51  ;;  %v3211_v52 = vadd.f32 %v12623_v58, %v2966_v41  ;;  %v2952_v63 = vmax.f32 %v2950_v21, %v2951_v8  ;;  %v9791_v45 = vpop.f32.mrf.mxu0  ;;  %v14708_v21 = vld [vmem:[#allocation39_spill] sm:$0xff] }
 0x2b1   : > { %9896 = vmatprep.mubr.msk.bf16.mxu1 %vm4109_vm8, %v12413_v46  ;;  %v2978_v51 = vmax.f32 %v14705_v9, %v2977_v49  ;;  %v14707_v46 = vmax.f32 %v12077_v14, %v12083_v23  ;;  %v2972_v11 = vsel %vm2721_vm3, %v9791_v45, -inf  ;;  %v3964_v49 = vsel %vm2721_vm3, %v10471_v26, %v12468_v24 }
 0x2b2   : > { %v3275_v3 = vmax.f32 %v3211_v52, 0.0  ;;  %v3209_v14 = vadd.f32 %v12623_v58, %v2952_v63  ;;  %v2973_v23 = vmax.f32 %v2971_v16, %v2972_v11  ;;  %v2597_v20 = vpop.f32.mrf.mxu0  ;;  %v14709_v16 = vmax.f32 %v12094_v42, %v12097_v25  ;;  %v14710_v25 = vld [vmem:[#allocation42_spill] sm:$0xff]  ;;  %v14711_v52 = vld [vmem:[#allocation43_spill] sm:$0xff]  ;;  %v12680_v11 = vpop.permute.xlu0 %4699 }
 0x2b3   : > { %v12629_v28 = vmax.f32 %v14707_v46, %v2984_v34  ;;  %v4778_v34 = vsel %vm2721_vm3, %v14708_v21, %v12483_v1  ;;  %v2958_v41 = vsel %vm2721_vm3, %v2597_v20, -inf  ;;  %v3993_v6 = vsel %vm3965_vm7, %v3964_v49, %v12498_v29  ;;  %v12684_v26 = vpop.permute.xlu1 %4701 }
 0x2b4   : > { %v9248_v24 = vpack.c.bf16 %v3275_v3, %v3275_v3  ;;  %v3273_v55 = vmax.f32 %v3209_v14, 0.0  ;;  %v3212_v17 = vadd.f32 %v12623_v58, %v2973_v23  ;;  %v2959_v50 = vmax.f32 %v2957_v43, %v2958_v41  ;;  %v9794_v40 = vpop.f32.mrf.mxu0 }
 0x2b5   : > { %v12655_v8 = vmax.f32 %v14709_v16, %v3019_v62  ;;  %v4806_v53 = vsel %vm3965_vm7, %v4778_v34, %v12500_v31  ;;  %v2993_v1 = vsel %vm2721_vm3, %v9794_v40, -inf  ;;  %v14712_v63 = vmax.f32 %v14710_v25, %v14711_v52  ;;  %v10472_v34 = vld [vmem:[#allocation2 + $0x18] sm:$0xff]   ;;  %v14719_v52 = vld [vmem:[#allocation11_spill] sm:$0xff] }
 0x2b6   : > { %3596 = vst.msk [vmem:[#allocation2 + $0x88] sm:$0xf] %vm3561_vm4, %v9248_v24  ;;  %v9246_v19 = vpack.c.bf16 %v3273_v55, %v3273_v55  ;;  %v3276_v9 = vmax.f32 %v3212_v17, 0.0  ;;  %v3210_v43 = vadd.f32 %v12623_v58, %v2959_v50  ;;  %v2994_v54 = vmax.f32 %v2992_v56, %v2993_v1  ;;  %v2610_v42 = vpop.f32.mrf.mxu0 }
 0x2b7   : > { %v12668_v45 = vmax.f32 %v14712_v63, %v3005_v18  ;;  %v14713_v31 = vmax.f32 %v12120_v36, %v12123_v37  ;;  %v14714_v46 = vmax.f32 %v12128_v38, %v12134_v30  ;;  %v2979_v56 = vsel %vm2721_vm3, %v2610_v42, -inf  ;;  %v12719_v1 = vpop.permute.xlu1 %4761  ;;  %v14717_v42 = vld [vmem:[#allocation10_spill] sm:$0xff]  ;;  %v14720_v63 = vld [vmem:[#allocation12_spill] sm:$0xff] }
 0x2b8   : > { %9897 = vmatmul.mubr.msk.bf16.gmra.mxu1 %vm4109_vm8, %v3993_v6  ;;  %3594 = vst.msk [vmem:[#allocation2 + $0x80] sm:$0xf] %vm3561_vm4, %v9246_v19  ;;  %v9249_v18 = vpack.c.bf16 %v3276_v9, %v3276_v9  ;;  %v3274_v49 = vmax.f32 %v3210_v43, 0.0  ;;  %v3215_v37 = vadd.f32 %v12623_v58, %v2994_v54  ;;  %v2980_v36 = vmax.f32 %v2978_v51, %v2979_v56  ;;  %v9795_v3 = vpop.f32.mrf.mxu0  ;;  %v12716_v6 = vpop.permute.xlu0 %4759  ;;  %v14716_v54 = vld [vmem:[#allocation9_spill] sm:$0xff] }
 0x2b9   : > { %v12673_v29 = vmax.f32 %v14713_v31, %v3026_v5  ;;  %v12678_v62 = vmax.f32 %v14714_v46, %v3012_v7  ;;  %9912 = vmatprep.mubr.msk.bf16.mxu1 %vm4109_vm8, %v4806_v53  ;;  %v3047_v30 = vsel %vm2721_vm3, %v12443_v60, -inf  ;;  %v3033_v38 = vsel %vm2721_vm3, %v12451_v22, -inf  ;;  %v14722_v56 = vld [vmem:[#allocation13_spill] sm:$0xff] }
 0x2ba   : > { %v3054_v14 = vsel %vm2721_vm3, %v12456_v4, -inf  ;;  %v3000_v23 = vsel %vm2721_vm3, %v9795_v3, -inf  ;;  %3597 = vst.msk [vmem:[#allocation2 + $0x8c] sm:$0xf] %vm3561_vm4, %v9249_v18  ;;  %v9247_v20 = vpack.c.bf16 %v3274_v49, %v3274_v49  ;;  %v3279_v5 = vmax.f32 %v3215_v37, 0.0  ;;  %v2613_v21 = vpop.f32.mrf.mxu0  ;;  %v10473_v4 = vld [vmem:[#allocation2 + $0x20] sm:$0xff]  }
 0x2bb   : > { %v3213_v7 = vadd.f32 %v12623_v58, %v2980_v36  ;;  %v3001_v51 = vmax.f32 %v12618_v13, %v3000_v23  ;;  %v4780_v60 = vsel %vm2721_vm3, %v10472_v34, %v12510_v32  ;;  %v12702_v22 = vsel %vm2721_vm3, %v12461_v0, -inf  ;;  %v14715_v32 = vld [vmem:[#allocation35_spill] sm:$0xff]  ;;  %v14723_v18 = vld [vmem:[#allocation14_spill] sm:$0xff] }
 0x2bc   : > { %v4782_v41 = vsel %vm2721_vm3, %v10473_v4, %v12514_v48  ;;  %v2986_v24 = vsel %vm2721_vm3, %v2613_v21, -inf  ;;  %3595 = vst.msk [vmem:[#allocation2 + $0x84] sm:$0xf] %vm3561_vm4, %v9247_v20  ;;  %v9252_v55 = vpack.c.bf16 %v3279_v5, %v3279_v5  ;;  %v9798_v40 = vpop.f32.mrf.mxu0  ;;  %v3075_v16 = vsel %vm2721_vm3, %v14715_v32, -inf }
 0x2bd   : > { %v3277_v17 = vmax.f32 %v3213_v7, 0.0  ;;  %v3216_v13 = vadd.f32 %v12623_v58, %v3001_v51  ;;  %v2987_v50 = vmax.f32 %v12629_v28, %v2986_v24  ;;  %v4808_v0 = vsel %vm3965_vm7, %v4780_v60, %v12522_v47  ;;  %v10474_v7 = vld [vmem:[#allocation2 + $0x28] sm:$0xff]  }
 0x2be   : > { %v4810_v48 = vsel %vm3965_vm7, %v4782_v41, %v12524_v2  ;;  %v3021_v53 = vsel %vm2721_vm3, %v9798_v40, -inf  ;;  %3600 = vst.msk [vmem:[#allocation2 + $0x98] sm:$0xf] %vm3561_vm4, %v9252_v55  ;;  %v2626_v47 = vpop.f32.mrf.mxu0  ;;  %v14718_v2 = vmax.f32 %v14716_v54, %v14717_v42  ;;  %v14721_v31 = vmax.f32 %v14719_v52, %v14720_v63  ;;  %v14726_v54 = vld [vmem:[#allocation16_spill] sm:$0xff]  ;;  %v14728_v52 = vld [vmem:[#allocation17_spill] sm:$0xff] }
 0x2bf   : > { %v9250_v19 = vpack.c.bf16 %v3277_v17, %v3277_v17  ;;  %v3280_v28 = vmax.f32 %v3216_v13, 0.0  ;;  %v3214_v9 = vadd.f32 %v12623_v58, %v2987_v50  ;;  %v3022_v43 = vmax.f32 %v12655_v8, %v3021_v53  ;;  %v10310_v8 = vld [vmem:[#allocation2 + $0x80] ss:$0 sps:$4 sm:$0x11]   ;;  %v12758_v50 = vpop.permute.xlu1 %4705 }
 0x2c0   : > { %9913 = vmatmul.mubr.msk.bf16.vlgmr.msra.gmra.mxu1 %vm4109_vm8, %v4808_v0  ;;  %v3048_v25 = vmax.f32 %v14718_v2, %v3047_v30  ;;  %v12731_v46 = vmax.f32 %v14721_v31, %v3033_v38  ;;  %v14724_v49 = vmax.f32 %v14722_v56, %v14723_v18  ;;  %v3007_v36 = vsel %vm2721_vm3, %v2626_v47, -inf  ;;  %v9799_v38 = vpop.f32.mrf.mxu0  ;;  %v14731_v56 = vld [vmem:[#allocation19_spill] sm:$0xff]  ;;  %v14732_v18 = vld [vmem:[#allocation20_spill] sm:$0xff] }
 0x2c1   : > { %9916 = vmatprep.mubr.msk.bf16.mxu1 %vm4109_vm8, %v4810_v48  ;;  %3598 = vst.msk [vmem:[#allocation2 + $0x90] sm:$0xf] %vm3561_vm4, %v9250_v19  ;;  %v9253_v3 = vpack.c.bf16 %v3280_v28, %v3280_v28  ;;  %v3278_v23 = vmax.f32 %v3214_v9, 0.0  ;;  %v3219_v30 = vadd.f32 %v12623_v58, %v3022_v43  ;;  %v3008_v20 = vmax.f32 %v12668_v45, %v3007_v36 }
 0x2c2   : > { %v12736_v37 = vmax.f32 %v14724_v49, %v3054_v14  ;;  %v3061_v5 = vsel %vm2721_vm3, %v12472_v35, -inf  ;;  %v4784_v14 = vsel %vm2721_vm3, %v10474_v7, %v12566_v10  ;;  %v3028_v51 = vsel %vm2721_vm3, %v9799_v38, -inf  ;;  %v2629_v45 = vpop.f32.mrf.mxu0  ;;  %v10475_v35 = vld [vmem:[#allocation2 + $0x30] sm:$0xff]   ;;  %v12755_v10 = vpop.permute.xlu0 %4703  ;;  %v14735_v38 = vld [vmem:[#allocation37_spill] sm:$0xff] }
 0x2c3   : > { %v4685_v21 = vshll.u32 %v10310_v8, 16  ;;  %3601 = vst.msk [vmem:[#allocation2 + $0x9c] sm:$0xf] %vm3561_vm4, %v9253_v3  ;;  %v9251_v34 = vpack.c.bf16 %v3278_v23, %v3278_v23  ;;  %v3283_v60 = vmax.f32 %v3219_v30, 0.0  ;;  %v3217_v4 = vadd.f32 %v12623_v58, %v3008_v20  ;;  %v14734_v20 = vld [vmem:[#allocation36_spill] sm:$0xff] }
 0x2c4   : > { %v3029_v41 = vmax.f32 %v12673_v29, %v3028_v51  ;;  %v4812_v24 = vsel %vm3965_vm7, %v4784_v14, %v12635_v15  ;;  %v4786_v55 = vsel %vm2721_vm3, %v10475_v35, %v12580_v39  ;;  %v3014_v17 = vsel %vm2721_vm3, %v2629_v45, -inf  ;;  %v9802_v15 = vpop.f32.mrf.mxu0  ;;  %v14736_v51 = vld [vmem:[#allocation41_spill] sm:$0xff]  ;;  %v14738_v35 = vld [vmem:[#allocation38_spill] sm:$0xff] }
 0x2c5   : > { %v4687_v13 = vrot.slane %v4685_v21, 1  ;;  %3599 = vst.msk [vmem:[#allocation2 + $0x94] sm:$0xf] %vm3561_vm4, %v9251_v34  ;;  %v9256_v40 = vpack.c.bf16 %v3283_v60, %v3283_v60  ;;  %v3281_v32 = vmax.f32 %v3217_v4, 0.0  ;;  %v3015_v0 = vmax.f32 %v12678_v62, %v3014_v17  ;;  %v12799_v60 = vpop.permute.xlu1 %4765  ;;  %v10476_v17 = vld [vmem:[#allocation2 + $0x38] sm:$0xff]  }
 0x2c6   : > { %v3220_v29 = vadd.f32 %v12623_v58, %v3029_v41  ;;  %v4814_v48 = vsel %vm3965_vm7, %v4786_v55, %v12640_v59  ;;  %v3049_v39 = vsel %vm2721_vm3, %v9802_v15, -inf  ;;  %v4747_v19 = vrot.slane %v10310_v8, 1  ;;  %v2642_v62 = vpop.f32.mrf.mxu0  ;;  %v14725_v59 = vld [vmem:[#allocation15_spill] sm:$0xff]  ;;  %v12793_v7 = vpop.permute.xlu0 %4763 }
 0x2c7   : > { %v4688_v53 = vsel %vm3731_vm6, %v12569_v57, %v4687_v13  ;;  %3604 = vst.msk [vmem:[#allocation2 + $0xa8] sm:$0xf] %vm3561_vm4, %v9256_v40  ;;  %v9254_v28 = vpack.c.bf16 %v3281_v32, %v3281_v32  ;;  %v3218_v43 = vadd.f32 %v12623_v58, %v3015_v0  ;;  %v3050_v47 = vmax.f32 %v3048_v25, %v3049_v39  ;;  %v14729_v57 = vld [vmem:[#allocation18_spill] sm:$0xff] }
 0x2c8   : > { %v3284_v9 = vmax.f32 %v3220_v29, 0.0  ;;  %9917 = vmatmul.mubr.msk.bf16.gmra.mxu1 %vm4109_vm8, %v4812_v24  ;;  %4715 = vrot.lane.b32.xlu0 %v4688_v53, %s10552_s28  ;;  %v14727_v42 = vmax.f32 %v14725_v59, %v14726_v54  ;;  %v14730_v63 = vmax.f32 %v14728_v52, %v14729_v57  ;;  %v14733_v49 = vmax.f32 %v14731_v56, %v14732_v18  ;;  %v9803_v30 = vpop.f32.mrf.mxu0  ;;  %v10477_v40 = vld [vmem:[#allocation2 + $0x40] sm:$0xff]   ;;  %v14739_v53 = vld [vmem:[#allocation52_spill] sm:$0xff] }
 0x2c9   : > { %v3035_v25 = vsel %vm2721_vm3, %v2642_v62, -inf  ;;  %9920 = vmatprep.mubr.msk.bf16.mxu1 %vm4109_vm8, %v4814_v48  ;;  %3602 = vst.msk [vmem:[#allocation2 + $0xa0] sm:$0xf] %vm3561_vm4, %v9254_v28  ;;  %v3282_v3 = vmax.f32 %v3218_v43, 0.0  ;;  %v3223_v23 = vadd.f32 %v12623_v58, %v3050_v47  ;;  %v3056_v14 = vsel %vm2721_vm3, %v9803_v30, -inf  ;;  %v14740_v54 = vld [vmem:[#allocation44_spill] sm:$0xff] }
 0x2ca   : > { %v3041_v2 = vmax.f32 %v14727_v42, %v12702_v22  ;;  %v3076_v31 = vmax.f32 %v14730_v63, %v3075_v16  ;;  %v12782_v36 = vmax.f32 %v14733_v49, %v3061_v5  ;;  %v9257_v8 = vpack.c.bf16 %v3284_v9, %v3284_v9  ;;  %v2645_v24 = vpop.f32.mrf.mxu0  ;;  %v14741_v42 = vld [vmem:[#allocation45_spill] sm:$0xff]  ;;  %v12832_v56 = vpop.permute.xlu0 %4707 }
 0x2cb   : > { %v3036_v22 = vmax.f32 %v12731_v46, %v3035_v25  ;;  %v3082_v16 = vsel %vm2721_vm3, %v14734_v20, -inf  ;;  %v3068_v5 = vsel %vm2721_vm3, %v14735_v38, -inf  ;;  %v14737_v21 = vrot.slane %v14736_v51, 1  ;;  %v14744_v57 = vld [vmem:[#allocation53_spill] sm:$0xff]  ;;  %v14748_v20 = vld [vmem:[#allocation48_spill] sm:$0xff] }
 0x2cc   : > { %3605 = vst.msk [vmem:[#allocation2 + $0xac] sm:$0xf] %vm3561_vm4, %v9257_v8  ;;  %v9255_v46 = vpack.c.bf16 %v3282_v3, %v3282_v3  ;;  %v3287_v4 = vmax.f32 %v3223_v23, 0.0  ;;  %v3057_v45 = vmax.f32 %v12736_v37, %v3056_v14  ;;  %v3103_v55 = vsel %vm2721_vm3, %v14738_v35, -inf  ;;  %v9806_v39 = vpop.f32.mrf.mxu0  ;;  %v14745_v3 = vld [vmem:[#allocation46_spill] sm:$0xff]  ;;  %v14746_v23 = vld [vmem:[#allocation47_spill] sm:$0xff] }
 0x2cd   : > { %v4748_v34 = vsel %vm3879_vm5, %v14737_v21, %v4747_v19  ;;  %v3221_v41 = vadd.f32 %v12623_v58, %v3036_v22  ;;  %v4788_v13 = vsel %vm2721_vm3, %v10476_v17, %v12680_v11  ;;  %v4790_v32 = vsel %vm2721_vm3, %v10477_v40, %v12684_v26  ;;  %v14751_v14 = vld [vmem:[#allocation54_spill] sm:$0xff]  ;;  %v10479_v17 = vld [vmem:[#allocation2 + $0x50] sm:$0xff]  }
 0x2ce   : > { %4775 = vrot.lane.b32.xlu0 %v4748_v34, %s10551_s27  ;;  %v3042_v29 = vsel %vm2721_vm3, %v2645_v24, -inf  ;;  %3603 = vst.msk [vmem:[#allocation2 + $0xa4] sm:$0xf] %vm3561_vm4, %v9255_v46  ;;  %v9260_v0 = vpack.c.bf16 %v3287_v4, %v3287_v4  ;;  %v3224_v15 = vadd.f32 %v12623_v58, %v3057_v45  ;;  %v3089_v19 = vsel %vm2721_vm3, %v14739_v53, -inf  ;;  %v2658_v59 = vpop.f32.mrf.mxu0  ;;  %v14752_v45 = vld [vmem:[#allocation55_spill] sm:$0xff] }
 0x2cf   : > { %v3285_v37 = vmax.f32 %v3221_v41, 0.0  ;;  %v3043_v48 = vmax.f32 %v3041_v2, %v3042_v29  ;;  %v4816_v11 = vsel %vm3965_vm7, %v4788_v13, %v12716_v6  ;;  %v4818_v28 = vsel %vm3965_vm7, %v4790_v32, %v12719_v1  ;;  %v10478_v35 = vld [vmem:[#allocation2 + $0x48] sm:$0xff]  }
 0x2d0   : > { %v3077_v26 = vsel %vm2721_vm3, %v9806_v39, -inf  ;;  %3608 = vst.msk [vmem:[#allocation2 + $0xb8] sm:$0xf] %vm3561_vm4, %v9260_v0  ;;  %v3288_v43 = vmax.f32 %v3224_v15, 0.0  ;;  %9921 = vmatmul.mubr.msk.bf16.gmra.mxu1 %vm4109_vm8, %v4816_v11  ;;  %v14742_v2 = vmax.f32 %v14740_v54, %v14741_v42  ;;  %v14743_v6 = vmax.f32 %v12546_v12, %v12534_v27  ;;  %v9807_v12 = vpop.f32.mrf.mxu0 }
 0x2d1   : > { %v9258_v9 = vpack.c.bf16 %v3285_v37, %v3285_v37  ;;  %v3222_v47 = vadd.f32 %v12623_v58, %v3043_v48  ;;  %v3078_v62 = vmax.f32 %v3076_v31, %v3077_v26  ;;  %v3110_v63 = vsel %vm2721_vm3, %v14744_v57, -inf  ;;  %9924 = vmatprep.mubr.msk.bf16.mxu1 %vm4109_vm8, %v4818_v28  ;;  %v12836_v31 = vpop.permute.xlu1 %4709  ;;  %v14753_v48 = vld [vmem:[#allocation56_spill] sm:$0xff] }
 0x2d2   : > { %v3083_v52 = vmax.f32 %v14742_v2, %v3082_v16  ;;  %v3069_v1 = vmax.f32 %v14743_v6, %v3068_v5  ;;  %v3063_v18 = vsel %vm2721_vm3, %v2658_v59, -inf  ;;  %v9261_v49 = vpack.c.bf16 %v3288_v43, %v3288_v43  ;;  %v14749_v16 = vld [vmem:[#allocation49_spill] sm:$0xff]  ;;  %v2661_v41 = vpop.f32.mrf.mxu0  ;;  %v14755_v59 = vld [vmem:[#allocation22_spill] sm:$0xff] }
 0x2d3   : > { %3606 = vst.msk [vmem:[#allocation2 + $0xb0] sm:$0xf] %vm3561_vm4, %v9258_v9  ;;  %v3286_v25 = vmax.f32 %v3222_v47, 0.0  ;;  %v3227_v8 = vadd.f32 %v12623_v58, %v3078_v62  ;;  %v3064_v27 = vmax.f32 %v12782_v36, %v3063_v18  ;;  %v14747_v22 = vmax.f32 %v14745_v3, %v14746_v23  ;;  %v14754_v62 = vld [vmem:[#allocation21_spill] sm:$0xff] }
 0x2d4   : > { %v14750_v38 = vmax.f32 %v14748_v20, %v14749_v16  ;;  %v3096_v51 = vsel %vm2721_vm3, %v14751_v14, -inf  ;;  %v3084_v21 = vsel %vm2721_vm3, %v9807_v12, -inf  ;;  %3609 = vst.msk [vmem:[#allocation2 + $0xbc] sm:$0xf] %vm3561_vm4, %v9261_v49  ;;  %v3131_v24 = vsel %vm2721_vm3, %v14752_v45, -inf  ;;  %v9810_v15 = vpop.f32.mrf.mxu0  ;;  %v14758_v2 = vld [vmem:[#allocation57_spill] sm:$0xff] }
 0x2d5   : > { %v3104_v30 = vmax.f32 %v14747_v22, %v3103_v55  ;;  %v9259_v34 = vpack.c.bf16 %v3286_v25, %v3286_v25  ;;  %v3291_v46 = vmax.f32 %v3227_v8, 0.0  ;;  %v3225_v36 = vadd.f32 %v12623_v58, %v3064_v27  ;;  %v4770_v11 = vpop.permute.xlu1 %4769  ;;  %v14760_v8 = vld [vmem:[#allocation24_spill] sm:$0xff]  ;;  %v14763_v12 = vld [vmem:[#allocation26_spill] sm:$0xff] }
 0x2d6   : > { %v3090_v5 = vmax.f32 %v14750_v38, %v3089_v19  ;;  %v3085_v4 = vmax.f32 %v3083_v52, %v3084_v21  ;;  %v4792_v55 = vsel %vm2721_vm3, %v10478_v35, %v12755_v10  ;;  %v4794_v13 = vsel %vm2721_vm3, %v10479_v17, %v12758_v50  ;;  %v4768_v50 = vpop.permute.xlu0 %4767  ;;  %v2674_v47 = vpop.f32.mrf.mxu0  ;;  %v14765_v22 = vld [vmem:[#allocation58_spill] sm:$0xff]  ;;  %v14766_v21 = vld [vmem:[#allocation59_spill] sm:$0xff] }
 0x2d7   : > { %v3070_v40 = vsel %vm2721_vm3, %v2661_v41, -inf  ;;  %3607 = vst.msk [vmem:[#allocation2 + $0xb4] sm:$0xf] %vm3561_vm4, %v9259_v34  ;;  %v9264_v32 = vpack.c.bf16 %v3291_v46, %v3291_v46  ;;  %v3289_v29 = vmax.f32 %v3225_v36, 0.0  ;;  %v3117_v39 = vsel %vm2721_vm3, %v14753_v48, -inf  ;;  %v10480_v46 = vld [vmem:[#allocation2 + $0x58] sm:$0xff]  }
 0x2d8   : > { %v3228_v0 = vadd.f32 %v12623_v58, %v3085_v4  ;;  %v3071_v37 = vmax.f32 %v3069_v1, %v3070_v40  ;;  %v4820_v10 = vsel %vm3965_vm7, %v4792_v55, %v12793_v7  ;;  %v4822_v53 = vsel %vm3965_vm7, %v4794_v13, %v12799_v60  ;;  %v9811_v25 = vpop.f32.mrf.mxu0  ;;  %v10481_v4 = vld [vmem:[#allocation2 + $0x60] sm:$0xff]  }
 0x2d9   : > { %v3105_v19 = vsel %vm2721_vm3, %v9810_v15, -inf  ;;  %3612 = vst.msk [vmem:[#allocation2 + $0xc8] sm:$0xf] %vm3561_vm4, %v9264_v32  ;;  %v9262_v28 = vpack.c.bf16 %v3289_v29, %v3289_v29  ;;  %9925 = vmatmul.mubr.msk.bf16.gmra.mxu1 %vm4109_vm8, %v4820_v10  ;;  %v14756_v7 = vmax.f32 %v14754_v62, %v14755_v59  ;;  %v14757_v60 = vmax.f32 %v12550_v44, %v12554_v61  ;;  %v14762_v61 = vld [vmem:[#allocation25_spill] sm:$0xff]  ;;  %v4714_v35 = vpop.permute.xlu1 %4713  ;;  %v14767_v29 = vld [vmem:[#allocation60_spill] sm:$0xff] }
 0x2da   : > { %v3292_v26 = vmax.f32 %v3228_v0, 0.0  ;;  %v3226_v9 = vadd.f32 %v12623_v58, %v3071_v37  ;;  %v3106_v43 = vmax.f32 %v3104_v30, %v3105_v19  ;;  %v3138_v52 = vsel %vm2721_vm3, %v14758_v2, -inf  ;;  %9928 = vmatprep.mubr.msk.bf16.mxu1 %vm4109_vm8, %v4822_v53  ;;  %v4712_v45 = vpop.permute.xlu0 %4711  ;;  %v14768_v19 = vld [vmem:[#allocation63_spill] sm:$0xff]  ;;  %v14773_v2 = vld [vmem:[#allocation30_spill] sm:$0xff] }
 0x2db   : > { %v3111_v54 = vmax.f32 %v14756_v7, %v3110_v63  ;;  %v3097_v42 = vmax.f32 %v14757_v60, %v3096_v51  ;;  %v3091_v6 = vsel %vm2721_vm3, %v2674_v47, -inf  ;;  %3610 = vst.msk [vmem:[#allocation2 + $0xc0] sm:$0xf] %vm3561_vm4, %v9262_v28  ;;  %v14759_v63 = vld [vmem:[#allocation23_spill] sm:$0xff]  ;;  %v14764_v3 = vmax.f32 %v14762_v61, %v14763_v12  ;;  %v2677_v51 = vpop.f32.mrf.mxu0 }
 0x2dc   : > { %v9265_v1 = vpack.c.bf16 %v3292_v26, %v3292_v26  ;;  %v3290_v57 = vmax.f32 %v3226_v9, 0.0  ;;  %v3231_v18 = vadd.f32 %v12623_v58, %v3106_v43  ;;  %v3092_v49 = vmax.f32 %v3090_v5, %v3091_v6  ;;  %v14769_v26 = vld [vmem:[#allocation27_spill] sm:$0xff]  ;;  %v14770_v9 = vld [vmem:[#allocation28_spill] sm:$0xff] }
 0x2dd   : > { %v14761_v27 = vmax.f32 %v14759_v63, %v14760_v8  ;;  %v3118_v23 = vmax.f32 %v14764_v3, %v3117_v39  ;;  %v3124_v30 = vsel %vm2721_vm3, %v14765_v22, -inf  ;;  %v3112_v20 = vsel %vm2721_vm3, %v9811_v25, -inf  ;;  %v9814_v32 = vpop.f32.mrf.mxu0  ;;  %v4774_v63 = vpop.permute.xlu1 %4773  ;;  %v14778_v3 = vld [vmem:[#allocation61_spill] sm:$0xff]  ;;  %v10482_v22 = vld [vmem:[#allocation2 + $0x68] sm:$0xff]  }
 0x2de   : > { %3613 = vst.msk [vmem:[#allocation2 + $0xcc] sm:$0xf] %vm3561_vm4, %v9265_v1  ;;  %v9263_v16 = vpack.c.bf16 %v3290_v57, %v3290_v57  ;;  %v3295_v38 = vmax.f32 %v3231_v18, 0.0  ;;  %v3229_v5 = vadd.f32 %v12623_v58, %v3092_v49  ;;  %v3113_v14 = vmax.f32 %v3111_v54, %v3112_v20  ;;  %v14775_v1 = vld [vmem:[#allocation31_spill] sm:$0xff]  ;;  %v14776_v57 = vld [vmem:[#allocation32_spill] sm:$0xff]  ;;  %v4772_v49 = vpop.permute.xlu0 %4771 }
 0x2df   : > { %v3132_v44 = vmax.f32 %v14761_v27, %v3131_v24  ;;  %v3159_v34 = vsel %vm2721_vm3, %v14766_v21, -inf  ;;  %v4796_v36 = vsel %vm2721_vm3, %v10480_v46, %v12832_v56  ;;  %v4798_v41 = vsel %vm2721_vm3, %v10481_v4, %v12836_v31  ;;  %v2690_v53 = vpop.f32.mrf.mxu0  ;;  %v10483_v20 = vld [vmem:[#allocation2 + $0x70] sm:$0xff]   ;;  %v14779_v46 = vld [vmem:[#allocation62_spill] sm:$0xff] }
 0x2e0   : > { %v3098_v24 = vsel %vm2721_vm3, %v2677_v51, -inf  ;;  %3611 = vst.msk [vmem:[#allocation2 + $0xc4] sm:$0xf] %vm3561_vm4, %v9263_v16  ;;  %v9268_v55 = vpack.c.bf16 %v3295_v38, %v3295_v38  ;;  %v3293_v17 = vmax.f32 %v3229_v5, 0.0  ;;  %v3232_v13 = vadd.f32 %v12623_v58, %v3113_v14 }
 0x2e1   : > { %v3099_v40 = vmax.f32 %v3097_v42, %v3098_v24  ;;  %v3145_v0 = vsel %vm2721_vm3, %v14767_v29, -inf  ;;  %v4824_v56 = vsel %vm3965_vm7, %v4796_v36, %v4768_v50  ;;  %v4826_v37 = vsel %vm3965_vm7, %v4798_v41, %v4770_v11  ;;  %v9815_v54 = vpop.f32.mrf.mxu0  ;;  %v14772_v42 = vld [vmem:[#allocation29_spill] sm:$0xff] }
 0x2e2   : > { %v3133_v31 = vsel %vm2721_vm3, %v9814_v32, -inf  ;;  %3616 = vst.msk [vmem:[#allocation2 + $0xd8] sm:$0xf] %vm3561_vm4, %v9268_v55  ;;  %v9266_v15 = vpack.c.bf16 %v3293_v17, %v3293_v17  ;;  %v3296_v48 = vmax.f32 %v3232_v13, 0.0  ;;  %9929 = vmatmul.mubr.msk.bf16.gmra.mxu1 %vm4109_vm8, %v4824_v56  ;;  %v3123_v28 = vmax.f32 %v14768_v19, %v12591_v33  ;;  %v14781_v32 = vld [vmem:[#allocation51_spill] sm:$0xff] }
 0x2e3   : > { %v3230_v39 = vadd.f32 %v12623_v58, %v3099_v40  ;;  %v3134_v10 = vmax.f32 %v3132_v44, %v3133_v31  ;;  %v14771_v50 = vmax.f32 %v14769_v26, %v14770_v9  ;;  %v3119_v11 = vsel %vm2721_vm3, %v2690_v53, -inf  ;;  %9932 = vmatprep.mubr.msk.bf16.mxu1 %vm4109_vm8, %v4826_v37  ;;  %v2693_v12 = vpop.f32.mrf.mxu0  ;;  %v14780_v40 = vld [vmem:[#allocation50_spill] sm:$0xff] }
 0x2e4   : > { %3614 = vst.msk [vmem:[#allocation2 + $0xd0] sm:$0xf] %vm3561_vm4, %v9266_v15  ;;  %v9269_v47 = vpack.c.bf16 %v3296_v48, %v3296_v48  ;;  %v3120_v7 = vmax.f32 %v3118_v23, %v3119_v11  ;;  %v3125_v60 = vmax.f32 %v3123_v28, %v3124_v30  ;;  %v14774_v33 = vmax.f32 %v14772_v42, %v14773_v2  ;;  %v14784_v53 = vld [vmem:[#allocation34_spill] sm:$0xff] }
 0x2e5   : > { %v3139_v43 = vmax.f32 %v14771_v50, %v3138_v52  ;;  %v3294_v62 = vmax.f32 %v3230_v39, 0.0  ;;  %v3235_v59 = vadd.f32 %v12623_v58, %v3134_v10  ;;  %v14777_v52 = vmax.f32 %v14775_v1, %v14776_v57  ;;  %v14783_v10 = vld [vmem:[#allocation33_spill] sm:$0xff] }
 0x2e6   : > { %v3160_v6 = vmax.f32 %v14774_v33, %v3159_v34  ;;  %v3140_v25 = vsel %vm2721_vm3, %v9815_v54, -inf  ;;  %3617 = vst.msk [vmem:[#allocation2 + $0xdc] sm:$0xf] %vm3561_vm4, %v9269_v47  ;;  %v3233_v44 = vadd.f32 %v12623_v58, %v3120_v7  ;;  %v3166_v23 = vsel %vm2721_vm3, %v14778_v3, -inf  ;;  %v9818_v34 = vpop.f32.mrf.mxu0 }
 0x2e7   : > { %v3146_v18 = vmax.f32 %v14777_v52, %v3145_v0  ;;  %v9267_v8 = vpack.c.bf16 %v3294_v62, %v3294_v62  ;;  %v3299_v27 = vmax.f32 %v3235_v59, 0.0  ;;  %v3141_v61 = vmax.f32 %v3139_v43, %v3140_v25 }
 0x2e8   : > { %v4800_v30 = vsel %vm2721_vm3, %v10482_v22, %v4712_v45  ;;  %v4802_v16 = vsel %vm2721_vm3, %v10483_v20, %v4714_v35  ;;  %v3126_v38 = vsel %vm2721_vm3, %v2693_v12, -inf  ;;  %v3297_v14 = vmax.f32 %v3233_v44, 0.0  ;;  %v2706_v13 = vpop.f32.mrf.mxu0 }
 0x2e9   : > { %3615 = vst.msk [vmem:[#allocation2 + $0xd4] sm:$0xf] %vm3561_vm4, %v9267_v8  ;;  %v9272_v5 = vpack.c.bf16 %v3299_v27, %v3299_v27  ;;  %v3236_v51 = vadd.f32 %v12623_v58, %v3141_v61  ;;  %v3127_v21 = vmax.f32 %v3125_v60, %v3126_v38  ;;  %v3152_v36 = vsel %vm2721_vm3, %v14779_v46, -inf }
 0x2ea   : > { %v4828_v4 = vsel %vm3965_vm7, %v4800_v30, %v4772_v49  ;;  %v4830_v41 = vsel %vm3965_vm7, %v4802_v16, %v4774_v63  ;;  %v3161_v45 = vsel %vm2721_vm3, %v9818_v34, -inf  ;;  %v9270_v24 = vpack.c.bf16 %v3297_v14, %v3297_v14  ;;  %v9819_v39 = vpop.f32.mrf.mxu0 }
 0x2eb   : > { %3620 = vst.msk [vmem:[#allocation2 + $0xe8] sm:$0xf] %vm3561_vm4, %v9272_v5  ;;  %v3300_v35 = vmax.f32 %v3236_v51, 0.0  ;;  %v3234_v55 = vadd.f32 %v12623_v58, %v3127_v21  ;;  %v3162_v17 = vmax.f32 %v3160_v6, %v3161_v45  ;;  %9933 = vmatmul.mubr.msk.bf16.gmra.mxu1 %vm4109_vm8, %v4828_v4  ;;  %v14782_v29 = vmax.f32 %v14780_v40, %v14781_v32 }
 0x2ec   : > { %v3147_v56 = vsel %vm2721_vm3, %v2706_v13, -inf  ;;  %9936 = vmatprep.mubr.msk.bf16.mxu1 %vm4109_vm8, %v4830_v41  ;;  %3618 = vst.msk [vmem:[#allocation2 + $0xe0] sm:$0xf] %vm3561_vm4, %v9270_v24  ;;  %v14785_v19 = vmax.f32 %v14783_v10, %v14784_v53  ;;  %v3168_v26 = vsel %vm2721_vm3, %v9819_v39, -inf  ;;  %v2709_v47 = vpop.f32.mrf.mxu0 }
 0x2ed   : > { %v3167_v0 = vmax.f32 %v14782_v29, %v3166_v23  ;;  %v9273_v37 = vpack.c.bf16 %v3300_v35, %v3300_v35  ;;  %v3298_v31 = vmax.f32 %v3234_v55, 0.0  ;;  %v3239_v15 = vadd.f32 %v12623_v58, %v3162_v17 }
 0x2ee   : > { %v3148_v48 = vmax.f32 %v3146_v18, %v3147_v56  ;;  %v3153_v28 = vmax.f32 %v14785_v19, %v3152_v36  ;;  %v3154_v62 = vsel %vm2721_vm3, %v2709_v47, -inf  ;;  %v10484_v36 = vld [vmem:[#allocation2 + $0x78] sm:$0xff]  }
 0x2ef   : > { %3621 = vst.msk [vmem:[#allocation2 + $0xec] sm:$0xf] %vm3561_vm4, %v9273_v37  ;;  %v9271_v9 = vpack.c.bf16 %v3298_v31, %v3298_v31  ;;  %v3303_v50 = vmax.f32 %v3239_v15, 0.0  ;;  %v3169_v11 = vmax.f32 %v3167_v0, %v3168_v26 }
 0x2f0   : > { %v3237_v43 = vadd.f32 %v12623_v58, %v3148_v48  ;;  %v3155_v60 = vmax.f32 %v3153_v28, %v3154_v62 }
 0x2f1   : > { %3619 = vst.msk [vmem:[#allocation2 + $0xe4] sm:$0xf] %vm3561_vm4, %v9271_v9  ;;  %v9276_v59 = vpack.c.bf16 %v3303_v50, %v3303_v50  ;;  %v3240_v54 = vadd.f32 %v12623_v58, %v3169_v11 }
 0x2f2   : > { %v3301_v7 = vmax.f32 %v3237_v43, 0.0  ;;  %v3238_v33 = vadd.f32 %v12623_v58, %v3155_v60 }
 0x2f3   : > { %3624 = vst.msk [vmem:[#allocation2 + $0xf8] sm:$0xf] %vm3561_vm4, %v9276_v59  ;;  %v3304_v2 = vmax.f32 %v3240_v54, 0.0 }
 0x2f4   : > { %v9274_v42 = vpack.c.bf16 %v3301_v7, %v3301_v7  ;;  %v3302_v1 = vmax.f32 %v3238_v33, 0.0 }
 0x2f5   : > { %v9277_v6 = vpack.c.bf16 %v3304_v2, %v3304_v2 }
 0x2f6   : > { %3622 = vst.msk [vmem:[#allocation2 + $0xf0] sm:$0xf] %vm3561_vm4, %v9274_v42  ;;  %v9275_v57 = vpack.c.bf16 %v3302_v1, %v3302_v1 }
 0x2f7   : > { %3625 = vst.msk [vmem:[#allocation2 + $0xfc] sm:$0xf] %vm3561_vm4, %v9277_v6 }
 0x2f8   : > { %3623 = vst.msk [vmem:[#allocation2 + $0xf4] sm:$0xf] %vm3561_vm4, %v9275_v57 }
 0x30c   : > { %v12965_v52 = vpop.f32.mrf.mxu1 }
 0x30e   : > { %v12967_v18 = vpop.f32.mrf.mxu1 }
 0x310   : > { %v12969_v49 = vpop.f32.mrf.mxu1 }
 0x312   : > { %v12971_v25 = vpop.f32.mrf.mxu1 }
 0x315   : > { %v12973_v63 = vpop.f32.mrf.mxu1 }
 0x317   : > { %v12975_v58 = vpop.f32.mrf.mxu1 }
 0x319   : > { %v12977_v8 = vpop.f32.mrf.mxu1 }
 0x31b   : > { %v12979_v27 = vpop.f32.mrf.mxu1 }
 0x31e   : > { %v12981_v44 = vpop.f32.mrf.mxu1 }
 0x320   : > { %v12983_v61 = vpop.f32.mrf.mxu1 }
 0x322   : > { %v12985_v12 = vpop.f32.mrf.mxu1 }
 0x324   : > { %v12987_v3 = vpop.f32.mrf.mxu1 }
 0x328   : > { %v12989_v23 = vpop.f32.mrf.mxu1 }
 0x32a   : > { %v12991_v22 = vpop.f32.mrf.mxu1 }
 0x32c   : > { %v12993_v30 = vpop.f32.mrf.mxu1 }
 0x32e   : > { %v12995_v20 = vpop.f32.mrf.mxu1 }
 0x330   : > { %v12997_v16 = vpop.f32.mrf.mxu1 }
 0x332   : > { %v12999_v38 = vpop.f32.mrf.mxu1 }
 0x334   : > { %v13001_v5 = vpop.f32.mrf.mxu1 }
 0x336   : > { %v13003_v14 = vpop.f32.mrf.mxu1 }
 0x338   : > { %v13005_v51 = vpop.f32.mrf.mxu1 }
 0x33a   : > { %v13007_v21 = vpop.f32.mrf.mxu1  ;;  %v4716_v34 = vpop.permute.xlu0 %4715 }
 0x33b   : > { %v4804_v4 = vsel %vm2721_vm3, %v10484_v36, %v4716_v34 }
 0x33c   : > { %v13009_v46 = vpop.f32.mrf.mxu1 }
 0x33e   : > { %v13012_v41 = vpop.f32.mrf.mxu1 }
 0x340   : > { %v4776_v45 = vpop.permute.xlu0 %4775  ;;  %v9858_v35 = vpop.f32.mrf.mxu1 }
 0x341   : > { %v4832_v24 = vsel %vm3965_vm7, %v4804_v4, %v4776_v45 }
 0x342   : > { %9937 = vmatmul.mubr.msk.bf16.gmra.mxu1 %vm4109_vm8, %v4832_v24  ;;  %v4268_v55 = vpop.f32.mrf.mxu1 }
 0x344   : > { %v9859_v17 = vpop.f32.mrf.mxu1 }
 0x346   : > { %v13016_v13 = vpop.f32.mrf.mxu1 }
 0x347   : > { %14786 = vst [vmem:[#allocation40_spill] sm:$0xff] %v13016_v13 }
 0x348   : > { %v9874_v40 = vpop.f32.mrf.mxu1 }
 0x349   : > { %v4368_v36 = vadd.f32 %v9874_v40, %v12965_v52 }
 0x34a   : > { %v4359_v32 = vpop.f32.mrf.mxu1 }
 0x34b   : > { %v4360_v4 = vadd.f32 %v4359_v32, %v12967_v18 }
 0x34c   : > { %v9875_v29 = vpop.f32.mrf.mxu1 }
 0x34e   : > { %v4362_v0 = vpop.f32.mrf.mxu1 }
 0x350   : > { %v9878_v56 = vpop.f32.mrf.mxu1 }
 0x352   : > { %v4375_v37 = vpop.f32.mrf.mxu1 }
 0x353   : > { %v4376_v52 = vadd.f32 %v4375_v37, %v12975_v58 }
 0x354   : > { %v9879_v31 = vpop.f32.mrf.mxu1 }
 0x356   : > { %v4378_v15 = vpop.f32.mrf.mxu1 }
 0x358   : > { %v9882_v48 = vpop.f32.mrf.mxu1 }
 0x359   : > { %v4400_v58 = vadd.f32 %v9882_v48, %v12981_v44 }
 0x35a   : > { %v4391_v39 = vpop.f32.mrf.mxu1 }
 0x35c   : > { %v13018_v10 = vpop.f32.mrf.mxu1 }
 0x35d   : > { %v4403_v44 = vadd.f32 %v13018_v10, %v12985_v12 }
 0x35e   : > { %v13020_v53 = vpop.f32.mrf.mxu1 }
 0x360   : > { %v13022_v19 = vpop.f32.mrf.mxu1 }
 0x362   : > { %v13024_v28 = vpop.f32.mrf.mxu1 }
 0x363   : > { %v4408_v12 = vadd.f32 %v13024_v28, %v12991_v22 }
 0x364   : > { %v13026_v26 = vpop.f32.mrf.mxu1 }
 0x365   : > { %v4419_v22 = vadd.f32 %v13026_v26, %v12993_v30 }
 0x366   : > { %v13028_v9 = vpop.f32.mrf.mxu1 }
 0x368   : > { %v13030_v50 = vpop.f32.mrf.mxu1 }
 0x36a   : > { %v13032_v43 = vpop.f32.mrf.mxu1 }
 0x36b   : > { %v4424_v26 = vadd.f32 %v13032_v43, %v12999_v38 }
 0x36c   : > { %v13034_v11 = vpop.f32.mrf.mxu1 }
 0x36d   : > { %v4435_v43 = vadd.f32 %v13034_v11, %v13001_v5 }
 0x36e   : > { %v13036_v47 = vpop.f32.mrf.mxu1 }
 0x370   : > { %v13038_v62 = vpop.f32.mrf.mxu1 }
 0x372   : > { %v13040_v59 = vpop.f32.mrf.mxu1 }
 0x373   : > { %v4440_v11 = vadd.f32 %v13040_v59, %v13007_v21 }
 0x374   : > { %v13042_v7 = vpop.f32.mrf.mxu1 }
 0x375   : > { %v4451_v59 = vadd.f32 %v13042_v7, %v13009_v46 }
 0x376   : > { %v13044_v54 = vpop.f32.mrf.mxu1 }
 0x377   : > { %14787 = vst [vmem:[#allocation39_spill] sm:$0xff] %v13044_v54 }
 0x378   : > { %v9898_v60 = vpop.f32.mrf.mxu1 }
 0x379   : > { %v13046_v42 = vadd.f32 %v9898_v60, %v9858_v35  ;;  %v4371_v35 = vadd.f32 %v9875_v29, %v12969_v49  ;;  %v4363_v60 = vadd.f32 %v4362_v0, %v12971_v25  ;;  %v4387_v25 = vadd.f32 %v9879_v31, %v12977_v8  ;;  %v13070_v8 = vld [vmem:[%s14444_s4] ss:$0 sm:$0xff] }
 0x37a   : > { %v4455_v2 = vpop.f32.mrf.mxu1 }
 0x37b   : > { %v13048_v33 = vadd.f32 %v4455_v2, %v4268_v55 }
 0x37c   : > { %v9899_v6 = vpop.f32.mrf.mxu1 }
 0x37d   : > { %v13050_v1 = vadd.f32 %v9899_v6, %v9859_v17 }
 0x37e   : > { %v13052_v57 = vpop.f32.mrf.mxu1 }
 0x37f   : > { %14788 = vst [vmem:[#allocation42_spill] sm:$0xff] %v13050_v1  ;;  %14789 = vst [vmem:[#allocation43_spill] sm:$0xff] %v13052_v57  ;;  %v4384_v57 = vadd.f32 %v9878_v56, %v12973_v63  ;;  %v4392_v56 = vadd.f32 %v4391_v39, %v12983_v61  ;;  %v4395_v61 = vadd.f32 %v13020_v53, %v12987_v3 }
 0x380   : > { %v9914_v34 = vpop.f32.mrf.mxu1 }
 0x381   : > { %v5057_v24 = vadd.f32 %v9914_v34, %v4368_v36 }
 0x382   : > { %v4944_v45 = vpop.f32.mrf.mxu1 }
 0x383   : > { %v5055_v13 = vadd.f32 %v4944_v45, %v4360_v4 }
 0x384   : > { %v9915_v54 = vpop.f32.mrf.mxu1 }
 0x385   : > { %v5083_v55 = vmax.f32 %v5055_v13, %v5057_v24  ;;  %v5058_v17 = vadd.f32 %v9915_v54, %v4371_v35  ;;  %v4379_v13 = vadd.f32 %v4378_v15, %v12979_v27 }
 0x386   : > { %v4947_v2 = vpop.f32.mrf.mxu1 }
 0x387   : > { %5097 = vst.msk [vmem:[#allocation3] sm:$0xff] %vm3965_vm7, %v5083_v55  ;;  %v5056_v6 = vadd.f32 %v4947_v2, %v4363_v60 }
 0x388   : > { %v9918_v1 = vpop.f32.mrf.mxu1 }
 0x389   : > { %v5084_v18 = vmax.f32 %v5056_v6, %v5058_v17  ;;  %v5061_v32 = vadd.f32 %v9918_v1, %v4384_v57  ;;  %v4416_v17 = vadd.f32 %v13022_v19, %v12989_v23  ;;  %v4411_v19 = vadd.f32 %v13028_v9, %v12995_v20 }
 0x38a   : > { %v4960_v40 = vpop.f32.mrf.mxu1  ;;  %v4432_v20 = vadd.f32 %v13030_v50, %v12997_v16 }
 0x38b   : > { %5098 = vst.msk [vmem:[#allocation3 + $0x8] sm:$0xff] %vm3965_vm7, %v5084_v18  ;;  %v5059_v34 = vadd.f32 %v4960_v40, %v4376_v52 }
 0x38c   : > { %v9919_v49 = vpop.f32.mrf.mxu1 }
 0x38d   : > { %v5085_v29 = vmax.f32 %v5059_v34, %v5061_v32  ;;  %v5062_v54 = vadd.f32 %v9919_v49, %v4387_v25  ;;  %v10315_v34 = vld [vmem:[%s14445_s5 + $0x98] sm:$0xff]   ;;  %v10316_v25 = vld [vmem:[%s14445_s5 + $0x90] sm:$0xff]  }
 0x38e   : > { %v4963_v0 = vpop.f32.mrf.mxu1  ;;  %5464 = vmatpush1.bf16.msra.mxu1 %v10315_v34 }
 0x38f   : > { %5099 = vst.msk [vmem:[#allocation3 + $0x10] sm:$0xff] %vm3965_vm7, %v5085_v29  ;;  %v5060_v36 = vadd.f32 %v4963_v0, %v4379_v13  ;;  %v14790_v29 = vmov 0  }
 0x390   : > { %v9922_v63 = vpop.f32.mrf.mxu1  ;;  %5465 = vmatprep.subr.bf16.mxu1 %v14790_v29  ;;  %5204 = vst.msk [vmem:[#allocation4 + $0x1c] sm:$0x1] %vm5203_vm11, %v14790_v29  ;;  %7484 = vst.msk [vmem:[#allocation4 + $0x3c] sm:$0x1] %vm5203_vm11, %v14790_v29 }
 0x391   : > { %v5086_v37 = vmax.f32 %v5060_v36, %v5062_v54  ;;  %v5065_v15 = vadd.f32 %v9922_v63, %v4400_v58  ;;  %v10317_v58 = vld [vmem:[%s14445_s5 + $0x88] sm:$0xff]  }
 0x392   : > { %v5111_v4 = vld [vmem:[#allocation3] ss:$2 sm:$0xff]  ;;  %v5125_v1 = vld [vmem:[#allocation3 + $0x1] ss:$2 sm:$0xff]  ;;  %v4976_v27 = vpop.f32.mrf.mxu1  ;;  %5466 = vmatpush1.bf16.msra.mxu1 %v10316_v25 }
 0x393   : > { %v5138_v31 = vmax.f32 %v5111_v4, %v5125_v1  ;;  %5100 = vst.msk [vmem:[#allocation3 + $0x18] sm:$0xff] %vm3965_vm7, %v5086_v37  ;;  %v5063_v57 = vadd.f32 %v4976_v27, %v4392_v56  ;;  %5467 = vmatprep.subr.bf16.mxu1 %v14790_v29  ;;  %v4427_v27 = vadd.f32 %v13036_v47, %v13003_v14 }
 0x394   : > { %v9923_v45 = vpop.f32.mrf.mxu1  ;;  %v4448_v14 = vadd.f32 %v13038_v62, %v13005_v51 }
 0x395   : > { %v5152_v48 = vadd.f32 %v13070_v8, %v5138_v31  ;;  %v5087_v39 = vmax.f32 %v5063_v57, %v5065_v15  ;;  %v5066_v60 = vadd.f32 %v9923_v45, %v4403_v44  ;;  %v10318_v57 = vld [vmem:[%s14445_s5 + $0x80] sm:$0xff]  }
 0x396   : > { %v4979_v24 = vpop.f32.mrf.mxu1  ;;  %5468 = vmatpush1.bf16.msra.mxu1 %v10317_v58  ;;  %v10325_v58 = vld [vmem:[%s14445_s5 + $0xb0] sm:$0xff]  }
 0x397   : > { %v5159_v35 = vmax.f32 %v5152_v48, 0.0  ;;  %5101 = vst.msk [vmem:[#allocation3 + $0x20] sm:$0xff] %vm3965_vm7, %v5087_v39  ;;  %v5064_v55 = vadd.f32 %v4979_v24, %v4395_v61  ;;  %5469 = vmatprep.subr.bf16.mxu1 %v14790_v29  ;;  %v10319_v24 = vld [vmem:[%s14445_s5 + $0x78] sm:$0xff]  }
 0x399   : > { %v9926_v2 = vpop.f32.mrf.mxu1  ;;  %v9278_v10 = vpack.c.bf16 %v5159_v35, %v5159_v35  ;;  %v5088_v6 = vmax.f32 %v5064_v55, %v5066_v60 }
 0x39a   : > { %v5113_v3 = vld [vmem:[#allocation3 + $0x10] ss:$2 sm:$0xff]  ;;  %v5127_v53 = vld [vmem:[#allocation3 + $0x11] ss:$2 sm:$0xff]  ;;  %v5069_v40 = vadd.f32 %v9926_v2, %v4416_v17  ;;  %5470 = vmatpush1.bf16.msra.mxu1 %v10318_v57  ;;  %v14791_v17 = vld [vmem:[#allocation39_spill] sm:$0xff] }
 0x39b   : > { %v4992_v52 = vpop.f32.mrf.mxu1  ;;  %5196 = vst.msk [vmem:[#allocation4] sm:$0xf] %vm5195_vm10, %v9278_v10  ;;  %v5139_v18 = vmax.f32 %v5113_v3, %v5127_v53  ;;  %5471 = vmatprep.subr.bf16.mxu1 %v14790_v29  ;;  %v10320_v3 = vld [vmem:[%s14445_s5 + $0x70] sm:$0xff]  }
 0x39c   : > { %5102 = vst.msk [vmem:[#allocation3 + $0x28] sm:$0xff] %vm3965_vm7, %v5088_v6  ;;  %v5067_v32 = vadd.f32 %v4992_v52, %v4408_v12  ;;  %v4443_v12 = vadd.f32 %v14791_v17, %v13012_v41  ;;  %v10321_v41 = vld [vmem:[%s14445_s5 + $0x68] sm:$0xff]   ;;  %v14792_v17 = vld [vmem:[#allocation40_spill] sm:$0xff] }
 0x39d   : > { %v9927_v23 = vpop.f32.mrf.mxu1  ;;  %v5153_v28 = vadd.f32 %v13070_v8, %v5139_v18 }
 0x39e   : > { %v5089_v49 = vmax.f32 %v5067_v32, %v5069_v40  ;;  %v5070_v54 = vadd.f32 %v9927_v23, %v4419_v22  ;;  %5472 = vmatpush1.bf16.msra.mxu1 %v10319_v24 }
 0x39f   : > { %v4995_v13 = vpop.f32.mrf.mxu1  ;;  %v5160_v0 = vmax.f32 %v5153_v28, 0.0  ;;  %5473 = vmatprep.subr.bf16.mxu1 %v14790_v29 }
 0x3a0   : > { %5103 = vst.msk [vmem:[#allocation3 + $0x30] sm:$0xff] %vm3965_vm7, %v5089_v49  ;;  %v5068_v36 = vadd.f32 %v4995_v13, %v4411_v19  ;;  %v10322_v19 = vld [vmem:[%s14445_s5 + $0x60] sm:$0xff]  }
 0x3a1   : > { %v9279_v9 = vpack.c.bf16 %v5160_v0, %v5160_v0  ;;  %v10324_v0 = vld [vmem:[%s14445_s5 + $0xb8] sm:$0xff]  }
 0x3a2   : > { %v9930_v30 = vpop.f32.mrf.mxu1  ;;  %v5090_v63 = vmax.f32 %v5068_v36, %v5070_v54  ;;  %5474 = vmatpush1.bf16.msra.mxu1 %v10320_v3 }
 0x3a3   : > { %v5115_v56 = vld [vmem:[#allocation3 + $0x20] ss:$2 sm:$0xff]  ;;  %v5129_v37 = vld [vmem:[#allocation3 + $0x21] ss:$2 sm:$0xff]  ;;  %5197 = vst.msk [vmem:[#allocation4 + $0x4] sm:$0xf] %vm5195_vm10, %v9279_v9  ;;  %v5073_v16 = vadd.f32 %v9930_v30, %v4432_v20  ;;  %5475 = vmatprep.subr.bf16.mxu1 %v14790_v29 }
 0x3a4   : > { %v5008_v4 = vpop.f32.mrf.mxu1  ;;  %v5140_v1 = vmax.f32 %v5115_v56, %v5129_v37  ;;  %5104 = vst.msk [vmem:[#allocation3 + $0x38] sm:$0xff] %vm3965_vm7, %v5090_v63 }
 0x3a5   : > { %v5071_v50 = vadd.f32 %v5008_v4, %v4424_v26 }
 0x3a6   : > { %v9931_v38 = vpop.f32.mrf.mxu1  ;;  %v5154_v31 = vadd.f32 %v13070_v8, %v5140_v1  ;;  %5476 = vmatpush1.bf16.msra.mxu1 %v10321_v41 }
 0x3a7   : > { %v5091_v15 = vmax.f32 %v5071_v50, %v5073_v16  ;;  %v5074_v61 = vadd.f32 %v9931_v38, %v4435_v43  ;;  %5477 = vmatprep.subr.bf16.mxu1 %v14790_v29  ;;  %v10328_v50 = vld [vmem:[%s14445_s5 + $0xa8] sm:$0xff]  }
 0x3a8   : > { %v5011_v45 = vpop.f32.mrf.mxu1  ;;  %v5161_v44 = vmax.f32 %v5154_v31, 0.0 }
 0x3a9   : > { %5105 = vst.msk [vmem:[#allocation3 + $0x40] sm:$0xff] %vm3965_vm7, %v5091_v15  ;;  %v5072_v48 = vadd.f32 %v5011_v45, %v4427_v27 }
 0x3aa   : > { %v9280_v47 = vpack.c.bf16 %v5161_v44, %v5161_v44  ;;  %v13151_v13 = vld [vmem:[#allocation4 + $0x4] sm:$0xf]  ;;  %5478 = vmatpush1.bf16.msra.mxu1 %v10322_v19  ;;  %v10330_v44 = vld [vmem:[%s14445_s5 + $0xa0] sm:$0xff]   ;;  %v5659_v19 = vld [vmem:[#allocation4 + $0x1c] sm:$0x1] }
 0x3ab   : > { %v9934_v5 = vpop.f32.mrf.mxu1  ;;  %v5092_v39 = vmax.f32 %v5072_v48, %v5074_v61  ;;  %v5117_v35 = vld [vmem:[#allocation3 + $0x30] ss:$2 sm:$0xff]  ;;  %v5131_v60 = vld [vmem:[#allocation3 + $0x31] ss:$2 sm:$0xff]  ;;  %5487 = vmatprep.subr.bf16.mxu1 %v14790_v29 }
 0x3ac   : > { %5198 = vst.msk [vmem:[#allocation4 + $0x8] sm:$0xf] %vm5195_vm10, %v9280_v47  ;;  %v5141_v2 = vmax.f32 %v5117_v35, %v5131_v60  ;;  %v5077_v51 = vadd.f32 %v9934_v5, %v4448_v14  ;;  %v5301_v4 = vld [vmem:[#allocation4 + $0x4] sm:$0xe] }
 0x3ad   : > { %v5024_v55 = vpop.f32.mrf.mxu1  ;;  %5106 = vst.msk [vmem:[#allocation3 + $0x48] sm:$0xff] %vm3965_vm7, %v5092_v39 }
 0x3ae   : > { %v5075_v62 = vadd.f32 %v5024_v55, %v4440_v11  ;;  %v5155_v10 = vadd.f32 %v13070_v8, %v5141_v2  ;;  %5488 = vmatpush2.bf16.msra.mxu1 %v10324_v0 }
 0x3af   : > { %v9935_v21 = vpop.f32.mrf.mxu1  ;;  %5489 = vmatprep.subr.bf16.mxu1 %v14790_v29 }
 0x3b0   : > { %v5093_v6 = vmax.f32 %v5075_v62, %v5077_v51  ;;  %v5162_v52 = vmax.f32 %v5155_v10, 0.0  ;;  %v5078_v18 = vadd.f32 %v9935_v21, %v4451_v59 }
 0x3b1   : > { %v5027_v53 = vpop.f32.mrf.mxu1 }
 0x3b2   : > { %5107 = vst.msk [vmem:[#allocation3 + $0x50] sm:$0xff] %vm3965_vm7, %v5093_v6  ;;  %v5076_v40 = vadd.f32 %v5027_v53, %v4443_v12  ;;  %v9281_v46 = vpack.c.bf16 %v5162_v52, %v5162_v52  ;;  %5490 = vmatpush2.bf16.msra.mxu1 %v10325_v58  ;;  %v14793_v12 = vld [vmem:[#allocation43_spill] sm:$0xff]  ;;  %v14794_v53 = vld [vmem:[#allocation42_spill] sm:$0xff] }
 0x3b3   : > { %v5207_v49 = vld [vmem:[#allocation4 + $0x8] sm:$0xf]  ;;  %5491 = vmatprep.subr.bf16.mxu1 %v14790_v29  ;;  %v4459_v10 = vadd.f32 %v14793_v12, %v14792_v17 }
 0x3b4   : > { %v5094_v7 = vmax.f32 %v5076_v40, %v5078_v18  ;;  %v5119_v32 = vld [vmem:[#allocation3 + $0x40] ss:$2 sm:$0xff]  ;;  %v5133_v34 = vld [vmem:[#allocation3 + $0x41] ss:$2 sm:$0xff]  ;;  %5199 = vst.msk [vmem:[#allocation4 + $0xc] sm:$0xf] %vm5195_vm10, %v9281_v46  ;;  %v13161_v9 = vcombine.low %v13151_v13, %v5207_v49  ;;  %v8864_v16 = vcombine.low %v5301_v4, %v5207_v49 }
 0x3b5   : > { %v5142_v23 = vmax.f32 %v5119_v32, %v5133_v34  ;;  %v5660_v47 = vld [vmem:[#allocation4 + $0x8] sm:$0xe]  ;;  %v5205_v34 = vld [vmem:[#allocation4] sm:$0xf] }
 0x3b6   : > { %5108 = vst.msk [vmem:[#allocation3 + $0x58] sm:$0xff] %vm3965_vm7, %v5094_v7  ;;  %v5313_v37 = vshll.u32 %v13161_v9, 16  ;;  %v5342_v31 = vrot.slane %v8864_v16, 1  ;;  %v5311_v57 = vshrl.u32 %v13161_v9, 16  ;;  %5492 = vmatpush2.bf16.msra.mxu1 %v10328_v50 }
 0x3b7   : > { %v5156_v22 = vadd.f32 %v13070_v8, %v5142_v23  ;;  %5493 = vmatprep.subr.bf16.mxu1 %v14790_v29  ;;  %v13209_v23 = vcombine.low %v5205_v34, %v13151_v13 }
 0x3b8   : > { %v5315_v27 = vrot.slane %v5313_v37, 1 }
 0x3b9   : > { %v5163_v28 = vmax.f32 %v5156_v22, 0.0 }
 0x3ba   : > { %v5316_v48 = vor.u32 %v5315_v27, %v5311_v57  ;;  %5494 = vmatpush2.bf16.msra.mxu1 %v10330_v44 }
 0x3bb   : > { %v9282_v25 = vpack.c.bf16 %v5163_v28, %v5163_v28  ;;  %v5208_v30 = vld [vmem:[#allocation4 + $0xc] sm:$0xf]  ;;  %5599 = vmatprep.subr.bf16.mxu1 %v14790_v29 }
 0x3bc   : > { %v13158_v26 = vcombine.low %v5207_v49, %v5208_v30  ;;  %v5656_v14 = vld [vmem:[#allocation4 + $0xc] sm:$0xf] }
 0x3bd   : > { %v5121_v54 = vld [vmem:[#allocation3 + $0x50] ss:$2 sm:$0xff]  ;;  %v5135_v36 = vld [vmem:[#allocation3 + $0x51] ss:$2 sm:$0xff]  ;;  %5200 = vst.msk [vmem:[#allocation4 + $0x10] sm:$0xf] %vm5195_vm10, %v9282_v25  ;;  %v8924_v39 = vcombine.low %v5660_v47, %v5656_v14 }
 0x3be   : > { %v5143_v20 = vmax.f32 %v5121_v54, %v5135_v36  ;;  %v5655_v36 = vld [vmem:[#allocation4 + $0x8] sm:$0xf] }
 0x3bf   : > { %v5710_v35 = vrot.slane %v8924_v39, 1 }
 0x3c0   : > { %v5157_v63 = vadd.f32 %v13070_v8, %v5143_v20  ;;  %v5236_v20 = vshll.u32 %v13158_v26, 16 }
 0x3c2   : > { %v5164_v56 = vmax.f32 %v5157_v63, 0.0  ;;  %v8921_v63 = vcombine.low %v5655_v36, %v5656_v14  ;;  %v5229_v14 = vshrl.u32 %v13209_v23, 16 }
 0x3c4   : > { %v9283_v1 = vpack.c.bf16 %v5164_v56, %v5164_v56  ;;  %v13172_v38 = vld [vmem:[#allocation4 + $0x10] sm:$0xf]  ;;  %v5681_v57 = vshll.u32 %v8921_v63, 16 }
 0x3c5   : > { %v13177_v43 = vcombine.low %v5208_v30, %v13172_v38 }
 0x3c6   : > { %5201 = vst.msk [vmem:[#allocation4 + $0x14] sm:$0xf] %vm5195_vm10, %v9283_v1 }
 0x3c7   : > { %v5343_v15 = vrot.slane %v13177_v43, 1  ;;  %v5318_v45 = vshll.u32 %v13177_v43, 16  ;;  %v5322_v58 = vshrl.u32 %v13177_v43, 16 }
 0x3c9   : > { %v5344_v61 = vsel %vm3879_vm5, %v5342_v31, %v5343_v15  ;;  %v5320_v5 = vrot.slane %v5318_v45, 1  ;;  %v5238_v31 = vrot.slane %v5236_v20, 1  ;;  %v5931_v45 = vld [vmem:[#allocation2 + $0x8c] sm:$0xf]  ;;  %v6306_v20 = vld [vmem:[#allocation2 + $0x88] sm:$0xe] }
 0x3ca   : > { %8901 = vmatprep.mubr.msk.bf16.mxu1 %vm3965_vm7, %v5344_v61 }
 0x3cb   : > { %v5321_v11 = vsel %vm3731_vm6, %v5316_v48, %v5320_v5  ;;  %v5324_v1 = vor.u32 %v5322_v58, %v5320_v5  ;;  %v5240_v5 = vshrl.u32 %v13158_v26, 16 }
 0x3cc   : > { %5333 = vrot.lane.b32.xlu1 %v5321_v11, %s10551_s27  ;;  %v10332_v11 = vld [vmem:[#allocation2 + $0x90] sm:$0xff]  }
 0x3cd   : > { %v13193_v24 = vld [vmem:[#allocation4 + $0x10] sm:$0xff]   ;;  %v6047_v17 = vshll.u32 %v10332_v11, 16 }
 0x3ce   : > { %v5711_v60 = vrot.slane %v13193_v24, 1  ;;  %v5210_v22 = vld [vmem:[#allocation4 + $0x14] sm:$0x1]  ;;  %v5686_v39 = vshll.u32 %v13193_v24, 16 }
 0x3cf   : > { %v13211_v28 = vld [vmem:[#allocation4 + $0x14] sm:$0xf]  ;;  %v13214_v25 = vcombine.low %v13172_v38, %v5210_v22 }
 0x3d0   : > { %v13197_v55 = vsel %vm3879_vm5, %v5710_v35, %v5711_v60  ;;  %v5930_v35 = vld [vmem:[#allocation2 + $0x88] sm:$0xf] }
 0x3d1   : > { %v5244_v37 = vshll.u32 %v13214_v25, 16 }
 0x3d3   : > { %v5246_v47 = vrot.slane %v5244_v37, 1 }
 0x402   : > { %v9938_v2 = vpop.f32.mrf.mxu1 }
 0x403   : > { %v5081_v62 = vadd.f32 %v9938_v2, %v13046_v42 }
 0x404   : > { %v5040_v51 = vpop.f32.mrf.mxu1 }
 0x405   : > { %v5079_v21 = vadd.f32 %v5040_v51, %v13048_v33  ;;  %v13239_v51 = vcombine.low %v5930_v35, %v5931_v45 }
 0x406   : > { %v9939_v59 = vpop.f32.mrf.mxu1 }
 0x407   : > { %v5095_v6 = vmax.f32 %v5079_v21, %v5081_v62  ;;  %v5082_v52 = vadd.f32 %v9939_v59, %v14794_v53  ;;  %v5683_v62 = vrot.slane %v5681_v57, 1  ;;  %v6039_v53 = vshll.u32 %v13239_v51, 16 }
 0x408   : > { %v5043_v3 = vpop.f32.mrf.mxu1 }
 0x409   : > { %5109 = vst.msk [vmem:[#allocation3 + $0x60] sm:$0xff] %vm3965_vm7, %v5095_v6  ;;  %v5080_v18 = vadd.f32 %v5043_v3, %v4459_v10  ;;  %v5248_v10 = vshrl.u32 %v13214_v25, 16  ;;  %v5679_v6 = vshrl.u32 %v8921_v63, 16  ;;  %v5688_v3 = vrot.slane %v5686_v39, 1 }
 0x40a   : > { %v13257_v22 = vrot.slane %v6039_v53, 1 }
 0x40b   : > { %v5096_v40 = vmax.f32 %v5080_v18, %v5082_v52  ;;  %v5250_v52 = vor.u32 %v5248_v10, %v5246_v47  ;;  %v5684_v18 = vor.u32 %v5683_v62, %v5679_v6 }
 0x40d   : > { %5110 = vst.msk [vmem:[#allocation3 + $0x68] sm:$0xff] %vm3965_vm7, %v5096_v40  ;;  %v13248_v40 = vld [vmem:[#allocation2 + $0x98] sm:$0xff]  }
 0x414   : > { %v5123_v46 = vld [vmem:[#allocation3 + $0x60] ss:$2 sm:$0xff]  ;;  %v5137_v7 = vld [vmem:[#allocation3 + $0x61] ss:$2 sm:$0xff] }
 0x415   : > { %v5144_v41 = vmax.f32 %v5123_v46, %v5137_v7  ;;  %v5690_v46 = vshrl.u32 %v13193_v24, 16 }
 0x417   : > { %v5158_v42 = vadd.f32 %v13070_v8, %v5144_v41  ;;  %v5231_v8 = vshll.u32 %v13209_v23, 16  ;;  %v5689_v41 = vsel %vm3731_vm6, %v5684_v18, %v5688_v3 }
 0x419   : > { %v5165_v33 = vmax.f32 %v5158_v42, 0.0  ;;  %v5233_v27 = vrot.slane %v5231_v8, 1  ;;  %v6049_v42 = vrot.slane %v6047_v17, 1  ;;  %v6043_v8 = vshrl.u32 %v13239_v51, 16 }
 0x41b   : > { %v9284_v32 = vpack.c.bf16 %v5165_v33, %v5165_v33  ;;  %v5234_v2 = vor.u32 %v5233_v27, %v5229_v14  ;;  %v13253_v33 = vld [vmem:[#allocation2 + $0xa0] sm:$0xff]   ;;  %v6045_v58 = vor.u32 %v6043_v8, %v13257_v22  ;;  %v6183_v14 = vrot.slane %v13248_v40, 1  ;;  %v13325_v8 = vld [vmem:[#allocation2 + $0xc8] sm:$0xff]  }
 0x41c   : > { %v6063_v63 = vshll.u32 %v13253_v33, 16  ;;  %v6185_v6 = vrot.slane %v13253_v33, 1 }
 0x41d   : > { %5202 = vst.msk [vmem:[#allocation4 + $0x18] sm:$0xf] %vm5195_vm10, %v9284_v32  ;;  %v5239_v21 = vsel %vm3731_vm6, %v5234_v2, %v5238_v31  ;;  %v5692_v32 = vor.u32 %v5690_v46, %v5688_v3  ;;  %v6059_v2 = vshrl.u32 %v13248_v40, 16 }
 0x41e   : > { %v6065_v57 = vrot.slane %v6063_v63, 1 }
 0x424   : > { %v5300_v49 = vld [vmem:[#allocation4 + $0x18] sm:$0x1] }
 0x425   : > { %v5654_v0 = vld [vmem:[#allocation4 + $0x18] sm:$0xf]  ;;  %v13217_v54 = vcombine.low %v13211_v28, %v5300_v49  ;;  %v6055_v49 = vshll.u32 %v13248_v40, 16 }
 0x426   : > { %v13220_v30 = vcombine.low %v5654_v0, %v5659_v19  ;;  %v6051_v19 = vshrl.u32 %v10332_v11, 16 }
 0x427   : > { %v5326_v56 = vshll.u32 %v13217_v54, 16  ;;  %v5330_v50 = vshrl.u32 %v13217_v54, 16  ;;  %v6057_v37 = vrot.slane %v6055_v49, 1 }
 0x428   : > { %v5713_v4 = vrot.slane %v13220_v30, 1  ;;  %v5694_v59 = vshll.u32 %v13220_v30, 16  ;;  %v5698_v34 = vshrl.u32 %v13220_v30, 16  ;;  %v6053_v36 = vor.u32 %v6051_v19, %v6049_v42  ;;  %v10395_v30 = vld [vmem:[%s14443_s3 + $0x30] sm:$0xff]  }
 0x429   : > { %v5328_v16 = vrot.slane %v5326_v56, 1  ;;  %v8982_v56 = vcombine.low %v6306_v20, %v5931_v45 }
 0x42a   : > { %v13231_v44 = vsel %vm3879_vm5, %v5711_v60, %v5713_v4  ;;  %v5242_v60 = vor.u32 %v5240_v5, %v5238_v31  ;;  %v5696_v7 = vrot.slane %v5694_v59, 1  ;;  %v6058_v27 = vsel %vm3731_vm6, %v6053_v36, %v6057_v37  ;;  %v10359_v36 = vld [vmem:[%s14445_s5 + $0x20] sm:$0xff]  }
 0x42b   : > { %v5329_v61 = vsel %vm3731_vm6, %v5324_v1, %v5328_v16  ;;  %v5332_v48 = vor.u32 %v5330_v50, %v5328_v16  ;;  %v13266_v1 = vld [vmem:[#allocation2 + $0xa8] sm:$0xff]   ;;  %v6050_v16 = vsel %vm3731_vm6, %v6045_v58, %v6049_v42  ;;  %v13269_v50 = vrot.slane %v10332_v11, 1 }
 0x42c   : > { %5335 = vrot.lane.b32.xlu0 %v5329_v61, %s10551_s27  ;;  %v5247_v12 = vsel %vm3731_vm6, %v5242_v60, %v5246_v47  ;;  %v5697_v24 = vsel %vm3731_vm6, %v5692_v32, %v5696_v7  ;;  %v5700_v0 = vor.u32 %v5698_v34, %v5696_v7  ;;  %v5345_v31 = vrot.slane %v13217_v54, 1  ;;  %v13274_v61 = vld [vmem:[#allocation2 + $0xb0] sm:$0xff]   ;;  %v10352_v47 = vld [vmem:[%s14445_s5 + $0x38] sm:$0xff]  }
 0x42d   : > { %5337 = vrot.lane.b32.xlu1 %v5332_v48, %s10551_s27  ;;  %v6335_v48 = vrot.slane %v8982_v56, 1  ;;  %v6067_v5 = vshrl.u32 %v13253_v33, 16  ;;  %v6071_v11 = vshll.u32 %v13266_v1, 16  ;;  %v6184_v62 = vsel %vm3879_vm5, %v13269_v50, %v6183_v14 }
 0x42e   : > { %v5346_v60 = vsel %vm3879_vm5, %v5343_v15, %v5345_v31  ;;  %v6061_v59 = vor.u32 %v6059_v2, %v6057_v37  ;;  %v10355_v15 = vld [vmem:[%s14445_s5 + $0x30] sm:$0xff]   ;;  %v6187_v18 = vrot.slane %v13266_v1, 1  ;;  %v6083_v46 = vshrl.u32 %v13274_v61, 16  ;;  %v13351_v2 = vld [vmem:[#allocation2 + $0xd8] sm:$0xff]  }
 0x42f   : > { %v6336_v35 = vsel %vm3879_vm5, %v6335_v48, %v13269_v50  ;;  %v6073_v17 = vrot.slane %v6071_v11, 1  ;;  %v6186_v42 = vsel %vm3879_vm5, %v6183_v14, %v6185_v6  ;;  %v6075_v32 = vshrl.u32 %v13266_v1, 16  ;;  %v13335_v37 = vld [vmem:[#allocation2 + $0xd0] sm:$0xff]   ;;  %v10361_v48 = vld [vmem:[%s14445_s5 + $0x18] sm:$0xff]  }
 0x430   : > { %5251 = vrot.lane.b32.xlu0 %v5239_v21, %s10551_s27  ;;  %v6069_v21 = vor.u32 %v6067_v5, %v6065_v57  ;;  %v6066_v10 = vsel %vm3731_vm6, %v6061_v59, %v6065_v57  ;;  %v6188_v34 = vsel %vm3879_vm5, %v6185_v6, %v6187_v18  ;;  %v6189_v63 = vrot.slane %v13274_v61, 1 }
 0x431   : > { %5253 = vrot.lane.b32.xlu1 %v5247_v12, %s10551_s27  ;;  %v13299_v12 = vld [vmem:[#allocation2 + $0xb8] sm:$0xff]   ;;  %v6103_v57 = vshll.u32 %v13325_v8, 16  ;;  %v6119_v6 = vshll.u32 %v13351_v2, 16 }
 0x432   : > { %v6074_v3 = vsel %vm3731_vm6, %v6069_v21, %v6073_v17  ;;  %v6087_v7 = vshll.u32 %v13299_v12, 16  ;;  %v6091_v14 = vshrl.u32 %v13299_v12, 16 }
 0x434   : > { %5255 = vrot.lane.b32.xlu0 %v5250_v52, %s10551_s27  ;;  %v13309_v52 = vld [vmem:[#allocation2 + $0xc0] sm:$0xff]  }
 0x435   : > { %5701 = vrot.lane.b32.xlu1 %v5689_v41, %s10551_s27  ;;  %v10357_v41 = vld [vmem:[%s14445_s5 + $0x28] sm:$0xff]   ;;  %v6095_v49 = vshll.u32 %v13309_v52, 16  ;;  %v6193_v21 = vrot.slane %v13309_v52, 1 }
 0x437   : > { %v6097_v56 = vrot.slane %v6095_v49, 1 }
 0x438   : > { %5703 = vrot.lane.b32.xlu0 %v5697_v24, %s10551_s27  ;;  %v6077_v24 = vor.u32 %v6075_v32, %v6073_v17  ;;  %v13361_v17 = vld [vmem:[#allocation2 + $0xe0] sm:$0xff]   ;;  %v6121_v32 = vrot.slane %v6119_v6, 1 }
 0x439   : > { %5705 = vrot.lane.b32.xlu1 %v5700_v0, %s10551_s27  ;;  %v6089_v0 = vrot.slane %v6087_v7, 1 }
 0x43c   : > { %6149 = vrot.lane.b32.xlu0 %v6050_v16, %s10552_s28  ;;  %v6191_v16 = vrot.slane %v13299_v12, 1 }
 0x43d   : > { %6151 = vrot.lane.b32.xlu1 %v6058_v27, %s10552_s28  ;;  %v6099_v27 = vshrl.u32 %v13309_v52, 16 }
 0x43e   : > { %v5334_v45 = vpop.permute.xlu1 %5333  ;;  %v6192_v5 = vsel %vm3879_vm5, %v6189_v63, %v6191_v16 }
 0x43f   : > { %v5348_v39 = vsel %vm3965_vm7, %v13161_v9, %v5334_v45  ;;  %v6079_v9 = vshll.u32 %v13274_v61, 16  ;;  %v6190_v45 = vsel %vm3879_vm5, %v6187_v18, %v6189_v63  ;;  %v6101_v11 = vor.u32 %v6099_v27, %v6097_v56 }
 0x440   : > { %5496 = vmatmul.mubr.bf16.vlgmr.msra.gmra.mxu1 %v5348_v39  ;;  %6341 = vrot.lane.b32.xlu0 %v6336_v35, %s10551_s27  ;;  %v6093_v39 = vor.u32 %v6091_v14, %v6089_v0  ;;  %v6105_v35 = vrot.slane %v6103_v57, 1  ;;  %v6107_v18 = vshrl.u32 %v13325_v8, 16  ;;  %v6199_v63 = vrot.slane %v13351_v2, 1 }
 0x441   : > { %8902 = vmatprep.mubr.msk.bf16.mxu1 %vm3965_vm7, %v5346_v60  ;;  %6211 = vrot.lane.b32.xlu1 %v6184_v62, %s10551_s27  ;;  %v6081_v53 = vrot.slane %v6079_v9, 1  ;;  %v10363_v60 = vld [vmem:[%s14445_s5 + $0x10] sm:$0xff]   ;;  %v6123_v57 = vshrl.u32 %v13351_v2, 16 }
 0x442   : > { %5600 = vmatpush1.bf16.msra.mxu1 %v10352_v47  ;;  %v6111_v47 = vshll.u32 %v13335_v37, 16  ;;  %v6098_v62 = vsel %vm3731_vm6, %v6093_v39, %v6097_v56  ;;  %v6106_v9 = vsel %vm3731_vm6, %v6101_v11, %v6105_v35 }
 0x443   : > { %5601 = vmatprep.subr.bf16.mxu1 %v14790_v29  ;;  %v6085_v19 = vor.u32 %v6083_v46, %v6081_v53  ;;  %v6082_v20 = vsel %vm3731_vm6, %v6077_v24, %v6081_v53  ;;  %v6194_v53 = vsel %vm3879_vm5, %v6191_v16, %v6193_v21  ;;  %v6197_v24 = vrot.slane %v13335_v37, 1  ;;  %v10369_v16 = vld [vmem:[%s14445_s5 + $0x58] sm:$0xff]  }
 0x444   : > { %6153 = vrot.lane.b32.xlu0 %v6066_v10, %s10552_s28  ;;  %v6113_v59 = vrot.slane %v6111_v47, 1  ;;  %v6115_v10 = vshrl.u32 %v13335_v37, 16  ;;  %v6125_v11 = vor.u32 %v6123_v57, %v6121_v32  ;;  %v5928_v47 = vld [vmem:[#allocation2 + $0x80] sm:$0xf] }
 0x445   : > { %6155 = vrot.lane.b32.xlu1 %v6074_v3, %s10552_s28  ;;  %v6090_v58 = vsel %vm3731_vm6, %v6085_v19, %v6089_v0  ;;  %v10365_v3 = vld [vmem:[%s14445_s5 + $0x8] sm:$0xff]   ;;  %v10367_v19 = vld [vmem:[%s14445_s5] sm:$0xff]   ;;  %v10349_v57 = vld [vmem:[#allocation2 + $0xf0] ss:$0 sps:$4 sm:$0x11]  }
 0x446   : > { %5602 = vmatpush1.bf16.msra.mxu1 %v10355_v15  ;;  %v6195_v15 = vrot.slane %v13325_v8, 1  ;;  %v6117_v7 = vor.u32 %v6115_v10, %v6113_v59 }
 0x447   : > { %5603 = vmatprep.subr.bf16.mxu1 %v14790_v29 }
 0x448   : > { %6213 = vrot.lane.b32.xlu0 %v6186_v42, %s10551_s27  ;;  %v6196_v46 = vsel %vm3879_vm5, %v6193_v21, %v6195_v15  ;;  %v6109_v42 = vor.u32 %v6107_v18, %v6105_v35  ;;  %v6122_v0 = vsel %vm3731_vm6, %v6117_v7, %v6121_v32  ;;  %v6198_v27 = vsel %vm3879_vm5, %v6195_v15, %v6197_v24  ;;  %v10346_v35 = vld [vmem:[#allocation2 + $0xf8] ss:$0 sps:$4 sm:$0x11]  }
 0x449   : > { %6215 = vrot.lane.b32.xlu1 %v6188_v34, %s10551_s27  ;;  %v13377_v34 = vld [vmem:[#allocation2 + $0xe8] sm:$0xff]   ;;  %v6201_v21 = vrot.slane %v13361_v17, 1 }
 0x44a   : > { %5604 = vmatpush1.bf16.msra.mxu1 %v10357_v41  ;;  %v6127_v41 = vshll.u32 %v13361_v17, 16  ;;  %v6114_v49 = vsel %vm3731_vm6, %v6109_v42, %v6113_v59  ;;  %v6135_v56 = vshll.u32 %v13377_v34, 16  ;;  %v13415_v10 = vrot.slane %v13377_v34, 1 }
 0x44b   : > { %5605 = vmatprep.subr.bf16.mxu1 %v14790_v29  ;;  %v6202_v18 = vsel %vm3879_vm5, %v6199_v63, %v6201_v21 }
 0x44c   : > { %6157 = vrot.lane.b32.xlu0 %v6082_v20, %s10552_s28  ;;  %v13387_v20 = vld [vmem:[#allocation2 + $0xf0] sm:$0xff]   ;;  %v6137_v39 = vrot.slane %v6135_v56, 1 }
 0x44d   : > { %6159 = vrot.lane.b32.xlu1 %v6090_v58, %s10552_s28  ;;  %v6131_v58 = vshrl.u32 %v13361_v17, 16  ;;  %v6316_v14 = vshll.u32 %v13387_v20, 16  ;;  %v6320_v6 = vshrl.u32 %v13387_v20, 16  ;;  %v6765_v56 = vld [vmem:[#allocation2 + $0x90] sm:$0xf] }
 0x44e   : > { %5606 = vmatpush1.bf16.msra.mxu1 %v10359_v36  ;;  %v6129_v36 = vrot.slane %v6127_v41, 1  ;;  %v6204_v41 = vsel %vm3879_vm5, %v6201_v21, %v13415_v10  ;;  %v13448_v21 = vld [vmem:[#allocation2 + $0x98] sm:$0xff]  }
 0x44f   : > { %5607 = vmatprep.subr.bf16.mxu1 %v14790_v29  ;;  %v6318_v15 = vrot.slane %v6316_v14, 1  ;;  %v6339_v14 = vrot.slane %v10346_v35, 1 }
 0x450   : > { %6217 = vrot.lane.b32.xlu0 %v6190_v45, %s10551_s27  ;;  %v6133_v45 = vor.u32 %v6131_v58, %v6129_v36  ;;  %v5957_v58 = vld [vmem:[#allocation2 + $0x80] sm:$0xe] }
 0x451   : > { %6219 = vrot.lane.b32.xlu1 %v6192_v5, %s10551_s27  ;;  %v5929_v5 = vld [vmem:[#allocation2 + $0x84] sm:$0xf]  ;;  %v6322_v42 = vor.u32 %v6320_v6, %v6318_v15 }
 0x452   : > { %5608 = vmatpush1.bf16.msra.mxu1 %v10361_v48  ;;  %v6200_v48 = vsel %vm3879_vm5, %v6197_v24, %v6199_v63  ;;  %v6138_v59 = vsel %vm3731_vm6, %v6133_v45, %v6137_v39  ;;  %v10375_v24 = vld [vmem:[%s14445_s5 + $0x40] sm:$0xff]  }
 0x453   : > { %5609 = vmatprep.subr.bf16.mxu1 %v14790_v29 }
 0x454   : > { %6161 = vrot.lane.b32.xlu0 %v6098_v62, %s10552_s28  ;;  %v6130_v62 = vsel %vm3731_vm6, %v6125_v11, %v6129_v36  ;;  %v6337_v36 = vrot.slane %v13387_v20, 1 }
 0x455   : > { %6163 = vrot.lane.b32.xlu1 %v6106_v9, %s10552_s28  ;;  %v13408_v9 = vcombine.low %v5928_v47, %v5929_v5 }
 0x456   : > { %5610 = vmatpush1.bf16.msra.mxu1 %v10363_v60  ;;  %v10371_v60 = vld [vmem:[%s14445_s5 + $0x50] sm:$0xff]   ;;  %v6338_v11 = vsel %vm3879_vm5, %v13415_v10, %v6337_v36 }
 0x457   : > { %5611 = vmatprep.subr.bf16.mxu1 %v14790_v29  ;;  %v6034_v7 = vshll.u32 %v13408_v9, 16  ;;  %v6032_v45 = vshrl.u32 %v13408_v9, 16 }
 0x458   : > { %6221 = vrot.lane.b32.xlu0 %v6194_v53, %s10551_s27  ;;  %v10373_v53 = vld [vmem:[%s14445_s5 + $0x48] sm:$0xff]  }
 0x459   : > { %6223 = vrot.lane.b32.xlu1 %v6196_v46, %s10551_s27  ;;  %v6139_v46 = vshrl.u32 %v13377_v34, 16  ;;  %v6036_v63 = vrot.slane %v6034_v7, 1 }
 0x45a   : > { %5612 = vmatpush1.bf16.msra.mxu1 %v10365_v3  ;;  %v6324_v3 = vshll.u32 %v10346_v35, 16  ;;  %v6179_v35 = vrot.slane %v13239_v51, 1 }
 0x45b   : > { %5613 = vmatprep.subr.bf16.mxu1 %v14790_v29  ;;  %v6141_v32 = vor.u32 %v6139_v46, %v6137_v39  ;;  %v6037_v47 = vor.u32 %v6036_v63, %v6032_v45  ;;  %v6340_v39 = vsel %vm3879_vm5, %v6337_v36, %v6339_v14  ;;  %v13466_v63 = vld [vmem:[#allocation2 + $0xa8] sm:$0xff]   ;;  %v7016_v45 = vrot.slane %v13448_v21, 1 }
 0x45c   : > { %6165 = vrot.lane.b32.xlu0 %v6114_v49, %s10552_s28  ;;  %v6326_v49 = vrot.slane %v6324_v3, 1  ;;  %v6182_v7 = vsel %vm3879_vm5, %v6179_v35, %v13269_v50  ;;  %v6880_v50 = vshrl.u32 %v13448_v21, 16 }
 0x45d   : > { %6167 = vrot.lane.b32.xlu1 %v6122_v0, %s10552_s28  ;;  %v6319_v0 = vsel %vm3731_vm6, %v6141_v32, %v6318_v15  ;;  %v13453_v15 = vld [vmem:[#allocation2 + $0xa0] sm:$0xff]  }
 0x45e   : > { %5614 = vmatpush1.bf16.msra.mxu1 %v10367_v19  ;;  %v6766_v19 = vld [vmem:[#allocation2 + $0x94] sm:$0xf]  ;;  %v6888_v14 = vshrl.u32 %v13453_v15, 16 }
 0x45f   : > { %5623 = vmatprep.subr.bf16.mxu1 %v14790_v29 }
 0x460   : > { %6225 = vrot.lane.b32.xlu0 %v6198_v27, %s10551_s27  ;;  %v8979_v27 = vcombine.low %v5957_v58, %v5929_v5 }
 0x461   : > { %6227 = vrot.lane.b32.xlu1 %v6200_v48, %s10551_s27  ;;  %v13437_v48 = vcombine.low %v6765_v56, %v6766_v19 }
 0x462   : > { %5624 = vmatpush2.bf16.msra.mxu1 %v10369_v16  ;;  %v6327_v16 = vsel %vm3731_vm6, %v6322_v42, %v6326_v49  ;;  %v6178_v5 = vrot.slane %v8979_v27, 1  ;;  %v6794_v42 = vld [vmem:[#allocation2 + $0x90] sm:$0xe] }
 0x463   : > { %5625 = vmatprep.subr.bf16.mxu1 %v14790_v29  ;;  %v6869_v46 = vshrl.u32 %v13437_v48, 16 }
 0x464   : > { %6169 = vrot.lane.b32.xlu0 %v6130_v62, %s10552_s28  ;;  %v6871_v62 = vshll.u32 %v13437_v48, 16  ;;  %v6180_v6 = vsel %vm3879_vm5, %v6178_v5, %v6179_v35 }
 0x465   : > { %6171 = vrot.lane.b32.xlu1 %v6138_v59, %s10552_s28  ;;  %v6042_v59 = vsel %vm3731_vm6, %v6037_v47, %v13257_v22  ;;  %v6884_v22 = vshll.u32 %v13453_v15, 16 }
 0x466   : > { %5626 = vmatpush2.bf16.msra.mxu1 %v10371_v60  ;;  %v6143_v60 = vshll.u32 %v10349_v57, 16 }
 0x467   : > { %5627 = vmatprep.subr.bf16.mxu1 %v14790_v29  ;;  %v6886_v56 = vrot.slane %v6884_v22, 1 }
 0x468   : > { %6229 = vrot.lane.b32.xlu0 %v6202_v18, %s10551_s27  ;;  %v6145_v3 = vrot.slane %v6143_v60, 1  ;;  %v6876_v18 = vshll.u32 %v13448_v21, 16 }
 0x469   : > { %6231 = vrot.lane.b32.xlu1 %v6204_v41, %s10551_s27  ;;  %v6205_v41 = vrot.slane %v10349_v57, 1  ;;  %v6892_v57 = vshll.u32 %v13466_v63, 16  ;;  %v6890_v5 = vor.u32 %v6888_v14, %v6886_v56 }
 0x46a   : > { %5628 = vmatpush2.bf16.msra.mxu1 %v10373_v53  ;;  %v6873_v53 = vrot.slane %v6871_v62, 1  ;;  %v6146_v49 = vsel %vm3731_vm6, %v6141_v32, %v6145_v3  ;;  %v6878_v36 = vrot.slane %v6876_v18, 1  ;;  %v13485_v62 = vld [vmem:[#allocation2 + $0xb8] sm:$0xff]   ;;  %v13489_v3 = vld [vmem:[#allocation2 + $0xc0] sm:$0xff]  }
 0x46b   : > { %5629 = vmatprep.subr.bf16.mxu1 %v14790_v29  ;;  %v6206_v58 = vsel %vm3879_vm5, %v13415_v10, %v6205_v41  ;;  %v6894_v60 = vrot.slane %v6892_v57, 1  ;;  %v7024_v14 = vrot.slane %v13485_v62, 1 }
 0x46c   : > { %6328 = vrot.lane.b32.xlu0 %v6319_v0, %s10552_s28  ;;  %v9050_v0 = vcombine.low %v6794_v42, %v6766_v19  ;;  %v6882_v19 = vor.u32 %v6880_v50, %v6878_v36 }
 0x46d   : > { %6330 = vrot.lane.b32.xlu1 %v6327_v16, %s10552_s28  ;;  %v13471_v16 = vld [vmem:[#allocation2 + $0xb0] sm:$0xff]  }
 0x46e   : > { %5630 = vmatpush2.bf16.msra.mxu1 %v10375_v24  ;;  %v6874_v24 = vor.u32 %v6873_v53, %v6869_v46  ;;  %v7015_v32 = vrot.slane %v9050_v0, 1  ;;  %v6887_v10 = vsel %vm3731_vm6, %v6882_v19, %v6886_v56  ;;  %v6900_v47 = vshll.u32 %v13471_v16, 16 }
 0x46f   : > { %5832 = vmatprep.subr.bf16.mxu1 %v14790_v29  ;;  %v6895_v53 = vsel %vm3731_vm6, %v6890_v5, %v6894_v60  ;;  %v6908_v46 = vshll.u32 %v13485_v62, 16  ;;  %v6904_v41 = vshrl.u32 %v13471_v16, 16  ;;  %v7022_v42 = vrot.slane %v13471_v16, 1 }
 0x470   : > { %6343 = vrot.lane.b32.xlu0 %v6338_v11, %s10551_s27  ;;  %v6879_v27 = vsel %vm3731_vm6, %v6874_v24, %v6878_v36  ;;  %v7018_v11 = vrot.slane %v13453_v15, 1  ;;  %v6912_v56 = vshrl.u32 %v13485_v62, 16 }
 0x471   : > { %6345 = vrot.lane.b32.xlu1 %v6340_v39, %s10551_s27  ;;  %v7017_v39 = vsel %vm3879_vm5, %v7015_v32, %v7016_v45  ;;  %v6910_v36 = vrot.slane %v6908_v46, 1  ;;  %v13507_v32 = vld [vmem:[#allocation2 + $0xd0] sm:$0xff]   ;;  %v7025_v5 = vsel %vm3879_vm5, %v7022_v42, %v7024_v14  ;;  %v13525_v46 = vld [vmem:[#allocation2 + $0xe0] sm:$0xff]  }
 0x472   : > { %v7019_v35 = vsel %vm3879_vm5, %v7016_v45, %v7018_v11 }
 0x473   : > { %v6914_v57 = vor.u32 %v6912_v56, %v6910_v36 }
 0x474   : > { %6147 = vrot.lane.b32.xlu0 %v6042_v59, %s10552_s28  ;;  %v6896_v59 = vshrl.u32 %v13466_v63, 16 }
 0x475   : > { %6207 = vrot.lane.b32.xlu1 %v6180_v6, %s10551_s27  ;;  %v6902_v6 = vrot.slane %v6900_v47, 1  ;;  %v7026_v47 = vrot.slane %v13489_v3, 1 }
 0x476   : > { %v6898_v18 = vor.u32 %v6896_v59, %v6894_v60  ;;  %v13521_v59 = vld [vmem:[#allocation2 + $0xd8] sm:$0xff]  }
 0x477   : > { %v6906_v0 = vor.u32 %v6904_v41, %v6902_v6 }
 0x478   : > { %6209 = vrot.lane.b32.xlu0 %v6182_v7, %s10551_s27  ;;  %v7020_v7 = vrot.slane %v13466_v63, 1  ;;  %v6903_v22 = vsel %vm3731_vm6, %v6898_v18, %v6902_v6  ;;  %v7027_v6 = vsel %vm3879_vm5, %v7024_v14, %v7026_v47  ;;  %v6944_v14 = vshrl.u32 %v13521_v59, 16 }
 0x479   : > { %6173 = vrot.lane.b32.xlu1 %v6146_v49, %s10552_s28  ;;  %v6916_v49 = vshll.u32 %v13489_v3, 16  ;;  %v6911_v19 = vsel %vm3731_vm6, %v6906_v0, %v6910_v36  ;;  %v7030_v0 = vrot.slane %v13507_v32, 1  ;;  %v6948_v36 = vshll.u32 %v13525_v46, 16 }
 0x47a   : > { %v7021_v24 = vsel %vm3879_vm5, %v7018_v11, %v7020_v7  ;;  %v7023_v50 = vsel %vm3879_vm5, %v7020_v7, %v7022_v42 }
 0x47c   : > { %6233 = vrot.lane.b32.xlu0 %v6206_v58, %s10551_s27  ;;  %v13503_v58 = vld [vmem:[#allocation2 + $0xc8] sm:$0xff]  }
 0x47d   : > { %6984 = vrot.lane.b32.xlu1 %v6879_v27, %s10552_s28  ;;  %v6918_v27 = vrot.slane %v6916_v49, 1  ;;  %v6924_v45 = vshll.u32 %v13503_v58, 16  ;;  %v7028_v42 = vrot.slane %v13503_v58, 1  ;;  %v6936_v49 = vshrl.u32 %v13507_v32, 16 }
 0x47f   : > { %v6919_v11 = vsel %vm3731_vm6, %v6914_v57, %v6918_v27  ;;  %v13542_v57 = vld [vmem:[#allocation2 + $0xe8] sm:$0xff]  }
 0x480   : > { %6986 = vrot.lane.b32.xlu0 %v6887_v10, %s10552_s28  ;;  %v6920_v10 = vshrl.u32 %v13489_v3, 16 }
 0x481   : > { %7044 = vrot.lane.b32.xlu1 %v7017_v39, %s10551_s27  ;;  %v6932_v39 = vshll.u32 %v13507_v32, 16 }
 0x482   : > { %v6922_v60 = vor.u32 %v6920_v10, %v6918_v27  ;;  %v10400_v27 = vld [vmem:[%s14445_s5 + $0xf8] sm:$0xff]   ;;  %v6950_v10 = vrot.slane %v6948_v36, 1 }
 0x483   : > { %v6934_v18 = vrot.slane %v6932_v39, 1  ;;  %8111 = vmatpush1.bf16.msra.mxu0 %v10400_v27 }
 0x484   : > { %7046 = vrot.lane.b32.xlu0 %v7019_v35, %s10551_s27  ;;  %v6926_v35 = vrot.slane %v6924_v45, 1  ;;  %v7031_v45 = vsel %vm3879_vm5, %v7028_v42, %v7030_v0  ;;  %8112 = vmatprep.subr.bf16.mxu0 %v14790_v29 }
 0x485   : > { %6988 = vrot.lane.b32.xlu1 %v6895_v53, %s10552_s28  ;;  %v6928_v53 = vshrl.u32 %v13503_v58, 16  ;;  %v6938_v56 = vor.u32 %v6936_v49, %v6934_v18 }
 0x486   : > { %v6927_v7 = vsel %vm3731_vm6, %v6922_v60, %v6926_v35 }
 0x487   : > { %v6930_v41 = vor.u32 %v6928_v53, %v6926_v35  ;;  %v7032_v35 = vrot.slane %v13521_v59, 1 }
 0x488   : > { %6990 = vrot.lane.b32.xlu0 %v6903_v22, %s10552_s28  ;;  %v6940_v22 = vshll.u32 %v13521_v59, 16 }
 0x489   : > { %7048 = vrot.lane.b32.xlu1 %v7021_v24, %s10551_s27  ;;  %v6935_v24 = vsel %vm3731_vm6, %v6930_v41, %v6934_v18 }
 0x48c   : > { %7050 = vrot.lane.b32.xlu0 %v7023_v50, %s10551_s27  ;;  %v7029_v50 = vsel %vm3879_vm5, %v7026_v47, %v7028_v42  ;;  %v7033_v42 = vsel %vm3879_vm5, %v7030_v0, %v7032_v35  ;;  %v10378_v0 = vld [vmem:[#allocation2 + $0x100] ss:$0 sps:$4 sm:$0x11]  }
 0x48d   : > { %6992 = vrot.lane.b32.xlu1 %v6911_v19, %s10552_s28  ;;  %v6942_v19 = vrot.slane %v6940_v22, 1  ;;  %v13560_v22 = vld [vmem:[#allocation2 + $0xf8] sm:$0xff]  }
 0x48f   : > { %v6943_v47 = vsel %vm3731_vm6, %v6938_v56, %v6942_v19  ;;  %v6946_v39 = vor.u32 %v6944_v14, %v6942_v19  ;;  %v6960_v56 = vshrl.u32 %v13542_v57, 16  ;;  %v6972_v19 = vshll.u32 %v13560_v22, 16 }
 0x490   : > { %6994 = vrot.lane.b32.xlu0 %v6919_v11, %s10552_s28  ;;  %v13546_v11 = vld [vmem:[#allocation2 + $0xf0] sm:$0xff]  }
 0x491   : > { %7052 = vrot.lane.b32.xlu1 %v7025_v5, %s10551_s27  ;;  %v6956_v5 = vshll.u32 %v13542_v57, 16  ;;  %v6951_v18 = vsel %vm3731_vm6, %v6946_v39, %v6950_v10  ;;  %v6964_v41 = vshll.u32 %v13546_v11, 16  ;;  %v6968_v39 = vshrl.u32 %v13546_v11, 16 }
 0x493   : > { %v6966_v27 = vrot.slane %v6964_v41, 1 }
 0x494   : > { %7054 = vrot.lane.b32.xlu0 %v7027_v6, %s10551_s27  ;;  %v6952_v6 = vshrl.u32 %v13525_v46, 16 }
 0x495   : > { %6996 = vrot.lane.b32.xlu1 %v6927_v7, %s10552_s28  ;;  %v7034_v7 = vrot.slane %v13525_v46, 1 }
 0x496   : > { %v6954_v49 = vor.u32 %v6952_v6, %v6950_v10  ;;  %v7038_v6 = vrot.slane %v13546_v11, 1 }
 0x498   : > { %6998 = vrot.lane.b32.xlu0 %v6935_v24, %s10552_s28  ;;  %v5211_v24 = vld [vmem:[#allocation4] sm:$0xe] }
 0x499   : > { %7056 = vrot.lane.b32.xlu1 %v7029_v50, %s10551_s27  ;;  %v8859_v36 = vcombine.low %v5211_v24, %v13151_v13  ;;  %v7035_v50 = vsel %vm3879_vm5, %v7032_v35, %v7034_v7  ;;  %v8862_v13 = vcombine.low %v13211_v28, %v13211_v28 }
 0x49b   : > { %v5260_v10 = vrot.slane %v8859_v36, 1 }
 0x49c   : > { %7058 = vrot.lane.b32.xlu0 %v7031_v45, %s10551_s27 }
 0x49d   : > { %7000 = vrot.lane.b32.xlu1 %v6943_v47, %s10552_s28  ;;  %v7036_v47 = vrot.slane %v13542_v57, 1 }
 0x49e   : > { %v5336_v60 = vpop.permute.xlu0 %5335 }
 0x49f   : > { %v5351_v53 = vsel %vm3965_vm7, %v13177_v43, %v5336_v60  ;;  %v6958_v43 = vrot.slane %v6956_v5, 1  ;;  %v5338_v45 = vpop.permute.xlu1 %5337  ;;  %v6980_v5 = vshll.u32 %v10378_v0, 16  ;;  %v7037_v41 = vsel %vm3879_vm5, %v7034_v7, %v7036_v47  ;;  %v10377_v7 = vld [vmem:[%s14445_s5 + $0xf8] sm:$0xff]  }
 0x4a0   : > { %5504 = vmatmul.mubr.bf16.gmra.mxu1 %v5351_v53  ;;  %7002 = vrot.lane.b32.xlu0 %v6951_v18, %s10552_s28  ;;  %v5355_v60 = vsel %vm3965_vm7, %v8862_v13, %v5338_v45  ;;  %v6974_v53 = vrot.slane %v6972_v19, 1  ;;  %v5263_v19 = vrot.slane %v13214_v25, 1  ;;  %v7042_v13 = vrot.slane %v10378_v0, 1 }
 0x4a1   : > { %8903 = vmatprep.mubr.msk.bf16.mxu1 %vm3965_vm7, %v5345_v31  ;;  %7060 = vrot.lane.b32.xlu1 %v7033_v42, %s10551_s27  ;;  %v6959_v54 = vsel %vm3731_vm6, %v6954_v49, %v6958_v43  ;;  %v5261_v31 = vrot.slane %v13158_v26, 1  ;;  %v6962_v14 = vor.u32 %v6960_v56, %v6958_v43  ;;  %v6970_v42 = vor.u32 %v6968_v39, %v6966_v27  ;;  %v10381_v39 = vld [vmem:[%s14445_s5 + $0xe0] sm:$0xff]  }
 0x4a2   : > { %v6976_v49 = vshrl.u32 %v13560_v22, 16  ;;  %v7039_v43 = vsel %vm3879_vm5, %v7036_v47, %v7038_v6  ;;  %v6982_v36 = vrot.slane %v6980_v5, 1 }
 0x4a3   : > { %v6967_v35 = vsel %vm3731_vm6, %v6962_v14, %v6966_v27  ;;  %v5262_v18 = vsel %vm3879_vm5, %v5260_v10, %v5261_v31  ;;  %v6975_v56 = vsel %vm3731_vm6, %v6970_v42, %v6974_v53  ;;  %v5264_v14 = vsel %vm3879_vm5, %v5261_v31, %v5263_v19  ;;  %v10379_v10 = vld [vmem:[%s14445_s5 + $0xf0] sm:$0xff]   ;;  %v5254_v0 = vpop.permute.xlu1 %5253  ;;  %v10380_v31 = vld [vmem:[%s14445_s5 + $0xe8] sm:$0xff]   ;;  %v10385_v42 = vld [vmem:[%s14445_s5 + $0xc0] sm:$0xff]  }
 0x4a4   : > { %7062 = vrot.lane.b32.xlu0 %v7035_v50, %s10551_s27  ;;  %v6978_v24 = vor.u32 %v6976_v49, %v6974_v53  ;;  %v5252_v50 = vpop.permute.xlu0 %5251  ;;  %v5269_v47 = vsel %vm3965_vm7, %v13158_v26, %v5254_v0  ;;  %v10383_v53 = vld [vmem:[%s14445_s5 + $0xd0] sm:$0xff]  }
 0x4a5   : > { %7004 = vrot.lane.b32.xlu1 %v6959_v54, %s10552_s28  ;;  %v5266_v27 = vsel %vm3965_vm7, %v13209_v23, %v5252_v50  ;;  %v7040_v54 = vrot.slane %v13560_v22, 1  ;;  %v10387_v50 = vld [vmem:[%s14445_s5 + $0x110] sm:$0xff]  }
 0x4a6   : > { %v6983_v45 = vsel %vm3731_vm6, %v6978_v24, %v6982_v36 }
 0x4a7   : > { %v7041_v25 = vsel %vm3879_vm5, %v7038_v6, %v7040_v54  ;;  %v7043_v23 = vsel %vm3879_vm5, %v7040_v54, %v7042_v13  ;;  %v10390_v54 = vld [vmem:[%s14443_s3 + $0x58] sm:$0xff]  }
 0x4a8   : > { %5512 = vmatmul.mubr.bf16.gmra.mxu1 %v5355_v60  ;;  %7006 = vrot.lane.b32.xlu0 %v6967_v35, %s10552_s28  ;;  %v5256_v5 = vpop.permute.xlu0 %5255  ;;  %v8857_v60 = vcombine.low %v13172_v38, %v13172_v38  ;;  %v10382_v35 = vld [vmem:[%s14445_s5 + $0xd8] sm:$0xff]   ;;  %v10406_v38 = vld [vmem:[%s14445_s5 + $0xf0] sm:$0xff]  }
 0x4a9   : > { %8916 = vmatprep.mubr.msk.bf16.mxu1 %vm3965_vm7, %v5262_v18  ;;  %7064 = vrot.lane.b32.xlu1 %v7037_v41, %s10551_s27  ;;  %v5702_v18 = vpop.permute.xlu1 %5701  ;;  %v10384_v41 = vld [vmem:[%s14445_s5 + $0xc8] sm:$0xff]  }
 0x4aa   : > { %v5273_v6 = vsel %vm3965_vm7, %v8857_v60, %v5256_v5  ;;  %8113 = vmatpush1.bf16.msra.mxu0 %v10406_v38 }
 0x4ab   : > { %8114 = vmatprep.subr.bf16.mxu0 %v14790_v29 }
 0x4ac   : > { %7066 = vrot.lane.b32.xlu0 %v7039_v43, %s10551_s27  ;;  %v10386_v43 = vld [vmem:[%s14445_s5 + $0x118] sm:$0xff]  }
 0x4ad   : > { %7008 = vrot.lane.b32.xlu1 %v6975_v56, %s10552_s28  ;;  %v5706_v49 = vpop.permute.xlu1 %5705 }
 0x4b0   : > { %5632 = vmatmul.mubr.bf16.vlgmr.msra.gmra.mxu1 %v5266_v27  ;;  %7010 = vrot.lane.b32.xlu0 %v6983_v45, %s10552_s28  ;;  %v10389_v27 = vld [vmem:[%s14445_s5 + $0x100] sm:$0xff]   ;;  %s10556_s28 = smov [#allocation6]  }
 0x4b1   : > { %5833 = vmatpush1.bf16.msra.mxu1 %v10377_v7  ;;  %8917 = vmatprep.mubr.msk.bf16.mxu1 %vm3965_vm7, %v5264_v14  ;;  %v6152_v36 = vpop.permute.xlu1 %6151  ;;  %v10391_v14 = vld [vmem:[%s14443_s3 + $0x50] sm:$0xff]   ;;  %s10492_s16 = sshll.u32 %s10556_s28, 4  ;;  %s10493_s16 = int_to_ptr.vmem [resolvable:$false] %s10492_s16 }
 0x4b2   : > { %7068 = vrot.lane.b32.xlu1 %v7041_v25, %s10551_s27  ;;  %5834 = vmatprep.subr.bf16.mxu1 %v14790_v29  ;;  %v5716_v25 = vsel %vm3965_vm7, %v13158_v26, %v5702_v18  ;;  %v10393_v26 = vld [vmem:[%s14443_s3 + $0x40] sm:$0xff]   ;;  %s10494_s17 = scalar_lea.vmem %s10493_s16, 64  ;;  %p10495_p0 = scmp.lt.s32.totalorder %s14401_s25, %s10493_s16 }
 0x4b3   : > { %p10496_p1 = scmp.lt.s32.totalorder %s10494_s17, %s10488_s13 }
 0x4b4   : > { %7070 = vrot.lane.b32.xlu0 %v7043_v23, %s10551_s27  ;;  %v10392_v23 = vld [vmem:[%s14443_s3 + $0x48] sm:$0xff]  }
 0x4b5   : > { %5835 = vmatpush1.bf16.msra.mxu1 %v10379_v10  ;;  %v6212_v7 = vpop.permute.xlu1 %6211  ;;  %p10497_p2 = por %p10496_p1, %p10495_p0 }
 0x4b6   : > { %5836 = vmatprep.subr.bf16.mxu1 %v14790_v29 }
 0x4b7   : > { %p10498_p3 = pnand %p10497_p2, %p10491_p13 }
 0x4b8   : > { %5640 = vmatmul.mubr.bf16.gmra.mxu1 %v5269_v47 }
 0x4b9   : > { %5837 = vmatpush1.bf16.msra.mxu1 %v10380_v31  ;;  %8918 = vmatprep.mubr.msk.bf16.mxu1 %vm3965_vm7, %v5263_v19  ;;  %v10388_v19 = vld [vmem:[%s14445_s5 + $0x108] sm:$0xff]   ;;  %v6156_v13 = vpop.permute.xlu1 %6155  ;;  %v10485_v31 = vld [vmem:[#allocation4 + $0x10] sm:$0xf] }
 0x4ba   : > { %5838 = vmatprep.subr.bf16.mxu1 %v14790_v29  ;;  %v8919_v47 = vcombine.low %v10485_v31, %v13211_v28  ;;  %v10394_v28 = vld [vmem:[%s14443_s3 + $0x38] sm:$0xff]  }
 0x4bd   : > { %5839 = vmatpush1.bf16.msra.mxu1 %v10381_v39  ;;  %v6216_v0 = vpop.permute.xlu1 %6215 }
 0x4be   : > { %5840 = vmatprep.subr.bf16.mxu1 %v14790_v29 }
 0x4c0   : > { %5648 = vmatmul.mubr.bf16.gmra.mxu1 %v5273_v6  ;;  %v10486_v6 = vld [vmem:[#allocation4 + $0x18] sm:$0xf] }
 0x4c1   : > { %5841 = vmatpush1.bf16.msra.mxu1 %v10382_v35  ;;  %8961 = vmatprep.mubr.msk.bf16.mxu1 %vm3965_vm7, %v13197_v55  ;;  %v5704_v55 = vpop.permute.xlu0 %5703  ;;  %v10410_v35 = vld [vmem:[%s14445_s5 + $0xe8] sm:$0xff]  }
 0x4c2   : > { %5842 = vmatprep.subr.bf16.mxu1 %v14790_v29  ;;  %v5720_v5 = vsel %vm3965_vm7, %v8919_v47, %v5704_v55  ;;  %8115 = vmatpush1.bf16.msra.mxu0 %v10410_v35 }
 0x4c3   : > { %8116 = vmatprep.subr.bf16.mxu0 %v14790_v29 }
 0x4c5   : > { %5843 = vmatpush1.bf16.msra.mxu1 %v10383_v53  ;;  %v6150_v24 = vpop.permute.xlu0 %6149  ;;  %v8920_v53 = vcombine.low %v10486_v6, %v10486_v6 }
 0x4c6   : > { %5844 = vmatprep.subr.bf16.mxu1 %v14790_v29  ;;  %v13697_v38 = vsel %vm2721_vm3, %v13239_v51, %v6150_v24  ;;  %v10487_v51 = vld [vmem:[#allocation2 + $0x90] sm:$0xff]   ;;  %v10397_v24 = vld [vmem:[%s14443_s3 + $0x20] sm:$0xff]  }
 0x4c9   : > { %5845 = vmatpush1.bf16.msra.mxu1 %v10384_v41  ;;  %v6342_v56 = vpop.permute.xlu0 %6341 }
 0x4ca   : > { %5846 = vmatprep.subr.bf16.mxu1 %v14790_v29  ;;  %v6352_v41 = vsel %vm3965_vm7, %v13697_v38, %v6342_v56 }
 0x4cd   : > { %5847 = vmatpush1.bf16.msra.mxu1 %v10385_v42  ;;  %v6154_v45 = vpop.permute.xlu0 %6153  ;;  %v10396_v42 = vld [vmem:[%s14443_s3 + $0x28] sm:$0xff]  }
 0x4ce   : > { %5856 = vmatprep.subr.bf16.mxu1 %v14790_v29  ;;  %v6242_v56 = vsel %vm2721_vm3, %v13248_v40, %v6154_v45  ;;  %v6244_v40 = vsel %vm2721_vm3, %v13253_v33, %v6156_v13 }
 0x4d1   : > { %5857 = vmatpush2.bf16.msra.mxu1 %v10386_v43  ;;  %v6214_v10 = vpop.permute.xlu0 %6213  ;;  %v6240_v43 = vsel %vm2721_vm3, %v10487_v51, %v6152_v36  ;;  %v10398_v36 = vld [vmem:[%s14443_s3 + $0x18] sm:$0xff]   ;;  %v10411_v51 = vld [vmem:[%s14445_s5 + $0xe0] sm:$0xff]  }
 0x4d2   : > { %5858 = vmatprep.subr.bf16.mxu1 %v14790_v29  ;;  %8117 = vmatpush1.bf16.msra.mxu0 %v10411_v51 }
 0x4d3   : > { %8118 = vmatprep.subr.bf16.mxu0 %v14790_v29 }
 0x4d5   : > { %5859 = vmatpush2.bf16.msra.mxu1 %v10387_v50  ;;  %v6158_v39 = vpop.permute.xlu0 %6157  ;;  %v13711_v50 = vsel %vm3965_vm7, %v6240_v43, %v6212_v7 }
 0x4d6   : > { %5860 = vmatprep.subr.bf16.mxu1 %v14790_v29 }
 0x4d9   : > { %5861 = vmatpush2.bf16.msra.mxu1 %v10388_v19  ;;  %v6218_v60 = vpop.permute.xlu0 %6217  ;;  %v13716_v19 = vsel %vm3965_vm7, %v6242_v56, %v6214_v10 }
 0x4da   : > { %5862 = vmatprep.subr.bf16.mxu1 %v14790_v29 }
 0x4dd   : > { %5863 = vmatpush2.bf16.msra.mxu1 %v10389_v27  ;;  %v6162_v55 = vpop.permute.xlu0 %6161 }
 0x4de   : > { %9940 = vmatprep.subr.bf16.mxu1 %v10390_v54 }
 0x4e0   : > { %5865 = vmatmul.mubr.bf16.vlgmr.msra.gmra.mxu1 %v5716_v25  ;;  %v6246_v25 = vsel %vm2721_vm3, %v13266_v1, %v6158_v39 }
 0x4e1   : > { %8962 = vmatprep.mubr.msk.bf16.mxu1 %vm3965_vm7, %v13231_v44  ;;  %9941 = vmatpush3.bf16.msra.mxu1 %v10390_v54  ;;  %v6160_v44 = vpop.permute.xlu1 %6159  ;;  %v6222_v27 = vpop.permute.xlu0 %6221  ;;  %v10399_v54 = vld [vmem:[%s14443_s3 + $0x10] sm:$0xff]   ;;  %v13736_v10 = vsel %vm3965_vm7, %v6246_v25, %v6218_v60 }
 0x4e2   : > { %9942 = vmatprep.subr.bf16.mxu1 %v10391_v14  ;;  %v6248_v47 = vsel %vm2721_vm3, %v13274_v61, %v6160_v44  ;;  %v10403_v44 = vld [vmem:[%s14443_s3 + $0x88] sm:$0xff]  }
 0x4e5   : > { %9943 = vmatpush3.bf16.msra.mxu1 %v10391_v14  ;;  %v6220_v18 = vpop.permute.xlu1 %6219  ;;  %v6166_v45 = vpop.permute.xlu0 %6165  ;;  %v13731_v14 = vsel %vm3965_vm7, %v6244_v40, %v6216_v0  ;;  %v10401_v0 = vld [vmem:[%s14443_s3 + $0x8] sm:$0xff]  }
 0x4e6   : > { %9944 = vmatprep.subr.bf16.mxu1 %v10392_v23 }
 0x4e8   : > { %5873 = vmatmul.mubr.bf16.gmra.mxu1 %v5720_v5  ;;  %v13755_v5 = vsel %vm3965_vm7, %v6248_v47, %v6220_v18 }
 0x4e9   : > { %8963 = vmatprep.mubr.msk.bf16.mxu1 %vm3965_vm7, %v5713_v4  ;;  %9945 = vmatpush3.bf16.msra.mxu1 %v10392_v23  ;;  %v5724_v4 = vsel %vm3965_vm7, %v8920_v53, %v5706_v49  ;;  %v6164_v49 = vpop.permute.xlu1 %6163  ;;  %v6226_v1 = vpop.permute.xlu0 %6225 }
 0x4ea   : > { %9946 = vmatprep.subr.bf16.mxu1 %v10393_v26 }
 0x4ed   : > { %9947 = vmatpush3.bf16.msra.mxu1 %v10393_v26  ;;  %v6224_v7 = vpop.permute.xlu1 %6223  ;;  %v10402_v26 = vld [vmem:[%s14443_s3] sm:$0xff]   ;;  %v6170_v61 = vpop.permute.xlu0 %6169 }
 0x4ee   : > { %9948 = vmatprep.subr.bf16.mxu1 %v10394_v28 }
 0x4f0   : > { %5881 = vmatmul.mubr.bf16.gmra.mxu1 %v5724_v4 }
 0x4f1   : > { %9949 = vmatpush3.bf16.msra.mxu1 %v10394_v28  ;;  %9952 = vmatprep.mubr.msk.bf16.mxu1 %vm4109_vm8, %v6352_v41  ;;  %v6168_v33 = vpop.permute.xlu1 %6167  ;;  %v6250_v28 = vsel %vm2721_vm3, %v13299_v12, %v6162_v55  ;;  %v6252_v12 = vsel %vm2721_vm3, %v13309_v52, %v6164_v49  ;;  %v6230_v18 = vpop.permute.xlu0 %6229 }
 0x4f2   : > { %9950 = vmatprep.subr.bf16.mxu1 %v10395_v30  ;;  %v13760_v35 = vsel %vm3965_vm7, %v6250_v28, %v6222_v27  ;;  %v13772_v53 = vsel %vm3965_vm7, %v6252_v12, %v6224_v7  ;;  %v6256_v52 = vsel %vm2721_vm3, %v13335_v37, %v6168_v33 }
 0x4f5   : > { %9951 = vmatpush3.bf16.msra.mxu1 %v10395_v30  ;;  %v6228_v60 = vpop.permute.xlu1 %6227  ;;  %v6254_v30 = vsel %vm2721_vm3, %v13325_v8, %v6166_v45  ;;  %v6329_v55 = vpop.permute.xlu0 %6328  ;;  %v6258_v8 = vsel %vm2721_vm3, %v13351_v2, %v6170_v61 }
 0x4f6   : > { %9980 = vmatprep.subr.bf16.mxu1 %v10396_v42  ;;  %v13777_v4 = vsel %vm3965_vm7, %v6254_v30, %v6226_v1  ;;  %v13791_v49 = vsel %vm3965_vm7, %v6258_v8, %v6230_v18  ;;  %v6348_v56 = vsel %vm2721_vm3, %v13377_v34, %v6329_v55  ;;  %v10409_v1 = vld [vmem:[%s14443_s3 + $0x60] sm:$0xff]  }
 0x4f8   : > { %9953 = vmatmul.mubr.msk.bf16.vlgmr.msra.gmra.mxu1 %vm4109_vm8, %v13711_v50 }
 0x4f9   : > { %9956 = vmatprep.mubr.msk.bf16.mxu1 %vm4109_vm8, %v13716_v19  ;;  %9981 = vmatpush3.bf16.msra.mxu1 %v10396_v42  ;;  %v6172_v6 = vpop.permute.xlu1 %6171  ;;  %v13786_v42 = vsel %vm3965_vm7, %v6256_v52, %v6228_v60  ;;  %v6344_v37 = vpop.permute.xlu0 %6343 }
 0x4fa   : > { %9982 = vmatprep.subr.bf16.mxu1 %v10397_v24  ;;  %v6260_v2 = vsel %vm2721_vm3, %v13361_v17, %v6172_v6 }
 0x4fd   : > { %9983 = vmatpush3.bf16.msra.mxu1 %v10397_v24  ;;  %v6232_v41 = vpop.permute.xlu1 %6231  ;;  %v6148_v7 = vpop.permute.xlu0 %6147 }
 0x4fe   : > { %9984 = vmatprep.subr.bf16.mxu1 %v10398_v36  ;;  %v6288_v24 = vsel %vm3965_vm7, %v6260_v2, %v6232_v41  ;;  %v6236_v40 = vsel %vm2721_vm3, %v13408_v9, %v6148_v7 }
 0x500   : > { %v13738_v23 = vpop.f32.mrf.mxu1  ;;  %9957 = vmatmul.mubr.msk.bf16.gmra.mxu1 %vm4109_vm8, %v13731_v14 }
 0x501   : > { %9960 = vmatprep.mubr.msk.bf16.mxu1 %vm4109_vm8, %v13736_v10  ;;  %9985 = vmatpush3.bf16.msra.mxu1 %v10398_v36  ;;  %v6331_v43 = vpop.permute.xlu1 %6330  ;;  %v6354_v36 = vsel %vm3965_vm7, %v6348_v56, %v6344_v37  ;;  %v6210_v33 = vpop.permute.xlu0 %6209 }
 0x502   : > { %v5499_v13 = vpop.f32.mrf.mxu1  ;;  %9986 = vmatprep.subr.bf16.mxu1 %v10399_v54  ;;  %v6350_v17 = vsel %vm2721_vm3, %v13387_v20, %v6331_v43  ;;  %v6266_v9 = vsel %vm3965_vm7, %v13697_v38, %v6210_v33  ;;  %v10405_v20 = vld [vmem:[%s14443_s3 + $0x78] sm:$0xff]  }
 0x503   : > { %v10404_v13 = vld [vmem:[%s14443_s3 + $0x80] sm:$0xff]  }
 0x504   : > { %v13747_v31 = vpop.f32.mrf.mxu1 }
 0x505   : > { %9987 = vmatpush3.bf16.msra.mxu1 %v10399_v54  ;;  %v6346_v27 = vpop.permute.xlu1 %6345 }
 0x506   : > { %v5502_v39 = vpop.f32.mrf.mxu1  ;;  %9988 = vmatprep.subr.bf16.mxu1 %v10401_v0  ;;  %v6356_v54 = vsel %vm3965_vm7, %v6350_v17, %v6346_v27 }
 0x507   : > { %v6234_v39 = vpop.permute.xlu0 %6233 }
 0x508   : > { %9961 = vmatmul.mubr.msk.bf16.gmra.mxu1 %vm4109_vm8, %v13755_v5 }
 0x509   : > { %9964 = vmatprep.mubr.msk.bf16.mxu1 %vm4109_vm8, %v13760_v35  ;;  %9989 = vmatpush3.bf16.msra.mxu1 %v10401_v0  ;;  %v6208_v45 = vpop.permute.xlu1 %6207  ;;  %v10407_v0 = vld [vmem:[%s14443_s3 + $0x70] sm:$0xff]  }
 0x50a   : > { %9990 = vmatprep.subr.bf16.mxu1 %v10402_v26  ;;  %v6264_v25 = vsel %vm3965_vm7, %v6236_v40, %v6208_v45 }
 0x50d   : > { %9991 = vmatpush3.bf16.msra.mxu1 %v10402_v26  ;;  %v6174_v38 = vpop.permute.xlu1 %6173  ;;  %v6987_v26 = vpop.permute.xlu0 %6986 }
 0x50e   : > { %10020 = vmatprep.subr.bf16.mxu1 %v10403_v44  ;;  %v6262_v6 = vsel %vm2721_vm3, %v13377_v34, %v6174_v38  ;;  %v7075_v34 = vsel %vm2721_vm3, %v13448_v21, %v6987_v26 }
 0x510   : > { %9965 = vmatmul.mubr.msk.bf16.gmra.mxu1 %vm4109_vm8, %v13772_v53 }
 0x511   : > { %9968 = vmatprep.mubr.msk.bf16.mxu1 %vm4109_vm8, %v13777_v4  ;;  %v6985_v47 = vpop.permute.xlu1 %6984 }
 0x512   : > { %v7073_v30 = vsel %vm2721_vm3, %v13437_v48, %v6985_v47 }
 0x518   : > { %9969 = vmatmul.mubr.msk.bf16.gmra.mxu1 %vm4109_vm8, %v13786_v42 }
 0x519   : > { %9972 = vmatprep.mubr.msk.bf16.mxu1 %vm4109_vm8, %v13791_v49 }
 0x520   : > { %9973 = vmatmul.mubr.msk.bf16.gmra.mxu1 %vm4109_vm8, %v6288_v24 }
 0x521   : > { %9976 = vmatprep.mubr.msk.bf16.mxu1 %vm4109_vm8, %v6354_v36  ;;  %v10413_v36 = vld [vmem:[%s14445_s5 + $0xd0] sm:$0xff]  }
 0x528   : > { %9977 = vmatmul.mubr.msk.bf16.gmra.mxu1 %vm4109_vm8, %v6356_v54 }
 0x529   : > { %9992 = vmatprep.mubr.msk.bf16.mxu1 %vm4109_vm8, %v6264_v25 }
 0x530   : > { %9993 = vmatmul.mubr.msk.bf16.vlgmr.msra.gmra.mxu1 %vm4109_vm8, %v6266_v9 }
 0x531   : > { %9996 = vmatprep.mubr.msk.bf16.mxu1 %vm4109_vm8, %v13711_v50  ;;  %10021 = vmatpush3.bf16.msra.mxu1 %v10403_v44  ;;  %v10408_v50 = vld [vmem:[%s14443_s3 + $0x68] sm:$0xff]  }
 0x532   : > { %10022 = vmatprep.subr.bf16.mxu1 %v10404_v13 }
 0x535   : > { %10023 = vmatpush3.bf16.msra.mxu1 %v10404_v13 }
 0x536   : > { %10024 = vmatprep.subr.bf16.mxu1 %v10405_v20 }
 0x538   : > { %9997 = vmatmul.mubr.msk.bf16.gmra.mxu1 %vm4109_vm8, %v13716_v19  ;;  %v10412_v19 = vld [vmem:[%s14445_s5 + $0xd8] sm:$0xff]  }
 0x539   : > { %10000 = vmatprep.mubr.msk.bf16.mxu1 %vm4109_vm8, %v13731_v14  ;;  %10025 = vmatpush3.bf16.msra.mxu1 %v10405_v20  ;;  %v7045_v14 = vpop.permute.xlu1 %7044 }
 0x53a   : > { %10026 = vmatprep.subr.bf16.mxu1 %v10407_v0  ;;  %8119 = vmatpush1.bf16.msra.mxu0 %v10412_v19 }
 0x53b   : > { %8120 = vmatprep.subr.bf16.mxu0 %v14790_v29 }
 0x53d   : > { %10027 = vmatpush3.bf16.msra.mxu1 %v10407_v0 }
 0x53e   : > { %10028 = vmatprep.subr.bf16.mxu1 %v10408_v50  ;;  %8121 = vmatpush1.bf16.msra.mxu0 %v10413_v36 }
 0x53f   : > { %8122 = vmatprep.subr.bf16.mxu0 %v14790_v29 }
 0x540   : > { %10001 = vmatmul.mubr.msk.bf16.gmra.mxu1 %vm4109_vm8, %v13736_v10  ;;  %v6989_v10 = vpop.permute.xlu1 %6988 }
 0x541   : > { %10004 = vmatprep.mubr.msk.bf16.mxu1 %vm4109_vm8, %v13755_v5  ;;  %10029 = vmatpush3.bf16.msra.mxu1 %v10408_v50  ;;  %v7047_v5 = vpop.permute.xlu0 %7046  ;;  %v7077_v48 = vsel %vm2721_vm3, %v13453_v15, %v6989_v10 }
 0x542   : > { %10030 = vmatprep.subr.bf16.mxu1 %v10409_v1 }
 0x544   : > { %v7049_v28 = vpop.permute.xlu1 %7048 }
 0x545   : > { %10031 = vmatpush3.bf16.msra.mxu1 %v10409_v1  ;;  %v6991_v60 = vpop.permute.xlu0 %6990  ;;  %v7105_v51 = vsel %vm3965_vm7, %v7077_v48, %v7049_v28 }
 0x546   : > { %7742 = vmatprep.subr.bf16.mxu1 %v14790_v29  ;;  %v7079_v21 = vsel %vm2721_vm3, %v13466_v63, %v6991_v60 }
 0x548   : > { %10005 = vmatmul.mubr.msk.bf16.gmra.mxu1 %vm4109_vm8, %v13760_v35  ;;  %v6993_v61 = vpop.permute.xlu1 %6992 }
 0x549   : > { %10008 = vmatprep.mubr.msk.bf16.mxu1 %vm4109_vm8, %v13772_v53  ;;  %v7051_v44 = vpop.permute.xlu0 %7050  ;;  %v6290_v53 = vsel %vm3965_vm7, %v6262_v6, %v6234_v39  ;;  %v7081_v7 = vsel %vm2721_vm3, %v13471_v16, %v6993_v61 }
 0x54a   : > { %v7107_v15 = vsel %vm3965_vm7, %v7079_v21, %v7051_v44 }
 0x54c   : > { %v7053_v35 = vpop.permute.xlu1 %7052 }
 0x54d   : > { %v6995_v12 = vpop.permute.xlu0 %6994  ;;  %v7109_v45 = vsel %vm3965_vm7, %v7081_v7, %v7053_v35 }
 0x54e   : > { %v7083_v13 = vsel %vm2721_vm3, %v13485_v62, %v6995_v12 }
 0x550   : > { %10009 = vmatmul.mubr.msk.bf16.gmra.mxu1 %vm4109_vm8, %v13777_v4  ;;  %v7101_v4 = vsel %vm3965_vm7, %v7073_v30, %v7045_v14  ;;  %v6997_v52 = vpop.permute.xlu1 %6996 }
 0x551   : > { %10012 = vmatprep.mubr.msk.bf16.mxu1 %vm4109_vm8, %v13786_v42  ;;  %v7055_v55 = vpop.permute.xlu0 %7054  ;;  %v7085_v0 = vsel %vm2721_vm3, %v13489_v3, %v6997_v52 }
 0x552   : > { %v7111_v20 = vsel %vm3965_vm7, %v7083_v13, %v7055_v55 }
 0x554   : > { %v7057_v37 = vpop.permute.xlu1 %7056 }
 0x555   : > { %v6999_v2 = vpop.permute.xlu0 %6998  ;;  %v7113_v38 = vsel %vm3965_vm7, %v7085_v0, %v7057_v37 }
 0x556   : > { %v7087_v62 = vsel %vm2721_vm3, %v13503_v58, %v6999_v2 }
 0x558   : > { %10013 = vmatmul.mubr.msk.bf16.gmra.mxu1 %vm4109_vm8, %v13791_v49  ;;  %v7103_v49 = vsel %vm3965_vm7, %v7075_v34, %v7047_v5  ;;  %v7001_v40 = vpop.permute.xlu1 %7000 }
 0x559   : > { %10016 = vmatprep.mubr.msk.bf16.mxu1 %vm4109_vm8, %v6288_v24  ;;  %v7059_v17 = vpop.permute.xlu0 %7058  ;;  %v7089_v3 = vsel %vm2721_vm3, %v13507_v32, %v7001_v40 }
 0x55a   : > { %v7115_v26 = vsel %vm3965_vm7, %v7087_v62, %v7059_v17 }
 0x55c   : > { %v7061_v33 = vpop.permute.xlu1 %7060 }
 0x55d   : > { %v7003_v9 = vpop.permute.xlu0 %7002  ;;  %v7117_v10 = vsel %vm3965_vm7, %v7089_v3, %v7061_v33 }
 0x55e   : > { %v7091_v58 = vsel %vm2721_vm3, %v13521_v59, %v7003_v9 }
 0x560   : > { %10017 = vmatmul.mubr.msk.bf16.gmra.mxu1 %vm4109_vm8, %v6290_v53  ;;  %v13868_v18 = vpop.f32.mrf.mxu1  ;;  %v7005_v47 = vpop.permute.xlu1 %7004 }
 0x561   : > { %10032 = vmatprep.mubr.msk.bf16.mxu1 %vm4109_vm8, %v7101_v4  ;;  %v7063_v39 = vpop.permute.xlu0 %7062  ;;  %v7093_v32 = vsel %vm2721_vm3, %v13525_v46, %v7005_v47 }
 0x562   : > { %v5507_v41 = vpop.f32.mrf.mxu1  ;;  %v7119_v6 = vsel %vm3965_vm7, %v7091_v58, %v7063_v39 }
 0x564   : > { %v13871_v42 = vpop.f32.mrf.mxu1  ;;  %v7065_v28 = vpop.permute.xlu1 %7064 }
 0x565   : > { %v7007_v60 = vpop.permute.xlu0 %7006  ;;  %v7121_v53 = vsel %vm3965_vm7, %v7093_v32, %v7065_v28 }
 0x566   : > { %v5510_v8 = vpop.f32.mrf.mxu1  ;;  %v7095_v41 = vsel %vm2721_vm3, %v13542_v57, %v7007_v60  ;;  %v10414_v57 = vld [vmem:[%s14445_s5 + $0xc8] sm:$0xff]  }
 0x567   : > { %8123 = vmatpush1.bf16.msra.mxu0 %v10414_v57 }
 0x568   : > { %10033 = vmatmul.mubr.msk.bf16.vlgmr.msra.gmra.mxu1 %vm4109_vm8, %v7103_v49  ;;  %v5513_v43 = vpop.f32.mrf.mxu1  ;;  %v7009_v12 = vpop.permute.xlu1 %7008  ;;  %8124 = vmatprep.subr.bf16.mxu0 %v14790_v29 }
 0x569   : > { %10036 = vmatprep.mubr.msk.bf16.mxu1 %vm4109_vm8, %v7105_v51  ;;  %v7067_v30 = vpop.permute.xlu0 %7066  ;;  %v7097_v55 = vsel %vm2721_vm3, %v13546_v11, %v7009_v12  ;;  %v5901_v11 = vlaneseq }
 0x56a   : > { %v5514_v24 = vpop.f32.mrf.mxu1  ;;  %v7123_v59 = vsel %vm3965_vm7, %v7095_v41, %v7067_v30 }
 0x56b   : > { %v13933_v51 = vshrl.u32 %v5901_v11, 7 }
 0x56c   : > { %v5515_v56 = vpop.f32.mrf.mxu1  ;;  %v7069_v4 = vpop.permute.xlu1 %7068 }
 0x56d   : > { %v7011_v52 = vpop.permute.xlu0 %7010  ;;  %v7125_v46 = vsel %vm3965_vm7, %v7097_v55, %v7069_v4  ;;  %14795 = vst [vmem:[#allocation35_spill] sm:$0xff] %v13933_v51  ;;  %v14522_v21 = vsub.s32 0, %v13933_v51 }
 0x56e   : > { %v5516_v27 = vpop.f32.mrf.mxu1  ;;  %v7099_v8 = vsel %vm2721_vm3, %v13560_v22, %v7011_v52  ;;  %v10415_v52 = vld [vmem:[%s14445_s5 + $0xc0] sm:$0xff]  }
 0x56f   : > { %v5896_v27 = vld [vmem:[%s14446_s6] sm:$0x1]  ;;  %8125 = vmatpush1.bf16.msra.mxu0 %v10415_v52 }
 0x570   : > { %10037 = vmatmul.mubr.msk.bf16.gmra.mxu1 %vm4109_vm8, %v7107_v15  ;;  %v5633_v54 = vpop.f32.mrf.mxu1  ;;  %8134 = vmatprep.subr.bf16.mxu0 %v14790_v29 }
 0x571   : > { %10040 = vmatprep.mubr.msk.bf16.mxu1 %vm4109_vm8, %v7109_v45  ;;  %v7071_v34 = vpop.permute.xlu0 %7070  ;;  %v5634_v37 = vadd.f32 %v5633_v54, %v13738_v23  ;;  %v5904_v45 = vrot.slane %v5896_v27, %v14522_v21  ;;  %v10435_v21 = vld [vmem:[%s14445_s5 + $0x60] sm:$0xff]  }
 0x572   : > { %v5635_v63 = vpop.f32.mrf.mxu1  ;;  %v7127_v49 = vsel %vm3965_vm7, %v7099_v8, %v7071_v34 }
 0x574   : > { %v5636_v25 = vpop.f32.mrf.mxu1 }
 0x575   : > { %v5637_v22 = vadd.f32 %v5636_v25, %v13747_v31 }
 0x576   : > { %v5638_v16 = vpop.f32.mrf.mxu1 }
 0x578   : > { %10041 = vmatmul.mubr.msk.bf16.gmra.mxu1 %vm4109_vm8, %v7111_v20  ;;  %v5641_v50 = vpop.f32.mrf.mxu1 }
 0x579   : > { %10044 = vmatprep.mubr.msk.bf16.mxu1 %vm4109_vm8, %v7113_v38  ;;  %v5642_v23 = vadd.f32 %v5641_v50, %v13868_v18 }
 0x57a   : > { %v5643_v1 = vpop.f32.mrf.mxu1 }
 0x57c   : > { %v5644_v19 = vpop.f32.mrf.mxu1 }
 0x57d   : > { %v5645_v31 = vadd.f32 %v5644_v19, %v13871_v42 }
 0x57e   : > { %v5646_v14 = vpop.f32.mrf.mxu1 }
 0x580   : > { %10045 = vmatmul.mubr.msk.bf16.gmra.mxu1 %vm4109_vm8, %v7115_v26  ;;  %v5649_v5 = vpop.f32.mrf.mxu1 }
 0x581   : > { %10048 = vmatprep.mubr.msk.bf16.mxu1 %vm4109_vm8, %v7117_v10 }
 0x582   : > { %v5650_v61 = vpop.f32.mrf.mxu1 }
 0x584   : > { %v5651_v44 = vpop.f32.mrf.mxu1 }
 0x586   : > { %v5652_v35 = vpop.f32.mrf.mxu1 }
 0x588   : > { %10049 = vmatmul.mubr.msk.bf16.gmra.mxu1 %vm4109_vm8, %v7119_v6 }
 0x589   : > { %10052 = vmatprep.mubr.msk.bf16.mxu1 %vm4109_vm8, %v7121_v53 }
 0x590   : > { %10053 = vmatmul.mubr.msk.bf16.gmra.mxu1 %vm4109_vm8, %v7123_v59 }
 0x591   : > { %10056 = vmatprep.mubr.msk.bf16.mxu1 %vm4109_vm8, %v7125_v46 }
 0x598   : > { %10057 = vmatmul.mubr.msk.bf16.gmra.mxu1 %vm4109_vm8, %v7127_v49 }
 0x5a0   : > { %v5866_v48 = vpop.f32.mrf.mxu1 }
 0x5a1   : > { %v5887_v24 = vadd.f32 %v5866_v48, %v5634_v37 }
 0x5a2   : > { %v5868_v43 = vpop.f32.mrf.mxu1 }
 0x5a4   : > { %v5869_v2 = vpop.f32.mrf.mxu1 }
 0x5a5   : > { %v5888_v56 = vadd.f32 %v5869_v2, %v5637_v22 }
 0x5a6   : > { %v5871_v36 = vpop.f32.mrf.mxu1 }
 0x5a7   : > { %v5891_v15 = vmax.f32 %v5887_v24, %v5888_v56  ;;  %v10416_v36 = vld [vmem:[%s14445_s5 + $0x118] sm:$0xff]  }
 0x5a8   : > { %v5874_v7 = vpop.f32.mrf.mxu1  ;;  %8135 = vmatpush2.bf16.msra.mxu0 %v10416_v36  ;;  %v10433_v36 = vld [vmem:[%s14445_s5 + $0x70] sm:$0xff]  }
 0x5a9   : > { %v5893_v40 = vrot.slane %v5891_v15, 1  ;;  %v5889_v33 = vadd.f32 %v5874_v7, %v5642_v23  ;;  %8136 = vmatprep.subr.bf16.mxu0 %v14790_v29 }
 0x5aa   : > { %v5876_v17 = vpop.f32.mrf.mxu1 }
 0x5ab   : > { %v5895_v54 = vmax.f32 %v5891_v15, %v5893_v40 }
 0x5ac   : > { %v5877_v63 = vpop.f32.mrf.mxu1 }
 0x5ad   : > { %v5906_v25 = vadd.f32 %v5904_v45, %v5895_v54  ;;  %v5890_v13 = vadd.f32 %v5877_v63, %v5645_v31  ;;  %v5897_v38 = vadd.f32 %v5896_v27, %v5895_v54 }
 0x5ae   : > { %v5879_v9 = vpop.f32.mrf.mxu1 }
 0x5af   : > { %v5907_v16 = vmax.f32 %v5906_v25, 0.0  ;;  %v5912_v20 = vmax.f32 %v5889_v33, %v5890_v13  ;;  %v5898_v26 = vmax.f32 %v5897_v38, 0.0 }
 0x5b0   : > { %v5882_v0 = vpop.f32.mrf.mxu1 }
 0x5b1   : > { %v5914_v1 = vrot.slane %v5912_v20, 1  ;;  %v5909_v39 = vrot.slane %v5907_v16, 2 }
 0x5b2   : > { %v5883_v47 = vpop.f32.mrf.mxu1 }
 0x5b3   : > { %v5916_v62 = vmax.f32 %v5912_v20, %v5914_v1  ;;  %v5911_v42 = vadd.f32 %v5909_v39, %v5898_v26  ;;  %v10426_v47 = vld [vmem:[%s14445_s5 + $0x110] sm:$0xff]   ;;  %v10427_v39 = vld [vmem:[%s14445_s5 + $0x98] sm:$0xff]   ;;  %v10432_v26 = vld [vmem:[%s14445_s5 + $0x108] sm:$0xff]  }
 0x5b4   : > { %v5884_v14 = vpop.f32.mrf.mxu1  ;;  %8137 = vmatpush2.bf16.msra.mxu0 %v10426_v47  ;;  %7743 = vmatpush1.bf16.msra.mxu1 %v10427_v39 }
 0x5b5   : > { %v5917_v3 = vadd.f32 %v5916_v62, %v5896_v27  ;;  %v5920_v18 = vadd.f32 %v5916_v62, %v5904_v45  ;;  %v10428_v14 = vld [vmem:[%s14445_s5 + $0x90] sm:$0xff]   ;;  %7744 = vmatprep.subr.bf16.mxu1 %v14790_v29  ;;  %8138 = vmatprep.subr.bf16.mxu0 %v14790_v29 }
 0x5b6   : > { %v5885_v50 = vpop.f32.mrf.mxu1 }
 0x5b7   : > { %v5918_v19 = vmax.f32 %v5917_v3, 0.0  ;;  %v5921_v10 = vmax.f32 %v5920_v18, 0.0  ;;  %v10429_v50 = vld [vmem:[%s14445_s5 + $0x88] sm:$0xff]  }
 0x5b8   : > { %v13945_v5 = vpop.f32.mrf.mxu1  ;;  %7745 = vmatpush1.bf16.msra.mxu1 %v10428_v14  ;;  %8139 = vmatpush2.bf16.msra.mxu0 %v10432_v26  ;;  %v10434_v14 = vld [vmem:[%s14445_s5 + $0x68] sm:$0xff]  }
 0x5b9   : > { %v5919_v28 = vadd.f32 %v5918_v19, %v5911_v42  ;;  %v5923_v60 = vrot.slane %v5921_v10, 2  ;;  %7746 = vmatprep.subr.bf16.mxu1 %v14790_v29  ;;  %8140 = vmatprep.subr.bf16.mxu0 %v14790_v29  ;;  %v10430_v10 = vld [vmem:[%s14445_s5 + $0x80] sm:$0xff]  }
 0x5ba   : > { %v13947_v61 = vpop.f32.mrf.mxu1 }
 0x5bb   : > { %v5925_v44 = vadd.f32 %v5923_v60, %v5919_v28 }
 0x5bc   : > { %v13949_v58 = vpop.f32.mrf.mxu1  ;;  %7747 = vmatpush1.bf16.msra.mxu1 %v10429_v50 }
 0x5bd   : > { %v5926_v35 = vmul.f32 0.25, %v5925_v44  ;;  %7748 = vmatprep.subr.bf16.mxu1 %v14790_v29  ;;  %v10431_v44 = vld [vmem:[%s14445_s5 + $0x78] sm:$0xff]  }
 0x5be   : > { %v13951_v6 = vpop.f32.mrf.mxu1 }
 0x5bf   : > { %5927 = vst [vmem:[#allocation5] sm:$0x1] %v5926_v35 }
 0x5c0   : > { %v13953_v32 = vpop.f32.mrf.mxu1  ;;  %7749 = vmatpush1.bf16.msra.mxu1 %v10430_v10 }
 0x5c1   : > { %7750 = vmatprep.subr.bf16.mxu1 %v14790_v29 }
 0x5c2   : > { %v13955_v12 = vpop.f32.mrf.mxu1 }
 0x5c4   : > { %v13957_v53 = vpop.f32.mrf.mxu1  ;;  %7751 = vmatpush1.bf16.msra.mxu1 %v10431_v44 }
 0x5c5   : > { %7752 = vmatprep.subr.bf16.mxu1 %v14790_v29 }
 0x5c6   : > { %v13959_v30 = vpop.f32.mrf.mxu1 }
 0x5c8   : > { %v13961_v4 = vpop.f32.mrf.mxu1  ;;  %7753 = vmatpush1.bf16.msra.mxu1 %v10433_v36 }
 0x5c9   : > { %7754 = vmatprep.subr.bf16.mxu1 %v14790_v29 }
 0x5ca   : > { %v13963_v41 = vpop.f32.mrf.mxu1 }
 0x5cc   : > { %v13968_v59 = vpop.f32.mrf.mxu1  ;;  %7755 = vmatpush1.bf16.msra.mxu1 %v10434_v14 }
 0x5cd   : > { %7756 = vmatprep.subr.bf16.mxu1 %v14790_v29 }
 0x5ce   : > { %v13971_v55 = vpop.f32.mrf.mxu1 }
 0x5d0   : > { %v13973_v46 = vpop.f32.mrf.mxu1  ;;  %7757 = vmatpush1.bf16.msra.mxu1 %v10435_v21  ;;  %v10437_v21 = vld [vmem:[%s14445_s5 + $0xb0] sm:$0xff]  }
 0x5d1   : > { %7766 = vmatprep.subr.bf16.mxu1 %v14790_v29 }
 0x5d2   : > { %v13975_v34 = vpop.f32.mrf.mxu1 }
 0x5d4   : > { %v13977_v8 = vpop.f32.mrf.mxu1 }
 0x5d6   : > { %v13979_v49 = vpop.f32.mrf.mxu1 }
 0x5d8   : > { %v13981_v57 = vpop.f32.mrf.mxu1 }
 0x5da   : > { %v13983_v11 = vpop.f32.mrf.mxu1 }
 0x5dc   : > { %v13985_v48 = vpop.f32.mrf.mxu1 }
 0x5de   : > { %v13987_v43 = vpop.f32.mrf.mxu1 }
 0x5e0   : > { %v13989_v37 = vpop.f32.mrf.mxu1 }
 0x5e2   : > { %v13991_v22 = vpop.f32.mrf.mxu1 }
 0x5e4   : > { %v13993_v2 = vpop.f32.mrf.mxu1 }
 0x5e6   : > { %v13995_v24 = vpop.f32.mrf.mxu1 }
 0x5e8   : > { %v13997_v56 = vpop.f32.mrf.mxu1 }
 0x5ea   : > { %v13999_v27 = vpop.f32.mrf.mxu1 }
 0x5ec   : > { %v14004_v15 = vpop.f32.mrf.mxu1 }
 0x5ed   : > { %14796 = vst [vmem:[#allocation9_spill] sm:$0xff] %v14004_v15 }
 0x5ee   : > { %v14006_v7 = vpop.f32.mrf.mxu1 }
 0x5ef   : > { %14797 = vst [vmem:[#allocation10_spill] sm:$0xff] %v14006_v7 }
 0x5f0   : > { %v9994_v40 = vpop.f32.mrf.mxu1 }
 0x5f1   : > { %v6663_v10 = vadd.f32 %v9994_v40, %v13945_v5  ;;  %v10436_v5 = vld [vmem:[%s14445_s5 + $0xb8] sm:$0xff]  }
 0x5f2   : > { %v6654_v45 = vpop.f32.mrf.mxu1  ;;  %7767 = vmatpush2.bf16.msra.mxu1 %v10436_v5 }
 0x5f3   : > { %v6655_v44 = vadd.f32 %v6654_v45, %v13947_v61  ;;  %7768 = vmatprep.subr.bf16.mxu1 %v14790_v29 }
 0x5f4   : > { %v9995_v17 = vpop.f32.mrf.mxu1 }
 0x5f6   : > { %v6657_v23 = vpop.f32.mrf.mxu1  ;;  %7769 = vmatpush2.bf16.msra.mxu1 %v10437_v21 }
 0x5f7   : > { %v6658_v15 = vadd.f32 %v6657_v23, %v13951_v6  ;;  %7770 = vmatprep.subr.bf16.mxu1 %v14790_v29 }
 0x5f8   : > { %v14009_v31 = vpop.f32.mrf.mxu1 }
 0x5fa   : > { %v14011_v54 = vpop.f32.mrf.mxu1 }
 0x5fc   : > { %v14013_v63 = vpop.f32.mrf.mxu1 }
 0x5fe   : > { %v14015_v25 = vpop.f32.mrf.mxu1 }
 0x600   : > { %v14017_v33 = vpop.f32.mrf.mxu1 }
 0x602   : > { %v14019_v13 = vpop.f32.mrf.mxu1 }
 0x604   : > { %v14021_v9 = vpop.f32.mrf.mxu1 }
 0x606   : > { %v14023_v16 = vpop.f32.mrf.mxu1 }
 0x608   : > { %v14025_v20 = vpop.f32.mrf.mxu1 }
 0x60a   : > { %v14027_v0 = vpop.f32.mrf.mxu1 }
 0x60c   : > { %v14029_v38 = vpop.f32.mrf.mxu1 }
 0x60e   : > { %v14031_v1 = vpop.f32.mrf.mxu1 }
 0x610   : > { %v14039_v62 = vpop.f32.mrf.mxu1 }
 0x612   : > { %v14047_v3 = vpop.f32.mrf.mxu1 }
 0x614   : > { %v14051_v18 = vpop.f32.mrf.mxu1 }
 0x616   : > { %v14056_v42 = vpop.f32.mrf.mxu1 }
 0x618   : > { %v14060_v19 = vpop.f32.mrf.mxu1 }
 0x61a   : > { %v14065_v28 = vpop.f32.mrf.mxu1 }
 0x61c   : > { %v14068_v60 = vpop.f32.mrf.mxu1 }
 0x61e   : > { %v14073_v35 = vpop.f32.mrf.mxu1 }
 0x620   : > { %v14076_v52 = vpop.f32.mrf.mxu1 }
 0x622   : > { %v14081_v47 = vpop.f32.mrf.mxu1 }
 0x623   : > { %14798 = vst [vmem:[#allocation11_spill] sm:$0xff] %v14081_v47 }
 0x624   : > { %v14084_v39 = vpop.f32.mrf.mxu1 }
 0x625   : > { %14799 = vst [vmem:[#allocation12_spill] sm:$0xff] %v14084_v39 }
 0x626   : > { %v14089_v26 = vpop.f32.mrf.mxu1 }
 0x627   : > { %14800 = vst [vmem:[#allocation13_spill] sm:$0xff] %v14089_v26  ;;  %v6666_v26 = vadd.f32 %v9995_v17, %v13949_v58  ;;  %v6671_v58 = vadd.f32 %v14011_v54, %v13955_v12  ;;  %v6674_v12 = vadd.f32 %v14015_v25, %v13959_v30  ;;  %v10438_v54 = vld [vmem:[%s14445_s5 + $0xa8] sm:$0xff]   ;;  %v6687_v30 = vadd.f32 %v14019_v13, %v13963_v41  ;;  %v10439_v25 = vld [vmem:[%s14445_s5 + $0xa0] sm:$0xff]  }
 0x628   : > { %v10034_v50 = vpop.f32.mrf.mxu1  ;;  %7771 = vmatpush2.bf16.msra.mxu1 %v10438_v54 }
 0x629   : > { %v7351_v36 = vadd.f32 %v10034_v50, %v6663_v10  ;;  %7772 = vmatprep.subr.bf16.mxu1 %v14790_v29 }
 0x62a   : > { %v7238_v51 = vpop.f32.mrf.mxu1 }
 0x62b   : > { %v7349_v7 = vadd.f32 %v7238_v51, %v6655_v44  ;;  %v6679_v51 = vadd.f32 %v14009_v31, %v13953_v32  ;;  %v6682_v32 = vadd.f32 %v14013_v63, %v13957_v53  ;;  %v6695_v53 = vadd.f32 %v14017_v33, %v13961_v4 }
 0x62c   : > { %v10035_v39 = vpop.f32.mrf.mxu1  ;;  %7773 = vmatpush2.bf16.msra.mxu1 %v10439_v25 }
 0x62d   : > { %v7377_v47 = vmax.f32 %v7349_v7, %v7351_v36  ;;  %v7352_v40 = vadd.f32 %v10035_v39, %v6666_v26  ;;  %v14133_v36 = vld [vmem:[%s14444_s4] ss:$0 sm:$0xff]  ;;  %7878 = vmatprep.subr.bf16.mxu1 %v14790_v29 }
 0x62e   : > { %v7241_v61 = vpop.f32.mrf.mxu1 }
 0x62f   : > { %7391 = vst.msk [vmem:[#allocation3] sm:$0xff] %vm3965_vm7, %v7377_v47  ;;  %v7350_v45 = vadd.f32 %v7241_v61, %v6658_v15  ;;  %v6698_v61 = vadd.f32 %v14021_v9, %v13968_v59  ;;  %v6703_v59 = vadd.f32 %v14027_v0, %v13975_v34 }
 0x630   : > { %v10038_v14 = vpop.f32.mrf.mxu1 }
 0x631   : > { %v7378_v6 = vmax.f32 %v7350_v45, %v7352_v40  ;;  %v7355_v17 = vadd.f32 %v10038_v14, %v6679_v51  ;;  %v6690_v40 = vadd.f32 %v14023_v16, %v13971_v55 }
 0x632   : > { %v7254_v7 = vpop.f32.mrf.mxu1 }
 0x633   : > { %7392 = vst.msk [vmem:[#allocation3 + $0x8] sm:$0xff] %vm3965_vm7, %v7378_v6  ;;  %v7353_v15 = vadd.f32 %v7254_v7, %v6671_v58 }
 0x634   : > { %v10039_v23 = vpop.f32.mrf.mxu1 }
 0x635   : > { %v7379_v31 = vmax.f32 %v7353_v15, %v7355_v17  ;;  %v7356_v39 = vadd.f32 %v10039_v23, %v6682_v32  ;;  %v6711_v17 = vadd.f32 %v14025_v20, %v13973_v46  ;;  %v6706_v46 = vadd.f32 %v14031_v1, %v13979_v49 }
 0x636   : > { %v7257_v47 = vpop.f32.mrf.mxu1 }
 0x637   : > { %7393 = vst.msk [vmem:[#allocation3 + $0x10] sm:$0xff] %vm3965_vm7, %v7379_v31  ;;  %v7354_v26 = vadd.f32 %v7257_v47, %v6674_v12  ;;  %v6714_v47 = vadd.f32 %v14029_v38, %v13977_v8 }
 0x638   : > { %v10042_v50 = vpop.f32.mrf.mxu1 }
 0x639   : > { %v7380_v63 = vmax.f32 %v7354_v26, %v7356_v39  ;;  %v7359_v41 = vadd.f32 %v10042_v50, %v6695_v53 }
 0x63a   : > { %v7405_v10 = vld [vmem:[#allocation3] ss:$2 sm:$0xff]  ;;  %v7412_v44 = vld [vmem:[#allocation3 + $0x1] ss:$2 sm:$0xff]  ;;  %v7270_v5 = vpop.f32.mrf.mxu1 }
 0x63b   : > { %v7419_v4 = vmax.f32 %v7405_v10, %v7412_v44  ;;  %7394 = vst.msk [vmem:[#allocation3 + $0x18] sm:$0xff] %vm3965_vm7, %v7380_v63  ;;  %v7357_v33 = vadd.f32 %v7270_v5, %v6687_v30  ;;  %v6727_v30 = vadd.f32 %v14039_v62, %v13981_v57  ;;  %v6719_v63 = vadd.f32 %v14047_v3, %v13983_v11 }
 0x63c   : > { %v10043_v13 = vpop.f32.mrf.mxu1  ;;  %v6722_v57 = vadd.f32 %v14056_v42, %v13987_v43 }
 0x63d   : > { %v7433_v45 = vadd.f32 %v14133_v36, %v7419_v4  ;;  %v7381_v14 = vmax.f32 %v7357_v33, %v7359_v41  ;;  %v7360_v58 = vadd.f32 %v10043_v13, %v6698_v61  ;;  %v6730_v41 = vadd.f32 %v14051_v18, %v13985_v48 }
 0x63e   : > { %v7273_v51 = vpop.f32.mrf.mxu1 }
 0x63f   : > { %7395 = vst.msk [vmem:[#allocation3 + $0x20] sm:$0xff] %vm3965_vm7, %v7381_v14  ;;  %v7358_v6 = vadd.f32 %v7273_v51, %v6690_v40  ;;  %v7440_v21 = vmax.f32 %v7433_v45, 0.0  ;;  %v6743_v45 = vadd.f32 %v14060_v19, %v13989_v37  ;;  %v6735_v14 = vadd.f32 %v14065_v28, %v13991_v22 }
 0x640   : > { %v10046_v7 = vpop.f32.mrf.mxu1  ;;  %v6738_v37 = vadd.f32 %v14073_v35, %v13995_v24 }
 0x641   : > { %v7382_v55 = vmax.f32 %v7358_v6, %v7360_v58  ;;  %v9285_v9 = vpack.c.bf16 %v7440_v21, %v7440_v21  ;;  %v7363_v32 = vadd.f32 %v10046_v7, %v6711_v17  ;;  %v6746_v17 = vadd.f32 %v14068_v60, %v13993_v2 }
 0x642   : > { %v7406_v16 = vld [vmem:[#allocation3 + $0x10] ss:$2 sm:$0xff]  ;;  %v7413_v15 = vld [vmem:[#allocation3 + $0x11] ss:$2 sm:$0xff]  ;;  %v7286_v23 = vpop.f32.mrf.mxu1 }
 0x643   : > { %7396 = vst.msk [vmem:[#allocation3 + $0x28] sm:$0xff] %vm3965_vm7, %v7382_v55  ;;  %v7361_v12 = vadd.f32 %v7286_v23, %v6703_v59  ;;  %v7420_v31 = vmax.f32 %v7406_v16, %v7413_v15  ;;  %v6759_v15 = vadd.f32 %v14076_v52, %v13997_v56  ;;  %v14801_v23 = vld [vmem:[#allocation11_spill] sm:$0xff]  ;;  %v14804_v56 = vld [vmem:[#allocation10_spill] sm:$0xff]  ;;  %v14805_v52 = vld [vmem:[#allocation13_spill] sm:$0xff] }
 0x644   : > { %7477 = vst.msk [vmem:[#allocation4 + $0x20] sm:$0xf] %vm5195_vm10, %v9285_v9  ;;  %v10047_v54 = vpop.f32.mrf.mxu1 }
 0x645   : > { %v7383_v34 = vmax.f32 %v7361_v12, %v7363_v32  ;;  %v7434_v20 = vadd.f32 %v14133_v36, %v7420_v31  ;;  %v7364_v39 = vadd.f32 %v10047_v54, %v6714_v47  ;;  %v6751_v32 = vadd.f32 %v14801_v23, %v13999_v27 }
 0x646   : > { %v7289_v0 = vpop.f32.mrf.mxu1 }
 0x647   : > { %7397 = vst.msk [vmem:[#allocation3 + $0x30] sm:$0xff] %vm3965_vm7, %v7383_v34  ;;  %v7362_v26 = vadd.f32 %v7289_v0, %v6706_v46  ;;  %v7441_v50 = vmax.f32 %v7434_v20, 0.0  ;;  %v14802_v34 = vld [vmem:[#allocation9_spill] sm:$0xff]  ;;  %v14803_v20 = vld [vmem:[#allocation12_spill] sm:$0xff] }
 0x648   : > { %v10050_v53 = vpop.f32.mrf.mxu1  ;;  %v6762_v0 = vadd.f32 %v14803_v20, %v14802_v34 }
 0x649   : > { %v7384_v8 = vmax.f32 %v7362_v26, %v7364_v39  ;;  %v9286_v38 = vpack.c.bf16 %v7441_v50, %v7441_v50  ;;  %v7367_v10 = vadd.f32 %v10050_v53, %v6727_v30  ;;  %v6754_v39 = vadd.f32 %v14805_v52, %v14804_v56 }
 0x64a   : > { %v7407_v25 = vld [vmem:[#allocation3 + $0x20] ss:$2 sm:$0xff]  ;;  %v7414_v49 = vld [vmem:[#allocation3 + $0x21] ss:$2 sm:$0xff]  ;;  %v7302_v1 = vpop.f32.mrf.mxu1 }
 0x64b   : > { %7398 = vst.msk [vmem:[#allocation3 + $0x38] sm:$0xff] %vm3965_vm7, %v7384_v8  ;;  %v7365_v44 = vadd.f32 %v7302_v1, %v6719_v63  ;;  %v7421_v5 = vmax.f32 %v7407_v25, %v7414_v49 }
 0x64c   : > { %7478 = vst.msk [vmem:[#allocation4 + $0x24] sm:$0xf] %vm5195_vm10, %v9286_v38  ;;  %v10051_v4 = vpop.f32.mrf.mxu1 }
 0x64d   : > { %v7385_v11 = vmax.f32 %v7365_v44, %v7367_v10  ;;  %v7435_v62 = vadd.f32 %v14133_v36, %v7421_v5  ;;  %v7368_v33 = vadd.f32 %v10051_v4, %v6730_v41 }
 0x64e   : > { %v7305_v3 = vpop.f32.mrf.mxu1 }
 0x64f   : > { %7399 = vst.msk [vmem:[#allocation3 + $0x40] sm:$0xff] %vm3965_vm7, %v7385_v11  ;;  %v7366_v13 = vadd.f32 %v7305_v3, %v6722_v57  ;;  %v7442_v61 = vmax.f32 %v7435_v62, 0.0 }
 0x650   : > { %v10054_v40 = vpop.f32.mrf.mxu1 }
 0x651   : > { %v7386_v48 = vmax.f32 %v7366_v13, %v7368_v33  ;;  %v9287_v18 = vpack.c.bf16 %v7442_v61, %v7442_v61  ;;  %v7371_v6 = vadd.f32 %v10054_v40, %v6743_v45 }
 0x652   : > { %v7408_v51 = vld [vmem:[#allocation3 + $0x30] ss:$2 sm:$0xff]  ;;  %v7415_v43 = vld [vmem:[#allocation3 + $0x31] ss:$2 sm:$0xff]  ;;  %v7318_v42 = vpop.f32.mrf.mxu1 }
 0x653   : > { %v7422_v58 = vmax.f32 %v7408_v51, %v7415_v43  ;;  %7400 = vst.msk [vmem:[#allocation3 + $0x48] sm:$0xff] %vm3965_vm7, %v7386_v48  ;;  %v7369_v21 = vadd.f32 %v7318_v42, %v6735_v14  ;;  %v14192_v10 = vld [vmem:[#allocation4 + $0x24] sm:$0xf] }
 0x654   : > { %7479 = vst.msk [vmem:[#allocation4 + $0x28] sm:$0xf] %vm5195_vm10, %v9287_v18  ;;  %v10055_v7 = vpop.f32.mrf.mxu1  ;;  %v7581_v41 = vld [vmem:[#allocation4 + $0x24] sm:$0xe] }
 0x655   : > { %v7387_v22 = vmax.f32 %v7369_v21, %v7371_v6  ;;  %v7436_v19 = vadd.f32 %v14133_v36, %v7422_v58  ;;  %v7372_v59 = vadd.f32 %v10055_v7, %v6746_v17 }
 0x656   : > { %v7321_v28 = vpop.f32.mrf.mxu1 }
 0x657   : > { %7401 = vst.msk [vmem:[#allocation3 + $0x50] sm:$0xff] %vm3965_vm7, %v7387_v22  ;;  %v7370_v55 = vadd.f32 %v7321_v28, %v6738_v37  ;;  %v7443_v9 = vmax.f32 %v7436_v19, 0.0  ;;  %v10443_v19 = vld [vmem:[%s14445_s5 + $0x100] sm:$0xff]  }
 0x658   : > { %v10058_v16 = vpop.f32.mrf.mxu1  ;;  %8141 = vmatpush2.bf16.msra.mxu0 %v10443_v19 }
 0x659   : > { %v7388_v2 = vmax.f32 %v7370_v55, %v7372_v59  ;;  %v9288_v60 = vpack.c.bf16 %v7443_v9, %v7443_v9  ;;  %v7375_v54 = vadd.f32 %v10058_v16, %v6759_v15 }
 0x65a   : > { %v7409_v12 = vld [vmem:[#allocation3 + $0x40] ss:$2 sm:$0xff]  ;;  %v7416_v24 = vld [vmem:[#allocation3 + $0x41] ss:$2 sm:$0xff]  ;;  %v7334_v35 = vpop.f32.mrf.mxu1 }
 0x65b   : > { %v7423_v31 = vmax.f32 %v7409_v12, %v7416_v24  ;;  %7402 = vst.msk [vmem:[#allocation3 + $0x58] sm:$0xff] %vm3965_vm7, %v7388_v2  ;;  %v7373_v47 = vadd.f32 %v7334_v35, %v6751_v32  ;;  %v7487_v8 = vld [vmem:[#allocation4 + $0x28] sm:$0xf]  ;;  %v7485_v2 = vld [vmem:[#allocation4 + $0x20] sm:$0xf] }
 0x65c   : > { %7480 = vst.msk [vmem:[#allocation4 + $0x2c] sm:$0xf] %vm5195_vm10, %v9288_v60  ;;  %v10059_v46 = vpop.f32.mrf.mxu1  ;;  %v14197_v5 = vcombine.low %v14192_v10, %v7487_v8  ;;  %v9100_v62 = vcombine.low %v7581_v41, %v7487_v8  ;;  %v7939_v37 = vld [vmem:[#allocation4 + $0x28] sm:$0xe]  ;;  %v14226_v12 = vcombine.low %v7485_v2, %v14192_v10  ;;  %v7938_v35 = vld [vmem:[#allocation4 + $0x3c] sm:$0x1] }
 0x65d   : > { %v7437_v27 = vadd.f32 %v14133_v36, %v7423_v31  ;;  %v7389_v26 = vmax.f32 %v7373_v47, %v7375_v54  ;;  %v7376_v30 = vadd.f32 %v10059_v46, %v6762_v0  ;;  %v7934_v60 = vld [vmem:[#allocation4 + $0x28] sm:$0xf] }
 0x65e   : > { %v7337_v50 = vpop.f32.mrf.mxu1  ;;  %v7593_v57 = vshll.u32 %v14197_v5, 16  ;;  %v7622_v18 = vrot.slane %v9100_v62, 1  ;;  %v7591_v43 = vshrl.u32 %v14197_v5, 16  ;;  %v7511_v20 = vshll.u32 %v14226_v12, 16 }
 0x65f   : > { %v7444_v53 = vmax.f32 %v7437_v27, 0.0  ;;  %7403 = vst.msk [vmem:[#allocation3 + $0x60] sm:$0xff] %vm3965_vm7, %v7389_v26  ;;  %v7374_v63 = vadd.f32 %v7337_v50, %v6754_v39 }
 0x660   : > { %v7595_v48 = vrot.slane %v7593_v57, 1 }
 0x661   : > { %v9289_v38 = vpack.c.bf16 %v7444_v53, %v7444_v53  ;;  %v7390_v25 = vmax.f32 %v7374_v63, %v7376_v30 }
 0x662   : > { %v7410_v49 = vld [vmem:[#allocation3 + $0x50] ss:$2 sm:$0xff]  ;;  %v7417_v1 = vld [vmem:[#allocation3 + $0x51] ss:$2 sm:$0xff]  ;;  %v7596_v7 = vor.u32 %v7595_v48, %v7591_v43 }
 0x663   : > { %7481 = vst.msk [vmem:[#allocation4 + $0x30] sm:$0xf] %vm5195_vm10, %v9289_v38  ;;  %v7424_v44 = vmax.f32 %v7410_v49, %v7417_v1  ;;  %v7488_v3 = vld [vmem:[#allocation4 + $0x2c] sm:$0xf]  ;;  %v7509_v49 = vshrl.u32 %v14226_v12, 16 }
 0x664   : > { %7404 = vst.msk [vmem:[#allocation3 + $0x68] sm:$0xff] %vm3965_vm7, %v7390_v25  ;;  %v7935_v58 = vld [vmem:[#allocation4 + $0x2c] sm:$0xf]  ;;  %v14228_v31 = vcombine.low %v7487_v8, %v7488_v3  ;;  %v7513_v25 = vrot.slane %v7511_v20, 1 }
 0x665   : > { %v7438_v4 = vadd.f32 %v14133_v36, %v7424_v44  ;;  %v9160_v28 = vcombine.low %v7939_v37, %v7935_v58  ;;  %v9157_v24 = vcombine.low %v7934_v60, %v7935_v58 }
 0x666   : > { %v7516_v27 = vshll.u32 %v14228_v31, 16 }
 0x667   : > { %v7445_v11 = vmax.f32 %v7438_v4, 0.0  ;;  %v7989_v15 = vrot.slane %v9160_v28, 1  ;;  %v7960_v56 = vshll.u32 %v9157_v24, 16 }
 0x669   : > { %v9290_v33 = vpack.c.bf16 %v7445_v11, %v7445_v11  ;;  %v7962_v1 = vrot.slane %v7960_v56, 1  ;;  %v7518_v11 = vrot.slane %v7516_v27, 1  ;;  %v7541_v56 = vrot.slane %v14228_v31, 1 }
 0x66a   : > { %v14201_v40 = vld [vmem:[#allocation4 + $0x30] sm:$0xf] }
 0x66b   : > { %v7411_v13 = vld [vmem:[#allocation3 + $0x60] ss:$2 sm:$0xff]  ;;  %v7418_v61 = vld [vmem:[#allocation3 + $0x61] ss:$2 sm:$0xff]  ;;  %v14204_v14 = vcombine.low %v7488_v3, %v14201_v40  ;;  %7482 = vst.msk [vmem:[#allocation4 + $0x34] sm:$0xf] %vm5195_vm10, %v9290_v33 }
 0x66c   : > { %v7425_v45 = vmax.f32 %v7411_v13, %v7418_v61  ;;  %v7958_v3 = vshrl.u32 %v9157_v24, 16  ;;  %v7514_v61 = vor.u32 %v7513_v25, %v7509_v49 }
 0x66d   : > { %v7623_v51 = vrot.slane %v14204_v14, 1  ;;  %v7598_v42 = vshll.u32 %v14204_v14, 16  ;;  %v7602_v52 = vshrl.u32 %v14204_v14, 16 }
 0x66e   : > { %v7439_v6 = vadd.f32 %v14133_v36, %v7425_v45  ;;  %v7963_v45 = vor.u32 %v7962_v1, %v7958_v3  ;;  %v7519_v48 = vsel %vm3731_vm6, %v7514_v61, %v7518_v11  ;;  %v10458_v3 = vld [vmem:[%s14447_s7 + $0x18] sm:$0xff]   ;;  %v10461_v61 = vld [vmem:[%s14447_s7] sm:$0xff]  }
 0x66f   : > { %v7624_v21 = vsel %vm3879_vm5, %v7622_v18, %v7623_v51  ;;  %v7600_v17 = vrot.slane %v7598_v42, 1  ;;  %v7520_v18 = vshrl.u32 %v14228_v31, 16 }
 0x670   : > { %v7446_v22 = vmax.f32 %v7439_v6, 0.0  ;;  %9137 = vmatprep.mubr.msk.bf16.mxu1 %vm3965_vm7, %v7624_v21 }
 0x671   : > { %v7601_v59 = vsel %vm3731_vm6, %v7596_v7, %v7600_v17  ;;  %v7604_v63 = vor.u32 %v7602_v52, %v7600_v17  ;;  %v7522_v6 = vor.u32 %v7520_v18, %v7518_v11  ;;  %v10447_v52 = vld [vmem:[%s14445_s5 + $0x8] sm:$0xff]   ;;  %v10454_v11 = vld [vmem:[%s14447_s7 + $0x38] sm:$0xff]  }
 0x672   : > { %v9291_v55 = vpack.c.bf16 %v7446_v22, %v7446_v22  ;;  %7613 = vrot.lane.b32.xlu1 %v7601_v59, %s10551_s27  ;;  %v10422_v36 = vld [vmem:[#allocation4 + $0x30] sm:$0xff]   ;;  %v10440_v59 = vld [vmem:[%s14445_s5 + $0x38] sm:$0xff]  }
 0x673   : > { %v14218_v9 = vld [vmem:[#allocation4 + $0x34] sm:$0xf]  ;;  %v7990_v23 = vrot.slane %v10422_v36, 1  ;;  %v7965_v50 = vshll.u32 %v10422_v36, 16  ;;  %v7969_v42 = vshrl.u32 %v10422_v36, 16 }
 0x674   : > { %7483 = vst.msk [vmem:[#allocation4 + $0x38] sm:$0xf] %vm5195_vm10, %v9291_v55  ;;  %v9155_v16 = vcombine.low %v14201_v40, %v14218_v9  ;;  %v7490_v47 = vld [vmem:[#allocation4 + $0x34] sm:$0x1] }
 0x675   : > { %v7991_v32 = vsel %vm3879_vm5, %v7989_v15, %v7990_v23  ;;  %v14243_v26 = vcombine.low %v14201_v40, %v7490_v47  ;;  %v7967_v33 = vrot.slane %v7965_v50, 1  ;;  %v10441_v15 = vld [vmem:[%s14445_s5 + $0x30] sm:$0xff]  }
 0x676   : > { %9197 = vmatprep.mubr.msk.bf16.mxu0 %vm3965_vm7, %v7991_v32  ;;  %v10445_v32 = vld [vmem:[%s14445_s5 + $0x18] sm:$0xff]  }
 0x677   : > { %v7524_v62 = vshll.u32 %v14243_v26, 16  ;;  %v7968_v43 = vsel %vm3731_vm6, %v7963_v45, %v7967_v33  ;;  %v7971_v21 = vor.u32 %v7969_v42, %v7967_v33  ;;  %v7528_v37 = vshrl.u32 %v14243_v26, 16  ;;  %v10459_v33 = vld [vmem:[%s14447_s7 + $0x10] sm:$0xff]  }
 0x678   : > { %v7543_v49 = vrot.slane %v14243_v26, 1  ;;  %v9093_v26 = vcombine.low %v14201_v40, %v14201_v40  ;;  %v10456_v40 = vld [vmem:[%s14447_s7 + $0x28] sm:$0xff]  }
 0x67b   : > { %v7580_v54 = vld [vmem:[#allocation4 + $0x38] sm:$0x1] }
 0x67c   : > { %v14230_v46 = vld [vmem:[#allocation4 + $0x38] sm:$0xf]  ;;  %v14233_v34 = vcombine.low %v14218_v9, %v7580_v54  ;;  %v7491_v54 = vld [vmem:[#allocation4 + $0x20] sm:$0xe] }
 0x67d   : > { %v14237_v0 = vcombine.low %v14230_v46, %v7938_v35  ;;  %v10446_v35 = vld [vmem:[%s14445_s5 + $0x10] sm:$0xff]   ;;  %v9095_v47 = vcombine.low %v7491_v54, %v14192_v10 }
 0x67e   : > { %v7606_v39 = vshll.u32 %v14233_v34, 16  ;;  %v7625_v53 = vrot.slane %v14233_v34, 1  ;;  %v7610_v38 = vshrl.u32 %v14233_v34, 16  ;;  %v9098_v34 = vcombine.low %v14218_v9, %v14218_v9  ;;  %v10451_v9 = vld [vmem:[%s14445_s5 + $0x50] sm:$0xff]  }
 0x67f   : > { %v7992_v30 = vrot.slane %v14237_v0, 1  ;;  %v7973_v13 = vshll.u32 %v14237_v0, 16  ;;  %v7977_v22 = vshrl.u32 %v14237_v0, 16  ;;  %v7540_v10 = vrot.slane %v9095_v47, 1  ;;  %v10452_v0 = vld [vmem:[%s14445_s5 + $0x48] sm:$0xff]  }
 0x680   : > { %v7608_v8 = vrot.slane %v7606_v39, 1  ;;  %v7626_v44 = vsel %vm3879_vm5, %v7623_v51, %v7625_v53  ;;  %v7526_v51 = vrot.slane %v7524_v62, 1  ;;  %v10457_v62 = vld [vmem:[%s14447_s7 + $0x20] sm:$0xff]  }
 0x681   : > { %v14255_v4 = vsel %vm3879_vm5, %v7990_v23, %v7992_v30  ;;  %v7975_v58 = vrot.slane %v7973_v13, 1  ;;  %v10442_v23 = vld [vmem:[%s14445_s5 + $0x28] sm:$0xff]   ;;  %v7542_v27 = vsel %vm3879_vm5, %v7540_v10, %v7541_v56 }
 0x682   : > { %v7609_v41 = vsel %vm3731_vm6, %v7604_v63, %v7608_v8  ;;  %v7612_v57 = vor.u32 %v7610_v38, %v7608_v8  ;;  %v7527_v7 = vsel %vm3731_vm6, %v7522_v6, %v7526_v51  ;;  %v7530_v19 = vor.u32 %v7528_v37, %v7526_v51  ;;  %v10450_v8 = vld [vmem:[%s14445_s5 + $0x58] sm:$0xff]   ;;  %v10460_v13 = vld [vmem:[%s14447_s7 + $0x8] sm:$0xff]  }
 0x683   : > { %7615 = vrot.lane.b32.xlu0 %v7609_v41, %s10551_s27  ;;  %v7976_v17 = vsel %vm3731_vm6, %v7971_v21, %v7975_v58  ;;  %v7979_v28 = vor.u32 %v7977_v22, %v7975_v58 }
 0x684   : > { %7617 = vrot.lane.b32.xlu1 %v7612_v57, %s10551_s27 }
 0x687   : > { %7531 = vrot.lane.b32.xlu0 %v7519_v48, %s10551_s27 }
 0x688   : > { %7980 = vrot.lane.b32.xlu1 %v7968_v43, %s10551_s27 }
 0x68b   : > { %7533 = vrot.lane.b32.xlu0 %v7527_v7, %s10551_s27 }
 0x68c   : > { %7982 = vrot.lane.b32.xlu1 %v7976_v17, %s10551_s27 }
 0x68f   : > { %7535 = vrot.lane.b32.xlu0 %v7530_v19, %s10551_s27 }
 0x690   : > { %7984 = vrot.lane.b32.xlu1 %v7979_v28, %s10551_s27  ;;  %s8322_s27 = scalar_lea.sflag [#allocation7], %s326_s21 }
 0x6e4   : > { %v7614_v55 = vpop.permute.xlu1 %7613 }
 0x6e5   : > { %v7628_v36 = vsel %vm3965_vm7, %v14197_v5, %v7614_v55  ;;  %v10444_v5 = vld [vmem:[%s14445_s5 + $0x20] sm:$0xff]  }
 0x6e6   : > { %7775 = vmatmul.mubr.bf16.vlgmr.msra.gmra.mxu1 %v7628_v36 }
 0x6e7   : > { %7879 = vmatpush1.bf16.msra.mxu1 %v10440_v59  ;;  %9138 = vmatprep.mubr.msk.bf16.mxu1 %vm3965_vm7, %v7626_v44  ;;  %v7544_v44 = vsel %vm3879_vm5, %v7541_v56, %v7543_v49 }
 0x6e8   : > { %7880 = vmatprep.subr.bf16.mxu1 %v14790_v29 }
 0x6eb   : > { %7881 = vmatpush1.bf16.msra.mxu1 %v10441_v15 }
 0x6ec   : > { %7882 = vmatprep.subr.bf16.mxu1 %v14790_v29 }
 0x6ef   : > { %7883 = vmatpush1.bf16.msra.mxu1 %v10442_v23 }
 0x6f0   : > { %7884 = vmatprep.subr.bf16.mxu1 %v14790_v29 }
 0x6f3   : > { %7885 = vmatpush1.bf16.msra.mxu1 %v10444_v5 }
 0x6f4   : > { %7886 = vmatprep.subr.bf16.mxu1 %v14790_v29 }
 0x6f5   : > { %v7616_v2 = vpop.permute.xlu0 %7615 }
 0x6f6   : > { %v7631_v60 = vsel %vm3965_vm7, %v14204_v14, %v7616_v2  ;;  %v7618_v24 = vpop.permute.xlu1 %7617 }
 0x6f7   : > { %7783 = vmatmul.mubr.bf16.gmra.mxu1 %v7631_v60  ;;  %v7635_v39 = vsel %vm3965_vm7, %v9098_v34, %v7618_v24 }
 0x6f8   : > { %7887 = vmatpush1.bf16.msra.mxu1 %v10445_v32  ;;  %9139 = vmatprep.mubr.msk.bf16.mxu1 %vm3965_vm7, %v7625_v53  ;;  %v10449_v53 = vld [vmem:[%s14445_s5] sm:$0xff]  }
 0x6f9   : > { %7888 = vmatprep.subr.bf16.mxu1 %v14790_v29 }
 0x6fa   : > { %v7981_v20 = vpop.permute.xlu1 %7980 }
 0x6fb   : > { %v7995_v14 = vsel %vm3965_vm7, %v14228_v31, %v7981_v20 }
 0x6fc   : > { %7889 = vmatpush1.bf16.msra.mxu1 %v10446_v35  ;;  %8143 = vmatmul.mubr.bf16.vlgmr.msra.gmra.mxu0 %v7995_v14 }
 0x6fd   : > { %9198 = vmatprep.mubr.msk.bf16.mxu0 %vm3965_vm7, %v14255_v4  ;;  %7890 = vmatprep.subr.bf16.mxu1 %v14790_v29 }
 0x6fe   : > { %v7983_v50 = vpop.permute.xlu1 %7982 }
 0x6ff   : > { %7791 = vmatmul.mubr.bf16.gmra.mxu1 %v7635_v39  ;;  %v7999_v63 = vsel %vm3965_vm7, %v9155_v16, %v7983_v50  ;;  %v9156_v16 = vcombine.low %v14230_v46, %v14230_v46  ;;  %v7532_v46 = vpop.permute.xlu0 %7531 }
 0x700   : > { %7891 = vmatpush1.bf16.msra.mxu1 %v10447_v52  ;;  %9152 = vmatprep.mubr.msk.bf16.mxu1 %vm3965_vm7, %v7542_v27  ;;  %v7546_v1 = vsel %vm3965_vm7, %v14226_v12, %v7532_v46  ;;  %v10554_v12 = vmov 0.0   ;;  %v8174_v52 = vld [vmem:[%s14446_s6] sm:$0x1] }
 0x701   : > { %7892 = vmatprep.subr.bf16.mxu1 %v14790_v29 }
 0x702   : > { %v7985_v38 = vpop.permute.xlu1 %7984 }
 0x703   : > { %v8003_v25 = vsel %vm3965_vm7, %v9156_v16, %v7985_v38  ;;  %v7534_v4 = vpop.permute.xlu0 %7533 }
 0x704   : > { %7893 = vmatpush1.bf16.msra.mxu1 %v10449_v53  ;;  %8151 = vmatmul.mubr.bf16.gmra.mxu0 %v7999_v63  ;;  %v7549_v41 = vsel %vm3965_vm7, %v14228_v31, %v7534_v4  ;;  %v10455_v31 = vld [vmem:[%s14447_s7 + $0x30] sm:$0xff]  }
 0x705   : > { %9199 = vmatprep.mubr.msk.bf16.mxu0 %vm3965_vm7, %v7992_v30  ;;  %7902 = vmatprep.subr.bf16.mxu1 %v14790_v29  ;;  %v10453_v30 = vld [vmem:[%s14445_s5 + $0x40] sm:$0xff]   ;;  %v14806_v53 = vld [vmem:[#allocation35_spill] sm:$0xff] }
 0x706   : > { %v14807_v63 = vsub.s32 0, %v14806_v53 }
 0x708   : > { %7903 = vmatpush2.bf16.msra.mxu1 %v10450_v8  ;;  %v8182_v8 = vrot.slane %v8174_v52, %v14807_v63 }
 0x709   : > { %7904 = vmatprep.subr.bf16.mxu1 %v14790_v29 }
 0x70c   : > { %7905 = vmatpush2.bf16.msra.mxu1 %v10451_v9  ;;  %8159 = vmatmul.mubr.bf16.gmra.mxu0 %v8003_v25 }
 0x70d   : > { %7906 = vmatprep.subr.bf16.mxu1 %v14790_v29 }
 0x710   : > { %7907 = vmatpush2.bf16.msra.mxu1 %v10452_v0 }
 0x711   : > { %7908 = vmatprep.subr.bf16.mxu1 %v14790_v29  ;;  %v7536_v29 = vpop.permute.xlu0 %7535 }
 0x712   : > { %v7553_v57 = vsel %vm3965_vm7, %v9093_v26, %v7536_v29 }
 0x714   : > { %7909 = vmatpush2.bf16.msra.mxu1 %v10453_v30 }
 0x715   : > { %10060 = vmatprep.subr.bf16.mxu1 %v10554_v12 }
 0x717   : > { %7911 = vmatmul.mubr.bf16.vlgmr.msra.gmra.mxu1 %v7546_v1 }
 0x718   : > { %9153 = vmatprep.mubr.msk.bf16.mxu1 %vm3965_vm7, %v7544_v44  ;;  %10061 = vmatpush3.bf16.msra.mxu1 %v10454_v11 }
 0x719   : > { %10062 = vmatprep.subr.bf16.mxu1 %v10554_v12 }
 0x71c   : > { %10063 = vmatpush3.bf16.msra.mxu1 %v10455_v31 }
 0x71d   : > { %10064 = vmatprep.subr.bf16.mxu1 %v10554_v12 }
 0x71f   : > { %7919 = vmatmul.mubr.bf16.gmra.mxu1 %v7549_v41 }
 0x720   : > { %9154 = vmatprep.mubr.msk.bf16.mxu1 %vm3965_vm7, %v7543_v49  ;;  %10065 = vmatpush3.bf16.msra.mxu1 %v10456_v40 }
 0x721   : > { %10066 = vmatprep.subr.bf16.mxu1 %v10554_v12 }
 0x724   : > { %10067 = vmatpush3.bf16.msra.mxu1 %v10457_v62 }
 0x725   : > { %10068 = vmatprep.subr.bf16.mxu1 %v10554_v12 }
 0x727   : > { %7927 = vmatmul.mubr.bf16.gmra.mxu1 %v7553_v57 }
 0x728   : > { %10076 = vmatprep.mubr.msk.bf16.mxu1 %vm10555_vm12, %v10554_v12  ;;  %10069 = vmatpush3.bf16.msra.mxu1 %v10458_v3 }
 0x729   : > { %10070 = vmatprep.subr.bf16.mxu1 %v10554_v12 }
 0x72c   : > { %10071 = vmatpush3.bf16.msra.mxu1 %v10459_v33 }
 0x72d   : > { %10072 = vmatprep.subr.bf16.mxu1 %v10554_v12 }
 0x730   : > { %10073 = vmatpush3.bf16.msra.mxu1 %v10460_v13 }
 0x731   : > { %10074 = vmatprep.subr.bf16.mxu1 %v10554_v12 }
 0x734   : > { %10075 = vmatpush3.bf16.msra.mxu1 %v10461_v61 }
 0x7a6   : > { %v7776_v45 = vpop.f32.mrf.mxu1 }
 0x7a8   : > { %v7778_v48 = vpop.f32.mrf.mxu1 }
 0x7aa   : > { %v7779_v18 = vpop.f32.mrf.mxu1 }
 0x7ac   : > { %v7781_v51 = vpop.f32.mrf.mxu1 }
 0x7b7   : > { %v7784_v43 = vpop.f32.mrf.mxu1 }
 0x7b9   : > { %v7786_v42 = vpop.f32.mrf.mxu1 }
 0x7bb   : > { %v7787_v58 = vpop.f32.mrf.mxu1 }
 0x7bc   : > { %v8144_v6 = vpop.f32.mrf.mxu0 }
 0x7bd   : > { %v7789_v21 = vpop.f32.mrf.mxu1 }
 0x7be   : > { %v8146_v7 = vpop.f32.mrf.mxu0 }
 0x7bf   : > { %v7792_v17 = vpop.f32.mrf.mxu1 }
 0x7c0   : > { %v8147_v37 = vpop.f32.mrf.mxu0 }
 0x7c1   : > { %v7793_v22 = vpop.f32.mrf.mxu1 }
 0x7c2   : > { %v8149_v19 = vpop.f32.mrf.mxu0 }
 0x7c3   : > { %v7794_v28 = vpop.f32.mrf.mxu1 }
 0x7c4   : > { %v8152_v59 = vpop.f32.mrf.mxu0 }
 0x7c5   : > { %v7795_v55 = vpop.f32.mrf.mxu1 }
 0x7c6   : > { %v8154_v36 = vpop.f32.mrf.mxu0 }
 0x7c8   : > { %v8155_v15 = vpop.f32.mrf.mxu0 }
 0x7ca   : > { %v8157_v23 = vpop.f32.mrf.mxu0 }
 0x7cc   : > { %v8160_v5 = vpop.f32.mrf.mxu0 }
 0x7ce   : > { %v8161_v32 = vpop.f32.mrf.mxu0 }
 0x7d0   : > { %v8162_v2 = vpop.f32.mrf.mxu0 }
 0x7d2   : > { %v8163_v60 = vpop.f32.mrf.mxu0 }
 0x7d7   : > { %v7912_v24 = vpop.f32.mrf.mxu1 }
 0x7d8   : > { %v7913_v54 = vadd.f32 %v7912_v24, %v7776_v45 }
 0x7d9   : > { %v7914_v35 = vpop.f32.mrf.mxu1 }
 0x7da   : > { %v8165_v56 = vadd.f32 %v8144_v6, %v7913_v54 }
 0x7db   : > { %v7915_v47 = vpop.f32.mrf.mxu1 }
 0x7dc   : > { %v7916_v20 = vadd.f32 %v7915_v47, %v7779_v18 }
 0x7dd   : > { %v7917_v14 = vpop.f32.mrf.mxu1 }
 0x7de   : > { %v8166_v34 = vadd.f32 %v8147_v37, %v7916_v20 }
 0x7df   : > { %v7920_v10 = vpop.f32.mrf.mxu1 }
 0x7e0   : > { %v8169_v39 = vmax.f32 %v8165_v56, %v8166_v34  ;;  %v7921_v38 = vadd.f32 %v7920_v10, %v7784_v43 }
 0x7e1   : > { %v7922_v27 = vpop.f32.mrf.mxu1 }
 0x7e2   : > { %v8171_v50 = vrot.slane %v8169_v39, 1  ;;  %v8167_v46 = vadd.f32 %v8152_v59, %v7921_v38 }
 0x7e3   : > { %v7923_v9 = vpop.f32.mrf.mxu1 }
 0x7e4   : > { %v8173_v16 = vmax.f32 %v8169_v39, %v8171_v50  ;;  %v7924_v25 = vadd.f32 %v7923_v9, %v7787_v58  ;;  %v9200_v58 = vld [vmem:[%s14448_s8] ss:$0 sm:$0xff] }
 0x7e5   : > { %v7925_v0 = vpop.f32.mrf.mxu1 }
 0x7e6   : > { %v8184_v30 = vadd.f32 %v8182_v8, %v8173_v16  ;;  %v8168_v49 = vadd.f32 %v8155_v15, %v7924_v25  ;;  %v8175_v29 = vadd.f32 %v8174_v52, %v8173_v16 }
 0x7e7   : > { %v7928_v1 = vpop.f32.mrf.mxu1 }
 0x7e8   : > { %v8185_v44 = vmax.f32 %v8184_v30, 0.0  ;;  %v8190_v4 = vmax.f32 %v8167_v46, %v8168_v49  ;;  %v8176_v40 = vmax.f32 %v8175_v29, 0.0 }
 0x7e9   : > { %v7929_v41 = vpop.f32.mrf.mxu1 }
 0x7ea   : > { %v8192_v26 = vrot.slane %v8190_v4, 1  ;;  %v8187_v12 = vrot.slane %v8185_v44, 2 }
 0x7eb   : > { %v7930_v57 = vpop.f32.mrf.mxu1 }
 0x7ec   : > { %v8194_v11 = vmax.f32 %v8190_v4, %v8192_v26  ;;  %v8189_v33 = vadd.f32 %v8187_v12, %v8176_v40 }
 0x7ed   : > { %v7931_v31 = vpop.f32.mrf.mxu1 }
 0x7ee   : > { %v8195_v62 = vadd.f32 %v8194_v11, %v8174_v52  ;;  %v8198_v3 = vadd.f32 %v8194_v11, %v8182_v8 }
 0x7f0   : > { %v8196_v13 = vmax.f32 %v8195_v62, 0.0  ;;  %v8199_v61 = vmax.f32 %v8198_v3, 0.0 }
 0x7f2   : > { %v8197_v45 = vadd.f32 %v8196_v13, %v8189_v33  ;;  %v8201_v48 = vrot.slane %v8199_v61, 2 }
 0x7f4   : > { %v8203_v18 = vadd.f32 %v8201_v48, %v8197_v45 }
 0x7f6   : > { %v8204_v51 = vmul.f32 0.25, %v8203_v18 }
 0x7f8   : > { %8205 = vst [vmem:[#allocation5 + $0x1] sm:$0x1] %v8204_v51 }
 0x7ff   : > { %v8206_v43 = vld [vmem:[#allocation5] sm:$0x3] }
 0x800   : > { %v8207_v42 = vpack.c.bf16 %v8206_v43, %v8206_v43 }
 0x802   : > { %10077 = vmatmul.mubr.bf16.vlgmr.msra.gmra.mxu1 %v8207_v42 }
 0x8c2   : > { %v8313_v6 = vpop.f32.mrf.mxu1 }
 0x8c3   : > { %v8314_v21 = vadd.f32 %v9200_v58, %v8313_v6 }
 0x8c4   : > { %v10078_v7 = vpop.f32.mrf.mxu1 }
 0x8c5   : > { %8320 = vst.msk [vmem:[%s328_s24] sm:$0x3] %vm8319_vm13, %v8314_v21 }
 0x8c6   : > { %v8316_v17 = vpop.f32.mrf.mxu1 }
 0x8c7   : > { %10501 = shalt.err (!%p10498_p3)
}
 0x8c8   : > { %s10502_s22 = scalar_lea.hbm %s14399_s14, 32  ;;  %s10506_s24 = scalar_lea.hbm %s14449_s9, 64 }
 0x8c9   : > { %p10503_p4 = scmp.ne.s32.totalorder %s14399_s14, %s10502_s22  ;;  %p10507_p9 = scmp.lt.s32.totalorder %s14399_s14, %s14449_s9 }
 0x8ca   : > { %p10508_p10 = scmp.lt.s32.totalorder %s10506_s24, %s10502_s22 }
 0x8cb   : > { %p10504_p7 = pnand %p10503_p4, %p10645_p5 }
 0x8cc   : > { %p10509_p11 = por %p10508_p10, %p10507_p9 }
 0x8cd   : > { %p10505_p8 = pneg %p10504_p7 }
 0x8cf   : > { %p10510_p12 = pnand %p10509_p11, %p10505_p8 }
 0x8d1   : > { %10513 = shalt.err (!%p10510_p12)
}
 0x8d2   : > { %10080 = dma.vmem_to_hbm [thread:$0]  (%p10645_p5), %s14401_s25, 32, %s14399_s14, %s8322_s27   ;;  %v10079_v37 = vpop.f32.mrf.mxu1 }
 0x8d3 PF: > { %p10086_p13 = scmp.ge.s32.totalorder %s10548_s12, 2  ;;  %s8347_s13 = sand.u32 1, %s10536_s30  }
 0x8d4   : > { %s8348_s28 = scalar_lea.sflag [#allocation7], %s8347_s13 }
 0x8d5   : > { %p10083_p0 = pnand %p10086_p13, %p10649_p6 }
 0x8d7   : > { %p10084_p1 = pneg %p10083_p0 }
 0x8d9   : > { %10531 = dma.done.wait (%p10084_p1), %s8348_s28, 32  }
 0x8da   : > { %10533 = vsyncadd (%p10084_p1), %s8348_s28, 4294967264  ;;  %p19_p2 = scmp.ge.s32.totalorder %s10632_s15, 4   ;;  %s14808_s30 = smov %s10540_s10 }
 0x8db   : > { %s14809_s10 = smov %s10544_s11  ;;  %s14810_s11 = smov %s10643_s18 }
 0x8dc   : > { %s14811_s12 = smov %s10632_s15  ;;  %21 = sbr.rel (!%p19_p2) target bundleno = 3 (0x3), region = 109 }
 0x8e1   :  { %8353 = vsyncpa [#allocation7], 1 }
 0x8e2   :  { %8355 = vsyncpa [#allocation7 + $0x1], 1 }

</bundles_post_ra>
